<compile_context>
chip_gen: v7x
topology: tpu7x:2x2x1
jax: 0.10.0
libtpu: 0.0.40
codegen_flags: <defaults>
</compile_context>

<pallas_src>
from functools import partial

import jax
import jax.numpy as jnp
from jax import lax
from jax.experimental import pallas as pl
from jax.experimental.pallas import tpu as pltpu


def _round_up(x, m):
    return (x + m - 1) // m * m


def _pick_tile(n, candidates=(512, 256, 128)):
    for c in candidates:
        if n % c == 0:
            return c
    return n  # fall back to the full (unblocked) extent


def _heads_per_block(num_heads, head_dim):
    # Group heads per grid step so attention in/out blocks stay lane-dense.
    g = max(1, 128 // head_dim)
    if num_heads % g or (g * head_dim) % 128:
        g = num_heads  # fall back: blocks equal the full array dims (always legal)
    return g


# --------------------- fused dual-group (patch/det) linear -------------------

def _dual_linear_kernel(gid_ref, x_ref, w_ref, b_ref, o_ref):
    # x: (tm, K) bf16, w: (K, tn) bf16, b: (1, tn) f32 -> o: (tm, tn)
    del gid_ref  # only consumed by the index_maps
    o_ref[...] = (jnp.dot(x_ref[...], w_ref[...],
                          preferred_element_type=jnp.float32)
                  + b_ref[...]).astype(o_ref.dtype)


def fused_dual_linear(x2d, gid, w, b, *, out_dtype, tm, tn=512):
    """x2d: (M, K) bf16 with M % tm == 0 and every tm-row tile inside one token
    group; gid: (M//tm,) int32 weight-group id per row tile; w: (2, K, Nout) bf16;
    b: (2, 1, Nout) f32 -> (M, Nout) out_dtype."""
    M, K = x2d.shape
    _, Kw, Nout = w.shape
    assert K == Kw and M % tm == 0, (M, K, Kw, tm)
    tn = _pick_tile(Nout, (tn, 512, 256, 128))

    # K collapsed: full-K weight block, no reduction axis / accumulator.  Row-tile
    # axis innermost -> weight block index (g[i], 0, j) is constant across the
    # consecutive row tiles of a group, so Pallas skips re-DMA of the weights.
    # TODO(synk): if DMA is still exposed on v5e, deepen the weight stream with
    # pipeline_mode=pl.Buffered(3) on the weight BlockSpec.
    grid = (Nout // tn, M // tm)

    cost = pl.CostEstimate(
        flops=2 * M * K * Nout,
        transcendentals=0,
        bytes_accessed=(x2d.size * 2 + w.size * 2 + b.size * 4
                        + M * Nout * jnp.dtype(out_dtype).itemsize),
    )
    return pl.pallas_call(
        _dual_linear_kernel,
        out_shape=jax.ShapeDtypeStruct((M, Nout), out_dtype),
        grid_spec=pltpu.PrefetchScalarGridSpec(
            num_scalar_prefetch=1,
            grid=grid,
            in_specs=[
                pl.BlockSpec((tm, K), lambda j, i, g: (i, 0)),
                pl.BlockSpec((None, K, tn), lambda j, i, g: (g[i], 0, j)),
                pl.BlockSpec((None, 1, tn), lambda j, i, g: (g[i], 0, j)),
            ],
            out_specs=pl.BlockSpec((tm, tn), lambda j, i, g: (i, j)),
        ),
        compiler_params=pltpu.CompilerParams(
            dimension_semantics=("parallel", "parallel"),
        ),
        cost_estimate=cost,
    )(gid, x2d, w, b)


# ------------------------------- attention -----------------------------------

def _attn_kernel(qkv_ref, o_ref, *, head_dim, heads_per_block,
                 n_patch, n_patch_pad, n_det, n_tok):
    hd, G = head_dim, heads_per_block
    w = G * hd
    # The G heads of this grid step sit in one contiguous [q | k | v] block; all
    # slices below are 128-lane aligned (w is a multiple of 128 or the full dim).
    q_all = qkv_ref[:, 0 * w:1 * w]
    k_all = qkv_ref[:, 1 * w:2 * w]
    v_all = qkv_ref[:, 2 * w:3 * w]

    # Mask padded key positions out of the softmax (only if padding exists).
    key_bias = None
    if n_patch_pad != n_patch or n_patch_pad + n_det != n_tok:
        kidx = lax.broadcasted_iota(jnp.int32, (1, n_tok), 1)
        valid = (kidx < n_patch) | ((kidx >= n_patch_pad)
                                    & (kidx < n_patch_pad + n_det))
        key_bias = jnp.where(valid, 0.0, -1e30)

    col = lax.broadcasted_iota(jnp.int32, (1, w), 1) if G > 1 else None
    o_acc = None
    for g in range(G):
        if G > 1:
            # Column mask for head g: avoids sub-128-lane slicing; the zeroed
            # columns contract to zero on the MXU, so per-head math stays exact.
            head_cols = (col >= g * hd) & (col < (g + 1) * hd)
            q_g = jnp.where(head_cols, q_all, jnp.zeros_like(q_all))
        else:
            q_g = q_all
        # Softmax scale is already folded into the q weights/bias.
        s = lax.dot_general(q_g, k_all, (((1,), (1,)), ((), ())),
                            preferred_element_type=jnp.float32)
        if key_bias is not None:
            s = s + key_bias
        s = s - jnp.max(s, axis=-1, keepdims=True)
        p = jnp.exp(s)
        p = p * pl.reciprocal(jnp.sum(p, axis=-1, keepdims=True), approx=True)
        o_g = jnp.dot(p.astype(v_all.dtype), v_all,
                      preferred_element_type=jnp.float32)
        if G > 1:
            o_g = jnp.where(head_cols, o_g, 0.0)
        o_acc = o_g if o_acc is None else o_acc + o_g
    o_ref[...] = o_acc.astype(o_ref.dtype)


def pallas_attention(qkv, *, num_heads, head_dim, n_patch, n_patch_pad, n_det):
    """qkv: (B, Npad, 3*H*hd) bf16 with per-head-group [q|k|v] column layout
    -> (B, Npad, H*hd) bf16 already in the final head-major layout."""
    B, Npad, _ = qkv.shape
    H, hd = num_heads, head_dim
    ahd = H * hd
    G = _heads_per_block(H, hd)

    cost = pl.CostEstimate(
        flops=4 * B * H * Npad * Npad * hd,
        transcendentals=B * H * Npad * Npad,
        bytes_accessed=qkv.size * 2 + B * Npad * ahd * 2,
    )
    # TODO(synk): for long sequences (and v7x's 64 MiB VMEM) switch to an
    # online-softmax (flash) loop over K/V tiles instead of materializing the full
    # (Npad, Npad) score matrix.
    return pl.pallas_call(
        partial(_attn_kernel, head_dim=hd, heads_per_block=G,
                n_patch=n_patch, n_patch_pad=n_patch_pad, n_det=n_det,
                n_tok=Npad),
        out_shape=jax.ShapeDtypeStruct((B, Npad, ahd), jnp.bfloat16),
        grid=(B, H // G),
        in_specs=[pl.BlockSpec((None, Npad, 3 * G * hd), lambda b, h: (b, 0, h))],
        out_specs=pl.BlockSpec((None, Npad, G * hd), lambda b, h: (b, 0, h)),
        compiler_params=pltpu.CompilerParams(
            dimension_semantics=("parallel", "parallel"),
        ),
        cost_estimate=cost,
    )(qkv)


# ------------------------------ module glue ----------------------------------

def init_attention_sep_params(key, dim, num_heads, qkv_bias=True):
    head_dim = dim // num_heads
    ahd = head_dim * num_heads
    ks = jax.random.split(key, 10)

    def init(k, shape, fan_in):
        bound = 1.0 / (fan_in ** 0.5)
        return jax.random.uniform(k, shape, jnp.float32, -bound, bound)

    return dict(
        qkv_patch_w=init(ks[0], (dim, 3 * ahd), dim),
        qkv_det_w=init(ks[1], (dim, 3 * ahd), dim),
        q_bias_patch=init(ks[2], (ahd,), dim) if qkv_bias else None,
        v_bias_patch=init(ks[3], (ahd,), dim) if qkv_bias else None,
        q_bias_det=init(ks[4], (ahd,), dim) if qkv_bias else None,
        v_bias_det=init(ks[5], (ahd,), dim) if qkv_bias else None,
        proj_patch_w=init(ks[6], (ahd, dim), ahd),
        proj_patch_b=init(ks[7], (dim,), ahd),
        proj_det_w=init(ks[8], (ahd, dim), ahd),
        proj_det_b=init(ks[9], (dim,), ahd),
    )


@partial(jax.jit, static_argnames=("num_heads", "num_det_tokens", "qk_scale",
                                   "row_tile"))
def attention_sep_forward(params, x, *, num_heads, num_det_tokens,
                          qk_scale=None, row_tile=256):
    B, N, C = x.shape
    ahd = params["proj_patch_w"].shape[0]
    H = num_heads
    hd = ahd // H
    scale = qk_scale if qk_scale is not None else hd ** (-0.5)
    Np = N - num_det_tokens
    Nd = num_det_tokens

    # --- row-tile / padding geometry -----------------------------------------
    # Each tm-row tile of the flattened activations must lie fully inside one token
    # group.  Rather than shrinking tm to gcd(Np, Nd), pad each group (per batch)
    # to a multiple of tm; pad keys are masked in attention and pad rows dropped.
    tm = min(row_tile, _round_up(max(Np, Nd), 8))
    Np_pad, Nd_pad = _round_up(Np, tm), _round_up(Nd, tm)
    Npad = Np_pad + Nd_pad
    G = _heads_per_block(H, hd)

    # --- parameter prep (cheap, handled by XLA around the kernels) -----------
    zeros = jnp.zeros((ahd,), jnp.float32)
    if params["q_bias_patch"] is not None:
        # qkv bias is [q_bias, 0, v_bias] (k has no bias); fold softmax scale
        # into the q section, in f32, before any bf16 cast.
        qkv_b = jnp.stack([
            jnp.concatenate([params["q_bias_patch"] * scale, zeros,
                             params["v_bias_patch"]]),
            jnp.concatenate([params["q_bias_det"] * scale, zeros,
                             params["v_bias_det"]]),
        ])
    else:
        qkv_b = jnp.zeros((2, 3 * ahd), jnp.float32)
    qkv_w = jnp.stack([params["qkv_patch_w"], params["qkv_det_w"]])   # (2, C, 3*ahd)
    col_scale = jnp.concatenate([jnp.full((ahd,), scale, jnp.float32),
                                 jnp.ones((2 * ahd,), jnp.float32)])
    qkv_w = qkv_w * col_scale                                          # fold scale (f32)

    def _perm_cols(a):
        # (…, 3, H, hd) -> (…, H//G, 3, G, hd): each attention grid step reads one
        # contiguous [q | k | v] column block for its G heads.
        lead = a.shape[:-1]
        a = a.reshape(*lead, 3, H // G, G, hd)
        a = jnp.moveaxis(a, -4, -3)
        return a.reshape(*lead, 3 * ahd)

    qkv_w = _perm_cols(qkv_w).astype(jnp.bfloat16)                     # (2, C, 3*ahd)
    qkv_b = _perm_cols(qkv_b)[:, None, :]                              # (2, 1, 3*ahd)

    proj_w = jnp.stack([params["proj_patch_w"],
                        params["proj_det_w"]]).astype(jnp.bfloat16)    # (2, ahd, C)
    proj_b = jnp.stack([params["proj_patch_b"],
                        params["proj_det_b"]])[:, None, :]             # (2, 1, C)

    # --- pad token groups & per-row-tile group ids ----------------------------
    x_bf = x.astype(jnp.bfloat16)
    if Np_pad == Np and Nd_pad == Nd:
        x_pad = x_bf
    else:
        x_pad = jnp.concatenate([
            jnp.pad(x_bf[:, :Np], ((0, 0), (0, Np_pad - Np), (0, 0))),
            jnp.pad(x_bf[:, Np:], ((0, 0), (0, Nd_pad - Nd), (0, 0))),
        ], axis=1)                                                     # (B, Npad, C)
    gid = jnp.tile(
        jnp.concatenate([jnp.zeros((Np_pad // tm,), jnp.int32),
                         jnp.ones((Nd_pad // tm,), jnp.int32)]), B)    # (B*Npad//tm,)

    # 1) fused (patch|det) qkv projection; bf16 output halves HBM traffic.
    qkv = fused_dual_linear(x_pad.reshape(B * Npad, C), gid, qkv_w, qkv_b,
                            out_dtype=jnp.bfloat16, tm=tm)
    qkv = qkv.reshape(B, Npad, 3 * ahd)

    # 2) multi-head attention (== memory_efficient_attention, dropout p = 0);
    #    output lands directly in the head-major (B, Npad, ahd) layout.
    x_attn = pallas_attention(qkv, num_heads=H, head_dim=hd,
                              n_patch=Np, n_patch_pad=Np_pad, n_det=Nd)
    # inner_attn_ln is nn.Identity (subln=False)

    # 3) fused (patch|det) output projection.
    out = fused_dual_linear(x_attn.reshape(B * Npad, ahd), gid, proj_w, proj_b,
                            out_dtype=jnp.float32, tm=tm)
    out = out.reshape(B, Npad, C)
    if Np_pad == Np and Nd_pad == Nd:
        return out
    return jnp.concatenate([out[:, :Np], out[:, Np_pad:Np_pad + Nd]], axis=1)


# ------------------------------ pure-JAX reference ---------------------------

def attention_sep_reference(params, x, *, num_heads, num_det_tokens):
    B, N, C = x.shape
    ahd = params["proj_patch_w"].shape[0]
    head_dim = ahd // num_heads
    scale = head_dim ** (-0.5)
    Np = N - num_det_tokens
    zeros = jnp.zeros((ahd,), jnp.float32)
    qkv_b_patch = jnp.concatenate(
        [params["q_bias_patch"], zeros, params["v_bias_patch"]])
    qkv_b_det = jnp.concatenate(
        [params["q_bias_det"], zeros, params["v_bias_det"]])
    qkv_patch = x[:, :Np, :] @ params["qkv_patch_w"] + qkv_b_patch
    qkv_det = x[:, Np:, :] @ params["qkv_det_w"] + qkv_b_det
    qkv = jnp.concatenate([qkv_patch, qkv_det], axis=1)
    qkv = qkv.reshape(B, N, 3, num_heads, head_dim).transpose(2, 0, 3, 1, 4)
    q, k, v = qkv[0] * scale, qkv[1], qkv[2]
    attn = jnp.einsum("bhqd,bhkd->bhqk", q, k)
    attn = jax.nn.softmax(attn, axis=-1)
    out = jnp.einsum("bhqk,bhkd->bhqd", attn, v)
    x_attn = out.transpose(0, 2, 1, 3).reshape(B, N, ahd)
    xp = x_attn[:, :Np, :] @ params["proj_patch_w"] + params["proj_patch_b"]
    xd = x_attn[:, Np:, :] @ params["proj_det_w"] + params["proj_det_b"]
    return jnp.concatenate([xp, xd], axis=1)


# ----------------------------------- main -------------------------------------

if __name__ == "__main__":
    B = 2
    dim = 256
    num_heads = 4              # head_dim = 64 -> exercises the G=2 head blocking
    num_det_tokens = 100       # real-model det-token count (previously a blocker)
    num_patch_tokens = 156
    N = num_patch_tokens + num_det_tokens   # 256 tokens

    key = jax.random.PRNGKey(0)
    k_param, k_x = jax.random.split(key)
    params = init_attention_sep_params(k_param, dim, num_heads, qkv_bias=True)
    x = jax.random.normal(k_x, (B, N, dim), jnp.float32)

    out = attention_sep_forward(
        params, x, num_heads=num_heads, num_det_tokens=num_det_tokens)
    out = jax.block_until_ready(out)

    ref = attention_sep_reference(
        params, x, num_heads=num_heads, num_det_tokens=num_det_tokens)
    assert out.shape == (B, N, dim), out.shape
    max_err = float(jnp.max(jnp.abs(out - ref)))
    # bf16 matmuls (f32 accumulation) + approx reciprocal vs f32 reference.
    assert jnp.allclose(out, ref, atol=2e-2, rtol=2e-2), max_err

    print("KERNEL_OK")
</pallas_src>

<mosaic_0001>
module attributes {stable_mosaic.version = 11 : i64} {
  func.func @_dual_linear_kernel(%arg0: i32, %arg1: i32, %arg2: memref<4xi32, #tpu.memory_space<smem>>, %arg3: memref<160x256xbf16, #tpu.memory_space<vmem>>, %arg4: memref<1x256x256xbf16, #tpu.memory_space<vmem>>, %arg5: memref<1x1x256xf32, #tpu.memory_space<vmem>>, %arg6: memref<160x256xbf16, #tpu.memory_space<vmem>>) attributes {dimension_semantics = [#tpu.dimension_semantics<parallel>, #tpu.dimension_semantics<parallel>], iteration_bounds = array<i64: 3, 4>, scalar_prefetch = 1 : i64, scratch_operands = 0 : i64, tpu.core_type = #tpu.core_type<tc>, window_params = [{transform_indices = @transform_0, window_bounds = array<i64: 160, 256>}, {transform_indices = @transform_1, window_bounds = array<i64: 1, 256, 256>}, {transform_indices = @transform_2, window_bounds = array<i64: 1, 1, 256>}, {transform_indices = @transform_3, window_bounds = array<i64: 160, 256>}]} {
    %c0 = arith.constant 0 : index
    %c0_0 = arith.constant 0 : index
    %0 = vector.load %arg3[%c0, %c0_0] : memref<160x256xbf16, #tpu.memory_space<vmem>>, vector<160x256xbf16>
    %c0_1 = arith.constant 0 : index
    %c0_2 = arith.constant 0 : index
    %c0_3 = arith.constant 0 : index
    %1 = vector.load %arg4[%c0_1, %c0_2, %c0_3] : memref<1x256x256xbf16, #tpu.memory_space<vmem>>, vector<1x256x256xbf16>
    %2 = vector.shape_cast %1 : vector<1x256x256xbf16> to vector<256x256xbf16>
    %cst = arith.constant dense<0.000000e+00> : vector<160x256xf32>
    %3 = tpu.matmul %0, %2, %cst {dimension_numbers = #tpu.dot_dimension_numbers<[1], [0], [0], [1], [0, 0, 1, 1], [], []>} : vector<160x256xbf16>, vector<256x256xbf16>, vector<160x256xf32> -> vector<160x256xf32>
    %c0_4 = arith.constant 0 : index
    %c0_5 = arith.constant 0 : index
    %c0_6 = arith.constant 0 : index
    %4 = vector.load %arg5[%c0_4, %c0_5, %c0_6] : memref<1x1x256xf32, #tpu.memory_space<vmem>>, vector<1x1x256xf32>
    %5 = vector.shape_cast %4 : vector<1x1x256xf32> to vector<1x256xf32>
    %6 = vector.broadcast %5 : vector<1x256xf32> to vector<160x256xf32>
    %7 = arith.addf %3, %6 : vector<160x256xf32>
    %8 = arith.truncf %7 : vector<160x256xf32> to vector<160x256xbf16>
    %c0_7 = arith.constant 0 : index
    %c0_8 = arith.constant 0 : index
    %9 = vector.load %arg6[%c0_7, %c0_8] : memref<160x256xbf16, #tpu.memory_space<vmem>>, vector<160x256xbf16>
    tpu.vector_store %arg6[%c0_7, %c0_8], %8 {strides = array<i32>} : memref<160x256xbf16, #tpu.memory_space<vmem>>, vector<160x256xbf16>,
    return
  }
  func.func @transform_0(%arg0: i32, %arg1: i32, %arg2: memref<4xi32, #tpu.memory_space<smem>>) -> (i32, i32) {
    %c0_i32 = arith.constant 0 : i32
    %c0_i32_0 = arith.constant 0 : i32
    return %arg1, %c0_i32 : i32, i32
  }
  func.func @transform_1(%arg0: i32, %arg1: i32, %arg2: memref<4xi32, #tpu.memory_space<smem>>) -> (i32, i32, i32) {
    %0 = arith.index_cast %arg1 : i32 to index
    %1 = memref.load %arg2[%0] : memref<4xi32, #tpu.memory_space<smem>>
    %c0_i32 = arith.constant 0 : i32
    %c0_i32_0 = arith.constant 0 : i32
    return %1, %c0_i32, %arg0 : i32, i32, i32
  }
  func.func @transform_2(%arg0: i32, %arg1: i32, %arg2: memref<4xi32, #tpu.memory_space<smem>>) -> (i32, i32, i32) {
    %0 = arith.index_cast %arg1 : i32 to index
    %1 = memref.load %arg2[%0] : memref<4xi32, #tpu.memory_space<smem>>
    %c0_i32 = arith.constant 0 : i32
    %c0_i32_0 = arith.constant 0 : i32
    return %1, %c0_i32, %arg0 : i32, i32, i32
  }
  func.func @transform_3(%arg0: i32, %arg1: i32, %arg2: memref<4xi32, #tpu.memory_space<smem>>) -> (i32, i32) {
    %c0_i32 = arith.constant 0 : i32
    return %arg1, %arg0 : i32, i32
  }
}

module attributes {stable_mosaic.version = 11 : i64} {
  func.func @_attn_kernel(%arg0: i32, %arg1: i32, %arg2: memref<1x320x384xbf16, #tpu.memory_space<vmem>>, %arg3: memref<1x320x128xbf16, #tpu.memory_space<vmem>>) attributes {dimension_semantics = [#tpu.dimension_semantics<parallel>, #tpu.dimension_semantics<parallel>], iteration_bounds = array<i64: 2, 2>, scalar_prefetch = 0 : i64, scratch_operands = 0 : i64, tpu.core_type = #tpu.core_type<tc>, window_params = [{transform_indices = @transform_0, window_bounds = array<i64: 1, 320, 384>}, {transform_indices = @transform_1, window_bounds = array<i64: 1, 320, 128>}]} {
    %c0 = arith.constant 0 : index
    %c0_0 = arith.constant 0 : index
    %c0_1 = arith.constant 0 : index
    %0 = vector.load %arg2[%c0, %c0_0, %c0_1] : memref<1x320x384xbf16, #tpu.memory_space<vmem>>, vector<1x320x128xbf16>
    %1 = vector.shape_cast %0 : vector<1x320x128xbf16> to vector<320x128xbf16>
    %c0_2 = arith.constant 0 : index
    %c0_3 = arith.constant 0 : index
    %c128 = arith.constant 128 : index
    %2 = vector.load %arg2[%c0_2, %c0_3, %c128] : memref<1x320x384xbf16, #tpu.memory_space<vmem>>, vector<1x320x128xbf16>
    %3 = vector.shape_cast %2 : vector<1x320x128xbf16> to vector<320x128xbf16>
    %c0_4 = arith.constant 0 : index
    %c0_5 = arith.constant 0 : index
    %c256 = arith.constant 256 : index
    %4 = vector.load %arg2[%c0_4, %c0_5, %c256] : memref<1x320x384xbf16, #tpu.memory_space<vmem>>, vector<1x320x128xbf16>
    %5 = vector.shape_cast %4 : vector<1x320x128xbf16> to vector<320x128xbf16>
    %6 = tpu.iota {dimensions = array<i32: 1>} : vector<1x320xi32>
    %c156_i32 = arith.constant 156 : i32
    %7 = vector.broadcast %c156_i32 : i32 to vector<1x320xi32>
    %8 = arith.cmpi slt, %6, %7 : vector<1x320xi32>
    %c160_i32 = arith.constant 160 : i32
    %9 = vector.broadcast %c160_i32 : i32 to vector<1x320xi32>
    %10 = arith.cmpi sge, %6, %9 : vector<1x320xi32>
    %c260_i32 = arith.constant 260 : i32
    %11 = vector.broadcast %c260_i32 : i32 to vector<1x320xi32>
    %12 = arith.cmpi slt, %6, %11 : vector<1x320xi32>
    %13 = arith.andi %10, %12 : vector<1x320xi1>
    %14 = arith.ori %8, %13 : vector<1x320xi1>
    %cst = arith.constant 0.000000e+00 : f32
    %cst_6 = arith.constant -1.000000e+30 : f32
    %15 = vector.broadcast %cst : f32 to vector<1x320xf32>
    %16 = vector.broadcast %cst_6 : f32 to vector<1x320xf32>
    %17 = arith.select %14, %15, %16 : vector<1x320xi1>, vector<1x320xf32>
    %18 = tpu.iota {dimensions = array<i32: 1>} : vector<1x128xi32>
    %c0_i32 = arith.constant 0 : i32
    %19 = vector.broadcast %c0_i32 : i32 to vector<1x128xi32>
    %20 = arith.cmpi sge, %18, %19 : vector<1x128xi32>
    %c64_i32 = arith.constant 64 : i32
    %21 = vector.broadcast %c64_i32 : i32 to vector<1x128xi32>
    %22 = arith.cmpi slt, %18, %21 : vector<1x128xi32>
    %23 = arith.andi %20, %22 : vector<1x128xi1>
    %cst_7 = arith.constant 0.000000e+00 : bf16
    %24 = vector.broadcast %cst_7 : bf16 to vector<320x128xbf16>
    %25 = vector.shape_cast %23 : vector<1x128xi1> to vector<1x128xi1>
    %26 = vector.broadcast %25 : vector<1x128xi1> to vector<320x128xi1>
    %27 = arith.select %26, %1, %24 : vector<320x128xi1>, vector<320x128xbf16>
    %cst_8 = arith.constant dense<0.000000e+00> : vector<320x320xf32>
    %28 = tpu.matmul %27, %3, %cst_8 {dimension_numbers = #tpu.dot_dimension_numbers<[1], [1], [0], [0], [0, 0, 1, 0], [], []>} : vector<320x128xbf16>, vector<320x128xbf16>, vector<320x320xf32> -> vector<320x320xf32>
    %29 = vector.broadcast %17 : vector<1x320xf32> to vector<320x320xf32>
    %30 = arith.addf %28, %29 : vector<320x320xf32>
    %cst_9 = arith.constant dense<0xFF800000> : vector<320xf32>
    %31 = vector.multi_reduction <maximumf>, %30, %cst_9 [1] : vector<320x320xf32> to vector<320xf32>
    %32 = vector.shape_cast %31 : vector<320xf32> to vector<320x1xf32>
    %33 = vector.broadcast %32 : vector<320x1xf32> to vector<320x320xf32>
    %34 = arith.subf %30, %33 : vector<320x320xf32>
    %35 = math.exp %34 : vector<320x320xf32>
    %cst_10 = arith.constant dense<0.000000e+00> : vector<320xf32>
    %36 = vector.multi_reduction <add>, %35, %cst_10 [1] : vector<320x320xf32> to vector<320xf32>
    %37 = vector.shape_cast %36 : vector<320xf32> to vector<320x1xf32>
    %38 = tpu.reciprocal %37 {approx = true} : vector<320x1xf32> -> vector<320x1xf32>
    %39 = vector.broadcast %38 : vector<320x1xf32> to vector<320x320xf32>
    %40 = arith.mulf %35, %39 : vector<320x320xf32>
    %41 = arith.truncf %40 : vector<320x320xf32> to vector<320x320xbf16>
    %cst_11 = arith.constant dense<0.000000e+00> : vector<320x128xf32>
    %42 = tpu.matmul %41, %5, %cst_11 {dimension_numbers = #tpu.dot_dimension_numbers<[1], [0], [0], [1], [0, 0, 1, 1], [], []>} : vector<320x320xbf16>, vector<320x128xbf16>, vector<320x128xf32> -> vector<320x128xf32>
    %cst_12 = arith.constant 0.000000e+00 : f32
    %43 = vector.shape_cast %23 : vector<1x128xi1> to vector<1x128xi1>
    %44 = vector.broadcast %43 : vector<1x128xi1> to vector<320x128xi1>
    %45 = vector.broadcast %cst_12 : f32 to vector<320x128xf32>
    %46 = arith.select %44, %42, %45 : vector<320x128xi1>, vector<320x128xf32>
    %c64_i32_13 = arith.constant 64 : i32
    %47 = vector.broadcast %c64_i32_13 : i32 to vector<1x128xi32>
    %48 = arith.cmpi sge, %18, %47 : vector<1x128xi32>
    %c128_i32 = arith.constant 128 : i32
    %49 = vector.broadcast %c128_i32 : i32 to vector<1x128xi32>
    %50 = arith.cmpi slt, %18, %49 : vector<1x128xi32>
    %51 = arith.andi %48, %50 : vector<1x128xi1>
    %cst_14 = arith.constant 0.000000e+00 : bf16
    %52 = vector.broadcast %cst_14 : bf16 to vector<320x128xbf16>
    %53 = vector.shape_cast %51 : vector<1x128xi1> to vector<1x128xi1>
    %54 = vector.broadcast %53 : vector<1x128xi1> to vector<320x128xi1>
    %55 = arith.select %54, %1, %52 : vector<320x128xi1>, vector<320x128xbf16>
    %cst_15 = arith.constant dense<0.000000e+00> : vector<320x320xf32>
    %56 = tpu.matmul %55, %3, %cst_15 {dimension_numbers = #tpu.dot_dimension_numbers<[1], [1], [0], [0], [0, 0, 1, 0], [], []>} : vector<320x128xbf16>, vector<320x128xbf16>, vector<320x320xf32> -> vector<320x320xf32>
    %57 = vector.broadcast %17 : vector<1x320xf32> to vector<320x320xf32>
    %58 = arith.addf %56, %57 : vector<320x320xf32>
    %cst_16 = arith.constant dense<0xFF800000> : vector<320xf32>
    %59 = vector.multi_reduction <maximumf>, %58, %cst_16 [1] : vector<320x320xf32> to vector<320xf32>
    %60 = vector.shape_cast %59 : vector<320xf32> to vector<320x1xf32>
    %61 = vector.broadcast %60 : vector<320x1xf32> to vector<320x320xf32>
    %62 = arith.subf %58, %61 : vector<320x320xf32>
    %63 = math.exp %62 : vector<320x320xf32>
    %cst_17 = arith.constant dense<0.000000e+00> : vector<320xf32>
    %64 = vector.multi_reduction <add>, %63, %cst_17 [1] : vector<320x320xf32> to vector<320xf32>
    %65 = vector.shape_cast %64 : vector<320xf32> to vector<320x1xf32>
    %66 = tpu.reciprocal %65 {approx = true} : vector<320x1xf32> -> vector<320x1xf32>
    %67 = vector.broadcast %66 : vector<320x1xf32> to vector<320x320xf32>
    %68 = arith.mulf %63, %67 : vector<320x320xf32>
    %69 = arith.truncf %68 : vector<320x320xf32> to vector<320x320xbf16>
    %cst_18 = arith.constant dense<0.000000e+00> : vector<320x128xf32>
    %70 = tpu.matmul %69, %5, %cst_18 {dimension_numbers = #tpu.dot_dimension_numbers<[1], [0], [0], [1], [0, 0, 1, 1], [], []>} : vector<320x320xbf16>, vector<320x128xbf16>, vector<320x128xf32> -> vector<320x128xf32>
    %cst_19 = arith.constant 0.000000e+00 : f32
    %71 = vector.shape_cast %51 : vector<1x128xi1> to vector<1x128xi1>
    %72 = vector.broadcast %71 : vector<1x128xi1> to vector<320x128xi1>
    %73 = vector.broadcast %cst_19 : f32 to vector<320x128xf32>
    %74 = arith.select %72, %70, %73 : vector<320x128xi1>, vector<320x128xf32>
    %75 = arith.addf %46, %74 : vector<320x128xf32>
    %76 = arith.truncf %75 : vector<320x128xf32> to vector<320x128xbf16>
    %c0_20 = arith.constant 0 : index
    %c0_21 = arith.constant 0 : index
    %c0_22 = arith.constant 0 : index
    %77 = vector.load %arg3[%c0_20, %c0_21, %c0_22] : memref<1x320x128xbf16, #tpu.memory_space<vmem>>, vector<1x320x128xbf16>
    %78 = vector.shape_cast %77 : vector<1x320x128xbf16> to vector<320x128xbf16>
    %79 = vector.shape_cast %76 : vector<320x128xbf16> to vector<1x320x128xbf16>
    tpu.vector_store %arg3[%c0_20, %c0_21, %c0_22], %79 {strides = array<i32>} : memref<1x320x128xbf16, #tpu.memory_space<vmem>>, vector<1x320x128xbf16>,
    return
  }
  func.func @transform_0(%arg0: i32, %arg1: i32) -> (i32, i32, i32) {
    %c0_i32 = arith.constant 0 : i32
    %c0_i32_0 = arith.constant 0 : i32
    return %arg0, %c0_i32, %arg1 : i32, i32, i32
  }
  func.func @transform_1(%arg0: i32, %arg1: i32) -> (i32, i32, i32) {
    %c0_i32 = arith.constant 0 : i32
    %c0_i32_0 = arith.constant 0 : i32
    return %arg0, %c0_i32, %arg1 : i32, i32, i32
  }
}

module attributes {stable_mosaic.version = 11 : i64} {
  func.func @_dual_linear_kernel(%arg0: i32, %arg1: i32, %arg2: memref<4xi32, #tpu.memory_space<smem>>, %arg3: memref<160x256xbf16, #tpu.memory_space<vmem>>, %arg4: memref<1x256x256xbf16, #tpu.memory_space<vmem>>, %arg5: memref<1x1x256xf32, #tpu.memory_space<vmem>>, %arg6: memref<160x256xf32, #tpu.memory_space<vmem>>) attributes {dimension_semantics = [#tpu.dimension_semantics<parallel>, #tpu.dimension_semantics<parallel>], iteration_bounds = array<i64: 1, 4>, scalar_prefetch = 1 : i64, scratch_operands = 0 : i64, tpu.core_type = #tpu.core_type<tc>, window_params = [{transform_indices = @transform_0, window_bounds = array<i64: 160, 256>}, {transform_indices = @transform_1, window_bounds = array<i64: 1, 256, 256>}, {transform_indices = @transform_2, window_bounds = array<i64: 1, 1, 256>}, {transform_indices = @transform_3, window_bounds = array<i64: 160, 256>}]} {
    %c0 = arith.constant 0 : index
    %c0_0 = arith.constant 0 : index
    %0 = vector.load %arg3[%c0, %c0_0] : memref<160x256xbf16, #tpu.memory_space<vmem>>, vector<160x256xbf16>
    %c0_1 = arith.constant 0 : index
    %c0_2 = arith.constant 0 : index
    %c0_3 = arith.constant 0 : index
    %1 = vector.load %arg4[%c0_1, %c0_2, %c0_3] : memref<1x256x256xbf16, #tpu.memory_space<vmem>>, vector<1x256x256xbf16>
    %2 = vector.shape_cast %1 : vector<1x256x256xbf16> to vector<256x256xbf16>
    %cst = arith.constant dense<0.000000e+00> : vector<160x256xf32>
    %3 = tpu.matmul %0, %2, %cst {dimension_numbers = #tpu.dot_dimension_numbers<[1], [0], [0], [1], [0, 0, 1, 1], [], []>} : vector<160x256xbf16>, vector<256x256xbf16>, vector<160x256xf32> -> vector<160x256xf32>
    %c0_4 = arith.constant 0 : index
    %c0_5 = arith.constant 0 : index
    %c0_6 = arith.constant 0 : index
    %4 = vector.load %arg5[%c0_4, %c0_5, %c0_6] : memref<1x1x256xf32, #tpu.memory_space<vmem>>, vector<1x1x256xf32>
    %5 = vector.shape_cast %4 : vector<1x1x256xf32> to vector<1x256xf32>
    %6 = vector.broadcast %5 : vector<1x256xf32> to vector<160x256xf32>
    %7 = arith.addf %3, %6 : vector<160x256xf32>
    %c0_7 = arith.constant 0 : index
    %c0_8 = arith.constant 0 : index
    %8 = vector.load %arg6[%c0_7, %c0_8] : memref<160x256xf32, #tpu.memory_space<vmem>>, vector<160x256xf32>
    tpu.vector_store %arg6[%c0_7, %c0_8], %7 {strides = array<i32>} : memref<160x256xf32, #tpu.memory_space<vmem>>, vector<160x256xf32>,
    return
  }
  func.func @transform_0(%arg0: i32, %arg1: i32, %arg2: memref<4xi32, #tpu.memory_space<smem>>) -> (i32, i32) {
    %c0_i32 = arith.constant 0 : i32
    %c0_i32_0 = arith.constant 0 : i32
    return %arg1, %c0_i32 : i32, i32
  }
  func.func @transform_1(%arg0: i32, %arg1: i32, %arg2: memref<4xi32, #tpu.memory_space<smem>>) -> (i32, i32, i32) {
    %0 = arith.index_cast %arg1 : i32 to index
    %1 = memref.load %arg2[%0] : memref<4xi32, #tpu.memory_space<smem>>
    %c0_i32 = arith.constant 0 : i32
    %c0_i32_0 = arith.constant 0 : i32
    return %1, %c0_i32, %arg0 : i32, i32, i32
  }
  func.func @transform_2(%arg0: i32, %arg1: i32, %arg2: memref<4xi32, #tpu.memory_space<smem>>) -> (i32, i32, i32) {
    %0 = arith.index_cast %arg1 : i32 to index
    %1 = memref.load %arg2[%0] : memref<4xi32, #tpu.memory_space<smem>>
    %c0_i32 = arith.constant 0 : i32
    %c0_i32_0 = arith.constant 0 : i32
    return %1, %c0_i32, %arg0 : i32, i32, i32
  }
  func.func @transform_3(%arg0: i32, %arg1: i32, %arg2: memref<4xi32, #tpu.memory_space<smem>>) -> (i32, i32) {
    %c0_i32 = arith.constant 0 : i32
    return %arg1, %arg0 : i32, i32
  }
}

</mosaic_0001>

<bundles_post_ra>
// kernel: tile.7
= control target key start
LH: loop header
LB: loop body
LE: loop exit
PB: predicated region body
PF: predicated region fallthrough
CT: control target
= control target key end

     0   :  { %vm7_vm0 = vcmask 15360   ;;  %vm13_vm1 = vcmask 31760   ;;  %s39_s0 = inlined_call_operand.vmem [shape: s32[2,2], index: 0, kind: input, shape index: {}]   ;;  %s40_s1 = inlined_call_operand.vmem [shape: s32[4], index: 1, kind: output, shape index: {}]  }
   0x1   :  { %v4_v0 = vld [vmem:[%s39_s0] sm:$0x3]  ;;  %s22_s0 = smov 2  }
   0x2   :  { %5 = vst [vmem:[#allocation1] sm:$0x3] %v4_v0 }
   0x9   :  { %v10_v1 = vld [vmem:[#allocation1 + $0x1] sm:$0x1]   ;;  %v6_v2 = vld [vmem:[#allocation1] sm:$0x1]  }
   0xa   :  { %11 = vrot.lane.b32.xlu0 %v10_v1, %s22_s0  ;;  %8 = vst.msk [vmem:[#allocation0] sm:$0x1] %vm7_vm0, %v6_v2  }
  0x7c   :  { %v12_v3 = vpop.permute.xlu0 %11  }
  0x7d   :  { %14 = vst.msk [vmem:[#allocation0] sm:$0x1] %vm13_vm1, %v12_v3  }
  0x84   :  { %v18_v4 = vld [vmem:[#allocation0] sm:$0x1] }
  0x85   :  { %20 = vst [vmem:[%s40_s1] sm:$0x1] %v18_v4 }

// kernel: attention_sep_forward.3
= control target key start
LH: loop header
LB: loop body
LE: loop exit
PB: predicated region body
PF: predicated region fallthrough
CT: control target
= control target key end

     0   :  { %s2002_s0 = inlined_call_operand.vmem [shape: s32[4], index: 0, kind: input, shape index: {}]   ;;  %s2003_s1 = inlined_call_operand.vmem [shape: bf16[640,256], index: 1, kind: input, shape index: {}]   ;;  %s2004_s2 = inlined_call_operand.vmem [shape: bf16[2,256,768], index: 2, kind: input, shape index: {}]   ;;  %s2005_s3 = inlined_call_operand.vmem [shape: f32[2,1,768], index: 3, kind: input, shape index: {}]   ;;  %s2006_s4 = inlined_call_operand.vmem [shape: bf16[640,768], index: 4, kind: output, shape index: {}]  }
   0x1   :  { %s9_s17 = sshll.u32 %s2002_s0, 4  ;;  %s10_s17 = int_to_ptr.vmem [resolvable:$true] %s9_s17 }
   0x2   :  { %s1537_s18 = scalar_lea.vmem %s10_s17, 16  ;;  %p1542_p1 = scmp.lt.s32.totalorder %s10_s17, %s10_s17 }
   0x3   :  { %p1538_p0 = scmp.ne.s32.totalorder %s10_s17, %s1537_s18  ;;  %p1543_p2 = scmp.lt.s32.totalorder %s1537_s18, %s1537_s18 }
   0x5   :  { %p1544_p3 = por %p1543_p2, %p1542_p1 }
   0x7   :  { %p1545_p4 = pnand %p1544_p3, %p1538_p0 }
   0x9   :  { %1548 = shalt.err (!%p1545_p4)  }
   0xa   :  { %s1623_s19 = smov [#allocation3]  }
   0xb   :  { %12 = dma.vmem_to_smem %s10_s17, 16, %s1623_s19, [#allocation2] }
   0xc   :  { %1585 = dma.done.wait [#allocation2], 16 }
   0xd   :  { %1586 = vsyncadd [#allocation2], 4294967280 }
   0xe   :  { %14 = sfence }
   0xf   :  { %s1652_s20 = smov 0   ;;  %s1654_s21 = smov 0  }
  0x10   :  { %s1656_s22 = smov 0   ;;  %s1658_s0 = smov 0  }
  0x11   :  { %s1660_s23 = smov 0   ;;  %s1662_s24 = smov 0  }
  0x12   :  { %s1664_s25 = smov 0   ;;  %s1666_s26 = smov 0  }
  0x13   :  { %s1668_s27 = smov 0  }
  0x14 LB: > { %s1240_s28 = sadd.s32 4294967295, %s1621_s27   ;;  %s29_s29 = sadd.s32 1, %s1613_s25  ;;  %s1621_s27 = sphi %s1668_s27, %s20_s27   ;;  %s1617_s26 = sphi %s1666_s26, %s2016_s26   ;;  %s1613_s25 = sphi %s1664_s25, %s2015_s25   ;;  %s1609_s24 = sphi %s1662_s24, %s2014_s24   ;;  %s1605_s23 = sphi %s1660_s23, %s2013_s23   ;;  %s1601_s0 = sphi %s1658_s0, %s2012_s0   ;;  %s1597_s22 = sphi %s1656_s22, %s2011_s22   ;;  %s1593_s21 = sphi %s1654_s21, %s2010_s21   ;;  %s1589_s20 = sphi %s1652_s20, %s2009_s20  }
  0x15   : > { %p30_p5 = scmp.ge.s32.totalorder %s29_s29, 4  ;;  %s32_s30 = sadd.s32 1, %s1617_s26 }
  0x16   : > { %s62_s5 = sld [smem:[#allocation3 + %s1613_s25]]  ;;  %s69_s6 = sadd.s32 1, %s1601_s0 }
  0x17   : > { %s2018_s29 = smov (%p30_p5, %s29_s29), 0  ;;  %s2020_s30 = smov (!%p30_p5, %s32_s30), %s1617_s26 }
  0x18   : > { %s63_s7 = sld [smem:[#allocation3 + %s2018_s29]]  ;;  %p76_p6 = scmp.ne.s32.totalorder %s1601_s0, %s1597_s22 }
  0x19   : > { %p34_p7 = scmp.ge.s32.totalorder %s2020_s30, 3  ;;  %p77_p8 = scmp.eq.s32.totalorder %s1621_s27, 0 }
  0x1a   : > { %s122_s8 = ssub.s32 %s1613_s25, %s2018_s29  ;;  %s127_s9 = sadd.s32 1, %s1593_s21 }
  0x1b   : > { %s2022_s30 = smov (%p34_p7, %s2020_s30), 0  ;;  %p1714_p9 = por %p77_p8, %p76_p6 }
  0x1c   : > { %p137_p10 = scmp.ne.s32.totalorder %s1593_s21, %s1589_s20  ;;  %s65_s11 = ssub.s32 %s1617_s26, %s2022_s30 }
  0x1d   : > { %p138_p11 = scmp.eq.s32.totalorder %s1240_s28, 11  ;;  %s124_s13 = sor.u32 %s122_s8, %s65_s11 }
  0x1e   : > { %s64_s12 = ssub.s32 %s62_s5, %s63_s7  ;;  %p125_p12 = scmp.eq.s32.totalorder %s124_s13, 0 }
  0x1f   : > { %s66_s14 = sor.u32 %s65_s11, %s64_s12  ;;  %p1722_p0 = por %p138_p11, %p137_p10 }
  0x20   : > { %p67_p13 = scmp.eq.s32.totalorder %s66_s14, 0  ;;  %p1243_p1 = scmp.ge.s32.totalorder %s1621_s27, 12 }
  0x21   : > { %s1727_s16 = scalar_select %p125_p12, %s1593_s21, %s127_s9  }
  0x22   : > { %s1730_s17 = scalar_select %p67_p13, %s1601_s0, %s69_s6  }
  0x23   : > { %160 = sbr.rel (%p1243_p1) target bundleno = 70 (0x46), region = 16 }
  0x2a   : > { %173 = sbr.rel (!%p1714_p9) target bundleno = 70 (0x46), region = 24  ;;  %s178_s18 = sld [smem:[#allocation3 + %s1613_s25]] (%p1714_p9) }
  0x2b   : > { %s175_s19 = sand.u32 (%p1714_p9), 1, %s1601_s0   ;;  %s1245_s28 = sshll.u32 (%p1714_p9), %s1617_s26, 1 }
  0x2c   : > { %s1244_s5 = sshll.u32 (%p1714_p9), %s175_s19, 8 }
  0x2d   : > { %s1746_s10 = scalar_lea.vmem (%p1714_p9), [#allocation4], %s1244_s5 }
  0x30   : > { %s1381_s7 = smul.u32 (%p1714_p9), 192, %s178_s18 }
  0x32   : > { %s181_s8 = sadd.s32 %s1381_s7, %s1245_s28 }
  0x33   : > { %s1246_s11 = sshll.u32 %s181_s8, 2 }
  0x34   : > { %s1741_s6 = scalar_lea.vmem %s2004_s2, %s1246_s11 }
  0x35   : > { %v273_v0 = vld [vmem:[%s1741_s6] sm:$0xff]  ;;  %v275_v1 = vld [vmem:[%s1741_s6 + $0x18] sm:$0xff]  ;;  %v277_v2 = vld [vmem:[%s1741_s6 + $0x30] sm:$0xff] }
  0x36   : > { %274 = vst [vmem:[%s1746_s10] sm:$0xff] %v273_v0  ;;  %276 = vst [vmem:[%s1746_s10 + $0x8] sm:$0xff] %v275_v1  ;;  %v279_v3 = vld [vmem:[%s1741_s6 + $0x48] sm:$0xff]  ;;  %v281_v4 = vld [vmem:[%s1741_s6 + $0x60] sm:$0xff] }
  0x37   : > { %278 = vst [vmem:[%s1746_s10 + $0x10] sm:$0xff] %v277_v2  ;;  %v283_v5 = vld [vmem:[%s1741_s6 + $0x78] sm:$0xff]  ;;  %280 = vst [vmem:[%s1746_s10 + $0x18] sm:$0xff] %v279_v3  ;;  %v285_v6 = vld [vmem:[%s1741_s6 + $0x90] sm:$0xff] }
  0x38   : > { %282 = vst [vmem:[%s1746_s10 + $0x20] sm:$0xff] %v281_v4  ;;  %284 = vst [vmem:[%s1746_s10 + $0x28] sm:$0xff] %v283_v5  ;;  %v287_v7 = vld [vmem:[%s1741_s6 + $0xa8] sm:$0xff]  ;;  %v289_v8 = vld [vmem:[%s1741_s6 + $0xc0] sm:$0xff] }
  0x39   : > { %286 = vst [vmem:[%s1746_s10 + $0x30] sm:$0xff] %v285_v6  ;;  %288 = vst [vmem:[%s1746_s10 + $0x38] sm:$0xff] %v287_v7  ;;  %v291_v9 = vld [vmem:[%s1741_s6 + $0xd8] sm:$0xff]  ;;  %v293_v10 = vld [vmem:[%s1741_s6 + $0xf0] sm:$0xff] }
  0x3a   : > { %290 = vst [vmem:[%s1746_s10 + $0x40] sm:$0xff] %v289_v8  ;;  %v295_v11 = vld [vmem:[%s1741_s6 + $0x108] sm:$0xff]  ;;  %292 = vst [vmem:[%s1746_s10 + $0x48] sm:$0xff] %v291_v9  ;;  %v297_v12 = vld [vmem:[%s1741_s6 + $0x120] sm:$0xff] }
  0x3b   : > { %294 = vst [vmem:[%s1746_s10 + $0x50] sm:$0xff] %v293_v10  ;;  %296 = vst [vmem:[%s1746_s10 + $0x58] sm:$0xff] %v295_v11  ;;  %v299_v13 = vld [vmem:[%s1741_s6 + $0x138] sm:$0xff]  ;;  %v301_v14 = vld [vmem:[%s1741_s6 + $0x150] sm:$0xff] }
  0x3c   : > { %298 = vst [vmem:[%s1746_s10 + $0x60] sm:$0xff] %v297_v12  ;;  %300 = vst [vmem:[%s1746_s10 + $0x68] sm:$0xff] %v299_v13  ;;  %v303_v15 = vld [vmem:[%s1741_s6 + $0x168] sm:$0xff]  ;;  %v305_v16 = vld [vmem:[%s1741_s6 + $0x180] sm:$0xff] }
  0x3d   : > { %302 = vst [vmem:[%s1746_s10 + $0x70] sm:$0xff] %v301_v14  ;;  %v307_v17 = vld [vmem:[%s1741_s6 + $0x198] sm:$0xff]  ;;  %304 = vst [vmem:[%s1746_s10 + $0x78] sm:$0xff] %v303_v15  ;;  %v309_v18 = vld [vmem:[%s1741_s6 + $0x1b0] sm:$0xff] }
  0x3e   : > { %306 = vst [vmem:[%s1746_s10 + $0x80] sm:$0xff] %v305_v16  ;;  %308 = vst [vmem:[%s1746_s10 + $0x88] sm:$0xff] %v307_v17  ;;  %v311_v19 = vld [vmem:[%s1741_s6 + $0x1c8] sm:$0xff]  ;;  %v313_v20 = vld [vmem:[%s1741_s6 + $0x1e0] sm:$0xff] }
  0x3f   : > { %310 = vst [vmem:[%s1746_s10 + $0x90] sm:$0xff] %v309_v18  ;;  %312 = vst [vmem:[%s1746_s10 + $0x98] sm:$0xff] %v311_v19  ;;  %v315_v21 = vld [vmem:[%s1741_s6 + $0x1f8] sm:$0xff]  ;;  %v317_v22 = vld [vmem:[%s1741_s6 + $0x210] sm:$0xff] }
  0x40   : > { %314 = vst [vmem:[%s1746_s10 + $0xa0] sm:$0xff] %v313_v20  ;;  %v319_v23 = vld [vmem:[%s1741_s6 + $0x228] sm:$0xff]  ;;  %316 = vst [vmem:[%s1746_s10 + $0xa8] sm:$0xff] %v315_v21  ;;  %v321_v24 = vld [vmem:[%s1741_s6 + $0x240] sm:$0xff] }
  0x41   : > { %318 = vst [vmem:[%s1746_s10 + $0xb0] sm:$0xff] %v317_v22  ;;  %320 = vst [vmem:[%s1746_s10 + $0xb8] sm:$0xff] %v319_v23  ;;  %v323_v25 = vld [vmem:[%s1741_s6 + $0x258] sm:$0xff]  ;;  %v325_v26 = vld [vmem:[%s1741_s6 + $0x270] sm:$0xff] }
  0x42   : > { %322 = vst [vmem:[%s1746_s10 + $0xc0] sm:$0xff] %v321_v24  ;;  %324 = vst [vmem:[%s1746_s10 + $0xc8] sm:$0xff] %v323_v25  ;;  %v327_v27 = vld [vmem:[%s1741_s6 + $0x288] sm:$0xff]  ;;  %v329_v28 = vld [vmem:[%s1741_s6 + $0x2a0] sm:$0xff] }
  0x43   : > { %326 = vst [vmem:[%s1746_s10 + $0xd0] sm:$0xff] %v325_v26  ;;  %v331_v29 = vld [vmem:[%s1741_s6 + $0x2b8] sm:$0xff]  ;;  %328 = vst [vmem:[%s1746_s10 + $0xd8] sm:$0xff] %v327_v27  ;;  %v333_v30 = vld [vmem:[%s1741_s6 + $0x2d0] sm:$0xff] }
  0x44   : > { %330 = vst [vmem:[%s1746_s10 + $0xe0] sm:$0xff] %v329_v28  ;;  %332 = vst [vmem:[%s1746_s10 + $0xe8] sm:$0xff] %v331_v29  ;;  %v335_v31 = vld [vmem:[%s1741_s6 + $0x2e8] sm:$0xff] }
  0x45   : > { %334 = vst [vmem:[%s1746_s10 + $0xf0] sm:$0xff] %v333_v30  ;;  %336 = vst [vmem:[%s1746_s10 + $0xf8] sm:$0xff] %v335_v31 }
  0x46 PF: > { %p1247_p2 = scmp.ge.s32.totalorder %s1621_s27, 1  ;;  %p355_p3 = scmp.lt.s32.totalorder %s1621_s27, 13 }
  0x48   : > { %p356_p4 = pnand %p1247_p2, %p355_p3 }
  0x49   : > { %s362_s13 = sand.u32 (!%p356_p4), 1, %s1597_s22   ;;  %s399_s22 = smul.u32 (!%p356_p4), 20, %s1605_s23  ;;  %v475_v20 = vlaneseq (!%p356_p4) }
  0x4a   : > { %359 = sbr.rel (%p356_p4) target bundleno = 401 (0x191), region = 66  ;;  %s1248_s14 = sshll.u32 (!%p356_p4), %s362_s13, 8 }
  0x4b   : > { %s1812_s18 = scalar_lea.vmem (!%p356_p4), [#allocation4], %s1248_s14  ;;  %p400_p5 = scmp.lt.s32.totalorder (!%p356_p4), %s399_s22, 79  ;;  %v476_v21 = vshrl.u32 (!%p356_p4), %v475_v20, 7 }
  0x4c   : > { %v1459_v32 = vld [vmem:[%s1812_s18 + $0x4] ss:$8 sps:$4 sm:$0xff] (!%p356_p4)   ;;  %v1461_v33 = vld [vmem:[%s1812_s18] ss:$8 sps:$4 sm:$0xff] (!%p356_p4)   ;;  %v1462_v34 = vld [vmem:[%s1812_s18 + $0x14] ss:$8 sps:$4 sm:$0xff] (!%p356_p4)  }
  0x4d   : > { %745 = vmatprep.subr.bf16.mxu0 (!%p356_p4), %v1459_v32  ;;  %1349 = vmatprep.subr.bf16.mxu1 (!%p356_p4), %v1459_v32  ;;  %v1464_v35 = vld [vmem:[%s1812_s18 + $0x10] ss:$8 sps:$4 sm:$0xff] (!%p356_p4)   ;;  %v1465_v36 = vld [vmem:[%s1812_s18 + $0x24] ss:$8 sps:$4 sm:$0xff] (!%p356_p4)   ;;  %v1467_v37 = vld [vmem:[%s1812_s18 + $0x20] ss:$8 sps:$4 sm:$0xff] (!%p356_p4)  }
  0x4e   : > { %746 = vmatpush1.bf16.msra.mxu0 (!%p356_p4), %v1461_v33  ;;  %1365 = vmatpush1.bf16.msra.mxu1 (!%p356_p4), %v1461_v33  ;;  %v1468_v38 = vld [vmem:[%s1812_s18 + $0x34] ss:$8 sps:$4 sm:$0xff] (!%p356_p4)   ;;  %v1470_v39 = vld [vmem:[%s1812_s18 + $0x30] ss:$8 sps:$4 sm:$0xff] (!%p356_p4)   ;;  %v1471_v40 = vld [vmem:[%s1812_s18 + $0x44] ss:$8 sps:$4 sm:$0xff] (!%p356_p4)  }
  0x4f   : > { %747 = vmatprep.subr.bf16.mxu0 (!%p356_p4), %v1462_v34  ;;  %1350 = vmatprep.subr.bf16.mxu1 (!%p356_p4), %v1462_v34  ;;  %v1473_v41 = vld [vmem:[%s1812_s18 + $0x40] ss:$8 sps:$4 sm:$0xff] (!%p356_p4)   ;;  %v1474_v42 = vld [vmem:[%s1812_s18 + $0x54] ss:$8 sps:$4 sm:$0xff] (!%p356_p4)   ;;  %v1476_v43 = vld [vmem:[%s1812_s18 + $0x50] ss:$8 sps:$4 sm:$0xff] (!%p356_p4)  }
  0x50   : > { %v1477_v44 = vld [vmem:[%s1812_s18 + $0x64] ss:$8 sps:$4 sm:$0xff] (!%p356_p4)   ;;  %v1479_v46 = vld [vmem:[%s1812_s18 + $0x60] ss:$8 sps:$4 sm:$0xff] (!%p356_p4)   ;;  %v1480_v48 = vld [vmem:[%s1812_s18 + $0x74] ss:$8 sps:$4 sm:$0xff] (!%p356_p4)  }
  0x51   : > { %s2024_s22 = smov (!%p400_p5, %s399_s22), 79  ;;  %v1482_v49 = vld [vmem:[%s1812_s18 + $0x70] ss:$8 sps:$4 sm:$0xff]   ;;  %v1483_v50 = vld [vmem:[%s1812_s18 + $0x84] ss:$8 sps:$4 sm:$0xff]   ;;  %s408_s8 = sld [smem:[#allocation3 + %s1605_s23]] }
  0x52   : > { %748 = vmatpush1.bf16.msra.mxu0 %v1464_v35  ;;  %1366 = vmatpush1.bf16.msra.mxu1 %v1464_v35  ;;  %s1328_s19 = sshll.u32 %s2024_s22, 3  ;;  %v1485_v51 = vld [vmem:[%s1812_s18 + $0x80] ss:$8 sps:$4 sm:$0xff]   ;;  %v1486_v52 = vld [vmem:[%s1812_s18 + $0x94] ss:$8 sps:$4 sm:$0xff]   ;;  %s1874_s11 = sshll.u32 %s1609_s24, 1 }
  0x53   : > { %749 = vmatprep.subr.bf16.mxu0 %v1465_v36  ;;  %1351 = vmatprep.subr.bf16.mxu1 %v1465_v36  ;;  %s1830_s7 = scalar_lea.vmem %s2003_s1, %s1328_s19  ;;  %v1488_v53 = vld [vmem:[%s1812_s18 + $0x90] ss:$8 sps:$4 sm:$0xff]   ;;  %v1489_v54 = vld [vmem:[%s1812_s18 + $0xa4] ss:$8 sps:$4 sm:$0xff]   ;;  %v1491_v55 = vld [vmem:[%s1812_s18 + $0xa0] ss:$8 sps:$4 sm:$0xff]  }
  0x54   : > { %v1509_v45 = vld [vmem:[%s1830_s7 + $0x4] ss:$8 sps:$4 sm:$0xff]   ;;  %v1512_v47 = vld [vmem:[%s1830_s7 + $0x54] ss:$8 sps:$4 sm:$0xff]   ;;  %v1494_v57 = vld [vmem:[%s1812_s18 + $0xb0] ss:$8 sps:$4 sm:$0xff]  }
  0x55   : > { %777 = vmatprep.mubr.bf16.mxu0 %v1509_v45  ;;  %827 = vmatprep.mubr.bf16.mxu1 %v1512_v47  ;;  %v1492_v56 = vld [vmem:[%s1812_s18 + $0xb4] ss:$8 sps:$4 sm:$0xff]   ;;  %v1495_v58 = vld [vmem:[%s1812_s18 + $0xc4] ss:$8 sps:$4 sm:$0xff]   ;;  %v1497_v59 = vld [vmem:[%s1812_s18 + $0xc0] ss:$8 sps:$4 sm:$0xff]  }
  0x56   : > { %750 = vmatpush1.bf16.msra.mxu0 %v1467_v37  ;;  %1367 = vmatpush1.bf16.msra.mxu1 %v1467_v37  ;;  %v1498_v60 = vld [vmem:[%s1812_s18 + $0xd4] ss:$8 sps:$4 sm:$0xff]   ;;  %v1500_v61 = vld [vmem:[%s1812_s18 + $0xd0] ss:$8 sps:$4 sm:$0xff]   ;;  %v1501_v62 = vld [vmem:[%s1812_s18 + $0xe4] ss:$8 sps:$4 sm:$0xff]  }
  0x57   : > { %751 = vmatprep.subr.bf16.mxu0 %v1468_v38  ;;  %1352 = vmatprep.subr.bf16.mxu1 %v1468_v38  ;;  %v1503_v63 = vld [vmem:[%s1812_s18 + $0xe0] ss:$8 sps:$4 sm:$0xff]   ;;  %v1504_v0 = vld [vmem:[%s1812_s18 + $0xf4] ss:$8 sps:$4 sm:$0xff]   ;;  %v1506_v1 = vld [vmem:[%s1812_s18 + $0xf0] ss:$8 sps:$4 sm:$0xff]  }
  0x58   : > { %v1507_v2 = vld [vmem:[%s1830_s7] ss:$8 sps:$4 sm:$0xff]   ;;  %v1510_v3 = vld [vmem:[%s1830_s7 + $0x50] ss:$8 sps:$4 sm:$0xff]   ;;  %v1513_v4 = vld [vmem:[%s1830_s7 + $0x14] ss:$8 sps:$4 sm:$0xff]  }
  0x59   : > { %v1515_v5 = vld [vmem:[%s1830_s7 + $0x64] ss:$8 sps:$4 sm:$0xff]   ;;  %v1517_v6 = vld [vmem:[%s1830_s7 + $0x10] ss:$8 sps:$4 sm:$0xff]   ;;  %v1518_v7 = vld [vmem:[%s1830_s7 + $0x60] ss:$8 sps:$4 sm:$0xff]  }
  0x5a   : > { %752 = vmatpush1.bf16.msra.mxu0 %v1470_v39  ;;  %1368 = vmatpush1.bf16.msra.mxu1 %v1470_v39  ;;  %v1519_v8 = vld [vmem:[%s1830_s7 + $0x24] ss:$8 sps:$4 sm:$0xff]   ;;  %v1521_v9 = vld [vmem:[%s1830_s7 + $0x74] ss:$8 sps:$4 sm:$0xff]   ;;  %v1523_v10 = vld [vmem:[%s1830_s7 + $0x20] ss:$8 sps:$4 sm:$0xff]  }
  0x5b   : > { %753 = vmatprep.subr.bf16.mxu0 %v1471_v40  ;;  %1353 = vmatprep.subr.bf16.mxu1 %v1471_v40  ;;  %v1524_v11 = vld [vmem:[%s1830_s7 + $0x70] ss:$8 sps:$4 sm:$0xff]   ;;  %v1525_v12 = vld [vmem:[%s1830_s7 + $0x34] ss:$8 sps:$4 sm:$0xff]   ;;  %v1527_v13 = vld [vmem:[%s1830_s7 + $0x84] ss:$8 sps:$4 sm:$0xff]  }
  0x5c   : > { %v1529_v14 = vld [vmem:[%s1830_s7 + $0x30] ss:$8 sps:$4 sm:$0xff]   ;;  %v1530_v15 = vld [vmem:[%s1830_s7 + $0x80] ss:$8 sps:$4 sm:$0xff]   ;;  %v1531_v16 = vld [vmem:[%s1830_s7 + $0x44] ss:$8 sps:$4 sm:$0xff]  }
  0x5d   : > { %v1533_v17 = vld [vmem:[%s1830_s7 + $0x94] ss:$8 sps:$4 sm:$0xff]   ;;  %v1535_v18 = vld [vmem:[%s1830_s7 + $0x40] ss:$8 sps:$4 sm:$0xff]   ;;  %v1536_v19 = vld [vmem:[%s1830_s7 + $0x90] ss:$8 sps:$4 sm:$0xff]  }
  0x5e   : > { %754 = vmatpush1.bf16.msra.mxu0 %v1473_v41  ;;  %1369 = vmatpush1.bf16.msra.mxu1 %v1473_v41  ;;  %p410_p6 = scmp.lt.s32.totalorder %s408_s8, 1  ;;  %p412_p7 = scmp.lt.s32.totalorder %s1874_s11, 5  ;;  %v477_v22 = vsub.s32 0, %v476_v21  ;;  %v481_v24 = vsub.s32 1, %v476_v21 }
  0x5f   : > { %755 = vmatprep.subr.bf16.mxu0 %v1474_v42  ;;  %1354 = vmatprep.subr.bf16.mxu1 %v1474_v42  ;;  %s396_s18 = sand.u32 1, %s1589_s20   ;;  %s1385_s22 = smul.u32 (%p1722_p0), 120, %s1605_s23 }
  0x60   : > { %s2026_s8 = smov (!%p410_p6, %s408_s8), 1  ;;  %s1382_s24 = smul.u32 160, %s396_s18 }
  0x61   : > { %s413_s9 = scalar_select %p412_p7, %s1874_s11, 5 }
  0x62   : > { %756 = vmatpush1.bf16.msra.mxu0 %v1476_v43  ;;  %1370 = vmatpush1.bf16.msra.mxu1 %v1476_v43  ;;  %s1383_s12 = smul.u32 6, %s2026_s8  ;;  %s1894_s20 = scalar_lea.vmem [#allocation5], %s1382_s24 }
  0x63   : > { %757 = vmatprep.subr.bf16.mxu0 %v1477_v44  ;;  %1355 = vmatprep.subr.bf16.mxu1 %v1477_v44  ;;  %s1028_s15 = sadd.s32 (%p1722_p0), %s1385_s22, %s1874_s11 }
  0x64   : > { %s415_s6 = sadd.s32 %s1383_s12, %s413_s9  ;;  %s1325_s19 = sshll.u32 (%p1722_p0), %s1028_s15, 2 }
  0x65   : > { %s416_s14 = scalar_lea.vmem %s2005_s3, %s415_s6  ;;  %s1030_s23 = scalar_lea.vmem (%p1722_p0), %s2006_s4, %s1325_s19 }
  0x66   : > { %758 = vmatpush1.bf16.msra.mxu0 %v1479_v46  ;;  %1371 = vmatpush1.bf16.msra.mxu1 %v1479_v46  ;;  %v473_v23 = vld [vmem:[%s416_s14] sm:$0x3] }
  0x67   : > { %759 = vmatprep.subr.bf16.mxu0 %v1480_v48  ;;  %1356 = vmatprep.subr.bf16.mxu1 %v1480_v48  ;;  %v1882_v25 = vrot.slane %v473_v23, %v477_v22  ;;  %v1884_v26 = vrot.slane %v473_v23, %v481_v24 }
  0x6a   : > { %760 = vmatpush1.bf16.msra.mxu0 %v1482_v49  ;;  %1372 = vmatpush1.bf16.msra.mxu1 %v1482_v49 }
  0x6b   : > { %761 = vmatprep.subr.bf16.mxu0 %v1483_v50  ;;  %1357 = vmatprep.subr.bf16.mxu1 %v1483_v50 }
  0x6e   : > { %762 = vmatpush1.bf16.msra.mxu0 %v1485_v51  ;;  %1373 = vmatpush1.bf16.msra.mxu1 %v1485_v51 }
  0x6f   : > { %763 = vmatprep.subr.bf16.mxu0 %v1486_v52  ;;  %1358 = vmatprep.subr.bf16.mxu1 %v1486_v52 }
  0x72   : > { %764 = vmatpush1.bf16.msra.mxu0 %v1488_v53  ;;  %1374 = vmatpush1.bf16.msra.mxu1 %v1488_v53 }
  0x73   : > { %765 = vmatprep.subr.bf16.mxu0 %v1489_v54  ;;  %1359 = vmatprep.subr.bf16.mxu1 %v1489_v54 }
  0x76   : > { %766 = vmatpush1.bf16.msra.mxu0 %v1491_v55  ;;  %1375 = vmatpush1.bf16.msra.mxu1 %v1491_v55 }
  0x77   : > { %767 = vmatprep.subr.bf16.mxu0 %v1492_v56  ;;  %1360 = vmatprep.subr.bf16.mxu1 %v1492_v56 }
  0x7a   : > { %768 = vmatpush1.bf16.msra.mxu0 %v1494_v57  ;;  %1376 = vmatpush1.bf16.msra.mxu1 %v1494_v57 }
  0x7b   : > { %769 = vmatprep.subr.bf16.mxu0 %v1495_v58  ;;  %1361 = vmatprep.subr.bf16.mxu1 %v1495_v58 }
  0x7e   : > { %770 = vmatpush1.bf16.msra.mxu0 %v1497_v59  ;;  %1377 = vmatpush1.bf16.msra.mxu1 %v1497_v59 }
  0x7f   : > { %771 = vmatprep.subr.bf16.mxu0 %v1498_v60  ;;  %1362 = vmatprep.subr.bf16.mxu1 %v1498_v60 }
  0x82   : > { %772 = vmatpush1.bf16.msra.mxu0 %v1500_v61  ;;  %1378 = vmatpush1.bf16.msra.mxu1 %v1500_v61 }
  0x83   : > { %773 = vmatprep.subr.bf16.mxu0 %v1501_v62  ;;  %1363 = vmatprep.subr.bf16.mxu1 %v1501_v62 }
  0x86   : > { %774 = vmatpush1.bf16.msra.mxu0 %v1503_v63  ;;  %1379 = vmatpush1.bf16.msra.mxu1 %v1503_v63 }
  0x87   : > { %775 = vmatprep.subr.bf16.mxu0 %v1504_v0  ;;  %1364 = vmatprep.subr.bf16.mxu1 %v1504_v0 }
  0x8a   : > { %776 = vmatpush1.bf16.msra.mxu0 %v1506_v1  ;;  %1380 = vmatpush1.bf16.msra.mxu1 %v1506_v1 }
  0x8d   : > { %778 = vmatmul.mubr.bf16.vlgmr.msra.gmra.mrb[0].mxu0 %v1507_v2  ;;  %828 = vmatmul.mubr.bf16.vlgmr.msra.gmra.mrb[0].mxu1 %v1510_v3 }
  0x8e   : > { %787 = vmatprep.mubr.bf16.mxu0 %v1513_v4  ;;  %837 = vmatprep.mubr.bf16.mxu1 %v1515_v5 }
  0x95   : > { %788 = vmatmul.mubr.bf16.gmra.mrb[4].mxu0 %v1517_v6  ;;  %838 = vmatmul.mubr.bf16.gmra.mrb[4].mxu1 %v1518_v7 }
  0x96   : > { %797 = vmatprep.mubr.bf16.mxu0 %v1519_v8  ;;  %847 = vmatprep.mubr.bf16.mxu1 %v1521_v9 }
  0x9d   : > { %798 = vmatmul.mubr.bf16.gmra.mrb[8].mxu0 %v1523_v10  ;;  %848 = vmatmul.mubr.bf16.gmra.mrb[8].mxu1 %v1524_v11 }
  0x9e   : > { %807 = vmatprep.mubr.bf16.mxu0 %v1525_v12  ;;  %857 = vmatprep.mubr.bf16.mxu1 %v1527_v13 }
  0xa5   : > { %808 = vmatmul.mubr.bf16.gmra.mrb[12].mxu0 %v1529_v14  ;;  %858 = vmatmul.mubr.bf16.gmra.mrb[12].mxu1 %v1530_v15 }
  0xa6   : > { %817 = vmatprep.mubr.bf16.mxu0 %v1531_v16  ;;  %867 = vmatprep.mubr.bf16.mxu1 %v1533_v17 }
  0xad   : > { %818 = vmatmul.mubr.bf16.gmra.mrb[16].mxu0 %v1535_v18  ;;  %868 = vmatmul.mubr.bf16.gmra.mrb[16].mxu1 %v1536_v19 }
 0x160   : > { %v779_v27 = vpop.f32.mrb[0].mxu0  ;;  %v829_v28 = vpop.f32.mrb[0].mxu1 }
 0x161   : > { %v780_v29 = vadd.f32 %v779_v27, %v1882_v25  ;;  %v830_v30 = vadd.f32 %v829_v28, %v1882_v25  ;;  %v781_v31 = vpop.f32.mrb[1].mxu0  ;;  %v831_v32 = vpop.f32.mrb[1].mxu1 }
 0x162   : > { %v782_v33 = vadd.f32 %v781_v31, %v1884_v26  ;;  %v832_v34 = vadd.f32 %v831_v32, %v1884_v26  ;;  %v783_v35 = vpop.f32.mrb[2].mxu0  ;;  %v833_v36 = vpop.f32.mrb[2].mxu1 }
 0x163   : > { %v784_v37 = vadd.f32 %v783_v35, %v1882_v25  ;;  %v834_v38 = vadd.f32 %v833_v36, %v1882_v25  ;;  %v785_v39 = vpop.f32.mrb[3].mxu0  ;;  %v835_v40 = vpop.f32.mrb[3].mxu1 }
 0x164   : > { %v1329_v41 = vpack.c.bf16 %v782_v33, %v780_v29  ;;  %v1339_v42 = vpack.c.bf16 %v832_v34, %v830_v30  ;;  %v786_v43 = vadd.f32 %v785_v39, %v1884_v26  ;;  %v836_v44 = vadd.f32 %v835_v40, %v1884_v26 }
 0x166   : > { %998 = vst [vmem:[%s1894_s20] sm:$0xff] %v1329_v41  ;;  %1008 = vst [vmem:[%s1894_s20 + $0x50] sm:$0xff] %v1339_v42  ;;  %v1330_v45 = vpack.c.bf16 %v786_v43, %v784_v37  ;;  %v1340_v46 = vpack.c.bf16 %v836_v44, %v834_v38 }
 0x168   : > { %999 = vst [vmem:[%s1894_s20 + $0x8] sm:$0xff] %v1330_v45  ;;  %1009 = vst [vmem:[%s1894_s20 + $0x58] sm:$0xff] %v1340_v46  ;;  %v789_v47 = vpop.f32.mrb[4].mxu0  ;;  %v839_v48 = vpop.f32.mrb[4].mxu1 }
 0x169   : > { %v790_v49 = vadd.f32 %v789_v47, %v1882_v25  ;;  %v840_v50 = vadd.f32 %v839_v48, %v1882_v25  ;;  %v791_v51 = vpop.f32.mrb[5].mxu0  ;;  %v841_v52 = vpop.f32.mrb[5].mxu1 }
 0x16a   : > { %v792_v53 = vadd.f32 %v791_v51, %v1884_v26  ;;  %v842_v54 = vadd.f32 %v841_v52, %v1884_v26  ;;  %v793_v55 = vpop.f32.mrb[6].mxu0  ;;  %v843_v56 = vpop.f32.mrb[6].mxu1 }
 0x16b   : > { %v794_v57 = vadd.f32 %v793_v55, %v1882_v25  ;;  %v844_v58 = vadd.f32 %v843_v56, %v1882_v25  ;;  %v795_v59 = vpop.f32.mrb[7].mxu0  ;;  %v845_v60 = vpop.f32.mrb[7].mxu1 }
 0x16c   : > { %v1331_v61 = vpack.c.bf16 %v792_v53, %v790_v49  ;;  %v1341_v62 = vpack.c.bf16 %v842_v54, %v840_v50  ;;  %v796_v63 = vadd.f32 %v795_v59, %v1884_v26  ;;  %v846_v0 = vadd.f32 %v845_v60, %v1884_v26 }
 0x16e   : > { %1000 = vst [vmem:[%s1894_s20 + $0x10] sm:$0xff] %v1331_v61  ;;  %1010 = vst [vmem:[%s1894_s20 + $0x60] sm:$0xff] %v1341_v62  ;;  %v1332_v1 = vpack.c.bf16 %v796_v63, %v794_v57  ;;  %v1342_v2 = vpack.c.bf16 %v846_v0, %v844_v58 }
 0x170   : > { %1001 = vst [vmem:[%s1894_s20 + $0x18] sm:$0xff] %v1332_v1  ;;  %1011 = vst [vmem:[%s1894_s20 + $0x68] sm:$0xff] %v1342_v2  ;;  %v799_v3 = vpop.f32.mrb[8].mxu0  ;;  %v849_v4 = vpop.f32.mrb[8].mxu1 }
 0x171   : > { %v800_v5 = vadd.f32 %v799_v3, %v1882_v25  ;;  %v850_v6 = vadd.f32 %v849_v4, %v1882_v25  ;;  %v801_v7 = vpop.f32.mrb[9].mxu0  ;;  %v851_v8 = vpop.f32.mrb[9].mxu1 }
 0x172   : > { %v802_v9 = vadd.f32 %v801_v7, %v1884_v26  ;;  %v852_v10 = vadd.f32 %v851_v8, %v1884_v26  ;;  %v803_v11 = vpop.f32.mrb[10].mxu0  ;;  %v853_v12 = vpop.f32.mrb[10].mxu1 }
 0x173   : > { %v804_v13 = vadd.f32 %v803_v11, %v1882_v25  ;;  %v854_v14 = vadd.f32 %v853_v12, %v1882_v25  ;;  %v805_v15 = vpop.f32.mrb[11].mxu0  ;;  %v855_v16 = vpop.f32.mrb[11].mxu1 }
 0x174   : > { %v1333_v17 = vpack.c.bf16 %v802_v9, %v800_v5  ;;  %v1343_v18 = vpack.c.bf16 %v852_v10, %v850_v6  ;;  %v806_v19 = vadd.f32 %v805_v15, %v1884_v26  ;;  %v856_v20 = vadd.f32 %v855_v16, %v1884_v26  ;;  %v1116_v9 = vld [vmem:[%s1894_s20 + $0x50] sm:$0xff] (%p1722_p0)  ;;  %v1118_v10 = vld [vmem:[%s1894_s20 + $0x58] sm:$0xff] (%p1722_p0) }
 0x175   : > { %v1100_v1 = vld [vmem:[%s1894_s20 + $0x10] sm:$0xff] (%p1722_p0)  ;;  %v1120_v11 = vld [vmem:[%s1894_s20 + $0x60] sm:$0xff] (%p1722_p0)  ;;  %1117 = vst [vmem:[%s1030_s23 + $0xf0] sm:$0xff] (%p1722_p0), %v1116_v9  ;;  %1119 = vst [vmem:[%s1030_s23 + $0x108] sm:$0xff] (%p1722_p0), %v1118_v10 }
 0x176   : > { %1002 = vst [vmem:[%s1894_s20 + $0x20] sm:$0xff] %v1333_v17  ;;  %1012 = vst [vmem:[%s1894_s20 + $0x70] sm:$0xff] %v1343_v18  ;;  %v1334_v21 = vpack.c.bf16 %v806_v19, %v804_v13  ;;  %v1344_v22 = vpack.c.bf16 %v856_v20, %v854_v14 }
 0x177   : > { %v1102_v2 = vld [vmem:[%s1894_s20 + $0x18] sm:$0xff] (%p1722_p0)  ;;  %v1122_v12 = vld [vmem:[%s1894_s20 + $0x68] sm:$0xff] (%p1722_p0)  ;;  %1101 = vst [vmem:[%s1030_s23 + $0x30] sm:$0xff] (%p1722_p0), %v1100_v1  ;;  %1121 = vst [vmem:[%s1030_s23 + $0x120] sm:$0xff] (%p1722_p0), %v1120_v11 }
 0x178   : > { %1003 = vst [vmem:[%s1894_s20 + $0x28] sm:$0xff] %v1334_v21  ;;  %1013 = vst [vmem:[%s1894_s20 + $0x78] sm:$0xff] %v1344_v22  ;;  %v809_v23 = vpop.f32.mrb[12].mxu0  ;;  %v859_v24 = vpop.f32.mrb[12].mxu1 }
 0x179   : > { %v810_v27 = vadd.f32 %v809_v23, %v1882_v25  ;;  %v860_v28 = vadd.f32 %v859_v24, %v1882_v25  ;;  %v811_v29 = vpop.f32.mrb[13].mxu0  ;;  %v861_v30 = vpop.f32.mrb[13].mxu1  ;;  %1103 = vst [vmem:[%s1030_s23 + $0x48] sm:$0xff] (%p1722_p0), %v1102_v2  ;;  %1123 = vst [vmem:[%s1030_s23 + $0x138] sm:$0xff] (%p1722_p0), %v1122_v12 }
 0x17a   : > { %v812_v31 = vadd.f32 %v811_v29, %v1884_v26  ;;  %v862_v32 = vadd.f32 %v861_v30, %v1884_v26  ;;  %v813_v33 = vpop.f32.mrb[14].mxu0  ;;  %v863_v34 = vpop.f32.mrb[14].mxu1 }
 0x17b   : > { %v814_v35 = vadd.f32 %v813_v33, %v1882_v25  ;;  %v864_v36 = vadd.f32 %v863_v34, %v1882_v25  ;;  %v815_v37 = vpop.f32.mrb[15].mxu0  ;;  %v865_v38 = vpop.f32.mrb[15].mxu1 }
 0x17c   : > { %v1335_v39 = vpack.c.bf16 %v812_v31, %v810_v27  ;;  %v1345_v40 = vpack.c.bf16 %v862_v32, %v860_v28  ;;  %v816_v41 = vadd.f32 %v815_v37, %v1884_v26  ;;  %v866_v42 = vadd.f32 %v865_v38, %v1884_v26 }
 0x17d   : > { %v1104_v3 = vld [vmem:[%s1894_s20 + $0x20] sm:$0xff] (%p1722_p0)  ;;  %v1124_v13 = vld [vmem:[%s1894_s20 + $0x70] sm:$0xff] (%p1722_p0) }
 0x17e   : > { %1004 = vst [vmem:[%s1894_s20 + $0x30] sm:$0xff] %v1335_v39  ;;  %1014 = vst [vmem:[%s1894_s20 + $0x80] sm:$0xff] %v1345_v40  ;;  %v1336_v43 = vpack.c.bf16 %v816_v41, %v814_v35  ;;  %v1346_v44 = vpack.c.bf16 %v866_v42, %v864_v36 }
 0x17f   : > { %v1106_v4 = vld [vmem:[%s1894_s20 + $0x28] sm:$0xff] (%p1722_p0)  ;;  %1105 = vst [vmem:[%s1030_s23 + $0x60] sm:$0xff] (%p1722_p0), %v1104_v3  ;;  %1125 = vst [vmem:[%s1030_s23 + $0x150] sm:$0xff] (%p1722_p0), %v1124_v13  ;;  %v1126_v14 = vld [vmem:[%s1894_s20 + $0x78] sm:$0xff] (%p1722_p0) }
 0x180   : > { %1005 = vst [vmem:[%s1894_s20 + $0x38] sm:$0xff] %v1336_v43  ;;  %1015 = vst [vmem:[%s1894_s20 + $0x88] sm:$0xff] %v1346_v44  ;;  %v819_v45 = vpop.f32.mrb[16].mxu0  ;;  %v869_v46 = vpop.f32.mrb[16].mxu1 }
 0x181   : > { %v820_v47 = vadd.f32 %v819_v45, %v1882_v25  ;;  %v870_v48 = vadd.f32 %v869_v46, %v1882_v25  ;;  %v821_v49 = vpop.f32.mrb[17].mxu0  ;;  %v871_v50 = vpop.f32.mrb[17].mxu1  ;;  %1107 = vst [vmem:[%s1030_s23 + $0x78] sm:$0xff] (%p1722_p0), %v1106_v4  ;;  %1127 = vst [vmem:[%s1030_s23 + $0x168] sm:$0xff] (%p1722_p0), %v1126_v14 }
 0x182   : > { %v822_v51 = vadd.f32 %v821_v49, %v1884_v26  ;;  %v872_v52 = vadd.f32 %v871_v50, %v1884_v26  ;;  %v823_v53 = vpop.f32.mrb[18].mxu0  ;;  %v873_v54 = vpop.f32.mrb[18].mxu1  ;;  %1024 = sbr.rel (!%p1722_p0) target bundleno = 401 (0x191), region = 74 }
 0x183   : > { %v824_v55 = vadd.f32 %v823_v53, %v1882_v25  ;;  %v874_v56 = vadd.f32 %v873_v54, %v1882_v25  ;;  %v825_v57 = vpop.f32.mrb[19].mxu0  ;;  %v875_v58 = vpop.f32.mrb[19].mxu1  ;;  %v1096_v25 = vld [vmem:[%s1894_s20] sm:$0xff] (%p1722_p0) }
 0x184   : > { %v1337_v59 = vpack.c.bf16 %v822_v51, %v820_v47  ;;  %v1347_v60 = vpack.c.bf16 %v872_v52, %v870_v48  ;;  %v826_v61 = vadd.f32 %v825_v57, %v1884_v26  ;;  %v876_v62 = vadd.f32 %v875_v58, %v1884_v26  ;;  %v1098_v26 = vld [vmem:[%s1894_s20 + $0x8] sm:$0xff] (%p1722_p0)  ;;  %1097 = vst [vmem:[%s1030_s23] sm:$0xff] (%p1722_p0), %v1096_v25 }
 0x185   : > { %v1108_v5 = vld [vmem:[%s1894_s20 + $0x30] sm:$0xff] (%p1722_p0)  ;;  %1099 = vst [vmem:[%s1030_s23 + $0x18] sm:$0xff] (%p1722_p0), %v1098_v26  ;;  %v1128_v15 = vld [vmem:[%s1894_s20 + $0x80] sm:$0xff] (%p1722_p0) }
 0x186   : > { %1006 = vst [vmem:[%s1894_s20 + $0x40] sm:$0xff] %v1337_v59  ;;  %1016 = vst [vmem:[%s1894_s20 + $0x90] sm:$0xff] %v1347_v60  ;;  %v1338_v63 = vpack.c.bf16 %v826_v61, %v824_v55  ;;  %v1348_v0 = vpack.c.bf16 %v876_v62, %v874_v56 }
 0x187   : > { %v1110_v6 = vld [vmem:[%s1894_s20 + $0x38] sm:$0xff] (%p1722_p0)  ;;  %1109 = vst [vmem:[%s1030_s23 + $0x90] sm:$0xff] (%p1722_p0), %v1108_v5  ;;  %v1130_v16 = vld [vmem:[%s1894_s20 + $0x88] sm:$0xff] (%p1722_p0)  ;;  %1129 = vst [vmem:[%s1030_s23 + $0x180] sm:$0xff] (%p1722_p0), %v1128_v15 }
 0x188   : > { %1007 = vst [vmem:[%s1894_s20 + $0x48] sm:$0xff] %v1338_v63  ;;  %1017 = vst [vmem:[%s1894_s20 + $0x98] sm:$0xff] %v1348_v0 }
 0x189   : > { %1111 = vst [vmem:[%s1030_s23 + $0xa8] sm:$0xff] %v1110_v6  ;;  %1131 = vst [vmem:[%s1030_s23 + $0x198] sm:$0xff] %v1130_v16 }
 0x18d   : > { %v1112_v7 = vld [vmem:[%s1894_s20 + $0x40] sm:$0xff]  ;;  %v1132_v17 = vld [vmem:[%s1894_s20 + $0x90] sm:$0xff] }
 0x18e   : > { %1113 = vst [vmem:[%s1030_s23 + $0xc0] sm:$0xff] %v1112_v7  ;;  %1133 = vst [vmem:[%s1030_s23 + $0x1b0] sm:$0xff] %v1132_v17 }
 0x18f   : > { %v1114_v8 = vld [vmem:[%s1894_s20 + $0x48] sm:$0xff]  ;;  %v1134_v18 = vld [vmem:[%s1894_s20 + $0x98] sm:$0xff] }
 0x190   : > { %1115 = vst [vmem:[%s1030_s23 + $0xd8] sm:$0xff] %v1114_v8  ;;  %1135 = vst [vmem:[%s1030_s23 + $0x1c8] sm:$0xff] %v1134_v18 }
 0x191 PF: > { %s20_s27 = sadd.s32 1, %s1621_s27   ;;  %s2009_s20 = smov %s1593_s21 }
 0x192   : > { %p17_p8 = scmp.ge.s32.totalorder %s20_s27, 14   ;;  %s2010_s21 = smov %s1727_s16 }
 0x193   : > { %s2011_s22 = smov %s1601_s0  ;;  %s2012_s0 = smov %s1730_s17 }
 0x194   : > { %s2013_s23 = smov %s1613_s25  ;;  %s2014_s24 = smov %s1617_s26 }
 0x195   : > { %s2015_s25 = smov %s2018_s29  ;;  %s2016_s26 = smov %s2022_s30 }
 0x196   :  { %19 = sbr.rel (!%p17_p8) target bundleno = 20 (0x14), region = 149 }

// kernel: attention_sep_forward.5
= control target key start
LH: loop header
LB: loop body
LE: loop exit
PB: predicated region body
PF: predicated region fallthrough
CT: control target
= control target key end

     0   :  { %s1367_s0 = inlined_call_operand.vmem [shape: s32[4], index: 0, kind: input, shape index: {}]   ;;  %s1368_s1 = inlined_call_operand.vmem [shape: bf16[640,256], index: 1, kind: input, shape index: {}]   ;;  %s1369_s2 = inlined_call_operand.vmem [shape: bf16[2,256,256], index: 2, kind: input, shape index: {}]   ;;  %s1370_s3 = inlined_call_operand.vmem [shape: f32[2,1,256], index: 3, kind: input, shape index: {}]   ;;  %s1371_s4 = inlined_call_operand.vmem [shape: f32[640,256], index: 4, kind: output, shape index: {}]  }
   0x1   :  { %s9_s17 = sshll.u32 %s1367_s0, 4  ;;  %s10_s17 = int_to_ptr.vmem [resolvable:$true] %s9_s17 }
   0x2   :  { %s1110_s18 = scalar_lea.vmem %s10_s17, 16  ;;  %p1115_p1 = scmp.lt.s32.totalorder %s10_s17, %s10_s17 }
   0x3   :  { %p1111_p0 = scmp.ne.s32.totalorder %s10_s17, %s1110_s18  ;;  %p1116_p2 = scmp.lt.s32.totalorder %s1110_s18, %s1110_s18 }
   0x5   :  { %p1117_p3 = por %p1116_p2, %p1115_p1 }
   0x7   :  { %p1118_p4 = pnand %p1117_p3, %p1111_p0 }
   0x9   :  { %1121 = shalt.err (!%p1118_p4)  }
   0xa   :  { %s1148_s19 = smov [#allocation3]  }
   0xb   :  { %12 = dma.vmem_to_smem %s10_s17, 16, %s1148_s19, [#allocation2] }
   0xc   :  { %1134 = dma.done.wait [#allocation2], 16 }
   0xd   :  { %1135 = vsyncadd [#allocation2], 4294967280 }
   0xe   :  { %14 = sfence }
   0xf   :  { %s1177_s20 = smov 0   ;;  %s1179_s21 = smov 0  }
  0x10   :  { %s1181_s22 = smov 0  }
  0x11 LB: > { %s29_s0 = sadd.s32 1, %s1142_s21  ;;  %p910_p5 = scmp.ge.s32.totalorder %s1146_s22, 1  ;;  %s1146_s22 = sphi %s1181_s22, %s20_s22   ;;  %s1142_s21 = sphi %s1179_s21, %s1373_s21   ;;  %s1138_s20 = sphi %s1177_s20, %s1372_s20  }
  0x12   : > { %p30_p6 = scmp.ge.s32.totalorder %s29_s0, 4  ;;  %p201_p7 = scmp.lt.s32.totalorder %s1146_s22, 5 }
  0x14   : > { %s1375_s0 = smov (%p30_p6, %s29_s0), 0  ;;  %p202_p8 = pnand %p910_p5, %p201_p7 }
  0x15   : > { %s257_s23 = sld [smem:[#allocation3 + %s1138_s20]] (!%p202_p8)  ;;  %s250_s24 = smul.u32 (!%p202_p8), 20, %s1138_s20  ;;  %v346_v52 = vlaneseq (!%p202_p8) }
  0x16   : > { %205 = sbr.rel (%p202_p8) target bundleno = 348 (0x15c), region = 32  ;;  %s269_s7 = sld [smem:[#allocation3 + %s1138_s20]] (!%p202_p8) }
  0x17   : > { %p251_p9 = scmp.lt.s32.totalorder (!%p202_p8), %s250_s24, 79  ;;  %v347_v53 = vshrl.u32 (!%p202_p8), %v346_v52, 7 }
  0x19   : > { %v348_v54 = vsub.s32 (!%p202_p8), 0, %v347_v53  ;;  %v352_v56 = vsub.s32 (!%p202_p8), 1, %v347_v53 }
  0x1b   : > { %p259_p10 = scmp.lt.s32.totalorder (!%p202_p8), %s257_s23, 1 }
  0x1c   : > { %p271_p11 = scmp.lt.s32.totalorder (!%p202_p8), %s269_s7, 1 }
  0x1d   : > { %s1377_s24 = smov (!%p251_p9, %s250_s24), 79  ;;  %s1379_s23 = smov (!%p259_p10, %s257_s23), 1 }
  0x1e   : > { %s972_s25 = sshll.u32 %s1377_s24, 3  ;;  %s973_s29 = sshll.u32 %s1379_s23, 8 }
  0x1f   : > { %s1205_s28 = scalar_lea.vmem %s1368_s1, %s972_s25  ;;  %s1212_s6 = scalar_lea.vmem %s1369_s2, %s973_s29 }
  0x20   : > { %v1082_v0 = vld [vmem:[%s1205_s28 + $0x4] ss:$8 sps:$4 sm:$0xff]   ;;  %v1085_v1 = vld [vmem:[%s1205_s28 + $0x54] ss:$8 sps:$4 sm:$0xff]   ;;  %v1034_v3 = vld [vmem:[%s1212_s6] ss:$8 sps:$4 sm:$0xff]  }
  0x21   : > { %648 = vmatprep.mubr.bf16.mxu0 %v1082_v0  ;;  %v1032_v2 = vld [vmem:[%s1212_s6 + $0x4] ss:$8 sps:$4 sm:$0xff]   ;;  %698 = vmatprep.mubr.bf16.mxu1 %v1085_v1  ;;  %v1035_v4 = vld [vmem:[%s1212_s6 + $0x14] ss:$8 sps:$4 sm:$0xff]   ;;  %v1037_v5 = vld [vmem:[%s1212_s6 + $0x10] ss:$8 sps:$4 sm:$0xff]  }
  0x22   : > { %616 = vmatprep.subr.bf16.mxu0 %v1032_v2  ;;  %975 = vmatprep.subr.bf16.mxu1 %v1032_v2  ;;  %v1038_v6 = vld [vmem:[%s1212_s6 + $0x24] ss:$8 sps:$4 sm:$0xff]   ;;  %v1040_v7 = vld [vmem:[%s1212_s6 + $0x20] ss:$8 sps:$4 sm:$0xff]   ;;  %v1041_v8 = vld [vmem:[%s1212_s6 + $0x34] ss:$8 sps:$4 sm:$0xff]  }
  0x23   : > { %617 = vmatpush1.bf16.msra.mxu0 %v1034_v3  ;;  %991 = vmatpush1.bf16.msra.mxu1 %v1034_v3  ;;  %v1043_v9 = vld [vmem:[%s1212_s6 + $0x30] ss:$8 sps:$4 sm:$0xff]   ;;  %v1044_v10 = vld [vmem:[%s1212_s6 + $0x44] ss:$8 sps:$4 sm:$0xff]   ;;  %v1046_v11 = vld [vmem:[%s1212_s6 + $0x40] ss:$8 sps:$4 sm:$0xff]  }
  0x24   : > { %618 = vmatprep.subr.bf16.mxu0 %v1035_v4  ;;  %976 = vmatprep.subr.bf16.mxu1 %v1035_v4  ;;  %v1047_v12 = vld [vmem:[%s1212_s6 + $0x54] ss:$8 sps:$4 sm:$0xff]   ;;  %v1049_v13 = vld [vmem:[%s1212_s6 + $0x50] ss:$8 sps:$4 sm:$0xff]   ;;  %v1050_v14 = vld [vmem:[%s1212_s6 + $0x64] ss:$8 sps:$4 sm:$0xff]  }
  0x25   : > { %v1052_v15 = vld [vmem:[%s1212_s6 + $0x60] ss:$8 sps:$4 sm:$0xff]   ;;  %v1053_v16 = vld [vmem:[%s1212_s6 + $0x74] ss:$8 sps:$4 sm:$0xff]   ;;  %v1055_v17 = vld [vmem:[%s1212_s6 + $0x70] ss:$8 sps:$4 sm:$0xff]  }
  0x26   : > { %v1056_v18 = vld [vmem:[%s1212_s6 + $0x84] ss:$8 sps:$4 sm:$0xff]   ;;  %v1058_v19 = vld [vmem:[%s1212_s6 + $0x80] ss:$8 sps:$4 sm:$0xff]   ;;  %v1059_v20 = vld [vmem:[%s1212_s6 + $0x94] ss:$8 sps:$4 sm:$0xff]  }
  0x27   : > { %619 = vmatpush1.bf16.msra.mxu0 %v1037_v5  ;;  %992 = vmatpush1.bf16.msra.mxu1 %v1037_v5  ;;  %v1061_v21 = vld [vmem:[%s1212_s6 + $0x90] ss:$8 sps:$4 sm:$0xff]   ;;  %v1062_v22 = vld [vmem:[%s1212_s6 + $0xa4] ss:$8 sps:$4 sm:$0xff]   ;;  %v1064_v23 = vld [vmem:[%s1212_s6 + $0xa0] ss:$8 sps:$4 sm:$0xff]  }
  0x28   : > { %620 = vmatprep.subr.bf16.mxu0 %v1038_v6  ;;  %977 = vmatprep.subr.bf16.mxu1 %v1038_v6  ;;  %v1065_v24 = vld [vmem:[%s1212_s6 + $0xb4] ss:$8 sps:$4 sm:$0xff]   ;;  %v1067_v25 = vld [vmem:[%s1212_s6 + $0xb0] ss:$8 sps:$4 sm:$0xff]   ;;  %v1068_v26 = vld [vmem:[%s1212_s6 + $0xc4] ss:$8 sps:$4 sm:$0xff]  }
  0x29   : > { %v1070_v27 = vld [vmem:[%s1212_s6 + $0xc0] ss:$8 sps:$4 sm:$0xff]   ;;  %v1071_v28 = vld [vmem:[%s1212_s6 + $0xd4] ss:$8 sps:$4 sm:$0xff]   ;;  %v1073_v29 = vld [vmem:[%s1212_s6 + $0xd0] ss:$8 sps:$4 sm:$0xff]  }
  0x2a   : > { %v1074_v30 = vld [vmem:[%s1212_s6 + $0xe4] ss:$8 sps:$4 sm:$0xff]   ;;  %v1076_v31 = vld [vmem:[%s1212_s6 + $0xe0] ss:$8 sps:$4 sm:$0xff]   ;;  %v1077_v32 = vld [vmem:[%s1212_s6 + $0xf4] ss:$8 sps:$4 sm:$0xff]  }
  0x2b   : > { %621 = vmatpush1.bf16.msra.mxu0 %v1040_v7  ;;  %993 = vmatpush1.bf16.msra.mxu1 %v1040_v7  ;;  %v1079_v33 = vld [vmem:[%s1212_s6 + $0xf0] ss:$8 sps:$4 sm:$0xff]   ;;  %v1080_v34 = vld [vmem:[%s1205_s28] ss:$8 sps:$4 sm:$0xff]   ;;  %v1086_v36 = vld [vmem:[%s1205_s28 + $0x14] ss:$8 sps:$4 sm:$0xff]  }
  0x2c   : > { %622 = vmatprep.subr.bf16.mxu0 %v1041_v8  ;;  %978 = vmatprep.subr.bf16.mxu1 %v1041_v8  ;;  %v1083_v35 = vld [vmem:[%s1205_s28 + $0x50] ss:$8 sps:$4 sm:$0xff]   ;;  %v1088_v37 = vld [vmem:[%s1205_s28 + $0x64] ss:$8 sps:$4 sm:$0xff]   ;;  %v1091_v39 = vld [vmem:[%s1205_s28 + $0x60] ss:$8 sps:$4 sm:$0xff]  }
  0x2d   : > { %v1090_v38 = vld [vmem:[%s1205_s28 + $0x10] ss:$8 sps:$4 sm:$0xff]   ;;  %v1092_v40 = vld [vmem:[%s1205_s28 + $0x24] ss:$8 sps:$4 sm:$0xff]   ;;  %v1094_v41 = vld [vmem:[%s1205_s28 + $0x74] ss:$8 sps:$4 sm:$0xff]  }
  0x2e   : > { %v1096_v42 = vld [vmem:[%s1205_s28 + $0x20] ss:$8 sps:$4 sm:$0xff]   ;;  %v1097_v43 = vld [vmem:[%s1205_s28 + $0x70] ss:$8 sps:$4 sm:$0xff]   ;;  %v1098_v44 = vld [vmem:[%s1205_s28 + $0x34] ss:$8 sps:$4 sm:$0xff]  }
  0x2f   : > { %623 = vmatpush1.bf16.msra.mxu0 %v1043_v9  ;;  %994 = vmatpush1.bf16.msra.mxu1 %v1043_v9  ;;  %v1100_v45 = vld [vmem:[%s1205_s28 + $0x84] ss:$8 sps:$4 sm:$0xff]   ;;  %v1102_v46 = vld [vmem:[%s1205_s28 + $0x30] ss:$8 sps:$4 sm:$0xff]   ;;  %v1103_v47 = vld [vmem:[%s1205_s28 + $0x80] ss:$8 sps:$4 sm:$0xff]  }
  0x30   : > { %624 = vmatprep.subr.bf16.mxu0 %v1044_v10  ;;  %979 = vmatprep.subr.bf16.mxu1 %v1044_v10  ;;  %v1104_v48 = vld [vmem:[%s1205_s28 + $0x44] ss:$8 sps:$4 sm:$0xff]   ;;  %v1106_v49 = vld [vmem:[%s1205_s28 + $0x94] ss:$8 sps:$4 sm:$0xff]   ;;  %v1108_v50 = vld [vmem:[%s1205_s28 + $0x40] ss:$8 sps:$4 sm:$0xff]  }
  0x31   : > { %v1109_v51 = vld [vmem:[%s1205_s28 + $0x90] ss:$8 sps:$4 sm:$0xff]   ;;  %s1381_s7 = smov (!%p271_p11, %s269_s7), 1  ;;  %s974_s12 = sshll.u32 %s1377_s24, 4 }
  0x32   : > { %s915_s8 = sshll.u32 %s1381_s7, 1  ;;  %s1276_s15 = scalar_lea.vmem %s1371_s4, %s974_s12 }
  0x33   : > { %625 = vmatpush1.bf16.msra.mxu0 %v1046_v11  ;;  %995 = vmatpush1.bf16.msra.mxu1 %v1046_v11  ;;  %s277_s11 = scalar_lea.vmem %s1370_s3, %s915_s8 }
  0x34   : > { %626 = vmatprep.subr.bf16.mxu0 %v1047_v12  ;;  %980 = vmatprep.subr.bf16.mxu1 %v1047_v12  ;;  %v344_v55 = vld [vmem:[%s277_s11] sm:$0x3] }
  0x35   : > { %v1269_v57 = vrot.slane %v344_v55, %v348_v54  ;;  %v1271_v58 = vrot.slane %v344_v55, %v352_v56 }
  0x37   : > { %627 = vmatpush1.bf16.msra.mxu0 %v1049_v13  ;;  %996 = vmatpush1.bf16.msra.mxu1 %v1049_v13 }
  0x38   : > { %628 = vmatprep.subr.bf16.mxu0 %v1050_v14  ;;  %981 = vmatprep.subr.bf16.mxu1 %v1050_v14 }
  0x3b   : > { %629 = vmatpush1.bf16.msra.mxu0 %v1052_v15  ;;  %997 = vmatpush1.bf16.msra.mxu1 %v1052_v15 }
  0x3c   : > { %630 = vmatprep.subr.bf16.mxu0 %v1053_v16  ;;  %982 = vmatprep.subr.bf16.mxu1 %v1053_v16 }
  0x3f   : > { %631 = vmatpush1.bf16.msra.mxu0 %v1055_v17  ;;  %998 = vmatpush1.bf16.msra.mxu1 %v1055_v17 }
  0x40   : > { %632 = vmatprep.subr.bf16.mxu0 %v1056_v18  ;;  %983 = vmatprep.subr.bf16.mxu1 %v1056_v18 }
  0x43   : > { %633 = vmatpush1.bf16.msra.mxu0 %v1058_v19  ;;  %999 = vmatpush1.bf16.msra.mxu1 %v1058_v19 }
  0x44   : > { %634 = vmatprep.subr.bf16.mxu0 %v1059_v20  ;;  %984 = vmatprep.subr.bf16.mxu1 %v1059_v20 }
  0x47   : > { %635 = vmatpush1.bf16.msra.mxu0 %v1061_v21  ;;  %1000 = vmatpush1.bf16.msra.mxu1 %v1061_v21 }
  0x48   : > { %636 = vmatprep.subr.bf16.mxu0 %v1062_v22  ;;  %985 = vmatprep.subr.bf16.mxu1 %v1062_v22 }
  0x4b   : > { %637 = vmatpush1.bf16.msra.mxu0 %v1064_v23  ;;  %1001 = vmatpush1.bf16.msra.mxu1 %v1064_v23 }
  0x4c   : > { %638 = vmatprep.subr.bf16.mxu0 %v1065_v24  ;;  %986 = vmatprep.subr.bf16.mxu1 %v1065_v24 }
  0x4f   : > { %639 = vmatpush1.bf16.msra.mxu0 %v1067_v25  ;;  %1002 = vmatpush1.bf16.msra.mxu1 %v1067_v25 }
  0x50   : > { %640 = vmatprep.subr.bf16.mxu0 %v1068_v26  ;;  %987 = vmatprep.subr.bf16.mxu1 %v1068_v26 }
  0x53   : > { %641 = vmatpush1.bf16.msra.mxu0 %v1070_v27  ;;  %1003 = vmatpush1.bf16.msra.mxu1 %v1070_v27 }
  0x54   : > { %642 = vmatprep.subr.bf16.mxu0 %v1071_v28  ;;  %988 = vmatprep.subr.bf16.mxu1 %v1071_v28 }
  0x57   : > { %643 = vmatpush1.bf16.msra.mxu0 %v1073_v29  ;;  %1004 = vmatpush1.bf16.msra.mxu1 %v1073_v29 }
  0x58   : > { %644 = vmatprep.subr.bf16.mxu0 %v1074_v30  ;;  %989 = vmatprep.subr.bf16.mxu1 %v1074_v30 }
  0x5b   : > { %645 = vmatpush1.bf16.msra.mxu0 %v1076_v31  ;;  %1005 = vmatpush1.bf16.msra.mxu1 %v1076_v31 }
  0x5c   : > { %646 = vmatprep.subr.bf16.mxu0 %v1077_v32  ;;  %990 = vmatprep.subr.bf16.mxu1 %v1077_v32 }
  0x5f   : > { %647 = vmatpush1.bf16.msra.mxu0 %v1079_v33  ;;  %1006 = vmatpush1.bf16.msra.mxu1 %v1079_v33 }
  0x62   : > { %649 = vmatmul.mubr.bf16.vlgmr.msra.gmra.mrb[0].mxu0 %v1080_v34  ;;  %699 = vmatmul.mubr.bf16.vlgmr.msra.gmra.mrb[0].mxu1 %v1083_v35 }
  0x63   : > { %658 = vmatprep.mubr.bf16.mxu0 %v1086_v36  ;;  %708 = vmatprep.mubr.bf16.mxu1 %v1088_v37 }
  0x6a   : > { %659 = vmatmul.mubr.bf16.gmra.mrb[4].mxu0 %v1090_v38  ;;  %709 = vmatmul.mubr.bf16.gmra.mrb[4].mxu1 %v1091_v39 }
  0x6b   : > { %668 = vmatprep.mubr.bf16.mxu0 %v1092_v40  ;;  %718 = vmatprep.mubr.bf16.mxu1 %v1094_v41 }
  0x72   : > { %669 = vmatmul.mubr.bf16.gmra.mrb[8].mxu0 %v1096_v42  ;;  %719 = vmatmul.mubr.bf16.gmra.mrb[8].mxu1 %v1097_v43 }
  0x73   : > { %678 = vmatprep.mubr.bf16.mxu0 %v1098_v44  ;;  %728 = vmatprep.mubr.bf16.mxu1 %v1100_v45 }
  0x7a   : > { %679 = vmatmul.mubr.bf16.gmra.mrb[12].mxu0 %v1102_v46  ;;  %729 = vmatmul.mubr.bf16.gmra.mrb[12].mxu1 %v1103_v47 }
  0x7b   : > { %688 = vmatprep.mubr.bf16.mxu0 %v1104_v48  ;;  %738 = vmatprep.mubr.bf16.mxu1 %v1106_v49 }
  0x82   : > { %689 = vmatmul.mubr.bf16.gmra.mrb[16].mxu0 %v1108_v50  ;;  %739 = vmatmul.mubr.bf16.gmra.mrb[16].mxu1 %v1109_v51 }
 0x135   : > { %v650_v59 = vpop.f32.mrb[0].mxu0  ;;  %v700_v60 = vpop.f32.mrb[0].mxu1 }
 0x136   : > { %v651_v61 = vadd.f32 %v650_v59, %v1269_v57  ;;  %v701_v62 = vadd.f32 %v700_v60, %v1269_v57  ;;  %v652_v63 = vpop.f32.mrb[1].mxu0  ;;  %v702_v0 = vpop.f32.mrb[1].mxu1 }
 0x137   : > { %v653_v1 = vadd.f32 %v652_v63, %v1271_v58  ;;  %v703_v2 = vadd.f32 %v702_v0, %v1271_v58  ;;  %v654_v3 = vpop.f32.mrb[2].mxu0  ;;  %v704_v4 = vpop.f32.mrb[2].mxu1 }
 0x138   : > { %749 = vst [vmem:[%s1276_s15] sm:$0xff] %v651_v61  ;;  %769 = vst [vmem:[%s1276_s15 + $0xa0] sm:$0xff] %v701_v62  ;;  %v655_v5 = vadd.f32 %v654_v3, %v1269_v57  ;;  %v705_v6 = vadd.f32 %v704_v4, %v1269_v57  ;;  %v656_v7 = vpop.f32.mrb[3].mxu0  ;;  %v706_v8 = vpop.f32.mrb[3].mxu1 }
 0x139   : > { %750 = vst [vmem:[%s1276_s15 + $0x8] sm:$0xff] %v653_v1  ;;  %770 = vst [vmem:[%s1276_s15 + $0xa8] sm:$0xff] %v703_v2  ;;  %v657_v9 = vadd.f32 %v656_v7, %v1271_v58  ;;  %v707_v10 = vadd.f32 %v706_v8, %v1271_v58 }
 0x13a   : > { %751 = vst [vmem:[%s1276_s15 + $0x10] sm:$0xff] %v655_v5  ;;  %771 = vst [vmem:[%s1276_s15 + $0xb0] sm:$0xff] %v705_v6 }
 0x13b   : > { %752 = vst [vmem:[%s1276_s15 + $0x18] sm:$0xff] %v657_v9  ;;  %772 = vst [vmem:[%s1276_s15 + $0xb8] sm:$0xff] %v707_v10 }
 0x13d   : > { %v660_v11 = vpop.f32.mrb[4].mxu0  ;;  %v710_v12 = vpop.f32.mrb[4].mxu1 }
 0x13e   : > { %v661_v13 = vadd.f32 %v660_v11, %v1269_v57  ;;  %v711_v14 = vadd.f32 %v710_v12, %v1269_v57  ;;  %v662_v15 = vpop.f32.mrb[5].mxu0  ;;  %v712_v16 = vpop.f32.mrb[5].mxu1 }
 0x13f   : > { %v663_v17 = vadd.f32 %v662_v15, %v1271_v58  ;;  %v713_v18 = vadd.f32 %v712_v16, %v1271_v58  ;;  %v664_v19 = vpop.f32.mrb[6].mxu0  ;;  %v714_v20 = vpop.f32.mrb[6].mxu1 }
 0x140   : > { %753 = vst [vmem:[%s1276_s15 + $0x20] sm:$0xff] %v661_v13  ;;  %773 = vst [vmem:[%s1276_s15 + $0xc0] sm:$0xff] %v711_v14  ;;  %v665_v21 = vadd.f32 %v664_v19, %v1269_v57  ;;  %v715_v22 = vadd.f32 %v714_v20, %v1269_v57  ;;  %v666_v23 = vpop.f32.mrb[7].mxu0  ;;  %v716_v24 = vpop.f32.mrb[7].mxu1 }
 0x141   : > { %754 = vst [vmem:[%s1276_s15 + $0x28] sm:$0xff] %v663_v17  ;;  %774 = vst [vmem:[%s1276_s15 + $0xc8] sm:$0xff] %v713_v18  ;;  %v667_v25 = vadd.f32 %v666_v23, %v1271_v58  ;;  %v717_v26 = vadd.f32 %v716_v24, %v1271_v58 }
 0x142   : > { %755 = vst [vmem:[%s1276_s15 + $0x30] sm:$0xff] %v665_v21  ;;  %775 = vst [vmem:[%s1276_s15 + $0xd0] sm:$0xff] %v715_v22 }
 0x143   : > { %756 = vst [vmem:[%s1276_s15 + $0x38] sm:$0xff] %v667_v25  ;;  %776 = vst [vmem:[%s1276_s15 + $0xd8] sm:$0xff] %v717_v26 }
 0x145   : > { %v670_v27 = vpop.f32.mrb[8].mxu0  ;;  %v720_v28 = vpop.f32.mrb[8].mxu1 }
 0x146   : > { %v671_v29 = vadd.f32 %v670_v27, %v1269_v57  ;;  %v721_v30 = vadd.f32 %v720_v28, %v1269_v57  ;;  %v672_v31 = vpop.f32.mrb[9].mxu0  ;;  %v722_v32 = vpop.f32.mrb[9].mxu1 }
 0x147   : > { %v673_v33 = vadd.f32 %v672_v31, %v1271_v58  ;;  %v723_v34 = vadd.f32 %v722_v32, %v1271_v58  ;;  %v674_v35 = vpop.f32.mrb[10].mxu0  ;;  %v724_v36 = vpop.f32.mrb[10].mxu1 }
 0x148   : > { %757 = vst [vmem:[%s1276_s15 + $0x40] sm:$0xff] %v671_v29  ;;  %777 = vst [vmem:[%s1276_s15 + $0xe0] sm:$0xff] %v721_v30  ;;  %v675_v37 = vadd.f32 %v674_v35, %v1269_v57  ;;  %v725_v38 = vadd.f32 %v724_v36, %v1269_v57  ;;  %v676_v39 = vpop.f32.mrb[11].mxu0  ;;  %v726_v40 = vpop.f32.mrb[11].mxu1 }
 0x149   : > { %758 = vst [vmem:[%s1276_s15 + $0x48] sm:$0xff] %v673_v33  ;;  %778 = vst [vmem:[%s1276_s15 + $0xe8] sm:$0xff] %v723_v34  ;;  %v677_v41 = vadd.f32 %v676_v39, %v1271_v58  ;;  %v727_v42 = vadd.f32 %v726_v40, %v1271_v58 }
 0x14a   : > { %759 = vst [vmem:[%s1276_s15 + $0x50] sm:$0xff] %v675_v37  ;;  %779 = vst [vmem:[%s1276_s15 + $0xf0] sm:$0xff] %v725_v38 }
 0x14b   : > { %760 = vst [vmem:[%s1276_s15 + $0x58] sm:$0xff] %v677_v41  ;;  %780 = vst [vmem:[%s1276_s15 + $0xf8] sm:$0xff] %v727_v42 }
 0x14d   : > { %v680_v43 = vpop.f32.mrb[12].mxu0  ;;  %v730_v44 = vpop.f32.mrb[12].mxu1 }
 0x14e   : > { %v681_v45 = vadd.f32 %v680_v43, %v1269_v57  ;;  %v731_v46 = vadd.f32 %v730_v44, %v1269_v57  ;;  %v682_v47 = vpop.f32.mrb[13].mxu0  ;;  %v732_v48 = vpop.f32.mrb[13].mxu1 }
 0x14f   : > { %v683_v49 = vadd.f32 %v682_v47, %v1271_v58  ;;  %v733_v50 = vadd.f32 %v732_v48, %v1271_v58  ;;  %v684_v51 = vpop.f32.mrb[14].mxu0  ;;  %v734_v52 = vpop.f32.mrb[14].mxu1 }
 0x150   : > { %761 = vst [vmem:[%s1276_s15 + $0x60] sm:$0xff] %v681_v45  ;;  %781 = vst [vmem:[%s1276_s15 + $0x100] sm:$0xff] %v731_v46  ;;  %v685_v53 = vadd.f32 %v684_v51, %v1269_v57  ;;  %v735_v54 = vadd.f32 %v734_v52, %v1269_v57  ;;  %v686_v55 = vpop.f32.mrb[15].mxu0  ;;  %v736_v56 = vpop.f32.mrb[15].mxu1 }
 0x151   : > { %762 = vst [vmem:[%s1276_s15 + $0x68] sm:$0xff] %v683_v49  ;;  %782 = vst [vmem:[%s1276_s15 + $0x108] sm:$0xff] %v733_v50  ;;  %v687_v59 = vadd.f32 %v686_v55, %v1271_v58  ;;  %v737_v60 = vadd.f32 %v736_v56, %v1271_v58 }
 0x152   : > { %763 = vst [vmem:[%s1276_s15 + $0x70] sm:$0xff] %v685_v53  ;;  %783 = vst [vmem:[%s1276_s15 + $0x110] sm:$0xff] %v735_v54 }
 0x153   : > { %764 = vst [vmem:[%s1276_s15 + $0x78] sm:$0xff] %v687_v59  ;;  %784 = vst [vmem:[%s1276_s15 + $0x118] sm:$0xff] %v737_v60 }
 0x155   : > { %v690_v61 = vpop.f32.mrb[16].mxu0  ;;  %v740_v62 = vpop.f32.mrb[16].mxu1 }
 0x156   : > { %v691_v63 = vadd.f32 %v690_v61, %v1269_v57  ;;  %v741_v0 = vadd.f32 %v740_v62, %v1269_v57  ;;  %v692_v1 = vpop.f32.mrb[17].mxu0  ;;  %v742_v2 = vpop.f32.mrb[17].mxu1 }
 0x157   : > { %v693_v3 = vadd.f32 %v692_v1, %v1271_v58  ;;  %v743_v4 = vadd.f32 %v742_v2, %v1271_v58  ;;  %v694_v5 = vpop.f32.mrb[18].mxu0  ;;  %v744_v6 = vpop.f32.mrb[18].mxu1 }
 0x158   : > { %765 = vst [vmem:[%s1276_s15 + $0x80] sm:$0xff] %v691_v63  ;;  %785 = vst [vmem:[%s1276_s15 + $0x120] sm:$0xff] %v741_v0  ;;  %v695_v7 = vadd.f32 %v694_v5, %v1269_v57  ;;  %v745_v8 = vadd.f32 %v744_v6, %v1269_v57  ;;  %v696_v9 = vpop.f32.mrb[19].mxu0  ;;  %v746_v10 = vpop.f32.mrb[19].mxu1 }
 0x159   : > { %766 = vst [vmem:[%s1276_s15 + $0x88] sm:$0xff] %v693_v3  ;;  %786 = vst [vmem:[%s1276_s15 + $0x128] sm:$0xff] %v743_v4  ;;  %v697_v11 = vadd.f32 %v696_v9, %v1271_v58  ;;  %v747_v12 = vadd.f32 %v746_v10, %v1271_v58 }
 0x15a   : > { %767 = vst [vmem:[%s1276_s15 + $0x90] sm:$0xff] %v695_v7  ;;  %787 = vst [vmem:[%s1276_s15 + $0x130] sm:$0xff] %v745_v8 }
 0x15b   : > { %768 = vst [vmem:[%s1276_s15 + $0x98] sm:$0xff] %v697_v11  ;;  %788 = vst [vmem:[%s1276_s15 + $0x138] sm:$0xff] %v747_v12 }
 0x15c PF: > { %s20_s22 = sadd.s32 1, %s1146_s22   ;;  %s1372_s20 = smov %s1142_s21 }
 0x15d   : > { %p17_p12 = scmp.ge.s32.totalorder %s20_s22, 6   ;;  %s1373_s21 = smov %s1375_s0 }
 0x15f   :  { %19 = sbr.rel (!%p17_p12) target bundleno = 17 (0x11), region = 68 }

// kernel: attention_sep_forward.4
= control target key start
LH: loop header
LB: loop body
LE: loop exit
PB: predicated region body
PF: predicated region fallthrough
CT: control target
= control target key end

     0   :  { %s7048_s6 = smov 0   ;;  %s7050_s7 = smov 0   ;;  %s10869_s0 = inlined_call_operand.vmem [shape: bf16[2,320,768], index: 0, kind: input, shape index: {}]   ;;  %s10870_s1 = inlined_call_operand.vmem [shape: bf16[2,320,256], index: 1, kind: output, shape index: {}]  }
   0x1   :  { %s7052_s8 = smov 0   ;;  %s7054_s9 = smov 0  }
   0x2   :  { %s7056_s10 = smov 0   ;;  %s7058_s11 = smov 0  }
   0x3   :  { %s7060_s12 = smov 0  }
   0x4 LB: > { %s20_s13 = sadd.s32 1, %s7026_s10  ;;  %s23_s14 = sadd.s32 1, %s7030_s11  ;;  %s7034_s12 = sphi %s7060_s12, %s11_s12   ;;  %s7030_s11 = sphi %s7058_s11, %s11865_s11   ;;  %s7026_s10 = sphi %s7056_s10, %s11864_s10   ;;  %s7022_s9 = sphi %s7054_s9, %s11863_s9   ;;  %s7018_s8 = sphi %s7052_s8, %s11862_s8   ;;  %s7014_s7 = sphi %s7050_s7, %s11861_s7   ;;  %s7010_s6 = sphi %s7048_s6, %s11860_s6  }
   0x5   : > { %p21_p0 = scmp.ge.s32.totalorder %s20_s13, 2  ;;  %s5340_s15 = sadd.s32 4294967295, %s7034_s12  }
   0x6   : > { %p39_p1 = scmp.ne.s32.totalorder %s7014_s7, %s7010_s6  ;;  %p40_p2 = scmp.eq.s32.totalorder %s7034_s12, 0 }
   0x7   : > { %s11867_s13 = smov (%p21_p0, %s20_s13), 0  ;;  %s11869_s14 = smov (!%p21_p0, %s23_s14), %s7030_s11 }
   0x8   : > { %p25_p3 = scmp.ge.s32.totalorder %s11869_s14, 2  ;;  %p71_p4 = scmp.eq.s32.totalorder %s5340_s15, 3 }
   0x9   : > { %s28_s16 = ssub.s32 %s7026_s10, %s11867_s13  ;;  %p41_p5 = por %p40_p2, %p39_p1 }
   0xa   : > { %s11871_s14 = smov (%p25_p3, %s11869_s14), 0  ;;  %p7096_p6 = por %p71_p4, %p39_p1 }
   0xb   : > { %s27_s18 = ssub.s32 %s7030_s11, %s11871_s14  ;;  %s32_s20 = sadd.s32 1, %s7014_s7 }
   0xc   : > { %s29_s19 = sor.u32 %s28_s16, %s27_s18  ;;  %p5343_p8 = scmp.ge.s32.totalorder %s7034_s12, 4 }
   0xd   : > { %p30_p7 = scmp.eq.s32.totalorder %s29_s19, 0 }
   0xe   : > { %93 = sbr.rel (%p5343_p8) target bundleno = 76 (0x4c), region = 16 }
   0xf   : > { %s7104_s21 = scalar_select %p30_p7, %s7014_s7, %s32_s20  }
  0x15   : > { %96 = sbr.rel (!%p41_p5) target bundleno = 76 (0x4c), region = 20  ;;  %s98_s22 = sand.u32 (%p41_p5), 1, %s7014_s7  }
  0x16   : > { %s101_s23 = smul.u32 (%p41_p5), 3, %s7026_s10 }
  0x17   : > { %s6156_s24 = smul.u32 (%p41_p5), 480, %s98_s22 }
  0x18   : > { %s6157_s25 = smul.u32 (%p41_p5), 240, %s7030_s11 }
  0x19   : > { %s7118_s2 = scalar_lea.vmem (%p41_p5), [#allocation2], %s6156_s24 }
  0x1a   : > { %s103_s26 = sadd.s32 (%p41_p5), %s6157_s25, %s101_s23 }
  0x1b   : > { %s5344_s27 = sshll.u32 (%p41_p5), %s103_s26, 2 }
  0x1c   : > { %s7113_s30 = scalar_lea.vmem %s10869_s0, %s5344_s27 }
  0x1d   : > { %v120_v0 = vld [vmem:[%s7113_s30] sm:$0xff]  ;;  %v122_v1 = vld [vmem:[%s7113_s30 + $0x18] sm:$0xff]  ;;  %v124_v2 = vld [vmem:[%s7113_s30 + $0x30] sm:$0xff] }
  0x1e   : > { %121 = vst [vmem:[%s7118_s2] sm:$0xff] %v120_v0  ;;  %123 = vst [vmem:[%s7118_s2 + $0xc] sm:$0xff] %v122_v1  ;;  %v126_v3 = vld [vmem:[%s7113_s30 + $0x48] sm:$0xff]  ;;  %v128_v4 = vld [vmem:[%s7113_s30 + $0x60] sm:$0xff] }
  0x1f   : > { %125 = vst [vmem:[%s7118_s2 + $0x18] sm:$0xff] %v124_v2  ;;  %v130_v5 = vld [vmem:[%s7113_s30 + $0x78] sm:$0xff]  ;;  %127 = vst [vmem:[%s7118_s2 + $0x24] sm:$0xff] %v126_v3  ;;  %v132_v6 = vld [vmem:[%s7113_s30 + $0x90] sm:$0xff] }
  0x20   : > { %129 = vst [vmem:[%s7118_s2 + $0x30] sm:$0xff] %v128_v4  ;;  %131 = vst [vmem:[%s7118_s2 + $0x3c] sm:$0xff] %v130_v5  ;;  %v134_v7 = vld [vmem:[%s7113_s30 + $0xa8] sm:$0xff]  ;;  %v136_v8 = vld [vmem:[%s7113_s30 + $0xc0] sm:$0xff] }
  0x21   : > { %133 = vst [vmem:[%s7118_s2 + $0x48] sm:$0xff] %v132_v6  ;;  %135 = vst [vmem:[%s7118_s2 + $0x54] sm:$0xff] %v134_v7  ;;  %v138_v9 = vld [vmem:[%s7113_s30 + $0xd8] sm:$0xff]  ;;  %v140_v10 = vld [vmem:[%s7113_s30 + $0xf0] sm:$0xff] }
  0x22   : > { %137 = vst [vmem:[%s7118_s2 + $0x60] sm:$0xff] %v136_v8  ;;  %v142_v11 = vld [vmem:[%s7113_s30 + $0x108] sm:$0xff]  ;;  %139 = vst [vmem:[%s7118_s2 + $0x6c] sm:$0xff] %v138_v9  ;;  %v144_v12 = vld [vmem:[%s7113_s30 + $0x120] sm:$0xff] }
  0x23   : > { %141 = vst [vmem:[%s7118_s2 + $0x78] sm:$0xff] %v140_v10  ;;  %143 = vst [vmem:[%s7118_s2 + $0x84] sm:$0xff] %v142_v11  ;;  %v146_v13 = vld [vmem:[%s7113_s30 + $0x138] sm:$0xff]  ;;  %v148_v14 = vld [vmem:[%s7113_s30 + $0x150] sm:$0xff] }
  0x24   : > { %145 = vst [vmem:[%s7118_s2 + $0x90] sm:$0xff] %v144_v12  ;;  %147 = vst [vmem:[%s7118_s2 + $0x9c] sm:$0xff] %v146_v13  ;;  %v150_v15 = vld [vmem:[%s7113_s30 + $0x168] sm:$0xff]  ;;  %v152_v16 = vld [vmem:[%s7113_s30 + $0x180] sm:$0xff] }
  0x25   : > { %149 = vst [vmem:[%s7118_s2 + $0xa8] sm:$0xff] %v148_v14  ;;  %v154_v17 = vld [vmem:[%s7113_s30 + $0x198] sm:$0xff]  ;;  %151 = vst [vmem:[%s7118_s2 + $0xb4] sm:$0xff] %v150_v15  ;;  %v156_v18 = vld [vmem:[%s7113_s30 + $0x1b0] sm:$0xff] }
  0x26   : > { %153 = vst [vmem:[%s7118_s2 + $0xc0] sm:$0xff] %v152_v16  ;;  %155 = vst [vmem:[%s7118_s2 + $0xcc] sm:$0xff] %v154_v17  ;;  %v158_v19 = vld [vmem:[%s7113_s30 + $0x1c8] sm:$0xff]  ;;  %v160_v20 = vld [vmem:[%s7113_s30 + $0x1e0] sm:$0xff] }
  0x27   : > { %157 = vst [vmem:[%s7118_s2 + $0xd8] sm:$0xff] %v156_v18  ;;  %159 = vst [vmem:[%s7118_s2 + $0xe4] sm:$0xff] %v158_v19  ;;  %v162_v21 = vld [vmem:[%s7113_s30 + $0x1f8] sm:$0xff]  ;;  %v164_v22 = vld [vmem:[%s7113_s30 + $0x210] sm:$0xff] }
  0x28   : > { %161 = vst [vmem:[%s7118_s2 + $0xf0] sm:$0xff] %v160_v20  ;;  %v166_v23 = vld [vmem:[%s7113_s30 + $0x228] sm:$0xff]  ;;  %163 = vst [vmem:[%s7118_s2 + $0xfc] sm:$0xff] %v162_v21  ;;  %v168_v24 = vld [vmem:[%s7113_s30 + $0x240] sm:$0xff] }
  0x29   : > { %165 = vst [vmem:[%s7118_s2 + $0x108] sm:$0xff] %v164_v22  ;;  %167 = vst [vmem:[%s7118_s2 + $0x114] sm:$0xff] %v166_v23  ;;  %v170_v25 = vld [vmem:[%s7113_s30 + $0x258] sm:$0xff]  ;;  %v172_v26 = vld [vmem:[%s7113_s30 + $0x270] sm:$0xff] }
  0x2a   : > { %169 = vst [vmem:[%s7118_s2 + $0x120] sm:$0xff] %v168_v24  ;;  %171 = vst [vmem:[%s7118_s2 + $0x12c] sm:$0xff] %v170_v25  ;;  %v174_v27 = vld [vmem:[%s7113_s30 + $0x288] sm:$0xff]  ;;  %v176_v28 = vld [vmem:[%s7113_s30 + $0x2a0] sm:$0xff] }
  0x2b   : > { %173 = vst [vmem:[%s7118_s2 + $0x138] sm:$0xff] %v172_v26  ;;  %v178_v29 = vld [vmem:[%s7113_s30 + $0x2b8] sm:$0xff]  ;;  %175 = vst [vmem:[%s7118_s2 + $0x144] sm:$0xff] %v174_v27  ;;  %v180_v30 = vld [vmem:[%s7113_s30 + $0x2d0] sm:$0xff] }
  0x2c   : > { %177 = vst [vmem:[%s7118_s2 + $0x150] sm:$0xff] %v176_v28  ;;  %179 = vst [vmem:[%s7118_s2 + $0x15c] sm:$0xff] %v178_v29  ;;  %v182_v31 = vld [vmem:[%s7113_s30 + $0x2e8] sm:$0xff]  ;;  %v184_v32 = vld [vmem:[%s7113_s30 + $0x300] sm:$0xff] }
  0x2d   : > { %181 = vst [vmem:[%s7118_s2 + $0x168] sm:$0xff] %v180_v30  ;;  %183 = vst [vmem:[%s7118_s2 + $0x174] sm:$0xff] %v182_v31  ;;  %v186_v33 = vld [vmem:[%s7113_s30 + $0x318] sm:$0xff]  ;;  %v188_v34 = vld [vmem:[%s7113_s30 + $0x330] sm:$0xff] }
  0x2e   : > { %185 = vst [vmem:[%s7118_s2 + $0x180] sm:$0xff] %v184_v32  ;;  %v190_v35 = vld [vmem:[%s7113_s30 + $0x348] sm:$0xff]  ;;  %187 = vst [vmem:[%s7118_s2 + $0x18c] sm:$0xff] %v186_v33  ;;  %v192_v36 = vld [vmem:[%s7113_s30 + $0x360] sm:$0xff] }
  0x2f   : > { %189 = vst [vmem:[%s7118_s2 + $0x198] sm:$0xff] %v188_v34  ;;  %191 = vst [vmem:[%s7118_s2 + $0x1a4] sm:$0xff] %v190_v35  ;;  %v194_v37 = vld [vmem:[%s7113_s30 + $0x378] sm:$0xff]  ;;  %v196_v38 = vld [vmem:[%s7113_s30 + $0x390] sm:$0xff] }
  0x30   : > { %193 = vst [vmem:[%s7118_s2 + $0x1b0] sm:$0xff] %v192_v36  ;;  %195 = vst [vmem:[%s7118_s2 + $0x1bc] sm:$0xff] %v194_v37  ;;  %v198_v39 = vld [vmem:[%s7113_s30 + $0x3a8] sm:$0xff]  ;;  %v5347_v41 = vld [vmem:[%s7113_s30 + $0x20] sm:$0xf] }
  0x31   : > { %197 = vst [vmem:[%s7118_s2 + $0x1c8] sm:$0xff] %v196_v38  ;;  %v5345_v40 = vld [vmem:[%s7113_s30 + $0x8] sm:$0xf]  ;;  %199 = vst [vmem:[%s7118_s2 + $0x1d4] sm:$0xff] %v198_v39  ;;  %v5349_v42 = vld [vmem:[%s7113_s30 + $0x38] sm:$0xf] }
  0x32   : > { %5346 = vst [vmem:[%s7118_s2 + $0x8] sm:$0xf] %v5345_v40  ;;  %5348 = vst [vmem:[%s7118_s2 + $0x14] sm:$0xf] %v5347_v41  ;;  %v5351_v43 = vld [vmem:[%s7113_s30 + $0x50] sm:$0xf] }
  0x33   : > { %v5353_v44 = vld [vmem:[%s7113_s30 + $0x68] sm:$0xf]  ;;  %5350 = vst [vmem:[%s7118_s2 + $0x20] sm:$0xf] %v5349_v42  ;;  %5352 = vst [vmem:[%s7118_s2 + $0x2c] sm:$0xf] %v5351_v43 }
  0x34   : > { %5354 = vst [vmem:[%s7118_s2 + $0x38] sm:$0xf] %v5353_v44  ;;  %v5355_v45 = vld [vmem:[%s7113_s30 + $0x80] sm:$0xf]  ;;  %v5357_v46 = vld [vmem:[%s7113_s30 + $0x98] sm:$0xf] }
  0x35   : > { %v5359_v47 = vld [vmem:[%s7113_s30 + $0xb0] sm:$0xf]  ;;  %5356 = vst [vmem:[%s7118_s2 + $0x44] sm:$0xf] %v5355_v45  ;;  %5358 = vst [vmem:[%s7118_s2 + $0x50] sm:$0xf] %v5357_v46 }
  0x36   : > { %5360 = vst [vmem:[%s7118_s2 + $0x5c] sm:$0xf] %v5359_v47  ;;  %v5361_v48 = vld [vmem:[%s7113_s30 + $0xc8] sm:$0xf]  ;;  %v5363_v49 = vld [vmem:[%s7113_s30 + $0xe0] sm:$0xf] }
  0x37   : > { %v5365_v50 = vld [vmem:[%s7113_s30 + $0xf8] sm:$0xf]  ;;  %5362 = vst [vmem:[%s7118_s2 + $0x68] sm:$0xf] %v5361_v48  ;;  %5364 = vst [vmem:[%s7118_s2 + $0x74] sm:$0xf] %v5363_v49 }
  0x38   : > { %5366 = vst [vmem:[%s7118_s2 + $0x80] sm:$0xf] %v5365_v50  ;;  %v5367_v51 = vld [vmem:[%s7113_s30 + $0x110] sm:$0xf]  ;;  %v5369_v52 = vld [vmem:[%s7113_s30 + $0x128] sm:$0xf] }
  0x39   : > { %v5371_v53 = vld [vmem:[%s7113_s30 + $0x140] sm:$0xf]  ;;  %5368 = vst [vmem:[%s7118_s2 + $0x8c] sm:$0xf] %v5367_v51  ;;  %5370 = vst [vmem:[%s7118_s2 + $0x98] sm:$0xf] %v5369_v52 }
  0x3a   : > { %5372 = vst [vmem:[%s7118_s2 + $0xa4] sm:$0xf] %v5371_v53  ;;  %v5373_v54 = vld [vmem:[%s7113_s30 + $0x158] sm:$0xf]  ;;  %v5375_v55 = vld [vmem:[%s7113_s30 + $0x170] sm:$0xf] }
  0x3b   : > { %v5377_v56 = vld [vmem:[%s7113_s30 + $0x188] sm:$0xf]  ;;  %5374 = vst [vmem:[%s7118_s2 + $0xb0] sm:$0xf] %v5373_v54  ;;  %5376 = vst [vmem:[%s7118_s2 + $0xbc] sm:$0xf] %v5375_v55 }
  0x3c   : > { %5378 = vst [vmem:[%s7118_s2 + $0xc8] sm:$0xf] %v5377_v56  ;;  %v5379_v57 = vld [vmem:[%s7113_s30 + $0x1a0] sm:$0xf]  ;;  %v5381_v58 = vld [vmem:[%s7113_s30 + $0x1b8] sm:$0xf] }
  0x3d   : > { %v5383_v59 = vld [vmem:[%s7113_s30 + $0x1d0] sm:$0xf]  ;;  %5380 = vst [vmem:[%s7118_s2 + $0xd4] sm:$0xf] %v5379_v57  ;;  %5382 = vst [vmem:[%s7118_s2 + $0xe0] sm:$0xf] %v5381_v58 }
  0x3e   : > { %5384 = vst [vmem:[%s7118_s2 + $0xec] sm:$0xf] %v5383_v59  ;;  %v5385_v60 = vld [vmem:[%s7113_s30 + $0x1e8] sm:$0xf]  ;;  %v5387_v61 = vld [vmem:[%s7113_s30 + $0x200] sm:$0xf] }
  0x3f   : > { %v5389_v62 = vld [vmem:[%s7113_s30 + $0x218] sm:$0xf]  ;;  %5386 = vst [vmem:[%s7118_s2 + $0xf8] sm:$0xf] %v5385_v60  ;;  %5388 = vst [vmem:[%s7118_s2 + $0x104] sm:$0xf] %v5387_v61 }
  0x40   : > { %5390 = vst [vmem:[%s7118_s2 + $0x110] sm:$0xf] %v5389_v62  ;;  %v5391_v63 = vld [vmem:[%s7113_s30 + $0x230] sm:$0xf]  ;;  %v5393_v0 = vld [vmem:[%s7113_s30 + $0x248] sm:$0xf] }
  0x41   : > { %v5395_v1 = vld [vmem:[%s7113_s30 + $0x260] sm:$0xf]  ;;  %5392 = vst [vmem:[%s7118_s2 + $0x11c] sm:$0xf] %v5391_v63  ;;  %5394 = vst [vmem:[%s7118_s2 + $0x128] sm:$0xf] %v5393_v0 }
  0x42   : > { %5396 = vst [vmem:[%s7118_s2 + $0x134] sm:$0xf] %v5395_v1  ;;  %v5397_v2 = vld [vmem:[%s7113_s30 + $0x278] sm:$0xf]  ;;  %v5399_v3 = vld [vmem:[%s7113_s30 + $0x290] sm:$0xf] }
  0x43   : > { %v5401_v4 = vld [vmem:[%s7113_s30 + $0x2a8] sm:$0xf]  ;;  %5398 = vst [vmem:[%s7118_s2 + $0x140] sm:$0xf] %v5397_v2  ;;  %5400 = vst [vmem:[%s7118_s2 + $0x14c] sm:$0xf] %v5399_v3 }
  0x44   : > { %5402 = vst [vmem:[%s7118_s2 + $0x158] sm:$0xf] %v5401_v4  ;;  %v5403_v5 = vld [vmem:[%s7113_s30 + $0x2c0] sm:$0xf]  ;;  %v5405_v6 = vld [vmem:[%s7113_s30 + $0x2d8] sm:$0xf] }
  0x45   : > { %v5407_v7 = vld [vmem:[%s7113_s30 + $0x2f0] sm:$0xf]  ;;  %5404 = vst [vmem:[%s7118_s2 + $0x164] sm:$0xf] %v5403_v5  ;;  %5406 = vst [vmem:[%s7118_s2 + $0x170] sm:$0xf] %v5405_v6 }
  0x46   : > { %5408 = vst [vmem:[%s7118_s2 + $0x17c] sm:$0xf] %v5407_v7  ;;  %v5409_v8 = vld [vmem:[%s7113_s30 + $0x308] sm:$0xf]  ;;  %v5411_v9 = vld [vmem:[%s7113_s30 + $0x320] sm:$0xf] }
  0x47   : > { %v5413_v10 = vld [vmem:[%s7113_s30 + $0x338] sm:$0xf]  ;;  %5410 = vst [vmem:[%s7118_s2 + $0x188] sm:$0xf] %v5409_v8  ;;  %5412 = vst [vmem:[%s7118_s2 + $0x194] sm:$0xf] %v5411_v9 }
  0x48   : > { %5414 = vst [vmem:[%s7118_s2 + $0x1a0] sm:$0xf] %v5413_v10  ;;  %v5415_v11 = vld [vmem:[%s7113_s30 + $0x350] sm:$0xf]  ;;  %v5417_v12 = vld [vmem:[%s7113_s30 + $0x368] sm:$0xf] }
  0x49   : > { %v5419_v13 = vld [vmem:[%s7113_s30 + $0x380] sm:$0xf]  ;;  %5416 = vst [vmem:[%s7118_s2 + $0x1ac] sm:$0xf] %v5415_v11  ;;  %5418 = vst [vmem:[%s7118_s2 + $0x1b8] sm:$0xf] %v5417_v12 }
  0x4a   : > { %5420 = vst [vmem:[%s7118_s2 + $0x1c4] sm:$0xf] %v5419_v13  ;;  %v5421_v14 = vld [vmem:[%s7113_s30 + $0x398] sm:$0xf]  ;;  %v5423_v15 = vld [vmem:[%s7113_s30 + $0x3b0] sm:$0xf] }
  0x4b   : > { %5422 = vst [vmem:[%s7118_s2 + $0x1d0] sm:$0xf] %v5421_v14  ;;  %5424 = vst [vmem:[%s7118_s2 + $0x1dc] sm:$0xf] %v5423_v15 }
  0x4c PF: > { %p5425_p9 = scmp.ge.s32.totalorder %s7034_s12, 1  ;;  %p291_p10 = scmp.lt.s32.totalorder %s7034_s12, 5 }
  0x4e   : > { %p292_p11 = pnand %p5425_p9, %p291_p10 }
  0x50   : > { %295 = sbr.rel (%p292_p11) target bundleno = 1938 (0x792), region = 46 }
  0x57   : > { %s298_s3 = sand.u32 1, %s7010_s6   ;;  %v438_v23 = vlaneseq  ;;  %v11166_v39 = vmov 0  ;;  %vm1173_vm8 = vcmask 523264   ;;  %s6160_s16 = smul.u32 (%p7096_p6), 80, %s7022_s9 }
  0x58   : > { %s6158_s4 = smul.u32 480, %s298_s3 }
  0x59   : > { %v7294_v27 = vand.u32 127, %v438_v23  ;;  %s6159_s15 = smul.u32 160, %s298_s3  ;;  %s5065_s17 = sadd.s32 (%p7096_p6), %s7018_s8, %s6160_s16 }
  0x5a   : > { %s7282_s5 = scalar_lea.vmem [#allocation2], %s6158_s4  ;;  %s5586_s18 = sshll.u32 (%p7096_p6), %s5065_s17, 2 }
  0x5b   : > { %v6219_v16 = vld [vmem:[%s7282_s5 + $0xc4] ss:$12 sps:$4 sm:$0xff]   ;;  %v6221_v18 = vld [vmem:[%s7282_s5 + $0xdc] ss:$12 sps:$4 sm:$0xff]   ;;  %v6223_v20 = vld [vmem:[%s7282_s5 + $0xf4] ss:$12 sps:$4 sm:$0xff]   ;;  %s10776_s22 = scalar_lea.vmem (%p7096_p6), %s10870_s1, %s5586_s18 }
  0x5c   : > { %v6220_v17 = vld [vmem:[%s7282_s5 + $0x4] ss:$12 sps:$4 sm:$0xff]   ;;  %5748 = vmatprep.subr.bf16.mxu0 %v6219_v16  ;;  %v6222_v19 = vld [vmem:[%s7282_s5 + $0x1c] ss:$12 sps:$4 sm:$0xff]   ;;  %v6224_v24 = vld [vmem:[%s7282_s5 + $0x34] ss:$12 sps:$4 sm:$0xff]  }
  0x5d   : > { %5749 = vmatpush3.bf16.xpose.msra.mxu0 %v6220_v17  ;;  %v6227_v21 = vld [vmem:[%s7282_s5 + $0x184] ss:$12 sps:$4 sm:$0xff]   ;;  %v6230_v22 = vld [vmem:[%s7282_s5 + $0x19c] ss:$12 sps:$4 sm:$0xff]   ;;  %v6225_v25 = vld [vmem:[%s7282_s5 + $0x10c] ss:$12 sps:$4 sm:$0xff]  }
  0x5e   : > { %5750 = vmatprep.subr.bf16.mxu0 %v6221_v18  ;;  %5956 = vmatprep.subr.bf16.mxu1 %v6227_v21  ;;  %v6233_v26 = vld [vmem:[%s7282_s5 + $0x1b4] ss:$12 sps:$4 sm:$0xff]   ;;  %11163 = vst [vmem:[#allocation4_spill] sm:$0xff] %v7294_v27  ;;  %v319_v29 = vld [vmem:[%s7282_s5 + $0xc] sm:$0xf]  ;;  %vm461_vm0 = vcmp.lt.s32.totalorder %v7294_v27, 64 }
  0x5f   : > { %5957 = vmatpush3.bf16.xpose.msra.mxu1 %v6227_v21  ;;  %v318_v28 = vld [vmem:[%s7282_s5] sm:$0xf]  ;;  %vm2759_vm1 = vcmp.ge.s32.totalorder %v7294_v27, 64  ;;  %v6226_v30 = vld [vmem:[%s7282_s5 + $0x4c] ss:$12 sps:$4 sm:$0xff]   ;;  %vm7304_vm2 = vmpackc.low %vm461_vm0, %vm461_vm0  ;;  %s10557_s6 = scalar_lea.vmem [#allocation3], %s6159_s15 }
  0x60   : > { %5958 = vmatprep.subr.bf16.mxu1 %v6230_v22  ;;  %v6228_v32 = vld [vmem:[%s7282_s5 + $0x124] ss:$12 sps:$4 sm:$0xff]   ;;  %v6236_v33 = vld [vmem:[%s7282_s5 + $0x1cc] ss:$12 sps:$4 sm:$0xff]   ;;  %v466_v34 = vsel %vm7304_vm2, %v318_v28, 0  ;;  %v467_v35 = vsel %vm7304_vm2, %v319_v29, 0  ;;  %vm7321_vm3 = vmpackc.low %vm2759_vm1, %vm2759_vm1 }
  0x61   : > { %v7314_v36 = vcombine.low %v466_v34, %v467_v35  ;;  %v320_v37 = vld [vmem:[%s7282_s5 + $0x18] sm:$0xf]  ;;  %v321_v38 = vld [vmem:[%s7282_s5 + $0x24] sm:$0xf]  ;;  %v11167_v39 = vsel %vm7321_vm3, 4294967295, %v11166_v39 }
  0x62   : > { %11168 = vst [vmem:[#allocation5_spill] sm:$0xff] %v11167_v39  ;;  %v2767_v40 = vsel %vm7321_vm3, %v320_v37, 0  ;;  %v2768_v41 = vsel %vm7321_vm3, %v321_v38, 0  ;;  %v6229_v43 = vld [vmem:[%s7282_s5 + $0x64] ss:$12 sps:$4 sm:$0xff]   ;;  %v468_v47 = vsel %vm7304_vm2, %v320_v37, 0 }
  0x63   : > { %5964 = vmatprep.mubr.bf16.mxu1 %v7314_v36  ;;  %v7330_v42 = vcombine.low %v2767_v40, %v2768_v41  ;;  %5764 = vmatprep.mubr.bf16.mxu0 %v7314_v36  ;;  %v6231_v44 = vld [vmem:[%s7282_s5 + $0x13c] ss:$12 sps:$4 sm:$0xff]   ;;  %v322_v45 = vld [vmem:[%s7282_s5 + $0x30] sm:$0xf]  ;;  %v469_v48 = vsel %vm7304_vm2, %v321_v38, 0 }
  0x64   : > { %v323_v46 = vld [vmem:[%s7282_s5 + $0x3c] sm:$0xf]  ;;  %v470_v49 = vsel %vm7304_vm2, %v322_v45, 0  ;;  %v324_v52 = vld [vmem:[%s7282_s5 + $0x48] sm:$0xf]  ;;  %v5427_v55 = vcombine.low %v468_v47, %v469_v48 }
  0x65   : > { %5751 = vmatpush3.bf16.xpose.msra.mxu0 %v6222_v19  ;;  %11169 = vst [vmem:[#allocation6_spill] sm:$0xff] %v7330_v42  ;;  %v471_v50 = vsel %vm7304_vm2, %v323_v46, 0  ;;  %v6232_v51 = vld [vmem:[%s7282_s5 + $0x7c] ss:$12 sps:$4 sm:$0xff]   ;;  %v325_v53 = vld [vmem:[%s7282_s5 + $0x54] sm:$0xf] }
  0x66   : > { %5752 = vmatprep.subr.bf16.mxu0 %v6223_v20  ;;  %v6234_v54 = vld [vmem:[%s7282_s5 + $0x154] ss:$12 sps:$4 sm:$0xff]   ;;  %v327_v57 = vld [vmem:[%s7282_s5 + $0x6c] sm:$0xf]  ;;  %v7351_v58 = vcombine.low %v470_v49, %v471_v50  ;;  %v472_v59 = vsel %vm7304_vm2, %v324_v52, 0  ;;  %v473_v60 = vsel %vm7304_vm2, %v325_v53, 0 }
  0x67   : > { %5959 = vmatpush3.bf16.xpose.msra.mxu1 %v6230_v22  ;;  %v326_v56 = vld [vmem:[%s7282_s5 + $0x60] sm:$0xf]  ;;  %v475_v62 = vsel %vm7304_vm2, %v327_v57, 0  ;;  %v6237_v0 = vld [vmem:[%s7282_s5 + $0x16c] ss:$12 sps:$4 sm:$0xff]   ;;  %v7364_v1 = vcombine.low %v472_v59, %v473_v60 }
  0x68   : > { %5960 = vmatprep.subr.bf16.mxu1 %v6233_v26  ;;  %v474_v61 = vsel %vm7304_vm2, %v326_v56, 0  ;;  %v6235_v63 = vld [vmem:[%s7282_s5 + $0x94] ss:$12 sps:$4 sm:$0xff]   ;;  %v328_v2 = vld [vmem:[%s7282_s5 + $0x78] sm:$0xf] }
  0x69   : > { %v329_v3 = vld [vmem:[%s7282_s5 + $0x84] sm:$0xf]  ;;  %v7368_v4 = vcombine.low %v474_v61, %v475_v62  ;;  %v330_v5 = vld [vmem:[%s7282_s5 + $0x90] sm:$0xf]  ;;  %v331_v6 = vld [vmem:[%s7282_s5 + $0x9c] sm:$0xf] }
  0x6a   : > { %v476_v7 = vsel %vm7304_vm2, %v328_v2, 0  ;;  %v477_v8 = vsel %vm7304_vm2, %v329_v3, 0  ;;  %v478_v9 = vsel %vm7304_vm2, %v330_v5, 0  ;;  %v479_v10 = vsel %vm7304_vm2, %v331_v6, 0  ;;  %v6238_v12 = vld [vmem:[%s7282_s5 + $0xac] ss:$12 sps:$4 sm:$0xff]  }
  0x6b   : > { %v7382_v11 = vcombine.low %v476_v7, %v477_v8  ;;  %v7385_v13 = vcombine.low %v478_v9, %v479_v10  ;;  %v332_v14 = vld [vmem:[%s7282_s5 + $0xa8] sm:$0xf]  ;;  %v333_v15 = vld [vmem:[%s7282_s5 + $0xb4] sm:$0xf]  ;;  %v334_v16 = vld [vmem:[%s7282_s5 + $0xc0] sm:$0xf] }
  0x6c   : > { %v335_v17 = vld [vmem:[%s7282_s5 + $0xcc] sm:$0xf]  ;;  %v480_v18 = vsel %vm7304_vm2, %v332_v14, 0  ;;  %v481_v19 = vsel %vm7304_vm2, %v333_v15, 0  ;;  %v482_v20 = vsel %vm7304_vm2, %v334_v16, 0 }
  0x6d   : > { %5753 = vmatpush3.bf16.xpose.msra.mxu0 %v6224_v24  ;;  %v483_v21 = vsel %vm7304_vm2, %v335_v17, 0  ;;  %v7401_v22 = vcombine.low %v480_v18, %v481_v19  ;;  %v336_v24 = vld [vmem:[%s7282_s5 + $0xd8] sm:$0xf]  ;;  %v339_v28 = vld [vmem:[%s7282_s5 + $0xfc] sm:$0xf] }
  0x6e   : > { %5754 = vmatprep.subr.bf16.mxu0 %v6225_v25  ;;  %v7403_v23 = vcombine.low %v482_v20, %v483_v21  ;;  %v337_v25 = vld [vmem:[%s7282_s5 + $0xe4] sm:$0xf]  ;;  %v484_v29 = vsel %vm7304_vm2, %v336_v24, 0  ;;  %v341_v37 = vld [vmem:[%s7282_s5 + $0x114] sm:$0xf] }
  0x6f   : > { %5961 = vmatpush3.bf16.xpose.msra.mxu1 %v6233_v26  ;;  %v338_v26 = vld [vmem:[%s7282_s5 + $0xf0] sm:$0xf]  ;;  %v489_v40 = vsel %vm7304_vm2, %v341_v37, 0  ;;  %v342_v41 = vld [vmem:[%s7282_s5 + $0x120] sm:$0xf] }
  0x70   : > { %5962 = vmatprep.subr.bf16.mxu1 %v6236_v33  ;;  %v490_v45 = vsel %vm7304_vm2, %v342_v41, 0  ;;  %v344_v47 = vld [vmem:[%s7282_s5 + $0x138] sm:$0xf]  ;;  %v345_v48 = vld [vmem:[%s7282_s5 + $0x144] sm:$0xf] }
  0x71   : > { %v492_v50 = vsel %vm7304_vm2, %v344_v47, 0  ;;  %v346_v52 = vld [vmem:[%s7282_s5 + $0x150] sm:$0xf]  ;;  %v347_v53 = vld [vmem:[%s7282_s5 + $0x15c] sm:$0xf] }
  0x72   : > { %v495_v56 = vsel %vm7304_vm2, %v347_v53, 0  ;;  %v348_v57 = vld [vmem:[%s7282_s5 + $0x168] sm:$0xf]  ;;  %v350_v62 = vld [vmem:[%s7282_s5 + $0x180] sm:$0xf] }
  0x73   : > { %v496_v60 = vsel %vm7304_vm2, %v348_v57, 0  ;;  %v498_v2 = vsel %vm7304_vm2, %v350_v62, 0  ;;  %v352_v3 = vld [vmem:[%s7282_s5 + $0x198] sm:$0xf]  ;;  %v353_v5 = vld [vmem:[%s7282_s5 + $0x1a4] sm:$0xf] }
  0x74   : > { %v500_v7 = vsel %vm7304_vm2, %v352_v3, 0  ;;  %v501_v8 = vsel %vm7304_vm2, %v353_v5, 0  ;;  %v354_v9 = vld [vmem:[%s7282_s5 + $0x1b0] sm:$0xf]  ;;  %v355_v10 = vld [vmem:[%s7282_s5 + $0x1bc] sm:$0xf] }
  0x75   : > { %5755 = vmatpush3.bf16.xpose.msra.mxu0 %v6226_v30  ;;  %v485_v30 = vsel %vm7304_vm2, %v337_v25, 0  ;;  %v502_v14 = vsel %vm7304_vm2, %v354_v9, 0  ;;  %v357_v16 = vld [vmem:[%s7282_s5 + $0x1d4] sm:$0xf] }
  0x76   : > { %5756 = vmatprep.subr.bf16.mxu0 %v6228_v32  ;;  %v486_v32 = vsel %vm7304_vm2, %v338_v26, 0  ;;  %v7420_v34 = vcombine.low %v484_v29, %v485_v30  ;;  %v505_v17 = vsel %vm7304_vm2, %v357_v16, 0  ;;  %v440_v26 = vadd.s32 128, %v7294_v27 }
  0x77   : > { %5963 = vmatpush3.bf16.xpose.msra.mxu1 %v6236_v33  ;;  %v487_v33 = vsel %vm7304_vm2, %v339_v28, 0  ;;  %v441_v28 = vadd.s32 256, %v7294_v27 }
  0x78   : > { %v7422_v35 = vcombine.low %v486_v32, %v487_v33  ;;  %vm443_vm4 = vcmp.lt.s32.totalorder %v440_v26, 156  ;;  %vm446_vm5 = vcmp.ge.s32.totalorder %v440_v26, 160 }
  0x79   : > { %vm450_vm6 = vcmp.lt.s32.totalorder %v441_v28, 260  ;;  %vm455_vm7 = vmor %vm443_vm4, %vm446_vm5 }
  0x7d   : > { %5757 = vmatpush3.bf16.xpose.msra.mxu0 %v6229_v43  ;;  %v343_v43 = vld [vmem:[%s7282_s5 + $0x12c] sm:$0xf] }
  0x7e   : > { %5758 = vmatprep.subr.bf16.mxu0 %v6231_v44  ;;  %5965 = vmatmul.mubr.bf16.vlgmr.msra.gmra.mrb[0].mxu1 %v5427_v55  ;;  %v491_v46 = vsel %vm7304_vm2, %v343_v43, 0 }
  0x7f   : > { %5968 = vmatprep.mubr.bf16.mxu1 %v7351_v58  ;;  %v5438_v49 = vcombine.low %v490_v45, %v491_v46 }
  0x85   : > { %5759 = vmatpush3.bf16.xpose.msra.mxu0 %v6232_v51  ;;  %v493_v51 = vsel %vm7304_vm2, %v345_v48, 0 }
  0x86   : > { %5760 = vmatprep.subr.bf16.mxu0 %v6234_v54  ;;  %5969 = vmatmul.mubr.bf16.gmra.mrb[4].mxu1 %v7364_v1  ;;  %v5439_v54 = vcombine.low %v492_v50, %v493_v51 }
  0x87   : > { %5972 = vmatprep.mubr.bf16.mxu1 %v7368_v4 }
  0x8d   : > { %5761 = vmatpush3.bf16.xpose.msra.mxu0 %v6235_v63  ;;  %v351_v63 = vld [vmem:[%s7282_s5 + $0x18c] sm:$0xf] }
  0x8e   : > { %5762 = vmatprep.subr.bf16.mxu0 %v6237_v0  ;;  %5973 = vmatmul.mubr.bf16.gmra.mrb[8].mxu1 %v7382_v11 }
  0x8f   : > { %5976 = vmatprep.mubr.bf16.mxu1 %v7385_v13 }
  0x95   : > { %5763 = vmatpush3.bf16.xpose.msra.mxu0 %v6238_v12  ;;  %v5443_v12 = vcombine.low %v500_v7, %v501_v8 }
  0x96   : > { %5977 = vmatmul.mubr.bf16.gmra.mrb[12].mxu1 %v7401_v22 }
  0x97   : > { %5980 = vmatprep.mubr.bf16.mxu1 %v7403_v23 }
  0x9c   : > { %5765 = vmatmul.mubr.bf16.vlgmr.msra.gmra.mrb[0].mxu0 %v7314_v36  ;;  %v340_v36 = vld [vmem:[%s7282_s5 + $0x108] sm:$0xf] }
  0x9d   : > { %5766 = vmatprep.mubr.bf16.mxu0 %v5427_v55  ;;  %v488_v38 = vsel %vm7304_vm2, %v340_v36, 0 }
  0x9e   : > { %5981 = vmatmul.mubr.bf16.gmra.mrb[16].mxu1 %v7420_v34  ;;  %v7435_v44 = vcombine.low %v488_v38, %v489_v40 }
  0x9f   : > { %5984 = vmatprep.mubr.bf16.mxu1 %v7422_v35 }
  0xa4   : > { %5767 = vmatmul.mubr.bf16.gmra.mrb[4].mxu0 %v5427_v55  ;;  %v494_v55 = vsel %vm7304_vm2, %v346_v52, 0 }
  0xa5   : > { %5768 = vmatprep.mubr.bf16.mxu0 %v7351_v58  ;;  %v5440_v59 = vcombine.low %v494_v55, %v495_v56 }
  0xa6   : > { %5985 = vmatmul.mubr.bf16.gmra.mrb[20].mxu1 %v7435_v44 }
  0xa7   : > { %5988 = vmatprep.mubr.bf16.mxu1 %v5438_v49 }
  0xac   : > { %5769 = vmatmul.mubr.bf16.gmra.mrb[8].mxu0 %v7351_v58  ;;  %v349_v58 = vld [vmem:[%s7282_s5 + $0x174] sm:$0xf] }
  0xad   : > { %5770 = vmatprep.mubr.bf16.mxu0 %v7364_v1  ;;  %v497_v61 = vsel %vm7304_vm2, %v349_v58, 0 }
  0xae   : > { %5989 = vmatmul.mubr.bf16.gmra.mrb[24].mxu1 %v5439_v54  ;;  %v5441_v0 = vcombine.low %v496_v60, %v497_v61 }
  0xaf   : > { %5992 = vmatprep.mubr.bf16.mxu1 %v5440_v59 }
  0xb4   : > { %5771 = vmatmul.mubr.bf16.gmra.mrb[12].mxu0 %v7364_v1  ;;  %v499_v1 = vsel %vm7304_vm2, %v351_v63, 0 }
  0xb5   : > { %5772 = vmatprep.mubr.bf16.mxu0 %v7368_v4  ;;  %v5442_v6 = vcombine.low %v498_v2, %v499_v1 }
  0xb6   : > { %5993 = vmatmul.mubr.bf16.gmra.mrb[28].mxu1 %v5441_v0 }
  0xb7   : > { %5996 = vmatprep.mubr.bf16.mxu1 %v5442_v6 }
  0xbc   : > { %5773 = vmatmul.mubr.bf16.gmra.mrb[16].mxu0 %v7368_v4  ;;  %v503_v4 = vsel %vm7304_vm2, %v355_v10, 0 }
  0xbd   : > { %5774 = vmatprep.mubr.bf16.mxu0 %v7382_v11  ;;  %v5444_v15 = vcombine.low %v502_v14, %v503_v4 }
  0xbe   : > { %5997 = vmatmul.mubr.bf16.gmra.mrb[32].mxu1 %v5443_v12 }
  0xbf   : > { %6000 = vmatprep.mubr.bf16.mxu1 %v5444_v15 }
  0xc4   : > { %5775 = vmatmul.mubr.bf16.gmra.mrb[20].mxu0 %v7382_v11  ;;  %v356_v11 = vld [vmem:[%s7282_s5 + $0x1c8] sm:$0xf] }
  0xc5   : > { %5776 = vmatprep.mubr.bf16.mxu0 %v7385_v13 }
  0xcc   : > { %5777 = vmatmul.mubr.bf16.gmra.mrb[24].mxu0 %v7385_v13  ;;  %v504_v13 = vsel %vm7304_vm2, %v356_v11, 0 }
  0xcd   : > { %5778 = vmatprep.mubr.bf16.mxu0 %v7401_v22  ;;  %v5445_v18 = vcombine.low %v504_v13, %v505_v17 }
  0xcf   : > { %6001 = vmatmul.mubr.bf16.gmra.mrb[36].mxu1 %v5445_v18 }
  0xd4   : > { %5779 = vmatmul.mubr.bf16.gmra.mrb[28].mxu0 %v7401_v22 }
  0xd5   : > { %5780 = vmatprep.mubr.bf16.mxu0 %v7403_v23 }
  0xdc   : > { %5781 = vmatmul.mubr.bf16.gmra.mrb[32].mxu0 %v7403_v23 }
  0xdd   : > { %5782 = vmatprep.mubr.bf16.mxu0 %v7420_v34 }
  0xe4   : > { %5783 = vmatmul.mubr.bf16.gmra.mrb[36].mxu0 %v7420_v34  ;;  %v7036_v34 = vmov -1e+30  }
  0xe5   : > { %5784 = vmatprep.mubr.bf16.mxu0 %v7422_v35  ;;  %v7519_v36 = vsel %vm455_vm7, 0.0, %v7036_v34 }
  0xe6   : > { %11171 = vst [vmem:[#allocation8_spill] sm:$0xff] %v7519_v36 }
  0xec   : > { %5785 = vmatmul.mubr.bf16.gmra.mrb[40].mxu0 %v7422_v35  ;;  %v7517_v35 = vsel %vm450_vm6, 0.0, %v7036_v34 }
  0xed   : > { %5786 = vmatprep.mubr.bf16.mxu0 %v7435_v44  ;;  %11170 = vst [vmem:[#allocation7_spill] sm:$0xff] %v7517_v35 }
  0xf4   : > { %5787 = vmatmul.mubr.bf16.gmra.mrb[44].mxu0 %v7435_v44 }
  0xf5   : > { %5788 = vmatprep.mubr.bf16.mxu0 %v5438_v49 }
  0xfc   : > { %5789 = vmatmul.mubr.bf16.gmra.mrb[48].mxu0 %v5438_v49 }
  0xfd   : > { %5790 = vmatprep.mubr.bf16.mxu0 %v5439_v54 }
 0x104   : > { %5791 = vmatmul.mubr.bf16.gmra.mrb[52].mxu0 %v5439_v54 }
 0x105   : > { %5792 = vmatprep.mubr.bf16.mxu0 %v5440_v59 }
 0x10c   : > { %5793 = vmatmul.mubr.bf16.gmra.mrb[56].mxu0 %v5440_v59 }
 0x10d   : > { %5794 = vmatprep.mubr.bf16.mxu0 %v5441_v0 }
 0x114   : > { %5795 = vmatmul.mubr.bf16.gmra.mrb[60].mxu0 %v5441_v0 }
 0x115   : > { %5796 = vmatprep.mubr.bf16.mxu0 %v5442_v6 }
 0x11c   : > { %5797 = vmatmul.mubr.bf16.gmra.mrb[64].mxu0 %v5442_v6 }
 0x11d   : > { %5798 = vmatprep.mubr.bf16.mxu0 %v5443_v12 }
 0x124   : > { %5799 = vmatmul.mubr.bf16.gmra.mrb[68].mxu0 %v5443_v12 }
 0x125   : > { %5800 = vmatprep.mubr.bf16.mxu0 %v5444_v15 }
 0x12c   : > { %5801 = vmatmul.mubr.bf16.gmra.mrb[72].mxu0 %v5444_v15 }
 0x12d   : > { %5802 = vmatprep.mubr.bf16.mxu0 %v5445_v18 }
 0x134   : > { %5803 = vmatmul.mubr.bf16.gmra.mrb[76].mxu0 %v5445_v18 }
 0x151   : > { %v5966_v31 = vpop.f32.mrb[0].mxu1 }
 0x152   : > { %v1013_v19 = vpop.f32.mrb[1].mxu1  ;;  %v7556_v57 = vadd.f32 %v5966_v31, %v7517_v35 }
 0x153   : > { %v5967_v20 = vpop.f32.mrb[2].mxu1  ;;  %v7522_v37 = vadd.f32 %v1013_v19, %v7517_v35 }
 0x154   : > { %v1016_v21 = vpop.f32.mrb[3].mxu1  ;;  %v7577_v6 = vadd.f32 %v5967_v20, %v7517_v35  ;;  %v1184_v7 = vsel %vm1173_vm8, %v7556_v57, -inf }
 0x155   : > { %v1174_v48 = vsel %vm1173_vm8, %v7522_v37, -inf  ;;  %v7547_v52 = vadd.f32 %v1016_v21, %v7517_v35 }
 0x156   : > { %v1189_v11 = vsel %vm1173_vm8, %v7577_v6, -inf }
 0x157   : > { %v1179_v59 = vsel %vm1173_vm8, %v7547_v52, -inf }
 0x159   : > { %v7503_v22 = vpop.f32.mrb[4].mxu1 }
 0x15a   : > { %v1029_v23 = vpop.f32.mrb[5].mxu1 }
 0x15b   : > { %v7505_v24 = vpop.f32.mrb[6].mxu1  ;;  %v7584_v10 = vadd.f32 %v1029_v23, %v7517_v35 }
 0x15c   : > { %v1032_v25 = vpop.f32.mrb[7].mxu1 }
 0x15d   : > { %v7591_v15 = vadd.f32 %v1032_v25, %v7517_v35  ;;  %v1194_v20 = vsel %vm1173_vm8, %v7584_v10, -inf }
 0x15f   : > { %v1199_v26 = vsel %vm1173_vm8, %v7591_v15, -inf }
 0x161   : > { %v7509_v29 = vpop.f32.mrb[8].mxu1 }
 0x162   : > { %v7511_v30 = vpop.f32.mrb[9].mxu1 }
 0x163   : > { %v7513_v32 = vpop.f32.mrb[10].mxu1 }
 0x164   : > { %v7515_v33 = vpop.f32.mrb[11].mxu1 }
 0x169   : > { %v7526_v40 = vpop.f32.mrb[12].mxu1 }
 0x16a   : > { %v7528_v43 = vpop.f32.mrb[13].mxu1 }
 0x16b   : > { %v7535_v46 = vpop.f32.mrb[14].mxu1 }
 0x16c   : > { %v7539_v49 = vpop.f32.mrb[15].mxu1 }
 0x16d   : > { %v7711_v39 = vadd.f32 %v7539_v49, %v7517_v35 }
 0x16f   : > { %v7524_v38 = vpop.f32.mrb[0].mxu0  ;;  %11185 = vst [vmem:[#allocation22_spill] sm:$0xff] %v7711_v39  ;;  %v1239_v49 = vsel %vm1173_vm8, %v7711_v39, -inf }
 0x170   : > { %v782_v41 = vpop.f32.mrb[1].mxu0 }
 0x171   : > { %v7531_v44 = vadd.f32 %v782_v41, %v7519_v36  ;;  %v7533_v45 = vpop.f32.mrb[2].mxu0  ;;  %v7553_v56 = vpop.f32.mrb[16].mxu1 }
 0x172   : > { %v786_v47 = vpop.f32.mrb[3].mxu0  ;;  %v7560_v60 = vpop.f32.mrb[17].mxu1 }
 0x173   : > { %v7542_v50 = vadd.f32 %v786_v47, %v7519_v36  ;;  %v1172_v51 = vmax.f32 %v7524_v38, %v7531_v44  ;;  %v7567_v0 = vpop.f32.mrb[18].mxu1 }
 0x174   : > { %v7569_v1 = vpop.f32.mrb[19].mxu1 }
 0x175   : > { %v1178_v53 = vmax.f32 %v7533_v45, %v7542_v50  ;;  %v1175_v54 = vmax.f32 %v1172_v51, %v1174_v48  ;;  %v7621_v48 = vadd.f32 %v7503_v22, %v7517_v35 }
 0x177   : > { %v7551_v55 = vpop.f32.mrb[4].mxu0  ;;  %1176 = vmax.xlane.f32.xlu0 %v1175_v54  ;;  %v1180_v63 = vmax.f32 %v1178_v53, %v1179_v59  ;;  %v1204_v22 = vsel %vm1173_vm8, %v7621_v48, -inf }
 0x178   : > { %v792_v58 = vpop.f32.mrb[5].mxu0 }
 0x179   : > { %v7563_v61 = vadd.f32 %v792_v58, %v7519_v36  ;;  %v7565_v62 = vpop.f32.mrb[6].mxu0  ;;  %v7588_v14 = vpop.f32.mrb[20].mxu1  ;;  %v7630_v58 = vadd.f32 %v7505_v24, %v7517_v35 }
 0x17a   : > { %v796_v2 = vpop.f32.mrb[7].mxu0  ;;  %v7595_v16 = vpop.f32.mrb[21].mxu1 }
 0x17b   : > { %v7572_v3 = vadd.f32 %v796_v2, %v7519_v36  ;;  %1181 = vmax.xlane.f32.xlu0 %v1180_v63  ;;  %v1183_v5 = vmax.f32 %v7551_v55, %v7563_v61  ;;  %v7602_v31 = vpop.f32.mrb[22].mxu1  ;;  %v1209_v24 = vsel %vm1173_vm8, %v7630_v58, -inf }
 0x17c   : > { %v7606_v21 = vpop.f32.mrb[23].mxu1 }
 0x17d   : > { %v1188_v8 = vmax.f32 %v7565_v62, %v7572_v3  ;;  %v1185_v9 = vmax.f32 %v1183_v5, %v1184_v7 }
 0x17f   : > { %v7586_v12 = vpop.f32.mrb[8].mxu0  ;;  %1186 = vmax.xlane.f32.xlu1 %v1185_v9  ;;  %v1190_v18 = vmax.f32 %v1188_v8, %v1189_v11  ;;  %v7643_v8 = vadd.f32 %v7511_v30, %v7517_v35 }
 0x180   : > { %v802_v4 = vpop.f32.mrb[9].mxu0 }
 0x181   : > { %v7598_v13 = vadd.f32 %v802_v4, %v7519_v36  ;;  %v7600_v17 = vpop.f32.mrb[10].mxu0  ;;  %11172 = vst [vmem:[#allocation9_spill] sm:$0xff] %v7643_v8 }
 0x182   : > { %v806_v19 = vpop.f32.mrb[11].mxu0 }
 0x183   : > { %v1193_v23 = vmax.f32 %v7586_v12, %v7598_v13  ;;  %v7611_v25 = vadd.f32 %v806_v19, %v7519_v36  ;;  %1191 = vmax.xlane.f32.xlu1 %v1190_v18  ;;  %v7651_v18 = vadd.f32 %v7515_v33, %v7517_v35 }
 0x185   : > { %v1198_v28 = vmax.f32 %v7600_v17, %v7611_v25  ;;  %v1195_v34 = vmax.f32 %v1193_v23, %v1194_v20  ;;  %11173 = vst [vmem:[#allocation10_spill] sm:$0xff] %v7651_v18  ;;  %v1214_v23 = vsel %vm1173_vm8, %v7643_v8, -inf  ;;  %v1219_v33 = vsel %vm1173_vm8, %v7651_v18, -inf }
 0x186   : > { %v10931_v18 = vmov 0  }
 0x187   : > { %v7617_v41 = vpop.f32.mrb[12].mxu0  ;;  %1196 = vmax.xlane.f32.xlu0 %v1195_v34  ;;  %v1200_v47 = vmax.f32 %v1198_v28, %v1199_v26  ;;  %v7667_v34 = vpop.f32.mrb[24].mxu1  ;;  %2333 = vmatprep.subr.bf16.mxu1 %v10931_v18 }
 0x188   : > { %v812_v51 = vpop.f32.mrb[13].mxu0 }
 0x189   : > { %v7624_v53 = vadd.f32 %v812_v51, %v7519_v36  ;;  %v7626_v54 = vpop.f32.mrb[14].mxu0  ;;  %1201 = vmax.xlane.f32.xlu1 %v1200_v47 }
 0x18a   : > { %v816_v59 = vpop.f32.mrb[15].mxu0 }
 0x18b   : > { %v1203_v63 = vmax.f32 %v7617_v41, %v7624_v53  ;;  %v7635_v2 = vadd.f32 %v816_v59, %v7519_v36  ;;  %v7671_v59 = vpop.f32.mrb[25].mxu1 }
 0x18d   : > { %v1208_v5 = vmax.f32 %v7626_v54, %v7635_v2  ;;  %v1205_v7 = vmax.f32 %v1203_v63, %v1204_v22  ;;  %v7673_v63 = vpop.f32.mrb[26].mxu1 }
 0x18f   : > { %v7647_v9 = vpop.f32.mrb[16].mxu0  ;;  %1206 = vmax.xlane.f32.xlu0 %v1205_v7  ;;  %v1210_v4 = vmax.f32 %v1208_v5, %v1209_v24  ;;  %v7677_v7 = vpop.f32.mrb[27].mxu1  ;;  %v7681_v24 = vadd.f32 %v7509_v29, %v7517_v35 }
 0x190   : > { %v822_v11 = vpop.f32.mrb[17].mxu0 }
 0x191   : > { %v7654_v19 = vadd.f32 %v822_v11, %v7519_v36  ;;  %v7656_v20 = vpop.f32.mrb[18].mxu0  ;;  %1211 = vmax.xlane.f32.xlu1 %v1210_v4  ;;  %11178 = vst [vmem:[#allocation15_spill] sm:$0xff] %v7681_v24  ;;  %v1224_v29 = vsel %vm1173_vm8, %v7681_v24, -inf }
 0x192   : > { %11175 = vst [vmem:[#allocation12_spill] sm:$0xff] %v7656_v20  ;;  %v826_v30 = vpop.f32.mrb[19].mxu0 }
 0x193   : > { %11174 = vst [vmem:[#allocation11_spill] sm:$0xff] %v7654_v19  ;;  %v1213_v26 = vmax.f32 %v7647_v9, %v7654_v19  ;;  %v7663_v28 = vadd.f32 %v826_v30, %v7519_v36 }
 0x195   : > { %11176 = vst [vmem:[#allocation13_spill] sm:$0xff] %v7663_v28  ;;  %v1218_v47 = vmax.f32 %v7656_v20, %v7663_v28  ;;  %v1215_v51 = vmax.f32 %v1213_v26, %v1214_v23  ;;  %v7690_v23 = vadd.f32 %v7513_v32, %v7517_v35 }
 0x197   : > { %v7675_v22 = vpop.f32.mrb[20].mxu0  ;;  %1216 = vmax.xlane.f32.xlu0 %v1215_v51  ;;  %v1220_v5 = vmax.f32 %v1218_v47, %v1219_v33  ;;  %11181 = vst [vmem:[#allocation18_spill] sm:$0xff] %v7690_v23  ;;  %v1229_v32 = vsel %vm1173_vm8, %v7690_v23, -inf }
 0x198   : > { %11177 = vst [vmem:[#allocation14_spill] sm:$0xff] %v7675_v22  ;;  %v832_v4 = vpop.f32.mrb[21].mxu0 }
 0x199   : > { %v7684_v11 = vadd.f32 %v832_v4, %v7519_v36  ;;  %v7686_v30 = vpop.f32.mrb[22].mxu0  ;;  %1221 = vmax.xlane.f32.xlu1 %v1220_v5  ;;  %v7703_v5 = vadd.f32 %v7528_v43, %v7517_v35 }
 0x19a   : > { %11180 = vst [vmem:[#allocation17_spill] sm:$0xff] %v7686_v30  ;;  %v836_v26 = vpop.f32.mrb[23].mxu0 }
 0x19b   : > { %11179 = vst [vmem:[#allocation16_spill] sm:$0xff] %v7684_v11  ;;  %v1223_v33 = vmax.f32 %v7675_v22, %v7684_v11  ;;  %v7695_v47 = vadd.f32 %v836_v26, %v7519_v36  ;;  %11183 = vst [vmem:[#allocation20_spill] sm:$0xff] %v7703_v5  ;;  %v6239_v22 = vld [vmem:[%s7282_s5 + $0x8] ss:$12 sps:$4 sm:$0xff]  }
 0x19c   : > { %2334 = vmatpush1.bf16.msra.mxu1 %v6239_v22 }
 0x19d   : > { %11182 = vst [vmem:[#allocation19_spill] sm:$0xff] %v7695_v47  ;;  %v1228_v51 = vmax.f32 %v7686_v30, %v7695_v47  ;;  %v1225_v4 = vmax.f32 %v1223_v33, %v1224_v29  ;;  %v1234_v29 = vsel %vm1173_vm8, %v7703_v5, -inf  ;;  %2335 = vmatprep.subr.bf16.mxu1 %v10931_v18 }
 0x19f   : > { %v7707_v27 = vpop.f32.mrb[24].mxu0  ;;  %1226 = vmax.xlane.f32.xlu0 %v1225_v4  ;;  %v1230_v42 = vmax.f32 %v1228_v51, %v1229_v32 }
 0x1a0   : > { %11184 = vst [vmem:[#allocation21_spill] sm:$0xff] %v7707_v27  ;;  %v842_v26 = vpop.f32.mrb[25].mxu0 }
 0x1a1   : > { %v7714_v24 = vadd.f32 %v842_v26, %v7519_v36  ;;  %v7716_v33 = vpop.f32.mrb[26].mxu0  ;;  %1231 = vmax.xlane.f32.xlu1 %v1230_v42  ;;  %v7729_v26 = vpop.f32.mrb[28].mxu1 }
 0x1a2   : > { %11187 = vst [vmem:[#allocation24_spill] sm:$0xff] %v7716_v33  ;;  %v846_v43 = vpop.f32.mrb[27].mxu0  ;;  %v7731_v42 = vpop.f32.mrb[29].mxu1 }
 0x1a3   : > { %11186 = vst [vmem:[#allocation23_spill] sm:$0xff] %v7714_v24  ;;  %v1233_v23 = vmax.f32 %v7707_v27, %v7714_v24  ;;  %v7723_v51 = vadd.f32 %v846_v43, %v7519_v36  ;;  %v7735_v30 = vpop.f32.mrb[30].mxu1  ;;  %v7739_v43 = vadd.f32 %v7526_v40, %v7517_v35 }
 0x1a4   : > { %v7741_v39 = vpop.f32.mrb[31].mxu1 }
 0x1a5   : > { %11188 = vst [vmem:[#allocation25_spill] sm:$0xff] %v7723_v51  ;;  %v1238_v4 = vmax.f32 %v7716_v33, %v7723_v51  ;;  %v1235_v32 = vmax.f32 %v1233_v23, %v1234_v29  ;;  %11190 = vst [vmem:[#allocation27_spill] sm:$0xff] %v7739_v43  ;;  %v7750_v29 = vadd.f32 %v7535_v46, %v7517_v35 }
 0x1a7   : > { %v7733_v47 = vpop.f32.mrb[28].mxu0  ;;  %1236 = vmax.xlane.f32.xlu0 %v1235_v32  ;;  %v1240_v5 = vmax.f32 %v1238_v4, %v1239_v49  ;;  %11193 = vst [vmem:[#allocation30_spill] sm:$0xff] %v7750_v29  ;;  %v1244_v32 = vsel %vm1173_vm8, %v7739_v43, -inf  ;;  %v1249_v46 = vsel %vm1173_vm8, %v7750_v29, -inf }
 0x1a8   : > { %11189 = vst [vmem:[#allocation26_spill] sm:$0xff] %v7733_v47  ;;  %v852_v24 = vpop.f32.mrb[29].mxu0 }
 0x1a9   : > { %v7744_v51 = vadd.f32 %v852_v24, %v7519_v36  ;;  %v7746_v23 = vpop.f32.mrb[30].mxu0  ;;  %1241 = vmax.xlane.f32.xlu1 %v1240_v5  ;;  %v7763_v5 = vadd.f32 %v7560_v60, %v7517_v35 }
 0x1aa   : > { %11192 = vst [vmem:[#allocation29_spill] sm:$0xff] %v7746_v23  ;;  %v856_v49 = vpop.f32.mrb[31].mxu0 }
 0x1ab   : > { %11191 = vst [vmem:[#allocation28_spill] sm:$0xff] %v7744_v51  ;;  %v1243_v4 = vmax.f32 %v7733_v47, %v7744_v51  ;;  %v7755_v40 = vadd.f32 %v856_v49, %v7519_v36  ;;  %11195 = vst [vmem:[#allocation32_spill] sm:$0xff] %v7763_v5  ;;  %v7771_v47 = vadd.f32 %v7569_v1, %v7517_v35 }
 0x1ad   : > { %11194 = vst [vmem:[#allocation31_spill] sm:$0xff] %v7755_v40  ;;  %v1248_v24 = vmax.f32 %v7746_v23, %v7755_v40  ;;  %v1245_v33 = vmax.f32 %v1243_v4, %v1244_v32  ;;  %11197 = vst [vmem:[#allocation34_spill] sm:$0xff] %v7771_v47  ;;  %v1254_v32 = vsel %vm1173_vm8, %v7763_v5, -inf  ;;  %v1259_v1 = vsel %vm1173_vm8, %v7771_v47, -inf }
 0x1ae   : > { %v7803_v47 = vadd.f32 %v7567_v0, %v7517_v35 }
 0x1af   : > { %v7767_v27 = vpop.f32.mrb[32].mxu0  ;;  %1246 = vmax.xlane.f32.xlu0 %v1245_v33  ;;  %v1250_v51 = vmax.f32 %v1248_v24, %v1249_v46 }
 0x1b0   : > { %11196 = vst [vmem:[#allocation33_spill] sm:$0xff] %v7767_v27  ;;  %v862_v49 = vpop.f32.mrb[33].mxu0  ;;  %11204 = vst [vmem:[#allocation41_spill] sm:$0xff] %v7803_v47  ;;  %v1269_v0 = vsel %vm1173_vm8, %v7803_v47, -inf }
 0x1b1   : > { %v7774_v43 = vadd.f32 %v862_v49, %v7519_v36  ;;  %v7776_v4 = vpop.f32.mrb[34].mxu0  ;;  %1251 = vmax.xlane.f32.xlu1 %v1250_v51  ;;  %v7789_v49 = vpop.f32.mrb[32].mxu1  ;;  %v7793_v51 = vadd.f32 %v7553_v56, %v7517_v35 }
 0x1b2   : > { %11199 = vst [vmem:[#allocation36_spill] sm:$0xff] %v7776_v4  ;;  %v866_v60 = vpop.f32.mrb[35].mxu0  ;;  %v7795_v5 = vpop.f32.mrb[33].mxu1 }
 0x1b3   : > { %11198 = vst [vmem:[#allocation35_spill] sm:$0xff] %v7774_v43  ;;  %v1253_v29 = vmax.f32 %v7767_v27, %v7774_v43  ;;  %v7783_v33 = vadd.f32 %v866_v60, %v7519_v36  ;;  %11201 = vst [vmem:[#allocation38_spill] sm:$0xff] %v7793_v51  ;;  %v7799_v43 = vpop.f32.mrb[34].mxu1 }
 0x1b4   : > { %11203 = vst [vmem:[#allocation40_spill] sm:$0xff] %v7799_v43 }
 0x1b5   : > { %11200 = vst [vmem:[#allocation37_spill] sm:$0xff] %v7783_v33  ;;  %v1258_v24 = vmax.f32 %v7776_v4, %v7783_v33  ;;  %v1255_v46 = vmax.f32 %v1253_v29, %v1254_v32  ;;  %v7805_v29 = vpop.f32.mrb[35].mxu1 }
 0x1b7   : > { %v7797_v40 = vpop.f32.mrb[36].mxu0  ;;  %1256 = vmax.xlane.f32.xlu0 %v1255_v46  ;;  %v1260_v60 = vmax.f32 %v1258_v24, %v1259_v1  ;;  %v1264_v46 = vsel %vm1173_vm8, %v7793_v51, -inf }
 0x1b8   : > { %11202 = vst [vmem:[#allocation39_spill] sm:$0xff] %v7797_v40  ;;  %v872_v33 = vpop.f32.mrb[37].mxu0 }
 0x1b9   : > { %v7808_v32 = vadd.f32 %v872_v33, %v7519_v36  ;;  %v7810_v56 = vpop.f32.mrb[38].mxu0  ;;  %1261 = vmax.xlane.f32.xlu1 %v1260_v60  ;;  %v7825_v60 = vadd.f32 %v7595_v16, %v7517_v35 }
 0x1ba   : > { %11206 = vst [vmem:[#allocation43_spill] sm:$0xff] %v7810_v56  ;;  %v876_v4 = vpop.f32.mrb[39].mxu0 }
 0x1bb   : > { %11205 = vst [vmem:[#allocation42_spill] sm:$0xff] %v7808_v32  ;;  %v1263_v1 = vmax.f32 %v7797_v40, %v7808_v32  ;;  %v7817_v24 = vadd.f32 %v876_v4, %v7519_v36  ;;  %11208 = vst [vmem:[#allocation45_spill] sm:$0xff] %v7825_v60  ;;  %v7831_v4 = vadd.f32 %v7606_v21, %v7517_v35  ;;  %v1274_v16 = vsel %vm1173_vm8, %v7825_v60, -inf }
 0x1bd   : > { %11207 = vst [vmem:[#allocation44_spill] sm:$0xff] %v7817_v24  ;;  %v1268_v33 = vmax.f32 %v7810_v56, %v7817_v24  ;;  %v1265_v27 = vmax.f32 %v1263_v1, %v1264_v46  ;;  %11210 = vst [vmem:[#allocation47_spill] sm:$0xff] %v7831_v4  ;;  %v1279_v21 = vsel %vm1173_vm8, %v7831_v4, -inf  ;;  %v7863_v4 = vadd.f32 %v7602_v31, %v7517_v35 }
 0x1bf   : > { %v7827_v23 = vpop.f32.mrb[40].mxu0  ;;  %1266 = vmax.xlane.f32.xlu0 %v1265_v27  ;;  %v1270_v51 = vmax.f32 %v1268_v33, %v1269_v0  ;;  %v7849_v33 = vpop.f32.mrb[36].mxu1  ;;  %11219 = vst [vmem:[#allocation56_spill] sm:$0xff] %v7863_v4  ;;  %v1289_v31 = vsel %vm1173_vm8, %v7863_v4, -inf }
 0x1c0   : > { %11209 = vst [vmem:[#allocation46_spill] sm:$0xff] %v7827_v23  ;;  %v882_v43 = vpop.f32.mrb[41].mxu0  ;;  %11214 = vst [vmem:[#allocation51_spill] sm:$0xff] %v7849_v33  ;;  %v7855_v60 = vpop.f32.mrb[37].mxu1 }
 0x1c1   : > { %v7834_v32 = vadd.f32 %v882_v43, %v7519_v36  ;;  %v7836_v47 = vpop.f32.mrb[42].mxu0  ;;  %1271 = vmax.xlane.f32.xlu1 %v1270_v51  ;;  %v7853_v51 = vadd.f32 %v7588_v14, %v7517_v35  ;;  %11216 = vst [vmem:[#allocation53_spill] sm:$0xff] %v7855_v60 }
 0x1c2   : > { %11212 = vst [vmem:[#allocation49_spill] sm:$0xff] %v7836_v47  ;;  %v886_v46 = vpop.f32.mrb[43].mxu0 }
 0x1c3   : > { %11211 = vst [vmem:[#allocation48_spill] sm:$0xff] %v7834_v32  ;;  %v1273_v1 = vmax.f32 %v7827_v23, %v7834_v32  ;;  %v7843_v27 = vadd.f32 %v886_v46, %v7519_v36  ;;  %11215 = vst [vmem:[#allocation52_spill] sm:$0xff] %v7853_v51  ;;  %v7859_v32 = vpop.f32.mrb[38].mxu1 }
 0x1c4   : > { %11218 = vst [vmem:[#allocation55_spill] sm:$0xff] %v7859_v32 }
 0x1c5   : > { %11213 = vst [vmem:[#allocation50_spill] sm:$0xff] %v7843_v27  ;;  %v1278_v43 = vmax.f32 %v7836_v47, %v7843_v27  ;;  %v1275_v0 = vmax.f32 %v1273_v1, %v1274_v16  ;;  %v7865_v16 = vpop.f32.mrb[39].mxu1 }
 0x1c6   : > { %11220 = vst [vmem:[#allocation57_spill] sm:$0xff] %v7865_v16 }
 0x1c7   : > { %v7857_v24 = vpop.f32.mrb[44].mxu0  ;;  %1276 = vmax.xlane.f32.xlu0 %v1275_v0  ;;  %v1280_v46 = vmax.f32 %v1278_v43, %v1279_v21  ;;  %v1284_v0 = vsel %vm1173_vm8, %v7853_v51, -inf }
 0x1c8   : > { %11217 = vst [vmem:[#allocation54_spill] sm:$0xff] %v7857_v24  ;;  %v892_v27 = vpop.f32.mrb[45].mxu0 }
 0x1c9   : > { %v7868_v1 = vadd.f32 %v892_v27, %v7519_v36  ;;  %v7870_v14 = vpop.f32.mrb[46].mxu0  ;;  %1281 = vmax.xlane.f32.xlu1 %v1280_v46 }
 0x1ca   : > { %11222 = vst [vmem:[#allocation59_spill] sm:$0xff] %v7870_v14  ;;  %v896_v47 = vpop.f32.mrb[47].mxu0 }
 0x1cb   : > { %11221 = vst [vmem:[#allocation58_spill] sm:$0xff] %v7868_v1  ;;  %v1283_v21 = vmax.f32 %v7857_v24, %v7868_v1  ;;  %v7877_v43 = vadd.f32 %v896_v47, %v7519_v36 }
 0x1cd   : > { %11223 = vst [vmem:[#allocation60_spill] sm:$0xff] %v7877_v43  ;;  %v1288_v27 = vmax.f32 %v7870_v14, %v7877_v43  ;;  %v1285_v23 = vmax.f32 %v1283_v21, %v1284_v0 }
 0x1cf   : > { %1286 = vmax.xlane.f32.xlu0 %v1285_v23  ;;  %v1290_v56 = vmax.f32 %v1288_v27, %v1289_v31  ;;  %v7883_v46 = vpop.f32.mrb[48].mxu0 }
 0x1d0   : > { %v7885_v40 = vpop.f32.mrb[49].mxu0 }
 0x1d1   : > { %1291 = vmax.xlane.f32.xlu1 %v1290_v56  ;;  %v7887_v51 = vpop.f32.mrb[50].mxu0 }
 0x1d2   : > { %v7889_v1 = vpop.f32.mrb[51].mxu0 }
 0x1d7   : > { %v7891_v47 = vpop.f32.mrb[52].mxu0 }
 0x1d8   : > { %v7893_v24 = vpop.f32.mrb[53].mxu0 }
 0x1d9   : > { %v7895_v4 = vpop.f32.mrb[54].mxu0 }
 0x1da   : > { %v7897_v43 = vpop.f32.mrb[55].mxu0 }
 0x1df   : > { %v7899_v23 = vpop.f32.mrb[56].mxu0 }
 0x1e0   : > { %v7901_v0 = vpop.f32.mrb[57].mxu0 }
 0x1e1   : > { %v7903_v21 = vpop.f32.mrb[58].mxu0 }
 0x1e2   : > { %v7905_v56 = vpop.f32.mrb[59].mxu0 }
 0x1e7   : > { %v7907_v31 = vpop.f32.mrb[60].mxu0 }
 0x1e8   : > { %11224 = vst [vmem:[#allocation61_spill] sm:$0xff] %v7907_v31  ;;  %v7909_v27 = vpop.f32.mrb[61].mxu0  ;;  %v6240_v31 = vld [vmem:[%s7282_s5 + $0x20] ss:$12 sps:$4 sm:$0xff]  }
 0x1e9   : > { %v7911_v14 = vpop.f32.mrb[62].mxu0  ;;  %2336 = vmatpush1.bf16.msra.mxu1 %v6240_v31 }
 0x1ea   : > { %11225 = vst [vmem:[#allocation62_spill] sm:$0xff] %v7911_v14  ;;  %v7913_v32 = vpop.f32.mrb[63].mxu0  ;;  %2337 = vmatprep.subr.bf16.mxu1 %v10931_v18 }
 0x1eb   : > { %11226 = vst [vmem:[#allocation63_spill] sm:$0xff] %v7913_v32 }
 0x1ef   : > { %v7915_v33 = vpop.f32.mrb[64].mxu0 }
 0x1f0   : > { %11227 = vst [vmem:[#allocation64_spill] sm:$0xff] %v7915_v33  ;;  %v7917_v16 = vpop.f32.mrb[65].mxu0 }
 0x1f1   : > { %11228 = vst [vmem:[#allocation65_spill] sm:$0xff] %v7917_v16  ;;  %v7919_v60 = vpop.f32.mrb[66].mxu0 }
 0x1f2   : > { %11229 = vst [vmem:[#allocation66_spill] sm:$0xff] %v7919_v60  ;;  %v7921_v11 = vpop.f32.mrb[67].mxu0  ;;  %v6241_v60 = vld [vmem:[%s7282_s5 + $0x38] ss:$12 sps:$4 sm:$0xff]  }
 0x1f3   : > { %11230 = vst [vmem:[#allocation67_spill] sm:$0xff] %v7921_v11  ;;  %2338 = vmatpush1.bf16.msra.mxu1 %v6241_v60  ;;  %v6242_v11 = vld [vmem:[%s7282_s5 + $0x50] ss:$12 sps:$4 sm:$0xff]  }
 0x1f4   : > { %2339 = vmatprep.subr.bf16.mxu1 %v10931_v18 }
 0x1f7   : > { %v7926_v28 = vpop.f32.mrb[68].mxu0  ;;  %2340 = vmatpush1.bf16.msra.mxu1 %v6242_v11  ;;  %v7956_v11 = vadd.f32 %v7667_v34, %v7517_v35 }
 0x1f8   : > { %11231 = vst [vmem:[#allocation68_spill] sm:$0xff] %v7926_v28  ;;  %v7929_v14 = vpop.f32.mrb[69].mxu0  ;;  %2341 = vmatprep.subr.bf16.mxu1 %v10931_v18 }
 0x1f9   : > { %11232 = vst [vmem:[#allocation69_spill] sm:$0xff] %v7929_v14  ;;  %v7931_v33 = vpop.f32.mrb[70].mxu0  ;;  %11239 = vst [vmem:[#allocation76_spill] sm:$0xff] %v7956_v11 }
 0x1fa   : > { %11233 = vst [vmem:[#allocation70_spill] sm:$0xff] %v7931_v33  ;;  %v7933_v16 = vpop.f32.mrb[71].mxu0  ;;  %v6243_v33 = vld [vmem:[%s7282_s5 + $0x68] ss:$12 sps:$4 sm:$0xff]  }
 0x1fb   : > { %11234 = vst [vmem:[#allocation71_spill] sm:$0xff] %v7933_v16  ;;  %2342 = vmatpush1.bf16.msra.mxu1 %v6243_v33 }
 0x1fc   : > { %2343 = vmatprep.subr.bf16.mxu1 %v10931_v18 }
 0x1ff   : > { %v7938_v22 = vpop.f32.mrb[72].mxu0 }
 0x200   : > { %11235 = vst [vmem:[#allocation72_spill] sm:$0xff] %v7938_v22  ;;  %v7941_v28 = vpop.f32.mrb[73].mxu0  ;;  %v6244_v22 = vld [vmem:[%s7282_s5 + $0x80] ss:$12 sps:$4 sm:$0xff]  }
 0x201   : > { %11236 = vst [vmem:[#allocation73_spill] sm:$0xff] %v7941_v28  ;;  %v7943_v20 = vpop.f32.mrb[74].mxu0  ;;  %2344 = vmatpush1.bf16.msra.mxu1 %v6244_v22 }
 0x202   : > { %11237 = vst [vmem:[#allocation74_spill] sm:$0xff] %v7943_v20  ;;  %v7945_v14 = vpop.f32.mrb[75].mxu0 }
 0x203   : > { %11238 = vst [vmem:[#allocation75_spill] sm:$0xff] %v7945_v14  ;;  %v11240_v14 = vmov 0  }
 0x204   : > { %v1177_v31 = vpop.xlane.xlu0 %1176  ;;  %2345 = vmatprep.subr.bf16.mxu1 %v11240_v14 }
 0x205   : > { %v1373_v16 = vsub.f32 %v7524_v38, %v1177_v31  ;;  %v1374_v60 = vsub.f32 %v7531_v44, %v1177_v31  ;;  %v1375_v32 = vsub.f32 %v7522_v37, %v1177_v31  ;;  %v7960_v38 = vadd.f32 %v7671_v59, %v7517_v35  ;;  %v6245_v59 = vld [vmem:[%s7282_s5 + $0x98] ss:$12 sps:$4 sm:$0xff]  }
 0x206   : > { %v7964_v37 = vadd.f32 %v7677_v7, %v7517_v35  ;;  %2346 = vmatpush1.bf16.msra.mxu1 %v6245_v59 }
 0x207   : > { %v1493_v8 = vmul.f32 1.442695, %v1373_v16  ;;  %v1495_v19 = vmul.f32 1.442695, %v1374_v60  ;;  %v1497_v28 = vmul.f32 1.442695, %v1375_v32  ;;  %2347 = vmatprep.subr.bf16.mxu1 %v11240_v14 }
 0x208   : > { %v1182_v20 = vpop.xlane.xlu0 %1181  ;;  %v7966_v44 = vpop.f32.mrb[76].mxu0 }
 0x209   : > { %6259 = vpow2.f32 %v1493_v8  ;;  %v1376_v32 = vsub.f32 %v7533_v45, %v1182_v20  ;;  %v1377_v33 = vsub.f32 %v7542_v50, %v1182_v20  ;;  %v1378_v16 = vsub.f32 %v7547_v52, %v1182_v20  ;;  %v7971_v31 = vpop.f32.mrb[77].mxu0 }
 0x20a   : > { %6261 = vpow2.f32 %v1495_v19  ;;  %v7973_v34 = vpop.f32.mrb[78].mxu0  ;;  %v7979_v45 = vadd.f32 %v7673_v63, %v7517_v35  ;;  %v7983_v50 = vsel %vm1173_vm8, %v7960_v38, -inf  ;;  %v7987_v52 = vsel %vm1173_vm8, %v7964_v37, -inf }
 0x20b   : > { %6263 = vpow2.f32 %v1497_v28  ;;  %v1499_v60 = vmul.f32 1.442695, %v1376_v32  ;;  %v1501_v7 = vmul.f32 1.442695, %v1377_v33  ;;  %v1503_v18 = vmul.f32 1.442695, %v1378_v16 }
 0x20c   : > { %v1187_v8 = vpop.xlane.xlu1 %1186  ;;  %11241 = vst [vmem:[#allocation77_spill] sm:$0xff] %v7979_v45  ;;  %v7991_v19 = vsel %vm1173_vm8, %v7956_v11, -inf  ;;  %v7993_v20 = vpop.f32.mrb[79].mxu0  ;;  %v8000_v32 = vadd.f32 %v7729_v26, %v7517_v35  ;;  %v8004_v33 = vadd.f32 %v7731_v42, %v7517_v35  ;;  %v8008_v16 = vadd.f32 %v7741_v39, %v7517_v35 }
 0x20d   : > { %6265 = vpow2.f32 %v1499_v60  ;;  %v1379_v28 = vsub.f32 %v7551_v55, %v1187_v8  ;;  %v1380_v63 = vsub.f32 %v7563_v61, %v1187_v8  ;;  %v1381_v22 = vsub.f32 %v7556_v57, %v1187_v8  ;;  %v6246_v60 = vld [vmem:[%s7282_s5 + $0xb0] ss:$12 sps:$4 sm:$0xff]  }
 0x20e   : > { %6267 = vpow2.f32 %v1501_v7  ;;  %11242 = vst [vmem:[#allocation78_spill] sm:$0xff] %v8000_v32  ;;  %11243 = vst [vmem:[#allocation79_spill] sm:$0xff] %v8004_v33  ;;  %v8014_v57 = vadd.f32 %v7885_v40, %v7519_v36  ;;  %v8018_v42 = vadd.f32 %v7889_v1, %v7519_v36  ;;  %v8022_v39 = vadd.f32 %v7735_v30, %v7517_v35 }
 0x20f   : > { %11244 = vst [vmem:[#allocation80_spill] sm:$0xff] %v8008_v16  ;;  %6269 = vpow2.f32 %v1503_v18  ;;  %v1505_v55 = vmul.f32 1.442695, %v1379_v28  ;;  %v1507_v61 = vmul.f32 1.442695, %v1380_v63  ;;  %v8026_v18 = vsel %vm1173_vm8, %v7979_v45, -inf  ;;  %2348 = vmatpush1.bf16.msra.mxu1 %v6246_v60 }
 0x210   : > { %v1509_v11 = vmul.f32 1.442695, %v1381_v22  ;;  %v1192_v26 = vpop.xlane.xlu1 %1191  ;;  %11245 = vst [vmem:[#allocation81_spill] sm:$0xff] %v8022_v39  ;;  %v8033_v1 = vsel %vm1173_vm8, %v8004_v33, -inf  ;;  %v8037_v30 = vsel %vm1173_vm8, %v8008_v16, -inf  ;;  %v8041_v8 = vsel %vm1173_vm8, %v8000_v32, -inf  ;;  %2349 = vmatprep.subr.bf16.mxu1 %v11240_v14 }
 0x211   : > { %6271 = vpow2.f32 %v1505_v55  ;;  %v1382_v59 = vsub.f32 %v7565_v62, %v1192_v26  ;;  %v1383_v7 = vsub.f32 %v7572_v3, %v1192_v26  ;;  %v1384_v40 = vsub.f32 %v7577_v6, %v1192_v26  ;;  %v6247_v28 = vld [vmem:[%s7282_s5 + $0xc8] ss:$12 sps:$4 sm:$0xff]  }
 0x212   : > { %6273 = vpow2.f32 %v1507_v61  ;;  %v1293_v55 = vmax.f32 %v7883_v46, %v8014_v57  ;;  %v1298_v61 = vmax.f32 %v7887_v51, %v8018_v42  ;;  %v8055_v60 = vadd.f32 %v7893_v24, %v7519_v36 }
 0x213   : > { %v8044_v62 = vpop.eup %6259  ;;  %6275 = vpow2.f32 %v1509_v11  ;;  %v1511_v3 = vmul.f32 1.442695, %v1382_v59  ;;  %v1513_v6 = vmul.f32 1.442695, %v1383_v7  ;;  %v1515_v63 = vmul.f32 1.442695, %v1384_v40  ;;  %2350 = vmatpush1.bf16.msra.mxu1 %v6247_v28 }
 0x214   : > { %11246 = vst [vmem:[#allocation82_spill] sm:$0xff] %v8044_v62  ;;  %v8047_v22 = vpop.eup %6261  ;;  %v1197_v26 = vpop.xlane.xlu0 %1196  ;;  %v8059_v11 = vsel %vm1173_vm8, %v8022_v39, -inf  ;;  %v8068_v16 = vadd.f32 %v7897_v43, %v7519_v36  ;;  %2351 = vmatprep.subr.bf16.mxu1 %v11240_v14  ;;  %v1295_v28 = vmax.f32 %v1293_v55, %v7983_v50  ;;  %v1300_v50 = vmax.f32 %v1298_v61, %v7987_v52 }
 0x215   : > { %11247 = vst [vmem:[#allocation83_spill] sm:$0xff] %v8047_v22  ;;  %v8061_v59 = vpop.eup %6263  ;;  %6277 = vpow2.f32 %v1511_v3  ;;  %v1385_v7 = vsub.f32 %v7586_v12, %v1197_v26  ;;  %v1386_v40 = vsub.f32 %v7598_v13, %v1197_v26  ;;  %v1387_v32 = vsub.f32 %v7584_v10, %v1197_v26  ;;  %v6248_v3 = vld [vmem:[%s7282_s5 + $0xe0] ss:$12 sps:$4 sm:$0xff]  }
 0x216   : > { %11248 = vst [vmem:[#allocation84_spill] sm:$0xff] %v8061_v59  ;;  %6279 = vpow2.f32 %v1513_v6  ;;  %v1202_v24 = vpop.xlane.xlu1 %1201  ;;  %v1733_v33 = vadd.f32 %v8047_v22, %v8044_v62  ;;  %v1734_v39 = vsel %vm1173_vm8, %v8061_v59, 0.0 }
 0x217   : > { %v8075_v45 = vpop.eup %6265  ;;  %6281 = vpow2.f32 %v1515_v63  ;;  %v1517_v12 = vmul.f32 1.442695, %v1385_v7  ;;  %v1519_v13 = vmul.f32 1.442695, %v1386_v40  ;;  %v1521_v10 = vmul.f32 1.442695, %v1387_v32  ;;  %2352 = vmatpush1.bf16.msra.mxu1 %v6248_v3 }
 0x218   : > { %v8078_v6 = vpop.eup %6267  ;;  %v1388_v43 = vsub.f32 %v7600_v17, %v1202_v24  ;;  %v1389_v26 = vsub.f32 %v7611_v25, %v1202_v24  ;;  %v1390_v62 = vsub.f32 %v7591_v15, %v1202_v24  ;;  %v1735_v22 = vadd.f32 %v1734_v39, %v1733_v33  ;;  %2353 = vmatprep.subr.bf16.mxu1 %v11240_v14 }
 0x219   : > { %v8083_v59 = vpop.eup %6269  ;;  %6283 = vpow2.f32 %v1517_v12  ;;  %v1738_v32 = vadd.f32 %v8078_v6, %v8075_v45  ;;  %v8090_v63 = vadd.f32 %v7789_v49, %v7517_v35  ;;  %v8099_v39 = vadd.f32 %v7795_v5, %v7517_v35  ;;  %v6249_v49 = vld [vmem:[%s7282_s5 + $0xf8] ss:$12 sps:$4 sm:$0xff]  }
 0x21a   : > { %6285 = vpow2.f32 %v1519_v13  ;;  %v1523_v17 = vmul.f32 1.442695, %v1388_v43  ;;  %v1525_v7 = vmul.f32 1.442695, %v1389_v26  ;;  %v1527_v25 = vmul.f32 1.442695, %v1390_v62  ;;  %1736 = vadd.xlane.f32.xlu0 %v1735_v22 }
 0x21b   : > { %11249 = vst [vmem:[#allocation85_spill] sm:$0xff] %v8090_v63  ;;  %v8092_v15 = vpop.eup %6271  ;;  %6287 = vpow2.f32 %v1521_v10  ;;  %v1739_v33 = vsel %vm1173_vm8, %v8083_v59, 0.0  ;;  %11250 = vst [vmem:[#allocation86_spill] sm:$0xff] %v8099_v39  ;;  %v1303_v62 = vmax.f32 %v7891_v47, %v8055_v60  ;;  %v1308_v22 = vmax.f32 %v7895_v4, %v8068_v16  ;;  %2354 = vmatpush1.bf16.msra.mxu1 %v6249_v49 }
 0x21c   : > { %v8103_v55 = vpop.eup %6273  ;;  %6289 = vpow2.f32 %v1523_v17  ;;  %v1740_v40 = vadd.f32 %v1739_v33, %v1738_v32  ;;  %v1207_v24 = vpop.xlane.xlu0 %1206  ;;  %v8116_v13 = vadd.f32 %v7901_v0, %v7519_v36  ;;  %2355 = vmatprep.subr.bf16.mxu1 %v11240_v14  ;;  %v8140_v49 = vadd.f32 %v7805_v29, %v7517_v35 }
 0x21d   : > { %v8109_v3 = vpop.eup %6275  ;;  %6291 = vpow2.f32 %v1525_v7  ;;  %v1391_v5 = vsub.f32 %v7617_v41, %v1207_v24  ;;  %v1392_v52 = vsub.f32 %v7624_v53, %v1207_v24  ;;  %v1393_v61 = vsub.f32 %v7621_v48, %v1207_v24 }
 0x21e   : > { %6293 = vpow2.f32 %v1527_v25  ;;  %1296 = vmax.xlane.f32.xlu0 %v1295_v28  ;;  %1741 = vadd.xlane.f32.xlu1 %v1740_v40  ;;  %v1212_v12 = vpop.xlane.xlu1 %1211  ;;  %v1743_v10 = vadd.f32 %v8103_v55, %v8092_v15  ;;  %v1744_v43 = vsel %vm1173_vm8, %v8109_v3, 0.0  ;;  %v8131_v25 = vadd.f32 %v7905_v56, %v7519_v36  ;;  %11251 = vst [vmem:[#allocation87_spill] sm:$0xff] %v8140_v49 }
 0x21f   : > { %v8122_v26 = vpop.eup %6277  ;;  %v1529_v41 = vmul.f32 1.442695, %v1391_v5  ;;  %v1531_v53 = vmul.f32 1.442695, %v1392_v52  ;;  %v1533_v32 = vmul.f32 1.442695, %v1393_v61  ;;  %v1394_v48 = vsub.f32 %v7626_v54, %v1212_v12 }
 0x220   : > { %v8125_v28 = vpop.eup %6279  ;;  %v1395_v17 = vsub.f32 %v7635_v2, %v1212_v12  ;;  %v1396_v0 = vsub.f32 %v7630_v58, %v1212_v12  ;;  %v1745_v7 = vadd.f32 %v1744_v43, %v1743_v10  ;;  %v1305_v5 = vmax.f32 %v1303_v62, %v7991_v19 }
 0x221   : > { %v8134_v33 = vpop.eup %6281  ;;  %6295 = vpow2.f32 %v1529_v41  ;;  %v1535_v40 = vmul.f32 1.442695, %v1394_v48  ;;  %v1748_v54 = vadd.f32 %v8125_v28, %v8122_v26  ;;  %v1310_v61 = vmax.f32 %v1308_v22, %v8026_v18  ;;  %v11255_v18 = vld [vmem:[#allocation11_spill] sm:$0xff]  ;;  %v11256_v22 = vld [vmem:[#allocation9_spill] sm:$0xff] }
 0x222   : > { %6297 = vpow2.f32 %v1531_v53  ;;  %v1537_v58 = vmul.f32 1.442695, %v1395_v17  ;;  %v1539_v2 = vmul.f32 1.442695, %v1396_v0  ;;  %1746 = vadd.xlane.f32.xlu0 %v1745_v7  ;;  %1301 = vmax.xlane.f32.xlu1 %v1300_v50  ;;  %v1749_v56 = vsel %vm1173_vm8, %v8134_v33, 0.0  ;;  %v11258_v48 = vld [vmem:[#allocation63_spill] sm:$0xff] }
 0x223   : > { %v8144_v24 = vpop.eup %6283  ;;  %6299 = vpow2.f32 %v1533_v32  ;;  %v1750_v52 = vadd.f32 %v1749_v56, %v1748_v54  ;;  %v1313_v29 = vmax.f32 %v7899_v23, %v8116_v13  ;;  %v1318_v50 = vmax.f32 %v7903_v21, %v8131_v25 }
 0x224   : > { %11252 = vst [vmem:[#allocation88_spill] sm:$0xff] %v8144_v24  ;;  %v8148_v12 = vpop.eup %6285  ;;  %6301 = vpow2.f32 %v1535_v40  ;;  %v8156_v10 = vadd.f32 %v7909_v27, %v7519_v36  ;;  %v1217_v43 = vpop.xlane.xlu0 %1216  ;;  %v8167_v27 = vadd.f32 %v11258_v48, %v7519_v36 }
 0x225   : > { %11253 = vst [vmem:[#allocation89_spill] sm:$0xff] %v8148_v12  ;;  %v8158_v41 = vpop.eup %6287  ;;  %6303 = vpow2.f32 %v1537_v58  ;;  %v1397_v19 = vsub.f32 %v7647_v9, %v1217_v43  ;;  %v1398_v62 = vsub.f32 %v11255_v18, %v1217_v43  ;;  %v1399_v53 = vsub.f32 %v11256_v22, %v1217_v43  ;;  %v11264_v18 = vld [vmem:[#allocation10_spill] sm:$0xff] }
 0x226   : > { %11254 = vst [vmem:[#allocation90_spill] sm:$0xff] %v8158_v41  ;;  %v8163_v32 = vpop.eup %6289  ;;  %6305 = vpow2.f32 %v1539_v2  ;;  %1306 = vmax.xlane.f32.xlu0 %v1305_v5  ;;  %1751 = vadd.xlane.f32.xlu1 %v1750_v52  ;;  %11259 = vst [vmem:[#allocation9_spill] sm:$0xff] %v8167_v27  ;;  %v1222_v17 = vpop.xlane.xlu1 %1221  ;;  %v1753_v0 = vadd.f32 %v8148_v12, %v8144_v24  ;;  %v1754_v9 = vsel %vm1173_vm8, %v8158_v41, 0.0  ;;  %v11261_v2 = vld [vmem:[#allocation12_spill] sm:$0xff]  ;;  %v11263_v52 = vld [vmem:[#allocation13_spill] sm:$0xff] }
 0x227   : > { %11257 = vst [vmem:[#allocation11_spill] sm:$0xff] %v8163_v32  ;;  %v8173_v7 = vpop.eup %6291  ;;  %v1541_v40 = vmul.f32 1.442695, %v1397_v19  ;;  %v1543_v54 = vmul.f32 1.442695, %v1398_v62  ;;  %v1400_v56 = vsub.f32 %v11261_v2, %v1222_v17  ;;  %v1401_v43 = vsub.f32 %v11263_v52, %v1222_v17 }
 0x228   : > { %11260 = vst [vmem:[#allocation63_spill] sm:$0xff] %v8173_v7  ;;  %v1545_v58 = vmul.f32 1.442695, %v1399_v53  ;;  %v8176_v5 = vpop.eup %6293  ;;  %v1402_v22 = vsub.f32 %v11264_v18, %v1222_v17  ;;  %v1755_v48 = vadd.f32 %v1754_v9, %v1753_v0  ;;  %v1758_v24 = vadd.f32 %v8173_v7, %v8163_v32  ;;  %v6250_v12 = vld [vmem:[%s7282_s5 + $0x110] ss:$12 sps:$4 sm:$0xff]   ;;  %v11266_v9 = vld [vmem:[#allocation61_spill] sm:$0xff] }
 0x229   : > { %11262 = vst [vmem:[#allocation12_spill] sm:$0xff] %v8176_v5  ;;  %6307 = vpow2.f32 %v1541_v40  ;;  %v1547_v41 = vmul.f32 1.442695, %v1400_v56  ;;  %v1759_v19 = vsel %vm1173_vm8, %v8176_v5, 0.0  ;;  %v8187_v62 = vsel %vm1173_vm8, %v8099_v39, -inf  ;;  %2356 = vmatpush1.bf16.msra.mxu1 %v6250_v12  ;;  %v11269_v18 = vld [vmem:[#allocation65_spill] sm:$0xff] }
 0x22a   : > { %6309 = vpow2.f32 %v1543_v54  ;;  %v1549_v53 = vmul.f32 1.442695, %v1401_v43  ;;  %v1551_v2 = vmul.f32 1.442695, %v1402_v22  ;;  %1311 = vmax.xlane.f32.xlu1 %v1310_v61  ;;  %1756 = vadd.xlane.f32.xlu0 %v1755_v48  ;;  %v1315_v17 = vmax.f32 %v1313_v29, %v8033_v1  ;;  %v11268_v61 = vld [vmem:[#allocation62_spill] sm:$0xff]  ;;  %v11273_v12 = vld [vmem:[#allocation16_spill] sm:$0xff] }
 0x22b   : > { %v8190_v0 = vpop.eup %6295  ;;  %v1323_v40 = vmax.f32 %v11266_v9, %v8156_v10  ;;  %6311 = vpow2.f32 %v1545_v58  ;;  %v1320_v56 = vmax.f32 %v1318_v50, %v8037_v30  ;;  %v8197_v52 = vsel %vm1173_vm8, %v8140_v49, -inf  ;;  %2357 = vmatprep.subr.bf16.mxu1 %v11240_v14  ;;  %v11272_v50 = vld [vmem:[#allocation14_spill] sm:$0xff]  ;;  %v11274_v49 = vld [vmem:[#allocation15_spill] sm:$0xff]  ;;  %v11279_v7 = vld [vmem:[#allocation17_spill] sm:$0xff] }
 0x22c   : > { %11265 = vst [vmem:[#allocation13_spill] sm:$0xff] %v8190_v0  ;;  %v8199_v54 = vpop.eup %6297  ;;  %v1328_v43 = vmax.f32 %v11268_v61, %v8167_v27  ;;  %6313 = vpow2.f32 %v1547_v41  ;;  %v1760_v1 = vadd.f32 %v1759_v19, %v1758_v24  ;;  %v1227_v29 = vpop.xlane.xlu0 %1226  ;;  %v8205_v22 = vadd.f32 %v11269_v18, %v7519_v36  ;;  %v6251_v39 = vld [vmem:[%s7282_s5 + $0x128] ss:$12 sps:$4 sm:$0xff]  }
 0x22d   : > { %11267 = vst [vmem:[#allocation10_spill] sm:$0xff] %v8199_v54  ;;  %v8208_v30 = vpop.eup %6299  ;;  %6315 = vpow2.f32 %v1549_v53  ;;  %v1403_v58 = vsub.f32 %v11272_v50, %v1227_v29  ;;  %v1404_v48 = vsub.f32 %v11273_v12, %v1227_v29  ;;  %v1405_v32 = vsub.f32 %v11274_v49, %v1227_v29  ;;  %v11276_v53 = vld [vmem:[#allocation67_spill] sm:$0xff]  ;;  %2358 = vmatpush1.bf16.msra.mxu1 %v6251_v39 }
 0x22e   : > { %11270 = vst [vmem:[#allocation61_spill] sm:$0xff] %v8205_v22  ;;  %11271 = vst [vmem:[#allocation65_spill] sm:$0xff] %v8208_v30  ;;  %v8214_v5 = vpop.eup %6301  ;;  %6317 = vpow2.f32 %v1551_v2  ;;  %1761 = vadd.xlane.f32.xlu1 %v1760_v1  ;;  %1316 = vmax.xlane.f32.xlu0 %v1315_v17  ;;  %v1232_v24 = vpop.xlane.xlu1 %1231  ;;  %v1763_v41 = vadd.f32 %v8199_v54, %v8190_v0  ;;  %v1764_v19 = vsel %vm1173_vm8, %v8208_v30, 0.0  ;;  %v11281_v1 = vld [vmem:[#allocation19_spill] sm:$0xff]  ;;  %v11282_v54 = vld [vmem:[#allocation18_spill] sm:$0xff]  ;;  %v8238_v39 = vsel %vm1173_vm8, %v8090_v63, -inf }
 0x22f   : > { %11275 = vst [vmem:[#allocation14_spill] sm:$0xff] %v8214_v5  ;;  %v8222_v18 = vadd.f32 %v11276_v53, %v7519_v36  ;;  %v8224_v50 = vpop.eup %6303  ;;  %v1553_v49 = vmul.f32 1.442695, %v1403_v58  ;;  %v1555_v29 = vmul.f32 1.442695, %v1404_v48  ;;  %v1406_v2 = vsub.f32 %v11279_v7, %v1232_v24  ;;  %2359 = vmatprep.subr.bf16.mxu1 %v11240_v14 }
 0x230   : > { %11278 = vst [vmem:[#allocation15_spill] sm:$0xff] %v8224_v50  ;;  %v1557_v12 = vmul.f32 1.442695, %v1405_v32  ;;  %v8227_v17 = vpop.eup %6305  ;;  %v1407_v0 = vsub.f32 %v11281_v1, %v1232_v24  ;;  %v1408_v27 = vsub.f32 %v11282_v54, %v1232_v24  ;;  %v1765_v30 = vadd.f32 %v1764_v19, %v1763_v41  ;;  %v11283_v54 = vld [vmem:[#allocation40_spill] sm:$0xff] }
 0x231   : > { %11277 = vst [vmem:[#allocation16_spill] sm:$0xff] %v8222_v18  ;;  %11280 = vst [vmem:[#allocation67_spill] sm:$0xff] %v8227_v17  ;;  %v1768_v53 = vadd.f32 %v8224_v50, %v8214_v5  ;;  %6319 = vpow2.f32 %v1553_v49  ;;  %v1559_v58 = vmul.f32 1.442695, %v1406_v2  ;;  %v1769_v32 = vsel %vm1173_vm8, %v8227_v17, 0.0  ;;  %v11286_v49 = vld [vmem:[#allocation64_spill] sm:$0xff] }
 0x232   : > { %6321 = vpow2.f32 %v1555_v29  ;;  %v1561_v7 = vmul.f32 1.442695, %v1407_v0  ;;  %v1563_v48 = vmul.f32 1.442695, %v1408_v27  ;;  %1321 = vmax.xlane.f32.xlu1 %v1320_v56  ;;  %1766 = vadd.xlane.f32.xlu0 %v1765_v30  ;;  %v8242_v24 = vadd.f32 %v11283_v54, %v7517_v35  ;;  %v6252_v41 = vld [vmem:[%s7282_s5 + $0x140] ss:$12 sps:$4 sm:$0xff]  }
 0x233   : > { %v8245_v19 = vpop.eup %6307  ;;  %6323 = vpow2.f32 %v1557_v12  ;;  %v1333_v2 = vmax.f32 %v11286_v49, %v8205_v22  ;;  %v1325_v1 = vmax.f32 %v1323_v40, %v8041_v8  ;;  %v1330_v29 = vmax.f32 %v1328_v43, %v8059_v11  ;;  %v11288_v27 = vld [vmem:[#allocation66_spill] sm:$0xff]  ;;  %v11289_v30 = vld [vmem:[#allocation69_spill] sm:$0xff]  ;;  %2360 = vmatpush1.bf16.msra.mxu1 %v6252_v41  ;;  %v11292_v40 = vld [vmem:[#allocation23_spill] sm:$0xff] }
 0x234   : > { %11284 = vst [vmem:[#allocation17_spill] sm:$0xff] %v8242_v24  ;;  %11285 = vst [vmem:[#allocation19_spill] sm:$0xff] %v8245_v19  ;;  %v8251_v0 = vpop.eup %6309  ;;  %6325 = vpow2.f32 %v1559_v58  ;;  %v1338_v56 = vmax.f32 %v11288_v27, %v8222_v18  ;;  %v8257_v54 = vadd.f32 %v11289_v30, %v7519_v36  ;;  %v1770_v5 = vadd.f32 %v1769_v32, %v1768_v53  ;;  %v1237_v63 = vpop.xlane.xlu0 %1236  ;;  %v6253_v12 = vld [vmem:[%s7282_s5 + $0x188] ss:$12 sps:$4 sm:$0xff]   ;;  %v11293_v58 = vld [vmem:[#allocation20_spill] sm:$0xff] }
 0x235   : > { %11287 = vst [vmem:[#allocation18_spill] sm:$0xff] %v8251_v0  ;;  %v8260_v17 = vpop.eup %6311  ;;  %6327 = vpow2.f32 %v1561_v7  ;;  %v11291_v8 = vld [vmem:[#allocation21_spill] sm:$0xff]  ;;  %v1410_v43 = vsub.f32 %v11292_v40, %v1237_v63  ;;  %v1411_v50 = vsub.f32 %v11293_v58, %v1237_v63  ;;  %2361 = vmatprep.subr.bf16.mxu1 %v11240_v14  ;;  %v11295_v53 = vld [vmem:[#allocation71_spill] sm:$0xff]  ;;  %v1773_v7 = vadd.f32 %v8251_v0, %v8245_v19  ;;  %v11301_v49 = vld [vmem:[#allocation22_spill] sm:$0xff] }
 0x236   : > { %11290 = vst [vmem:[#allocation40_spill] sm:$0xff] %v8260_v17  ;;  %v1409_v11 = vsub.f32 %v11291_v8, %v1237_v63  ;;  %v8266_v18 = vpop.eup %6313  ;;  %6329 = vpow2.f32 %v1563_v48  ;;  %1771 = vadd.xlane.f32.xlu1 %v1770_v5  ;;  %1326 = vmax.xlane.f32.xlu0 %v1325_v1  ;;  %v8270_v32 = vadd.f32 %v11295_v53, %v7519_v36  ;;  %v1242_v41 = vpop.xlane.xlu1 %1241  ;;  %v1774_v30 = vsel %vm1173_vm8, %v8260_v17, 0.0  ;;  %v6254_v63 = vld [vmem:[%s7282_s5 + $0x158] ss:$12 sps:$4 sm:$0xff]   ;;  %v11300_v53 = vld [vmem:[#allocation25_spill] sm:$0xff] }
 0x237   : > { %11294 = vst [vmem:[#allocation69_spill] sm:$0xff] %v8266_v18  ;;  %v8277_v8 = vpop.eup %6315  ;;  %v1567_v58 = vmul.f32 1.442695, %v1410_v43  ;;  %v1569_v48 = vmul.f32 1.442695, %v1411_v50  ;;  %v11298_v5 = vld [vmem:[#allocation24_spill] sm:$0xff]  ;;  %6004 = vmatprep.subr.bf16.mxu0 %v6253_v12  ;;  %v1413_v22 = vsub.f32 %v11300_v53, %v1242_v41  ;;  %v1414_v61 = vsub.f32 %v11301_v49, %v1242_v41  ;;  %2362 = vmatpush1.bf16.msra.mxu1 %v6254_v63 }
 0x238   : > { %11296 = vst [vmem:[#allocation21_spill] sm:$0xff] %v8270_v32  ;;  %11297 = vst [vmem:[#allocation23_spill] sm:$0xff] %v8277_v8  ;;  %v1565_v40 = vmul.f32 1.442695, %v1409_v11  ;;  %v1412_v1 = vsub.f32 %v11298_v5, %v1242_v41  ;;  %v8280_v27 = vpop.eup %6317  ;;  %v1775_v19 = vadd.f32 %v1774_v30, %v1773_v7  ;;  %v1778_v17 = vadd.f32 %v8277_v8, %v8266_v18  ;;  %v6255_v0 = vld [vmem:[%s7282_s5 + $0x1a0] ss:$12 sps:$4 sm:$0xff]  }
 0x239   : > { %11299 = vst [vmem:[#allocation20_spill] sm:$0xff] %v8280_v27  ;;  %6005 = vmatpush3.bf16.msra.mxu0 %v6253_v12  ;;  %v1779_v50 = vsel %vm1173_vm8, %v8280_v27, 0.0  ;;  %v8291_v43 = vsel %vm1173_vm8, %v8242_v24, -inf  ;;  %v1573_v5 = vmul.f32 1.442695, %v1413_v22  ;;  %v1335_v41 = vmax.f32 %v1333_v2, %v8187_v62  ;;  %v11303_v30 = vld [vmem:[#allocation68_spill] sm:$0xff]  ;;  %2363 = vmatprep.subr.bf16.mxu1 %v11240_v14 }
 0x23a   : > { %6331 = vpow2.f32 %v1565_v40  ;;  %v1571_v11 = vmul.f32 1.442695, %v1412_v1  ;;  %v1575_v49 = vmul.f32 1.442695, %v1414_v61  ;;  %1331 = vmax.xlane.f32.xlu1 %v1330_v29  ;;  %1776 = vadd.xlane.f32.xlu0 %v1775_v19  ;;  %v6256_v12 = vld [vmem:[%s7282_s5 + $0x170] ss:$12 sps:$4 sm:$0xff]   ;;  %v1343_v40 = vmax.f32 %v11303_v30, %v8257_v54 }
 0x23b   : > { %6333 = vpow2.f32 %v1567_v58  ;;  %v8295_v7 = vpop.eup %6319  ;;  %v1340_v1 = vmax.f32 %v1338_v56, %v8197_v52  ;;  %v11304_v53 = vld [vmem:[#allocation53_spill] sm:$0xff]  ;;  %6006 = vmatprep.subr.bf16.mxu0 %v6255_v0  ;;  %v11306_v62 = vld [vmem:[#allocation70_spill] sm:$0xff]  ;;  %v1780_v19 = vadd.f32 %v1779_v50, %v1778_v17  ;;  %v6257_v52 = vld [vmem:[%s7282_s5 + $0x1b8] ss:$12 sps:$4 sm:$0xff]   ;;  %2364 = vmatpush1.bf16.msra.mxu1 %v6256_v12 }
 0x23c   : > { %11302 = vst [vmem:[#allocation71_spill] sm:$0xff] %v8295_v7  ;;  %6335 = vpow2.f32 %v1569_v48  ;;  %v8302_v63 = vadd.f32 %v11304_v53, %v7517_v35  ;;  %v8305_v61 = vpop.eup %6321  ;;  %v1348_v22 = vmax.f32 %v11306_v62, %v8270_v32  ;;  %v1247_v2 = vpop.xlane.xlu0 %1246  ;;  %v11307_v29 = vld [vmem:[#allocation73_spill] sm:$0xff]  ;;  %v11309_v48 = vld [vmem:[#allocation26_spill] sm:$0xff]  ;;  %v11310_v14 = vld [vmem:[#allocation28_spill] sm:$0xff] }
 0x23d   : > { %11305 = vst [vmem:[#allocation24_spill] sm:$0xff] %v8305_v61  ;;  %6337 = vpow2.f32 %v1571_v11  ;;  %v8311_v58 = vadd.f32 %v11307_v29, %v7519_v36  ;;  %6007 = vmatpush3.bf16.msra.mxu0 %v6255_v0  ;;  %v8314_v56 = vpop.eup %6323  ;;  %v1415_v53 = vsub.f32 %v11309_v48, %v1247_v2  ;;  %v1416_v18 = vsub.f32 %v11310_v14, %v1247_v2  ;;  %v11311_v27 = vld [vmem:[#allocation27_spill] sm:$0xff] }
 0x23e   : > { %11308 = vst [vmem:[#allocation25_spill] sm:$0xff] %v8314_v56  ;;  %6339 = vpow2.f32 %v1573_v5  ;;  %v1417_v8 = vsub.f32 %v11311_v27, %v1247_v2  ;;  %v8319_v11 = vpop.eup %6325  ;;  %1781 = vadd.xlane.f32.xlu1 %v1780_v19  ;;  %1336 = vmax.xlane.f32.xlu0 %v1335_v41  ;;  %v1252_v17 = vpop.xlane.xlu1 %1251  ;;  %v1783_v0 = vadd.f32 %v8305_v61, %v8295_v7  ;;  %v1784_v50 = vsel %vm1173_vm8, %v8314_v56, 0.0  ;;  %v11313_v5 = vld [vmem:[#allocation75_spill] sm:$0xff]  ;;  %v6899_v41 = vld [vmem:[%s7282_s5 + $0xc4] ss:$12 sps:$4 sm:$0xff]  }
 0x23f   : > { %11312 = vst [vmem:[#allocation22_spill] sm:$0xff] %v8319_v11  ;;  %6341 = vpow2.f32 %v1575_v49  ;;  %v8327_v14 = vadd.f32 %v11313_v5, %v7519_v36  ;;  %v8329_v27 = vpop.eup %6327  ;;  %v1577_v12 = vmul.f32 1.442695, %v1415_v53  ;;  %v1579_v2 = vmul.f32 1.442695, %v1416_v18  ;;  %v11316_v49 = vld [vmem:[#allocation29_spill] sm:$0xff]  ;;  %6008 = vmatprep.subr.bf16.mxu0 %v6257_v52  ;;  %5852 = vmatprep.subr.bf16.mxu1 %v6899_v41 }
 0x240   : > { %11315 = vst [vmem:[#allocation53_spill] sm:$0xff] %v8329_v27  ;;  %v1581_v29 = vmul.f32 1.442695, %v1417_v8  ;;  %v1418_v19 = vsub.f32 %v11316_v49, %v1252_v17  ;;  %v8333_v48 = vpop.eup %6329  ;;  %v11318_v7 = vld [vmem:[#allocation31_spill] sm:$0xff]  ;;  %v11319_v56 = vld [vmem:[#allocation30_spill] sm:$0xff]  ;;  %v1785_v32 = vadd.f32 %v1784_v50, %v1783_v0  ;;  %v1788_v5 = vadd.f32 %v8329_v27, %v8319_v11 }
 0x241   : > { %11314 = vst [vmem:[#allocation68_spill] sm:$0xff] %v8327_v14  ;;  %11317 = vst [vmem:[#allocation73_spill] sm:$0xff] %v8333_v48  ;;  %v1419_v61 = vsub.f32 %v11318_v7, %v1252_v17  ;;  %v1420_v24 = vsub.f32 %v11319_v56, %v1252_v17  ;;  %6009 = vmatpush3.bf16.msra.mxu0 %v6257_v52  ;;  %v6258_v62 = vld [vmem:[%s7282_s5 + $0x1d0] ss:$12 sps:$4 sm:$0xff]   ;;  %6343 = vpow2.f32 %v1577_v12  ;;  %v1789_v8 = vsel %vm1173_vm8, %v8333_v48, 0.0  ;;  %v11320_v7 = vld [vmem:[#allocation57_spill] sm:$0xff] }
 0x242   : > { %v1583_v18 = vmul.f32 1.442695, %v1418_v19  ;;  %6345 = vpow2.f32 %v1579_v2  ;;  %1341 = vmax.xlane.f32.xlu1 %v1340_v1  ;;  %1786 = vadd.xlane.f32.xlu0 %v1785_v32  ;;  %v8344_v41 = vadd.f32 %v11320_v7, %v7517_v35  ;;  %v1345_v52 = vmax.f32 %v1343_v40, %v8238_v39  ;;  %v11324_v1 = vld [vmem:[#allocation74_spill] sm:$0xff]  ;;  %v11328_v19 = vld [vmem:[#allocation32_spill] sm:$0xff] }
 0x243   : > { %v1585_v53 = vmul.f32 1.442695, %v1419_v61  ;;  %v1587_v49 = vmul.f32 1.442695, %v1420_v24  ;;  %6347 = vpow2.f32 %v1581_v29  ;;  %v1350_v17 = vmax.f32 %v1348_v22, %v8291_v43  ;;  %6010 = vmatprep.subr.bf16.mxu0 %v6258_v62  ;;  %v11323_v24 = vld [vmem:[#allocation72_spill] sm:$0xff]  ;;  %v11326_v43 = vld [vmem:[#allocation33_spill] sm:$0xff] }
 0x244   : > { %v8346_v56 = vpop.eup %6331  ;;  %v1354_v0 = vsel %vm1173_vm8, %v8302_v63, -inf  ;;  %6349 = vpow2.f32 %v1583_v18  ;;  %v1353_v32 = vmax.f32 %v11323_v24, %v8311_v58  ;;  %v1358_v50 = vmax.f32 %v11324_v1, %v8327_v14  ;;  %v1257_v2 = vpop.xlane.xlu0 %1256  ;;  %v11327_v22 = vld [vmem:[#allocation35_spill] sm:$0xff]  ;;  %v8364_v11 = vld [vmem:[%s7282_s5 + $0x184] ss:$12 sps:$4 sm:$0xff]  }
 0x245   : > { %11321 = vst [vmem:[#allocation26_spill] sm:$0xff] %v8346_v56  ;;  %v8352_v61 = vpop.eup %6333  ;;  %v1790_v12 = vadd.f32 %v1789_v8, %v1788_v5  ;;  %6011 = vmatpush3.bf16.msra.mxu0 %v6258_v62  ;;  %6351 = vpow2.f32 %v1585_v53  ;;  %v1421_v40 = vsub.f32 %v11326_v43, %v1257_v2  ;;  %v1422_v29 = vsub.f32 %v11327_v22, %v1257_v2  ;;  %v11330_v48 = vld [vmem:[#allocation36_spill] sm:$0xff] }
 0x246   : > { %11322 = vst [vmem:[#allocation28_spill] sm:$0xff] %v8352_v61  ;;  %v8358_v39 = vpop.eup %6335  ;;  %v1423_v7 = vsub.f32 %v11328_v19, %v1257_v2  ;;  %6052 = vmatprep.subr.bf16.mxu0 %v8364_v11  ;;  %6353 = vpow2.f32 %v1587_v49  ;;  %v8371_v5 = vadd.f32 %v7971_v31, %v7519_v36  ;;  %1346 = vmax.xlane.f32.xlu0 %v1345_v52  ;;  %v1262_v62 = vpop.xlane.xlu1 %1261  ;;  %v11331_v31 = vld [vmem:[#allocation37_spill] sm:$0xff] }
 0x247   : > { %11325 = vst [vmem:[#allocation27_spill] sm:$0xff] %v8358_v39  ;;  %v8367_v18 = vpop.eup %6337  ;;  %1791 = vadd.xlane.f32.xlu1 %v1790_v12  ;;  %v1793_v8 = vadd.f32 %v8352_v61, %v8346_v56  ;;  %v1794_v53 = vsel %vm1173_vm8, %v8358_v39, 0.0  ;;  %v1589_v43 = vmul.f32 1.442695, %v1421_v40  ;;  %v1591_v22 = vmul.f32 1.442695, %v1422_v29 }
 0x248   : > { %11329 = vst [vmem:[#allocation75_spill] sm:$0xff] %v8367_v18  ;;  %v8377_v2 = vpop.eup %6339  ;;  %v1593_v19 = vmul.f32 1.442695, %v1423_v7  ;;  %v1424_v49 = vsub.f32 %v11330_v48, %v1262_v62  ;;  %v1425_v14 = vsub.f32 %v11331_v31, %v1262_v62  ;;  %v11332_v12 = vld [vmem:[#allocation34_spill] sm:$0xff]  ;;  %v1359_v40 = vsel %vm1173_vm8, %v8344_v41, -inf }
 0x249   : > { %v8380_v27 = vpop.eup %6341  ;;  %v1426_v52 = vsub.f32 %v11332_v12, %v1262_v62  ;;  %v1795_v1 = vadd.f32 %v1794_v53, %v1793_v8  ;;  %v1798_v56 = vadd.f32 %v8377_v2, %v8367_v18  ;;  %6355 = vpow2.f32 %v1589_v43  ;;  %v11334_v62 = vld [vmem:[#allocation51_spill] sm:$0xff]  ;;  %v11340_v18 = vld [vmem:[#allocation38_spill] sm:$0xff] }
 0x24a   : > { %v1595_v61 = vmul.f32 1.442695, %v1424_v49  ;;  %v1799_v39 = vsel %vm1173_vm8, %v8380_v27, 0.0  ;;  %6357 = vpow2.f32 %v1591_v22  ;;  %v1597_v48 = vmul.f32 1.442695, %v1425_v14  ;;  %v11335_v53 = vld [vmem:[#allocation55_spill] sm:$0xff] }
 0x24b   : > { %v1599_v29 = vmul.f32 1.442695, %v1426_v52  ;;  %1351 = vmax.xlane.f32.xlu1 %v1350_v17  ;;  %1796 = vadd.xlane.f32.xlu0 %v1795_v1  ;;  %v1355_v7 = vmax.f32 %v1353_v32, %v1354_v0  ;;  %v8390_v31 = vpop.eup %6343  ;;  %v8394_v8 = vadd.f32 %v11334_v62, %v7517_v35  ;;  %v8398_v43 = vadd.f32 %v11335_v53, %v7517_v35  ;;  %v11338_v22 = vld [vmem:[#allocation39_spill] sm:$0xff]  ;;  %v11339_v52 = vld [vmem:[#allocation42_spill] sm:$0xff] }
 0x24c   : > { %11333 = vst [vmem:[#allocation29_spill] sm:$0xff] %v8390_v31  ;;  %6359 = vpow2.f32 %v1593_v19  ;;  %v8400_v49 = vpop.eup %6345  ;;  %v1363_v14 = vmax.f32 %v7966_v44, %v8371_v5  ;;  %v1800_v17 = vadd.f32 %v1799_v39, %v1798_v56  ;;  %v1267_v1 = vpop.xlane.xlu0 %1266  ;;  %v1360_v0 = vmax.f32 %v1358_v50, %v1359_v40 }
 0x24d   : > { %11336 = vst [vmem:[#allocation31_spill] sm:$0xff] %v8400_v49  ;;  %6361 = vpow2.f32 %v1595_v61  ;;  %v8404_v32 = vpop.eup %6347  ;;  %v1427_v12 = vsub.f32 %v11338_v22, %v1267_v1  ;;  %v1428_v62 = vsub.f32 %v11339_v52, %v1267_v1  ;;  %v1429_v53 = vsub.f32 %v11340_v18, %v1267_v1  ;;  %v11343_v1 = vld [vmem:[#allocation43_spill] sm:$0xff] }
 0x24e   : > { %11337 = vst [vmem:[#allocation30_spill] sm:$0xff] %v8404_v32  ;;  %6363 = vpow2.f32 %v1597_v48  ;;  %v8409_v35 = vpop.eup %6349  ;;  %v8413_v19 = vadd.f32 %v7993_v20, %v7519_v36  ;;  %v1272_v56 = vpop.xlane.xlu1 %1271  ;;  %v1803_v61 = vadd.f32 %v8400_v49, %v8390_v31  ;;  %v1804_v50 = vsel %vm1173_vm8, %v8404_v32, 0.0  ;;  %v11345_v20 = vld [vmem:[#allocation44_spill] sm:$0xff] }
 0x24f   : > { %11341 = vst [vmem:[#allocation57_spill] sm:$0xff] %v8409_v35  ;;  %6365 = vpow2.f32 %v1599_v29  ;;  %1801 = vadd.xlane.f32.xlu1 %v1800_v17  ;;  %1356 = vmax.xlane.f32.xlu0 %v1355_v7  ;;  %v8419_v39 = vpop.eup %6351  ;;  %v1601_v40 = vmul.f32 1.442695, %v1427_v12  ;;  %v1603_v18 = vmul.f32 1.442695, %v1428_v62  ;;  %v1430_v22 = vsub.f32 %v11343_v1, %v1272_v56  ;;  %v11346_v17 = vld [vmem:[#allocation41_spill] sm:$0xff] }
 0x250   : > { %11342 = vst [vmem:[#allocation72_spill] sm:$0xff] %v8419_v39  ;;  %v1605_v48 = vmul.f32 1.442695, %v1429_v53  ;;  %v8422_v52 = vpop.eup %6353  ;;  %v1431_v29 = vsub.f32 %v11345_v20, %v1272_v56  ;;  %v1432_v7 = vsub.f32 %v11346_v17, %v1272_v56  ;;  %v1805_v36 = vadd.f32 %v1804_v50, %v1803_v61 }
 0x251   : > { %11344 = vst [vmem:[#allocation33_spill] sm:$0xff] %v8422_v52  ;;  %v1808_v31 = vadd.f32 %v8419_v39, %v8409_v35  ;;  %6367 = vpow2.f32 %v1601_v40  ;;  %v1607_v49 = vmul.f32 1.442695, %v1430_v22  ;;  %v1809_v32 = vsel %vm1173_vm8, %v8422_v52, 0.0 }
 0x252   : > { %v1364_v12 = vsel %vm1173_vm8, %v8394_v8, -inf  ;;  %v1368_v62 = vmax.f32 %v7973_v34, %v8413_v19  ;;  %6369 = vpow2.f32 %v1603_v18  ;;  %v1609_v53 = vmul.f32 1.442695, %v1431_v29  ;;  %v11349_v18 = vld [vmem:[#allocation46_spill] sm:$0xff] }
 0x253   : > { %v1611_v1 = vmul.f32 1.442695, %v1432_v7  ;;  %1361 = vmax.xlane.f32.xlu1 %v1360_v0  ;;  %1806 = vadd.xlane.f32.xlu0 %v1805_v36  ;;  %v8434_v56 = vpop.eup %6355  ;;  %6371 = vpow2.f32 %v1605_v48  ;;  %v1369_v61 = vsel %vm1173_vm8, %v8398_v43, -inf  ;;  %v1810_v40 = vadd.f32 %v1809_v32, %v1808_v31  ;;  %v11350_v7 = vld [vmem:[#allocation48_spill] sm:$0xff]  ;;  %v11351_v36 = vld [vmem:[#allocation45_spill] sm:$0xff] }
 0x254   : > { %11347 = vst [vmem:[#allocation35_spill] sm:$0xff] %v8434_v56  ;;  %v8438_v50 = vpop.eup %6357  ;;  %6373 = vpow2.f32 %v1607_v49  ;;  %v1365_v22 = vmax.f32 %v1363_v14, %v1364_v12  ;;  %v1277_v20 = vpop.xlane.xlu0 %1276  ;;  %v1370_v39 = vmax.f32 %v1368_v62, %v1369_v61 }
 0x255   : > { %6375 = vpow2.f32 %v1609_v53  ;;  %v1433_v29 = vsub.f32 %v11349_v18, %v1277_v20  ;;  %v1434_v0 = vsub.f32 %v11350_v7, %v1277_v20  ;;  %v1435_v35 = vsub.f32 %v11351_v36, %v1277_v20  ;;  %v11353_v18 = vld [vmem:[#allocation49_spill] sm:$0xff] }
 0x256   : > { %v8440_v17 = vpop.eup %6359  ;;  %6377 = vpow2.f32 %v1611_v1  ;;  %v1282_v48 = vpop.xlane.xlu1 %1281  ;;  %v1813_v31 = vadd.f32 %v8438_v50, %v8434_v56  ;;  %v11355_v1 = vld [vmem:[#allocation50_spill] sm:$0xff] }
 0x257   : > { %11348 = vst [vmem:[#allocation32_spill] sm:$0xff] %v8440_v17  ;;  %v8445_v52 = vpop.eup %6361  ;;  %1811 = vadd.xlane.f32.xlu1 %v1810_v40  ;;  %1366 = vmax.xlane.f32.xlu0 %v1365_v22  ;;  %v1814_v49 = vsel %vm1173_vm8, %v8440_v17, 0.0  ;;  %v1613_v32 = vmul.f32 1.442695, %v1433_v29  ;;  %v1615_v12 = vmul.f32 1.442695, %v1434_v0  ;;  %v1436_v20 = vsub.f32 %v11353_v18, %v1282_v48 }
 0x258   : > { %11352 = vst [vmem:[#allocation36_spill] sm:$0xff] %v8445_v52  ;;  %v8451_v14 = vpop.eup %6363  ;;  %v1617_v53 = vmul.f32 1.442695, %v1435_v35  ;;  %v1437_v40 = vsub.f32 %v11355_v1, %v1282_v48  ;;  %v11356_v22 = vld [vmem:[#allocation47_spill] sm:$0xff]  ;;  %v1815_v62 = vadd.f32 %v1814_v49, %v1813_v31  ;;  %v11361_v1 = vld [vmem:[#allocation58_spill] sm:$0xff] }
 0x259   : > { %v8454_v7 = vpop.eup %6365  ;;  %v1438_v36 = vsub.f32 %v11356_v22, %v1282_v48  ;;  %v1818_v61 = vadd.f32 %v8451_v14, %v8445_v52  ;;  %6379 = vpow2.f32 %v1613_v32  ;;  %v1619_v56 = vmul.f32 1.442695, %v1436_v20  ;;  %v11360_v32 = vld [vmem:[#allocation54_spill] sm:$0xff] }
 0x25a   : > { %11354 = vst [vmem:[#allocation37_spill] sm:$0xff] %v8454_v7  ;;  %v1819_v17 = vsel %vm1173_vm8, %v8454_v7, 0.0  ;;  %6381 = vpow2.f32 %v1615_v12  ;;  %v1621_v29 = vmul.f32 1.442695, %v1437_v40  ;;  %v11362_v12 = vld [vmem:[#allocation52_spill] sm:$0xff] }
 0x25b   : > { %v1623_v35 = vmul.f32 1.442695, %v1438_v36  ;;  %1371 = vmax.xlane.f32.xlu1 %v1370_v39  ;;  %1816 = vadd.xlane.f32.xlu0 %v1815_v62  ;;  %v8462_v0 = vpop.eup %6367  ;;  %6383 = vpow2.f32 %v1617_v53  ;;  %v1820_v48 = vadd.f32 %v1819_v17, %v1818_v61 }
 0x25c   : > { %11357 = vst [vmem:[#allocation34_spill] sm:$0xff] %v8462_v0  ;;  %v8464_v18 = vpop.eup %6369  ;;  %6385 = vpow2.f32 %v1619_v56  ;;  %v1287_v31 = vpop.xlane.xlu0 %1286 }
 0x25d   : > { %11358 = vst [vmem:[#allocation51_spill] sm:$0xff] %v8464_v18  ;;  %v8466_v49 = vpop.eup %6371  ;;  %6387 = vpow2.f32 %v1621_v29  ;;  %v1439_v20 = vsub.f32 %v11360_v32, %v1287_v31  ;;  %v1440_v22 = vsub.f32 %v11361_v1, %v1287_v31  ;;  %v1441_v40 = vsub.f32 %v11362_v12, %v1287_v31  ;;  %v11363_v32 = vld [vmem:[#allocation59_spill] sm:$0xff]  ;;  %v11364_v31 = vld [vmem:[#allocation60_spill] sm:$0xff] }
 0x25e   : > { %11359 = vst [vmem:[#allocation55_spill] sm:$0xff] %v8466_v49  ;;  %v8471_v36 = vpop.eup %6373  ;;  %6389 = vpow2.f32 %v1623_v35  ;;  %v1292_v39 = vpop.xlane.xlu1 %1291  ;;  %v1823_v53 = vadd.f32 %v8464_v18, %v8462_v0  ;;  %v1824_v56 = vsel %vm1173_vm8, %v8466_v49, 0.0  ;;  %v11365_v35 = vld [vmem:[#allocation56_spill] sm:$0xff] }
 0x25f   : > { %1821 = vadd.xlane.f32.xlu1 %v1820_v48  ;;  %v8477_v17 = vpop.eup %6375  ;;  %v1625_v62 = vmul.f32 1.442695, %v1439_v20  ;;  %v1627_v61 = vmul.f32 1.442695, %v1440_v22  ;;  %v1629_v29 = vmul.f32 1.442695, %v1441_v40  ;;  %v1442_v1 = vsub.f32 %v11363_v32, %v1292_v39 }
 0x260   : > { %v8480_v52 = vpop.eup %6377  ;;  %v1443_v12 = vsub.f32 %v11364_v31, %v1292_v39  ;;  %v1444_v48 = vsub.f32 %v11365_v35, %v1292_v39  ;;  %v1825_v7 = vadd.f32 %v1824_v56, %v1823_v53  ;;  %v1828_v0 = vadd.f32 %v8477_v17, %v8471_v36 }
 0x261   : > { %6391 = vpow2.f32 %v1625_v62  ;;  %v1631_v18 = vmul.f32 1.442695, %v1442_v1  ;;  %v1829_v49 = vsel %vm1173_vm8, %v8480_v52, 0.0 }
 0x262   : > { %6393 = vpow2.f32 %v1627_v61  ;;  %v1633_v20 = vmul.f32 1.442695, %v1443_v12  ;;  %v1635_v22 = vmul.f32 1.442695, %v1444_v48  ;;  %1826 = vadd.xlane.f32.xlu0 %v1825_v7  ;;  %v1830_v40 = vadd.f32 %v1829_v49, %v1828_v0 }
 0x263   : > { %v8488_v32 = vpop.eup %6379  ;;  %6395 = vpow2.f32 %v1629_v29 }
 0x264   : > { %11366 = vst [vmem:[#allocation39_spill] sm:$0xff] %v8488_v32  ;;  %v8490_v31 = vpop.eup %6381  ;;  %6397 = vpow2.f32 %v1631_v18  ;;  %1831 = vadd.xlane.f32.xlu1 %v1830_v40 }
 0x265   : > { %v8492_v39 = vpop.eup %6383  ;;  %6399 = vpow2.f32 %v1633_v20  ;;  %v1833_v53 = vadd.f32 %v8490_v31, %v8488_v32 }
 0x266   : > { %v8496_v56 = vpop.eup %6385  ;;  %6401 = vpow2.f32 %v1635_v22  ;;  %v1834_v7 = vsel %vm1173_vm8, %v8492_v39, 0.0 }
 0x267   : > { %11367 = vst [vmem:[#allocation42_spill] sm:$0xff] %v8496_v56  ;;  %v8500_v0 = vpop.eup %6387  ;;  %v1835_v49 = vadd.f32 %v1834_v7, %v1833_v53 }
 0x268   : > { %v8502_v62 = vpop.eup %6389  ;;  %v1838_v18 = vadd.f32 %v8500_v0, %v8496_v56 }
 0x269   : > { %1836 = vadd.xlane.f32.xlu0 %v1835_v49  ;;  %v1839_v61 = vsel %vm1173_vm8, %v8502_v62, 0.0 }
 0x26a   : > { %v1840_v29 = vadd.f32 %v1839_v61, %v1838_v18 }
 0x26b   : > { %v8508_v1 = vpop.eup %6391 }
 0x26c   : > { %11368 = vst [vmem:[#allocation38_spill] sm:$0xff] %v8508_v1  ;;  %v8510_v12 = vpop.eup %6393  ;;  %1841 = vadd.xlane.f32.xlu1 %v1840_v29 }
 0x26d   : > { %11369 = vst [vmem:[#allocation43_spill] sm:$0xff] %v8510_v12  ;;  %v8512_v35 = vpop.eup %6395  ;;  %v1843_v48 = vadd.f32 %v8510_v12, %v8508_v1 }
 0x26e   : > { %11370 = vst [vmem:[#allocation44_spill] sm:$0xff] %v8512_v35  ;;  %v8516_v20 = vpop.eup %6397  ;;  %v1844_v22 = vsel %vm1173_vm8, %v8512_v35, 0.0 }
 0x26f   : > { %11371 = vst [vmem:[#allocation41_spill] sm:$0xff] %v8516_v20  ;;  %v8520_v40 = vpop.eup %6399  ;;  %v1845_v53 = vadd.f32 %v1844_v22, %v1843_v48 }
 0x270   : > { %11372 = vst [vmem:[#allocation46_spill] sm:$0xff] %v8520_v40  ;;  %v8522_v7 = vpop.eup %6401  ;;  %v1848_v49 = vadd.f32 %v8520_v40, %v8516_v20 }
 0x271   : > { %11373 = vst [vmem:[#allocation48_spill] sm:$0xff] %v8522_v7  ;;  %1846 = vadd.xlane.f32.xlu0 %v1845_v53  ;;  %v1849_v18 = vsel %vm1173_vm8, %v8522_v7, 0.0 }
 0x272   : > { %v1850_v61 = vadd.f32 %v1849_v18, %v1848_v49 }
 0x274   : > { %1851 = vadd.xlane.f32.xlu1 %v1850_v61 }
 0x2a7   : > { %v1737_v29 = vpop.xlane.xlu0 %1736 }
 0x2a8   : > { %6403 = vrcp.f32 %v1737_v29 }
 0x2ab   : > { %v1742_v1 = vpop.xlane.xlu1 %1741  ;;  %v1297_v32 = vpop.xlane.xlu0 %1296 }
 0x2ac   : > { %6405 = vrcp.f32 %v1742_v1  ;;  %v1445_v12 = vsub.f32 %v7883_v46, %v1297_v32  ;;  %v1446_v48 = vsub.f32 %v8014_v57, %v1297_v32  ;;  %v1447_v22 = vsub.f32 %v7960_v38, %v1297_v32 }
 0x2ae   : > { %v1637_v56 = vmul.f32 1.442695, %v1445_v12  ;;  %v1639_v35 = vmul.f32 1.442695, %v1446_v48  ;;  %v1641_v20 = vmul.f32 1.442695, %v1447_v22 }
 0x2af   : > { %v1302_v53 = vpop.xlane.xlu1 %1301  ;;  %v1747_v40 = vpop.xlane.xlu0 %1746  ;;  %v11374_v48 = vld [vmem:[#allocation76_spill] sm:$0xff] }
 0x2b0   : > { %6407 = vpow2.f32 %v1637_v56  ;;  %v1448_v49 = vsub.f32 %v7887_v51, %v1302_v53  ;;  %v1449_v18 = vsub.f32 %v8018_v42, %v1302_v53  ;;  %v1450_v61 = vsub.f32 %v7964_v37, %v1302_v53  ;;  %v11375_v42 = vld [vmem:[#allocation83_spill] sm:$0xff]  ;;  %v11376_v37 = vld [vmem:[#allocation84_spill] sm:$0xff]  ;;  %v11377_v53 = vld [vmem:[#allocation82_spill] sm:$0xff] }
 0x2b1   : > { %6409 = vpow2.f32 %v1639_v35 }
 0x2b2   : > { %v6404_v1 = vpop.eup %6403  ;;  %6411 = vpow2.f32 %v1641_v20  ;;  %v1643_v46 = vmul.f32 1.442695, %v1448_v49  ;;  %v1645_v29 = vmul.f32 1.442695, %v1449_v18  ;;  %v1647_v57 = vmul.f32 1.442695, %v1450_v61 }
 0x2b3   : > { %6413 = vrcp.f32 %v1747_v40  ;;  %v1752_v38 = vpop.xlane.xlu1 %1751  ;;  %v1307_v32 = vpop.xlane.xlu0 %1306  ;;  %v1974_v22 = vmul.f32 %v6404_v1, %v11375_v42  ;;  %v1975_v35 = vmul.f32 %v6404_v1, %v11376_v37  ;;  %v1973_v20 = vmul.f32 %v6404_v1, %v11377_v53  ;;  %v11378_v1 = vld [vmem:[#allocation77_spill] sm:$0xff]  ;;  %v11379_v53 = vld [vmem:[#allocation79_spill] sm:$0xff] }
 0x2b4   : > { %6415 = vpow2.f32 %v1643_v46  ;;  %v1451_v12 = vsub.f32 %v7891_v47, %v1307_v32  ;;  %v1452_v56 = vsub.f32 %v8055_v60, %v1307_v32  ;;  %v1453_v51 = vsub.f32 %v11374_v48, %v1307_v32 }
 0x2b5   : > { %6417 = vpow2.f32 %v1645_v29 }
 0x2b6   : > { %v6406_v49 = vpop.eup %6405  ;;  %6419 = vpow2.f32 %v1647_v57  ;;  %v1649_v18 = vmul.f32 1.442695, %v1451_v12  ;;  %v1651_v40 = vmul.f32 1.442695, %v1452_v56  ;;  %v1653_v61 = vmul.f32 1.442695, %v1453_v51 }
 0x2b7   : > { %6421 = vrcp.f32 %v1752_v38  ;;  %v1312_v46 = vpop.xlane.xlu1 %1311  ;;  %v1757_v7 = vpop.xlane.xlu0 %1756  ;;  %v1977_v47 = vmul.f32 %v6406_v49, %v8078_v6  ;;  %v1978_v60 = vmul.f32 %v6406_v49, %v8083_v59  ;;  %v1976_v29 = vmul.f32 %v6406_v49, %v8075_v45 }
 0x2b8   : > { %6423 = vpow2.f32 %v1649_v18  ;;  %v1454_v32 = vsub.f32 %v7895_v4, %v1312_v46  ;;  %v1455_v48 = vsub.f32 %v8068_v16, %v1312_v46  ;;  %v1456_v42 = vsub.f32 %v11378_v1, %v1312_v46 }
 0x2b9   : > { %6425 = vpow2.f32 %v1651_v40  ;;  %v2094_v57 = vpack.c.bf16 %v1977_v47, %v1974_v22  ;;  %v2095_v12 = vpack.c.bf16 %v1978_v60, %v1975_v35  ;;  %v2093_v56 = vpack.c.bf16 %v1976_v29, %v1973_v20  ;;  %v6901_v40 = vld [vmem:[%s7282_s5 + $0x4] ss:$12 sps:$4 sm:$0xff]  }
 0x2ba   : > { %v8546_v38 = vpop.eup %6407  ;;  %6427 = vpow2.f32 %v1653_v61  ;;  %v1655_v51 = vmul.f32 1.442695, %v1454_v32  ;;  %v1657_v6 = vmul.f32 1.442695, %v1455_v48  ;;  %v1659_v37 = vmul.f32 1.442695, %v1456_v42 }
 0x2bb   : > { %v8548_v59 = vpop.eup %6409  ;;  %6429 = vrcp.f32 %v1757_v7  ;;  %v1762_v45 = vpop.xlane.xlu1 %1761  ;;  %2365 = vmatprep.mubr.bf16.mxu1 %v2094_v57  ;;  %6012 = vmatprep.mubr.msk.bf16.mxu0 %vm1173_vm8, %v2095_v12 }
 0x2bc   : > { %v1317_v4 = vpop.xlane.xlu0 %1316  ;;  %v8551_v16 = vpop.eup %6411  ;;  %6431 = vpow2.f32 %v1655_v51  ;;  %2366 = vmatmul.mubr.bf16.vlgmr.msra.gmra.mrb[40].mxu1 %v2093_v56  ;;  %v1853_v7 = vadd.f32 %v8548_v59, %v8546_v38  ;;  %v11380_v51 = vld [vmem:[#allocation80_spill] sm:$0xff] }
 0x2bd   : > { %v1457_v22 = vsub.f32 %v7899_v23, %v1317_v4  ;;  %v1458_v35 = vsub.f32 %v8116_v13, %v1317_v4  ;;  %v1459_v20 = vsub.f32 %v11379_v53, %v1317_v4  ;;  %v6414_v49 = vpop.eup %6413  ;;  %6433 = vpow2.f32 %v1657_v6  ;;  %5853 = vmatpush3.bf16.xpose.msra.mxu1 %v6901_v40  ;;  %v6902_v13 = vld [vmem:[%s7282_s5 + $0xdc] ss:$12 sps:$4 sm:$0xff]  }
 0x2be   : > { %v1854_v18 = vsel %vm1173_vm8, %v8551_v16, 0.0  ;;  %v8561_v61 = vpop.eup %6415  ;;  %6435 = vpow2.f32 %v1659_v37  ;;  %5854 = vmatprep.subr.bf16.mxu1 %v6902_v13  ;;  %v1980_v1 = vmul.f32 %v6414_v49, %v8103_v55  ;;  %v1981_v42 = vmul.f32 %v6414_v49, %v8109_v3 }
 0x2bf   : > { %v1661_v46 = vmul.f32 1.442695, %v1457_v22  ;;  %v1663_v23 = vmul.f32 1.442695, %v1458_v35  ;;  %v1665_v47 = vmul.f32 1.442695, %v1459_v20  ;;  %v8564_v60 = vpop.eup %6417  ;;  %6437 = vrcp.f32 %v1762_v45  ;;  %v1322_v29 = vpop.xlane.xlu1 %1321 }
 0x2c0   : > { %v1855_v32 = vadd.f32 %v1854_v18, %v1853_v7  ;;  %v1767_v48 = vpop.xlane.xlu0 %1766  ;;  %v8568_v57 = vpop.eup %6419  ;;  %v1460_v12 = vsub.f32 %v7903_v21, %v1322_v29  ;;  %v1461_v56 = vsub.f32 %v8131_v25, %v1322_v29  ;;  %v1462_v6 = vsub.f32 %v11380_v51, %v1322_v29  ;;  %v6904_v51 = vld [vmem:[%s7282_s5 + $0xf4] ss:$12 sps:$4 sm:$0xff]  }
 0x2c1   : > { %6439 = vpow2.f32 %v1661_v46  ;;  %v6422_v37 = vpop.eup %6421  ;;  %v1858_v45 = vadd.f32 %v8564_v60, %v8561_v61  ;;  %v1859_v55 = vsel %vm1173_vm8, %v8568_v57, 0.0  ;;  %v1979_v3 = vmul.f32 %v6414_v49, %v8092_v15 }
 0x2c2   : > { %6441 = vpow2.f32 %v1663_v23  ;;  %1856 = vadd.xlane.f32.xlu0 %v1855_v32  ;;  %v8578_v4 = vpop.eup %6423  ;;  %v1667_v22 = vmul.f32 1.442695, %v1460_v12  ;;  %v1669_v21 = vmul.f32 1.442695, %v1461_v56  ;;  %v1671_v35 = vmul.f32 1.442695, %v1462_v6 }
 0x2c3   : > { %6443 = vpow2.f32 %v1665_v47  ;;  %v8580_v25 = vpop.eup %6425  ;;  %v1860_v53 = vadd.f32 %v1859_v55, %v1858_v45  ;;  %v1772_v20 = vpop.xlane.xlu1 %1771  ;;  %v1983_v7 = vmul.f32 %v6422_v37, %v8125_v28  ;;  %v1984_v18 = vmul.f32 %v6422_v37, %v8134_v33  ;;  %v11381_v23 = vld [vmem:[#allocation78_spill] sm:$0xff]  ;;  %v6903_v33 = vld [vmem:[%s7282_s5 + $0x1c] ss:$12 sps:$4 sm:$0xff]  }
 0x2c4   : > { %6445 = vrcp.f32 %v1767_v48  ;;  %v1327_v40 = vpop.xlane.xlu0 %1326  ;;  %v8584_v46 = vpop.eup %6427  ;;  %v1982_v28 = vmul.f32 %v6422_v37, %v8122_v26  ;;  %v1863_v26 = vadd.f32 %v8580_v25, %v8578_v4  ;;  %v11383_v55 = vld [vmem:[#allocation62_spill] sm:$0xff] }
 0x2c5   : > { %6447 = vpow2.f32 %v1667_v22  ;;  %v1463_v15 = vsub.f32 %v11266_v9, %v1327_v40  ;;  %v1464_v49 = vsub.f32 %v8156_v10, %v1327_v40  ;;  %v1465_v47 = vsub.f32 %v11381_v23, %v1327_v40  ;;  %v8589_v13 = vpop.eup %6429  ;;  %1861 = vadd.xlane.f32.xlu1 %v1860_v53  ;;  %5855 = vmatpush3.bf16.xpose.msra.mxu1 %v6903_v33  ;;  %v11385_v53 = vld [vmem:[#allocation81_spill] sm:$0xff] }
 0x2c6   : > { %6449 = vpow2.f32 %v1669_v21  ;;  %v2097_v29 = vpack.c.bf16 %v1983_v7, %v1980_v1  ;;  %v2098_v32 = vpack.c.bf16 %v1984_v18, %v1981_v42  ;;  %v8593_v48 = vpop.eup %6431  ;;  %5856 = vmatprep.subr.bf16.mxu1 %v6904_v51  ;;  %v2096_v1 = vpack.c.bf16 %v1982_v28, %v1979_v3  ;;  %v11384_v21 = vld [vmem:[#allocation9_spill] sm:$0xff] }
 0x2c7   : > { %11382 = vst [vmem:[#allocation45_spill] sm:$0xff] %v8593_v48  ;;  %6451 = vpow2.f32 %v1671_v35  ;;  %v1673_v12 = vmul.f32 1.442695, %v1463_v15  ;;  %v1675_v9 = vmul.f32 1.442695, %v1464_v49  ;;  %v8596_v10 = vpop.eup %6433  ;;  %v1332_v42 = vpop.xlane.xlu1 %1331  ;;  %v1864_v6 = vsel %vm1173_vm8, %v8584_v46, 0.0 }
 0x2c8   : > { %v1677_v56 = vmul.f32 1.442695, %v1465_v47  ;;  %6453 = vrcp.f32 %v1772_v20  ;;  %2373 = vmatprep.mubr.bf16.mxu1 %v2097_v29  ;;  %6013 = vmatmul.mubr.msk.bf16.vlgmr.msra.gmra.mrb[80].mxu0 %vm1173_vm8, %v2098_v32  ;;  %v1777_v37 = vpop.xlane.xlu0 %1776  ;;  %v8603_v45 = vpop.eup %6435  ;;  %v1466_v22 = vsub.f32 %v11383_v55, %v1332_v42  ;;  %v1467_v35 = vsub.f32 %v11384_v21, %v1332_v42  ;;  %v6905_v15 = vld [vmem:[%s7282_s5 + $0x19c] ss:$12 sps:$4 sm:$0xff]  }
 0x2c9   : > { %6455 = vpow2.f32 %v1673_v12  ;;  %v1468_v20 = vsub.f32 %v11385_v53, %v1332_v42  ;;  %6053 = vmatpush3.bf16.xpose.msra.mxu0 %v8364_v11  ;;  %v6438_v3 = vpop.eup %6437  ;;  %2374 = vmatmul.mubr.bf16.gmra.mrb[44].mxu1 %v2096_v1  ;;  %v1865_v7 = vadd.f32 %v1864_v6, %v1863_v26  ;;  %v1868_v18 = vadd.f32 %v8596_v10, %v8593_v48  ;;  %v11387_v33 = vld [vmem:[#allocation89_spill] sm:$0xff]  ;;  %v11391_v6 = vld [vmem:[#allocation12_spill] sm:$0xff] }
 0x2ca   : > { %6457 = vpow2.f32 %v1675_v9  ;;  %v1869_v40 = vsel %vm1173_vm8, %v8603_v45, 0.0  ;;  %6054 = vmatprep.subr.bf16.mxu0 %v6905_v15  ;;  %v1679_v23 = vmul.f32 1.442695, %v1466_v22  ;;  %v1681_v47 = vmul.f32 1.442695, %v1467_v35  ;;  %v11388_v9 = vld [vmem:[#allocation63_spill] sm:$0xff] }
 0x2cb   : > { %v8614_v49 = vpop.eup %6439  ;;  %6459 = vpow2.f32 %v1677_v56  ;;  %v1683_v29 = vmul.f32 1.442695, %v1468_v20  ;;  %1866 = vadd.xlane.f32.xlu0 %v1865_v7  ;;  %v1870_v11 = vadd.f32 %v1869_v40, %v1868_v18  ;;  %v1782_v28 = vpop.xlane.xlu1 %1781  ;;  %v1986_v12 = vmul.f32 %v8589_v13, %v11387_v33  ;;  %v11390_v56 = vld [vmem:[#allocation90_spill] sm:$0xff]  ;;  %v11392_v22 = vld [vmem:[#allocation64_spill] sm:$0xff]  ;;  %v11393_v53 = vld [vmem:[#allocation61_spill] sm:$0xff] }
 0x2cc   : > { %11386 = vst [vmem:[#allocation49_spill] sm:$0xff] %v8614_v49  ;;  %v8616_v32 = vpop.eup %6441  ;;  %6461 = vrcp.f32 %v1777_v37  ;;  %v1989_v51 = vmul.f32 %v6438_v3, %v11388_v9  ;;  %v1337_v1 = vpop.xlane.xlu0 %1336  ;;  %v1987_v26 = vmul.f32 %v8589_v13, %v11390_v56  ;;  %v1990_v55 = vmul.f32 %v6438_v3, %v11391_v6  ;;  %v11394_v7 = vld [vmem:[#allocation86_spill] sm:$0xff]  ;;  %v11396_v56 = vld [vmem:[#allocation88_spill] sm:$0xff] }
 0x2cd   : > { %v8621_v42 = vpop.eup %6443  ;;  %6463 = vpow2.f32 %v1679_v23  ;;  %v1469_v37 = vsub.f32 %v11392_v22, %v1337_v1  ;;  %1871 = vadd.xlane.f32.xlu1 %v1870_v11  ;;  %v1470_v20 = vsub.f32 %v11393_v53, %v1337_v1  ;;  %v1471_v18 = vsub.f32 %v11394_v7, %v1337_v1  ;;  %v6906_v40 = vld [vmem:[%s7282_s5 + $0x34] ss:$12 sps:$4 sm:$0xff]   ;;  %v6907_v22 = vld [vmem:[%s7282_s5 + $0x10c] ss:$12 sps:$4 sm:$0xff]  }
 0x2ce   : > { %11389 = vst [vmem:[#allocation50_spill] sm:$0xff] %v8621_v42  ;;  %v8627_v21 = vpop.eup %6445  ;;  %6465 = vpow2.f32 %v1681_v47  ;;  %v2100_v35 = vpack.c.bf16 %v1989_v51, %v1986_v12  ;;  %5857 = vmatpush3.bf16.xpose.msra.mxu1 %v6906_v40  ;;  %v2101_v33 = vpack.c.bf16 %v1990_v55, %v1987_v26  ;;  %v1985_v6 = vmul.f32 %v8589_v13, %v11396_v56  ;;  %v11398_v12 = vld [vmem:[#allocation11_spill] sm:$0xff]  ;;  %v11401_v26 = vld [vmem:[#allocation16_spill] sm:$0xff] }
 0x2cf   : > { %v8632_v23 = vpop.eup %6447  ;;  %6467 = vpow2.f32 %v1683_v29  ;;  %v1685_v9 = vmul.f32 1.442695, %v1469_v37  ;;  %5858 = vmatprep.subr.bf16.mxu1 %v6907_v22  ;;  %v1687_v47 = vmul.f32 1.442695, %v1470_v20  ;;  %v1689_v11 = vmul.f32 1.442695, %v1471_v18  ;;  %v1342_v1 = vpop.xlane.xlu1 %1341 }
 0x2d0   : > { %11395 = vst [vmem:[#allocation47_spill] sm:$0xff] %v8632_v23  ;;  %v8637_v48 = vpop.eup %6449  ;;  %6469 = vrcp.f32 %v1782_v28  ;;  %2381 = vmatprep.mubr.bf16.mxu1 %v2100_v35  ;;  %v1988_v51 = vmul.f32 %v6438_v3, %v11398_v12  ;;  %v1787_v53 = vpop.xlane.xlu0 %1786  ;;  %6016 = vmatprep.mubr.msk.bf16.mxu0 %vm1173_vm8, %v2101_v33  ;;  %v11400_v29 = vld [vmem:[#allocation66_spill] sm:$0xff]  ;;  %v1473_v55 = vsub.f32 %v11401_v26, %v1342_v1  ;;  %v11402_v37 = vld [vmem:[#allocation87_spill] sm:$0xff]  ;;  %v1874_v20 = vsel %vm1173_vm8, %v8621_v42, 0.0 }
 0x2d1   : > { %11397 = vst [vmem:[#allocation54_spill] sm:$0xff] %v8637_v48  ;;  %v8640_v7 = vpop.eup %6451  ;;  %6471 = vpow2.f32 %v1685_v9  ;;  %v1472_v13 = vsub.f32 %v11400_v29, %v1342_v1  ;;  %v1474_v40 = vsub.f32 %v11402_v37, %v1342_v1  ;;  %6055 = vmatpush3.bf16.xpose.msra.mxu0 %v6905_v15  ;;  %v1873_v3 = vadd.f32 %v8616_v32, %v8614_v49  ;;  %v6908_v18 = vld [vmem:[%s7282_s5 + $0x1b4] ss:$12 sps:$4 sm:$0xff]   ;;  %v11405_v26 = vld [vmem:[#allocation15_spill] sm:$0xff]  ;;  %v11406_v37 = vld [vmem:[#allocation65_spill] sm:$0xff] }
 0x2d2   : > { %11399 = vst [vmem:[#allocation58_spill] sm:$0xff] %v8640_v7  ;;  %v6454_v28 = vpop.eup %6453  ;;  %6473 = vpow2.f32 %v1687_v47  ;;  %v2099_v35 = vpack.c.bf16 %v1988_v51, %v1985_v6  ;;  %6056 = vmatprep.subr.bf16.mxu0 %v6908_v18  ;;  %v1693_v56 = vmul.f32 1.442695, %v1473_v55  ;;  %v1878_v6 = vadd.f32 %v8637_v48, %v8632_v23  ;;  %v6909_v49 = vld [vmem:[%s7282_s5 + $0x4c] ss:$12 sps:$4 sm:$0xff]  }
 0x2d3   : > { %v8651_v33 = vpop.eup %6455  ;;  %6475 = vpow2.f32 %v1689_v11  ;;  %v1691_v9 = vmul.f32 1.442695, %v1472_v13  ;;  %v1695_v22 = vmul.f32 1.442695, %v1474_v40  ;;  %v1875_v15 = vadd.f32 %v1874_v20, %v1873_v3  ;;  %v11404_v11 = vld [vmem:[#allocation10_spill] sm:$0xff]  ;;  %v11407_v3 = vld [vmem:[#allocation67_spill] sm:$0xff] }
 0x2d4   : > { %11403 = vst [vmem:[#allocation52_spill] sm:$0xff] %v8651_v33  ;;  %v8653_v12 = vpop.eup %6457  ;;  %2382 = vmatmul.mubr.bf16.gmra.mrb[48].mxu1 %v2099_v35  ;;  %6477 = vrcp.f32 %v1787_v53  ;;  %v1879_v47 = vsel %vm1173_vm8, %v8640_v7, 0.0  ;;  %v1792_v51 = vpop.xlane.xlu1 %1791  ;;  %v1992_v13 = vmul.f32 %v8627_v21, %v11404_v11  ;;  %v1995_v55 = vmul.f32 %v6454_v28, %v11405_v26  ;;  %v11409_v7 = vld [vmem:[#allocation85_spill] sm:$0xff] }
 0x2d5   : > { %v1347_v1 = vpop.xlane.xlu0 %1346  ;;  %v8659_v29 = vpop.eup %6459  ;;  %6479 = vpow2.f32 %v1691_v9  ;;  %v1993_v53 = vmul.f32 %v8627_v21, %v11406_v37  ;;  %1876 = vadd.xlane.f32.xlu0 %v1875_v15  ;;  %v1880_v35 = vadd.f32 %v1879_v47, %v1878_v6  ;;  %v1996_v20 = vmul.f32 %v6454_v28, %v11407_v3  ;;  %v6910_v37 = vld [vmem:[%s7282_s5 + $0x124] ss:$12 sps:$4 sm:$0xff]   ;;  %v11411_v6 = vld [vmem:[#allocation13_spill] sm:$0xff] }
 0x2d6   : > { %v8666_v40 = vpop.eup %6461  ;;  %6481 = vpow2.f32 %v1693_v56  ;;  %v1475_v23 = vsub.f32 %v11303_v30, %v1347_v1  ;;  %5859 = vmatpush3.bf16.xpose.msra.mxu1 %v6909_v49  ;;  %v2103_v11 = vpack.c.bf16 %v1995_v55, %v1992_v13  ;;  %v1476_v26 = vsub.f32 %v8257_v54, %v1347_v1  ;;  %v11414_v55 = vld [vmem:[#allocation70_spill] sm:$0xff] }
 0x2d7   : > { %v8671_v9 = vpop.eup %6463  ;;  %6483 = vpow2.f32 %v1695_v22  ;;  %v1477_v48 = vsub.f32 %v11409_v7, %v1347_v1  ;;  %5860 = vmatprep.subr.bf16.mxu1 %v6910_v37  ;;  %1881 = vadd.xlane.f32.xlu1 %v1880_v35  ;;  %v2104_v56 = vpack.c.bf16 %v1996_v20, %v1993_v53  ;;  %v1991_v30 = vmul.f32 %v8627_v21, %v11411_v6  ;;  %v11413_v7 = vld [vmem:[#allocation14_spill] sm:$0xff]  ;;  %v11416_v21 = vld [vmem:[#allocation17_spill] sm:$0xff] }
 0x2d8   : > { %11408 = vst [vmem:[#allocation59_spill] sm:$0xff] %v8671_v9  ;;  %v8676_v42 = vpop.eup %6465  ;;  %6485 = vrcp.f32 %v1792_v51  ;;  %v1697_v15 = vmul.f32 1.442695, %v1475_v23  ;;  %v1352_v49 = vpop.xlane.xlu1 %1351  ;;  %2389 = vmatprep.mubr.bf16.mxu1 %v2103_v11  ;;  %v1699_v54 = vmul.f32 1.442695, %v1476_v26  ;;  %v1994_v1 = vmul.f32 %v6454_v28, %v11413_v7  ;;  %v11415_v23 = vld [vmem:[#allocation21_spill] sm:$0xff] }
 0x2d9   : > { %11410 = vst [vmem:[#allocation60_spill] sm:$0xff] %v8676_v42  ;;  %v1797_v47 = vpop.xlane.xlu0 %1796  ;;  %v8680_v22 = vpop.eup %6467  ;;  %v1701_v13 = vmul.f32 1.442695, %v1477_v48  ;;  %v1478_v3 = vsub.f32 %v11414_v55, %v1352_v49  ;;  %6057 = vmatpush3.bf16.xpose.msra.mxu0 %v6908_v18  ;;  %v1479_v51 = vsub.f32 %v11415_v23, %v1352_v49  ;;  %v1480_v53 = vsub.f32 %v11416_v21, %v1352_v49  ;;  %v8690_v37 = vld [vmem:[%s7282_s5 + $0x1cc] ss:$12 sps:$4 sm:$0xff]   ;;  %v11420_v21 = vld [vmem:[#allocation40_spill] sm:$0xff] }
 0x2da   : > { %11412 = vst [vmem:[#allocation56_spill] sm:$0xff] %v8680_v22  ;;  %v6470_v35 = vpop.eup %6469  ;;  %6017 = vmatmul.mubr.msk.bf16.gmra.mrb[84].mxu0 %vm1173_vm8, %v2104_v56  ;;  %6487 = vpow2.f32 %v1697_v15  ;;  %v1883_v20 = vadd.f32 %v8653_v12, %v8651_v33  ;;  %11417 = vst [vmem:[#allocation76_spill] sm:$0xff] %v8690_v37  ;;  %6058 = vmatprep.subr.bf16.mxu0 %v8690_v37  ;;  %v2102_v28 = vpack.c.bf16 %v1994_v1, %v1991_v30  ;;  %v11418_v1 = vld [vmem:[#allocation18_spill] sm:$0xff]  ;;  %v11419_v23 = vld [vmem:[#allocation23_spill] sm:$0xff] }
 0x2db   : > { %v8693_v48 = vpop.eup %6471  ;;  %6489 = vpow2.f32 %v1699_v54  ;;  %v1703_v18 = vmul.f32 1.442695, %v1478_v3  ;;  %v1884_v11 = vsel %vm1173_vm8, %v8659_v29, 0.0  ;;  %v1705_v56 = vmul.f32 1.442695, %v1479_v51 }
 0x2dc   : > { %v8697_v26 = vpop.eup %6473  ;;  %6491 = vpow2.f32 %v1701_v13  ;;  %v1707_v15 = vmul.f32 1.442695, %v1480_v53  ;;  %v1885_v6 = vadd.f32 %v1884_v11, %v1883_v20  ;;  %v1802_v49 = vpop.xlane.xlu1 %1801  ;;  %2390 = vmatmul.mubr.bf16.gmra.mrb[52].mxu1 %v2102_v28  ;;  %v1888_v30 = vadd.f32 %v8676_v42, %v8671_v9  ;;  %v11421_v20 = vld [vmem:[#allocation20_spill] sm:$0xff] }
 0x2dd   : > { %v1357_v7 = vpop.xlane.xlu0 %1356  ;;  %v8699_v55 = vpop.eup %6475  ;;  %6493 = vpow2.f32 %v1703_v18  ;;  %v1889_v54 = vsel %vm1173_vm8, %v8680_v22, 0.0  ;;  %v1998_v13 = vmul.f32 %v8666_v40, %v11418_v1  ;;  %v2001_v51 = vmul.f32 %v6470_v35, %v11419_v23  ;;  %v6912_v18 = vld [vmem:[%s7282_s5 + $0x64] ss:$12 sps:$4 sm:$0xff]   ;;  %v6913_v22 = vld [vmem:[%s7282_s5 + $0x13c] ss:$12 sps:$4 sm:$0xff]  }
 0x2de   : > { %v8707_v3 = vpop.eup %6477  ;;  %6495 = vpow2.f32 %v1705_v56  ;;  %1886 = vadd.xlane.f32.xlu0 %v1885_v6  ;;  %v1999_v53 = vmul.f32 %v8666_v40, %v11420_v21  ;;  %v2002_v28 = vmul.f32 %v6470_v35, %v11421_v20  ;;  %5861 = vmatpush3.bf16.xpose.msra.mxu1 %v6912_v18  ;;  %v1890_v9 = vadd.f32 %v1889_v54, %v1888_v30  ;;  %v11424_v54 = vld [vmem:[#allocation69_spill] sm:$0xff] }
 0x2df   : > { %v8714_v11 = vpop.eup %6479  ;;  %6497 = vpow2.f32 %v1707_v15  ;;  %v1481_v33 = vsub.f32 %v11323_v24, %v1357_v7  ;;  %v1482_v1 = vsub.f32 %v8311_v58, %v1357_v7  ;;  %5862 = vmatprep.subr.bf16.mxu1 %v6913_v22  ;;  %v2106_v6 = vpack.c.bf16 %v2001_v51, %v1998_v13  ;;  %v11423_v24 = vld [vmem:[#allocation19_spill] sm:$0xff]  ;;  %v11426_v51 = vld [vmem:[#allocation68_spill] sm:$0xff] }
 0x2e0   : > { %11422 = vst [vmem:[#allocation83_spill] sm:$0xff] %v8714_v11  ;;  %v8719_v56 = vpop.eup %6481  ;;  %6499 = vrcp.f32 %v1797_v47  ;;  %v2107_v23 = vpack.c.bf16 %v2002_v28, %v1999_v53  ;;  %v1483_v21 = vsub.f32 %v8302_v63, %v1357_v7  ;;  %v1362_v20 = vpop.xlane.xlu1 %1361  ;;  %1891 = vadd.xlane.f32.xlu1 %v1890_v9  ;;  %v1997_v58 = vmul.f32 %v8666_v40, %v11423_v24  ;;  %v11425_v7 = vld [vmem:[#allocation74_spill] sm:$0xff] }
 0x2e1   : > { %v1807_v42 = vpop.xlane.xlu0 %1806  ;;  %v8722_v18 = vpop.eup %6483  ;;  %6501 = vrcp.f32 %v1802_v49  ;;  %v1709_v15 = vmul.f32 1.442695, %v1481_v33  ;;  %v1711_v30 = vmul.f32 1.442695, %v1482_v1  ;;  %6059 = vmatpush3.bf16.xpose.msra.mxu0 %v8690_v37  ;;  %2397 = vmatprep.mubr.bf16.mxu1 %v2106_v6  ;;  %v2000_v63 = vmul.f32 %v6470_v35, %v11424_v54 }
 0x2e2   : > { %v6486_v22 = vpop.eup %6485  ;;  %6020 = vmatprep.mubr.msk.bf16.mxu0 %vm1173_vm8, %v2107_v23  ;;  %v1713_v47 = vmul.f32 1.442695, %v1483_v21  ;;  %v1484_v13 = vsub.f32 %v11425_v7, %v1362_v20  ;;  %v1485_v53 = vsub.f32 %v11426_v51, %v1362_v20  ;;  %v1486_v33 = vsub.f32 %v8344_v41, %v1362_v20  ;;  %v11429_v7 = vld [vmem:[#allocation53_spill] sm:$0xff] }
 0x2e3   : > { %6503 = vpow2.f32 %v1709_v15  ;;  %v1893_v9 = vadd.f32 %v8697_v26, %v8693_v48  ;;  %v1894_v40 = vsel %vm1173_vm8, %v8699_v55, 0.0  ;;  %v11427_v49 = vmov 0  }
 0x2e4   : > { %4391 = vmatprep.subr.bf16.mxu0 %v11427_v49  ;;  %v8737_v28 = vpop.eup %6487  ;;  %6505 = vpow2.f32 %v1711_v30  ;;  %v2105_v1 = vpack.c.bf16 %v2000_v63, %v1997_v58  ;;  %v1715_v35 = vmul.f32 1.442695, %v1484_v13  ;;  %v1717_v6 = vmul.f32 1.442695, %v1485_v53  ;;  %v1812_v23 = vpop.xlane.xlu1 %1811  ;;  %v11428_v58 = vld [vmem:[#allocation24_spill] sm:$0xff]  ;;  %v11430_v53 = vld [vmem:[#allocation25_spill] sm:$0xff] }
 0x2e5   : > { %v8739_v21 = vpop.eup %6489  ;;  %6507 = vpow2.f32 %v1713_v47  ;;  %v1719_v15 = vmul.f32 1.442695, %v1486_v33  ;;  %v1895_v41 = vadd.f32 %v1894_v40, %v1893_v9  ;;  %v1898_v20 = vadd.f32 %v8719_v56, %v8714_v11  ;;  %v1367_v24 = vpop.xlane.xlu0 %1366  ;;  %v11431_v9 = vld [vmem:[#allocation73_spill] sm:$0xff]  ;;  %v6915_v11 = vld [vmem:[%s7282_s5 + $0x154] ss:$12 sps:$4 sm:$0xff]  }
 0x2e6   : > { %v8743_v54 = vpop.eup %6491  ;;  %2398 = vmatmul.mubr.bf16.gmra.mrb[56].mxu1 %v2105_v1  ;;  %6509 = vpow2.f32 %v1715_v35  ;;  %v1899_v30 = vsel %vm1173_vm8, %v8722_v18, 0.0  ;;  %v2004_v63 = vmul.f32 %v8707_v3, %v11428_v58  ;;  %v2007_v47 = vmul.f32 %v6486_v22, %v11429_v7  ;;  %v6914_v1 = vld [vmem:[%s7282_s5 + $0x7c] ss:$12 sps:$4 sm:$0xff]  }
 0x2e7   : > { %v8750_v13 = vpop.eup %6493  ;;  %6511 = vpow2.f32 %v1717_v6  ;;  %1896 = vadd.xlane.f32.xlu0 %v1895_v41  ;;  %v1900_v51 = vadd.f32 %v1899_v30, %v1898_v20  ;;  %v2005_v33 = vmul.f32 %v8707_v3, %v11430_v53  ;;  %v2008_v40 = vmul.f32 %v6486_v22, %v11431_v9  ;;  %5863 = vmatpush3.bf16.xpose.msra.mxu1 %v6914_v1  ;;  %v11432_v30 = vld [vmem:[#allocation71_spill] sm:$0xff] }
 0x2e8   : > { %v8756_v35 = vpop.eup %6495  ;;  %6513 = vpow2.f32 %v1719_v15  ;;  %v2109_v37 = vpack.c.bf16 %v2007_v47, %v2004_v63  ;;  %v1487_v58 = vsub.f32 %v7966_v44, %v1367_v24  ;;  %v1488_v7 = vsub.f32 %v8371_v5, %v1367_v24  ;;  %v1372_v49 = vpop.xlane.xlu1 %1371  ;;  %5864 = vmatprep.subr.bf16.mxu1 %v6915_v11  ;;  %v11433_v63 = vld [vmem:[#allocation22_spill] sm:$0xff] }
 0x2e9   : > { %v8761_v6 = vpop.eup %6497  ;;  %6515 = vrcp.f32 %v1807_v42  ;;  %1901 = vadd.xlane.f32.xlu1 %v1900_v51  ;;  %v2110_v41 = vpack.c.bf16 %v2008_v40, %v2005_v33  ;;  %v1489_v20 = vsub.f32 %v8394_v8, %v1367_v24  ;;  %v2003_v53 = vmul.f32 %v8707_v3, %v11432_v30 }
 0x2ea   : > { %v6500_v9 = vpop.eup %6499  ;;  %6517 = vrcp.f32 %v1812_v23  ;;  %2405 = vmatprep.mubr.bf16.mxu1 %v2109_v37  ;;  %v1721_v15 = vmul.f32 1.442695, %v1487_v58  ;;  %v1723_v44 = vmul.f32 1.442695, %v1488_v7  ;;  %v2006_v5 = vmul.f32 %v6486_v22, %v11433_v63 }
 0x2eb   : > { %v6502_v47 = vpop.eup %6501  ;;  %6021 = vmatmul.mubr.msk.bf16.gmra.mrb[88].mxu0 %vm1173_vm8, %v2110_v41  ;;  %v1725_v11 = vmul.f32 1.442695, %v1489_v20  ;;  %v1490_v42 = vsub.f32 %v7973_v34, %v1372_v49  ;;  %v1491_v51 = vsub.f32 %v8413_v19, %v1372_v49  ;;  %v1492_v8 = vsub.f32 %v8398_v43, %v1372_v49  ;;  %v1817_v34 = vpop.xlane.xlu0 %1816  ;;  %v11434_v41 = vld [vmem:[#allocation28_spill] sm:$0xff] }
 0x2ec   : > { %6519 = vpow2.f32 %v1721_v15  ;;  %v2108_v24 = vpack.c.bf16 %v2006_v5, %v2003_v53  ;;  %v1903_v3 = vadd.f32 %v8739_v21, %v8737_v28  ;;  %v1904_v37 = vsel %vm1173_vm8, %v8743_v54, 0.0  ;;  %v1822_v58 = vpop.xlane.xlu1 %1821  ;;  %v11435_v53 = vld [vmem:[#allocation27_spill] sm:$0xff] }
 0x2ed   : > { %v8775_v23 = vpop.eup %6503  ;;  %6521 = vpow2.f32 %v1723_v44  ;;  %v1727_v22 = vmul.f32 1.442695, %v1490_v42  ;;  %v1729_v33 = vmul.f32 1.442695, %v1491_v51  ;;  %v1731_v40 = vmul.f32 1.442695, %v1492_v8 }
 0x2ee   : > { %v8777_v1 = vpop.eup %6505  ;;  %6523 = vpow2.f32 %v1725_v11  ;;  %2406 = vmatmul.mubr.bf16.gmra.mrb[60].mxu1 %v2108_v24  ;;  %v1905_v43 = vadd.f32 %v1904_v37, %v1903_v3  ;;  %v1908_v19 = vadd.f32 %v8756_v35, %v8750_v13  ;;  %v1909_v49 = vsel %vm1173_vm8, %v8761_v6, 0.0  ;;  %v6916_v44 = vld [vmem:[%s7282_s5 + $0x94] ss:$12 sps:$4 sm:$0xff]   ;;  %v6917_v8 = vld [vmem:[%s7282_s5 + $0x16c] ss:$12 sps:$4 sm:$0xff]  }
 0x2ef   : > { %v8783_v7 = vpop.eup %6507  ;;  %6525 = vpow2.f32 %v1727_v22  ;;  %v2010_v20 = vmul.f32 %v6500_v9, %v11434_v41  ;;  %v2013_v30 = vmul.f32 %v6502_v47, %v8377_v2  ;;  %v2011_v15 = vmul.f32 %v6500_v9, %v11435_v53  ;;  %5865 = vmatpush3.bf16.xpose.msra.mxu1 %v6916_v44  ;;  %v11436_v42 = vld [vmem:[#allocation26_spill] sm:$0xff]  ;;  %v11437_v2 = vld [vmem:[#allocation75_spill] sm:$0xff]  ;;  %v1827_v41 = vpop.xlane.xlu0 %1826  ;;  %v11439_v44 = vld [vmem:[#allocation72_spill] sm:$0xff] }
 0x2f0   : > { %v8789_v63 = vpop.eup %6509  ;;  %6527 = vpow2.f32 %v1729_v33  ;;  %1906 = vadd.xlane.f32.xlu0 %v1905_v43  ;;  %v1910_v5 = vadd.f32 %v1909_v49, %v1908_v19  ;;  %v2014_v11 = vmul.f32 %v6502_v47, %v8380_v27  ;;  %v2009_v51 = vmul.f32 %v6500_v9, %v11436_v42  ;;  %5866 = vmatprep.subr.bf16.mxu1 %v6917_v8  ;;  %v11441_v42 = vld [vmem:[#allocation33_spill] sm:$0xff] }
 0x2f1   : > { %v8794_v24 = vpop.eup %6511  ;;  %6529 = vpow2.f32 %v1731_v40  ;;  %v2112_v3 = vpack.c.bf16 %v2013_v30, %v2010_v20  ;;  %v2012_v37 = vmul.f32 %v6502_v47, %v11437_v2  ;;  %v1913_v22 = vadd.f32 %v8777_v1, %v8775_v23  ;;  %v1832_v9 = vpop.xlane.xlu1 %1831  ;;  %v11438_v30 = vld [vmem:[#allocation31_spill] sm:$0xff] }
 0x2f2   : > { %v8799_v53 = vpop.eup %6513  ;;  %6531 = vrcp.f32 %v1817_v34  ;;  %1911 = vadd.xlane.f32.xlu1 %v1910_v5  ;;  %v2113_v33 = vpack.c.bf16 %v2014_v11, %v2011_v15  ;;  %v1914_v27 = vsel %vm1173_vm8, %v8783_v7, 0.0  ;;  %v1918_v43 = vadd.f32 %v8794_v24, %v8789_v63  ;;  %v11440_v11 = vld [vmem:[#allocation30_spill] sm:$0xff] }
 0x2f3   : > { %v6516_v40 = vpop.eup %6515  ;;  %6533 = vrcp.f32 %v1822_v58  ;;  %2413 = vmatprep.mubr.bf16.mxu1 %v2112_v3  ;;  %v2111_v47 = vpack.c.bf16 %v2012_v37, %v2009_v51  ;;  %v1915_v19 = vadd.f32 %v1914_v27, %v1913_v22  ;;  %v1919_v49 = vsel %vm1173_vm8, %v8799_v53, 0.0  ;;  %v11443_v3 = vld [vmem:[#allocation57_spill] sm:$0xff] }
 0x2f4   : > { %v6518_v20 = vpop.eup %6517  ;;  %6024 = vmatprep.mubr.msk.bf16.mxu0 %vm1173_vm8, %v2113_v33  ;;  %6535 = vrcp.f32 %v1827_v41  ;;  %v1920_v34 = vadd.f32 %v1919_v49, %v1918_v43  ;;  %v2016_v15 = vmul.f32 %v6516_v40, %v11438_v30  ;;  %v2017_v58 = vmul.f32 %v6516_v40, %v11440_v11  ;;  %v6918_v27 = vld [vmem:[%s7282_s5 + $0xac] ss:$12 sps:$4 sm:$0xff]   ;;  %v8824_v30 = vld [vmem:[%s7282_s5 + $0x184] ss:$12 sps:$4 sm:$0xff]  }
 0x2f5   : > { %1916 = vadd.xlane.f32.xlu0 %v1915_v19  ;;  %6537 = vrcp.f32 %v1832_v9  ;;  %v2019_v5 = vmul.f32 %v6518_v20, %v11439_v44  ;;  %v2020_v51 = vmul.f32 %v6518_v20, %v11441_v42  ;;  %v2018_v2 = vmul.f32 %v6518_v20, %v11443_v3  ;;  %v11444_v43 = vld [vmem:[#allocation29_spill] sm:$0xff]  ;;  %11445 = vst [vmem:[#allocation82_spill] sm:$0xff] %v8824_v30 }
 0x2f6   : > { %v8812_v8 = vpop.eup %6519  ;;  %2414 = vmatmul.mubr.bf16.gmra.mrb[64].mxu1 %v2111_v47  ;;  %1921 = vadd.xlane.f32.xlu1 %v1920_v34  ;;  %v1837_v33 = vpop.xlane.xlu0 %1836  ;;  %v2015_v19 = vmul.f32 %v6516_v40, %v11444_v43  ;;  %v11449_v43 = vld [vmem:[#allocation37_spill] sm:$0xff] }
 0x2f7   : > { %11442 = vst [vmem:[#allocation84_spill] sm:$0xff] %v8812_v8  ;;  %v8815_v37 = vpop.eup %6521  ;;  %v2115_v22 = vpack.c.bf16 %v2019_v5, %v2016_v15  ;;  %v2116_v41 = vpack.c.bf16 %v2020_v51, %v2017_v58  ;;  %5867 = vmatpush3.bf16.xpose.msra.mxu1 %v6918_v27  ;;  %6539 = vrcp.f32 %v1837_v33  ;;  %v11448_v33 = vld [vmem:[#allocation32_spill] sm:$0xff] }
 0x2f8   : > { %v8818_v9 = vpop.eup %6523  ;;  %v1923_v49 = vadd.f32 %v8815_v37, %v8812_v8  ;;  %6148 = vmatprep.subr.bf16.mxu1 %v8824_v30  ;;  %v2114_v15 = vpack.c.bf16 %v2018_v2, %v2015_v19 }
 0x2f9   : > { %v8827_v47 = vpop.eup %6525  ;;  %2421 = vmatprep.mubr.bf16.mxu1 %v2115_v22  ;;  %6025 = vmatmul.mubr.msk.bf16.gmra.mrb[92].mxu0 %vm1173_vm8, %v2116_v41  ;;  %v1924_v20 = vsel %vm1173_vm8, %v8818_v9, 0.0  ;;  %v1842_v44 = vpop.xlane.xlu1 %1841 }
 0x2fa   : > { %11446 = vst [vmem:[#allocation77_spill] sm:$0xff] %v8827_v47  ;;  %v8832_v34 = vpop.eup %6527  ;;  %v1925_v40 = vadd.f32 %v1924_v20, %v1923_v49  ;;  %6541 = vrcp.f32 %v1842_v44  ;;  %v11450_v49 = vld [vmem:[#allocation36_spill] sm:$0xff] }
 0x2fb   : > { %v8834_v5 = vpop.eup %6529  ;;  %v1928_v11 = vadd.f32 %v8832_v34, %v8827_v47  ;;  %v11451_v47 = vld [vmem:[#allocation35_spill] sm:$0xff] }
 0x2fc   : > { %11447 = vst [vmem:[#allocation79_spill] sm:$0xff] %v8834_v5  ;;  %v6532_v58 = vpop.eup %6531  ;;  %1926 = vadd.xlane.f32.xlu0 %v1925_v40  ;;  %v1929_v42 = vsel %vm1173_vm8, %v8834_v5, 0.0 }
 0x2fd   : > { %v6534_v51 = vpop.eup %6533  ;;  %v1930_v3 = vadd.f32 %v1929_v42, %v1928_v11  ;;  %v2022_v22 = vmul.f32 %v6532_v58, %v8438_v50  ;;  %v2023_v27 = vmul.f32 %v6532_v58, %v11448_v33  ;;  %v2021_v5 = vmul.f32 %v6532_v58, %v11451_v47  ;;  %v11452_v11 = vld [vmem:[#allocation51_spill] sm:$0xff]  ;;  %v11454_v58 = vld [vmem:[#allocation34_spill] sm:$0xff] }
 0x2fe   : > { %v6536_v41 = vpop.eup %6535  ;;  %2422 = vmatmul.mubr.bf16.gmra.mrb[68].mxu1 %v2114_v15  ;;  %v2025_v2 = vmul.f32 %v6534_v51, %v8451_v14  ;;  %v2026_v19 = vmul.f32 %v6534_v51, %v11449_v43  ;;  %v2024_v20 = vmul.f32 %v6534_v51, %v11450_v49  ;;  %v1847_v40 = vpop.xlane.xlu0 %1846  ;;  %v11453_v15 = vld [vmem:[#allocation55_spill] sm:$0xff] }
 0x2ff   : > { %v6538_v44 = vpop.eup %6537  ;;  %1931 = vadd.xlane.f32.xlu1 %v1930_v3  ;;  %v2028_v42 = vmul.f32 %v6536_v41, %v11452_v11  ;;  %6543 = vrcp.f32 %v1847_v40  ;;  %v2029_v14 = vmul.f32 %v6536_v41, %v11453_v15 }
 0x300   : > { %v2118_v30 = vpack.c.bf16 %v2025_v2, %v2022_v22  ;;  %v2119_v8 = vpack.c.bf16 %v2026_v19, %v2023_v27  ;;  %v2031_v50 = vmul.f32 %v6538_v44, %v8477_v17  ;;  %v2032_v33 = vmul.f32 %v6538_v44, %v8480_v52 }
 0x301   : > { %v2117_v51 = vpack.c.bf16 %v2024_v20, %v2021_v5  ;;  %v1852_v43 = vpop.xlane.xlu1 %1851  ;;  %v6540_v3 = vpop.eup %6539  ;;  %v2027_v19 = vmul.f32 %v6536_v41, %v11454_v58  ;;  %v11460_v41 = vld [vmem:[#allocation39_spill] sm:$0xff] }
 0x302   : > { %2429 = vmatprep.mubr.bf16.mxu1 %v2118_v30  ;;  %6028 = vmatprep.mubr.msk.bf16.mxu0 %vm1173_vm8, %v2119_v8  ;;  %6545 = vrcp.f32 %v1852_v43  ;;  %v2121_v22 = vpack.c.bf16 %v2031_v50, %v2028_v42  ;;  %v2122_v2 = vpack.c.bf16 %v2032_v33, %v2029_v14  ;;  %v2035_v47 = vmul.f32 %v6540_v3, %v8492_v39  ;;  %v11455_v39 = vld [vmem:[#allocation44_spill] sm:$0xff] }
 0x303   : > { %v2030_v30 = vmul.f32 %v6538_v44, %v8471_v36  ;;  %v2034_v5 = vmul.f32 %v6540_v3, %v8490_v31  ;;  %v11458_v36 = vld [vmem:[#allocation42_spill] sm:$0xff]  ;;  %v11459_v31 = vld [vmem:[#allocation43_spill] sm:$0xff] }
 0x304   : > { %v6542_v27 = vpop.eup %6541  ;;  %6029 = vmatmul.mubr.msk.bf16.gmra.mrb[96].mxu0 %vm1173_vm8, %v2122_v2  ;;  %v11461_v2 = vld [vmem:[#allocation41_spill] sm:$0xff] }
 0x305   : > { %v2038_v17 = vmul.f32 %v6542_v27, %v8502_v62  ;;  %v2037_v52 = vmul.f32 %v6542_v27, %v8500_v0  ;;  %v2120_v40 = vpack.c.bf16 %v2030_v30, %v2027_v19  ;;  %v11456_v62 = vld [vmem:[#allocation48_spill] sm:$0xff]  ;;  %v11457_v0 = vld [vmem:[#allocation46_spill] sm:$0xff]  ;;  %v2036_v44 = vmul.f32 %v6542_v27, %v11458_v36 }
 0x306   : > { %2430 = vmatmul.mubr.bf16.gmra.mrb[72].mxu1 %v2117_v51  ;;  %v2033_v51 = vmul.f32 %v6540_v3, %v11460_v41 }
 0x307   : > { %2437 = vmatprep.mubr.bf16.mxu1 %v2121_v22  ;;  %v2125_v8 = vpack.c.bf16 %v2038_v17, %v2035_v47  ;;  %v2124_v20 = vpack.c.bf16 %v2037_v52, %v2034_v5  ;;  %v11462_v17 = vld [vmem:[#allocation38_spill] sm:$0xff] }
 0x308   : > { %v2123_v22 = vpack.c.bf16 %v2036_v44, %v2033_v51 }
 0x309   : > { %6032 = vmatprep.mubr.msk.bf16.mxu0 %vm1173_vm8, %v2125_v8  ;;  %v6544_v49 = vpop.eup %6543 }
 0x30a   : > { %v2041_v42 = vmul.f32 %v6544_v49, %v11455_v39  ;;  %v2040_v33 = vmul.f32 %v6544_v49, %v11459_v31  ;;  %v2039_v52 = vmul.f32 %v6544_v49, %v11462_v17  ;;  %v11466_v17 = vld [vmem:[#allocation58_spill] sm:$0xff] }
 0x30c   : > { %v6546_v11 = vpop.eup %6545 }
 0x30d   : > { %v2044_v50 = vmul.f32 %v6546_v11, %v11456_v62  ;;  %v2043_v15 = vmul.f32 %v6546_v11, %v11457_v0  ;;  %v2042_v47 = vmul.f32 %v6546_v11, %v11461_v2 }
 0x30e   : > { %2438 = vmatmul.mubr.bf16.gmra.mrb[76].mxu1 %v2120_v40 }
 0x30f   : > { %2445 = vmatprep.mubr.bf16.mxu1 %v2124_v20  ;;  %v2128_v14 = vpack.c.bf16 %v2044_v50, %v2041_v42  ;;  %v2127_v43 = vpack.c.bf16 %v2043_v15, %v2040_v33  ;;  %v2126_v30 = vpack.c.bf16 %v2042_v47, %v2039_v52 }
 0x311   : > { %6033 = vmatmul.mubr.msk.bf16.gmra.mrb[100].mxu0 %vm1173_vm8, %v2128_v14  ;;  %v11463_v14 = vld [vmem:[#allocation45_spill] sm:$0xff] }
 0x316   : > { %2446 = vmatmul.mubr.bf16.gmra.mrb[80].mxu1 %v2123_v22 }
 0x317   : > { %2453 = vmatprep.mubr.bf16.mxu1 %v2127_v43 }
 0x31e   : > { %2454 = vmatmul.mubr.bf16.gmra.mrb[84].mxu1 %v2126_v30  ;;  %v11467_v30 = vld [vmem:[#allocation49_spill] sm:$0xff] }
 0x34f   : > { %v1857_v8 = vpop.xlane.xlu0 %1856 }
 0x350   : > { %6547 = vrcp.f32 %v1857_v8 }
 0x352   : > { %v1862_v27 = vpop.xlane.xlu1 %1861 }
 0x353   : > { %6549 = vrcp.f32 %v1862_v27  ;;  %v11468_v27 = vld [vmem:[#allocation47_spill] sm:$0xff] }
 0x358   : > { %v1867_v5 = vpop.xlane.xlu0 %1866 }
 0x359   : > { %6551 = vrcp.f32 %v1867_v5 }
 0x35a   : > { %v6548_v58 = vpop.eup %6547  ;;  %v1872_v3 = vpop.xlane.xlu1 %1871 }
 0x35b   : > { %6553 = vrcp.f32 %v1872_v3  ;;  %v2046_v20 = vmul.f32 %v6548_v58, %v8548_v59  ;;  %v2047_v40 = vmul.f32 %v6548_v58, %v8551_v16  ;;  %v2045_v39 = vmul.f32 %v6548_v58, %v8546_v38 }
 0x35d   : > { %v6550_v19 = vpop.eup %6549 }
 0x35e   : > { %v2049_v11 = vmul.f32 %v6550_v19, %v8564_v60  ;;  %v2050_v49 = vmul.f32 %v6550_v19, %v8568_v57  ;;  %v2048_v42 = vmul.f32 %v6550_v19, %v8561_v61 }
 0x360   : > { %v2130_v62 = vpack.c.bf16 %v2049_v11, %v2046_v20  ;;  %v2131_v50 = vpack.c.bf16 %v2050_v49, %v2047_v40  ;;  %v2129_v0 = vpack.c.bf16 %v2048_v42, %v2045_v39  ;;  %v11469_v42 = vld [vmem:[#allocation60_spill] sm:$0xff] }
 0x362   : > { %v1877_v15 = vpop.xlane.xlu0 %1876  ;;  %2461 = vmatprep.mubr.bf16.mxu1 %v2130_v62  ;;  %6036 = vmatprep.mubr.msk.bf16.mxu0 %vm1173_vm8, %v2131_v50  ;;  %v11470_v50 = vld [vmem:[#allocation56_spill] sm:$0xff] }
 0x363   : > { %v6552_v36 = vpop.eup %6551  ;;  %6555 = vrcp.f32 %v1877_v15  ;;  %2462 = vmatmul.mubr.bf16.gmra.mrb[88].mxu1 %v2129_v0  ;;  %v11471_v15 = vld [vmem:[#allocation52_spill] sm:$0xff] }
 0x364   : > { %v1882_v59 = vpop.xlane.xlu1 %1881  ;;  %v2052_v60 = vmul.f32 %v6552_v36, %v8580_v25  ;;  %v2053_v57 = vmul.f32 %v6552_v36, %v8584_v46  ;;  %v2051_v44 = vmul.f32 %v6552_v36, %v8578_v4  ;;  %v11465_v4 = vld [vmem:[#allocation54_spill] sm:$0xff] }
 0x365   : > { %v6554_v16 = vpop.eup %6553  ;;  %6557 = vrcp.f32 %v1882_v59  ;;  %v11472_v59 = vld [vmem:[#allocation59_spill] sm:$0xff] }
 0x366   : > { %v2055_v38 = vmul.f32 %v6554_v16, %v8596_v10  ;;  %v2056_v61 = vmul.f32 %v6554_v16, %v8603_v45  ;;  %v2054_v31 = vmul.f32 %v6554_v16, %v11463_v14  ;;  %v11464_v45 = vld [vmem:[#allocation50_spill] sm:$0xff] }
 0x368   : > { %v2133_v33 = vpack.c.bf16 %v2055_v38, %v2052_v60  ;;  %v2134_v41 = vpack.c.bf16 %v2056_v61, %v2053_v57  ;;  %v2132_v51 = vpack.c.bf16 %v2054_v31, %v2051_v44 }
 0x36a   : > { %2469 = vmatprep.mubr.bf16.mxu1 %v2133_v33  ;;  %6037 = vmatmul.mubr.msk.bf16.gmra.mrb[104].mxu0 %vm1173_vm8, %v2134_v41 }
 0x36b   : > { %v1887_v43 = vpop.xlane.xlu0 %1886  ;;  %2470 = vmatmul.mubr.bf16.gmra.mrb[92].mxu1 %v2132_v51 }
 0x36c   : > { %6559 = vrcp.f32 %v1887_v43 }
 0x36d   : > { %v6556_v25 = vpop.eup %6555  ;;  %v1892_v22 = vpop.xlane.xlu1 %1891 }
 0x36e   : > { %6561 = vrcp.f32 %v1892_v22  ;;  %v2058_v10 = vmul.f32 %v6556_v25, %v8616_v32  ;;  %v2059_v2 = vmul.f32 %v6556_v25, %v11464_v45  ;;  %v2057_v8 = vmul.f32 %v6556_v25, %v11467_v30  ;;  %v11473_v25 = vld [vmem:[#allocation83_spill] sm:$0xff] }
 0x36f   : > { %v6558_v46 = vpop.eup %6557 }
 0x370   : > { %v2061_v47 = vmul.f32 %v6558_v46, %v11465_v4  ;;  %v2062_v52 = vmul.f32 %v6558_v46, %v11466_v17  ;;  %v2060_v5 = vmul.f32 %v6558_v46, %v11468_v27 }
 0x372   : > { %v2136_v58 = vpack.c.bf16 %v2061_v47, %v2058_v10  ;;  %v2137_v3 = vpack.c.bf16 %v2062_v52, %v2059_v2  ;;  %v2135_v19 = vpack.c.bf16 %v2060_v5, %v2057_v8 }
 0x374   : > { %v1897_v20 = vpop.xlane.xlu0 %1896  ;;  %2477 = vmatprep.mubr.bf16.mxu1 %v2136_v58  ;;  %6040 = vmatprep.mubr.msk.bf16.mxu0 %vm1173_vm8, %v2137_v3 }
 0x375   : > { %6563 = vrcp.f32 %v1897_v20  ;;  %2478 = vmatmul.mubr.bf16.gmra.mrb[96].mxu1 %v2135_v19 }
 0x376   : > { %v6560_v40 = vpop.eup %6559  ;;  %v1902_v32 = vpop.xlane.xlu1 %1901 }
 0x377   : > { %6565 = vrcp.f32 %v1902_v32  ;;  %v2064_v49 = vmul.f32 %v6560_v40, %v8653_v12  ;;  %v2065_v39 = vmul.f32 %v6560_v40, %v8659_v29  ;;  %v2063_v36 = vmul.f32 %v6560_v40, %v11471_v15  ;;  %v11475_v15 = vld [vmem:[#allocation79_spill] sm:$0xff] }
 0x378   : > { %v6562_v11 = vpop.eup %6561 }
 0x379   : > { %v2067_v62 = vmul.f32 %v6562_v11, %v11469_v42  ;;  %v2068_v0 = vmul.f32 %v6562_v11, %v11470_v50  ;;  %v2066_v16 = vmul.f32 %v6562_v11, %v11472_v59  ;;  %v6921_v42 = vld [vmem:[%s7282_s5 + $0xc] sm:$0xf] }
 0x37a   : > { %v11476_v59 = vld [vmem:[#allocation77_spill] sm:$0xff] }
 0x37b   : > { %v2139_v60 = vpack.c.bf16 %v2067_v62, %v2064_v49  ;;  %v2140_v57 = vpack.c.bf16 %v2068_v0, %v2065_v39  ;;  %v2138_v38 = vpack.c.bf16 %v2066_v16, %v2063_v36 }
 0x37d   : > { %v1907_v61 = vpop.xlane.xlu0 %1906  ;;  %2485 = vmatprep.mubr.bf16.mxu1 %v2139_v60  ;;  %6041 = vmatmul.mubr.msk.bf16.gmra.mrb[108].mxu0 %vm1173_vm8, %v2140_v57 }
 0x37e   : > { %6567 = vrcp.f32 %v1907_v61  ;;  %2486 = vmatmul.mubr.bf16.gmra.mrb[100].mxu1 %v2138_v38  ;;  %v11477_v61 = vld [vmem:[#allocation84_spill] sm:$0xff] }
 0x37f   : > { %v6564_v44 = vpop.eup %6563  ;;  %v1912_v12 = vpop.xlane.xlu1 %1911 }
 0x380   : > { %6569 = vrcp.f32 %v1912_v12  ;;  %v2070_v14 = vmul.f32 %v6564_v44, %v8697_v26  ;;  %v2071_v31 = vmul.f32 %v6564_v44, %v8699_v55  ;;  %v2069_v43 = vmul.f32 %v6564_v44, %v8693_v48 }
 0x381   : > { %v6566_v29 = vpop.eup %6565 }
 0x382   : > { %v1917_v33 = vpop.xlane.xlu0 %1916  ;;  %v2073_v41 = vmul.f32 %v6566_v29, %v8719_v56  ;;  %v2074_v51 = vmul.f32 %v6566_v29, %v8722_v18  ;;  %v2072_v22 = vmul.f32 %v6566_v29, %v11473_v25  ;;  %v6923_v25 = vld [vmem:[%s7282_s5 + $0x3c] sm:$0xf] }
 0x383   : > { %6571 = vrcp.f32 %v1917_v33  ;;  %v1922_v46 = vpop.xlane.xlu1 %1921 }
 0x384   : > { %6573 = vrcp.f32 %v1922_v46  ;;  %v2142_v10 = vpack.c.bf16 %v2073_v41, %v2070_v14  ;;  %v2143_v45 = vpack.c.bf16 %v2074_v51, %v2071_v31  ;;  %v2141_v2 = vpack.c.bf16 %v2072_v22, %v2069_v43  ;;  %v6922_v51 = vld [vmem:[%s7282_s5 + $0x30] sm:$0xf] }
 0x385   : > { %v2769_v43 = vsel %vm7321_vm3, %v6922_v51, 0  ;;  %v2770_v22 = vsel %vm7321_vm3, %v6923_v25, 0 }
 0x386   : > { %2493 = vmatprep.mubr.bf16.mxu1 %v2142_v10  ;;  %6044 = vmatprep.mubr.msk.bf16.mxu0 %vm1173_vm8, %v2143_v45 }
 0x387   : > { %2494 = vmatmul.mubr.bf16.gmra.mrb[104].mxu1 %v2141_v2 }
 0x388   : > { %v6568_v26 = vpop.eup %6567 }
 0x389   : > { %v1927_v55 = vpop.xlane.xlu0 %1926  ;;  %v2076_v56 = vmul.f32 %v6568_v26, %v8739_v21  ;;  %v2077_v48 = vmul.f32 %v6568_v26, %v8743_v54  ;;  %v2075_v17 = vmul.f32 %v6568_v26, %v8737_v28  ;;  %v8944_v26 = vcombine.low %v2769_v43, %v2770_v22  ;;  %v6942_v43 = vld [vmem:[%s7282_s5 + $0x68] ss:$12 sps:$4 sm:$0xff]  }
 0x38a   : > { %v6570_v4 = vpop.eup %6569  ;;  %6575 = vrcp.f32 %v1927_v55  ;;  %v11482_v55 = vld [vmem:[#allocation6_spill] sm:$0xff] }
 0x38b   : > { %v2079_v18 = vmul.f32 %v6570_v4, %v8756_v35  ;;  %v2080_v47 = vmul.f32 %v6570_v4, %v8761_v6  ;;  %v2078_v52 = vmul.f32 %v6570_v4, %v8750_v13  ;;  %v6924_v4 = vld [vmem:[%s7282_s5 + $0x48] sm:$0xf] }
 0x38c   : > { %v1932_v30 = vpop.xlane.xlu1 %1931 }
 0x38d   : > { %v6572_v8 = vpop.eup %6571  ;;  %6577 = vrcp.f32 %v1932_v30  ;;  %v2145_v27 = vpack.c.bf16 %v2079_v18, %v2076_v56  ;;  %v2146_v5 = vpack.c.bf16 %v2080_v47, %v2077_v48  ;;  %v2144_v58 = vpack.c.bf16 %v2078_v52, %v2075_v17  ;;  %v6925_v48 = vld [vmem:[%s7282_s5 + $0x54] sm:$0xf]  ;;  %v6927_v17 = vld [vmem:[%s7282_s5 + $0x60] sm:$0xf]  ;;  %v6928_v30 = vld [vmem:[%s7282_s5 + $0x6c] sm:$0xf] }
 0x38e   : > { %v6574_v3 = vpop.eup %6573  ;;  %v2082_v19 = vmul.f32 %v6572_v8, %v8777_v1  ;;  %v2083_v54 = vmul.f32 %v6572_v8, %v8783_v7  ;;  %v2081_v1 = vmul.f32 %v6572_v8, %v8775_v23  ;;  %v6920_v7 = vld [vmem:[%s7282_s5] sm:$0xf]  ;;  %v2771_v56 = vsel %vm7321_vm3, %v6924_v4, 0  ;;  %v6926_v47 = vld [vmem:[%s7282_s5 + $0x8] ss:$12 sps:$4 sm:$0xff]  }
 0x38f   : > { %2501 = vmatprep.mubr.bf16.mxu1 %v2145_v27  ;;  %6045 = vmatmul.mubr.msk.bf16.gmra.mrb[112].mxu0 %vm1173_vm8, %v2146_v5  ;;  %v2085_v21 = vmul.f32 %v6574_v3, %v8794_v24  ;;  %v2086_v28 = vmul.f32 %v6574_v3, %v8799_v53  ;;  %v2367_v13 = vpop.f32.mrb[40].mxu1  ;;  %v2084_v35 = vmul.f32 %v6574_v3, %v8789_v63  ;;  %v2765_v53 = vsel %vm7321_vm3, %v6920_v7, 0  ;;  %v6934_v7 = vld [vmem:[%s7282_s5 + $0x9c] sm:$0xf]  ;;  %v6943_v4 = vld [vmem:[%s7282_s5 + $0x80] ss:$12 sps:$4 sm:$0xff]  }
 0x390   : > { %2502 = vmatmul.mubr.bf16.gmra.mrb[108].mxu1 %v2144_v58  ;;  %v2369_v6 = vpop.f32.mrb[41].mxu1  ;;  %v2766_v63 = vsel %vm7321_vm3, %v6921_v42, 0  ;;  %v2772_v18 = vsel %vm7321_vm3, %v6925_v48, 0  ;;  %v2773_v52 = vsel %vm7321_vm3, %v6927_v17, 0  ;;  %v2774_v8 = vsel %vm7321_vm3, %v6928_v30, 0 }
 0x391   : > { %v2148_v20 = vpack.c.bf16 %v2085_v21, %v2082_v19  ;;  %v2149_v40 = vpack.c.bf16 %v2086_v28, %v2083_v54  ;;  %v2370_v32 = vpop.f32.mrb[42].mxu1  ;;  %v2147_v49 = vpack.c.bf16 %v2084_v35, %v2081_v1  ;;  %v5506_v60 = vcombine.low %v2765_v53, %v2766_v63  ;;  %v11484_v54 = vld [vmem:[#allocation82_spill] sm:$0xff]  ;;  %v6930_v35 = vld [vmem:[%s7282_s5 + $0x20] ss:$12 sps:$4 sm:$0xff]   ;;  %v6935_v42 = vld [vmem:[%s7282_s5 + $0x38] ss:$12 sps:$4 sm:$0xff]  }
 0x392   : > { %v2372_v24 = vpop.f32.mrb[43].mxu1  ;;  %v11483_v27 = vmov 0   ;;  %v8962_v3 = vcombine.low %v2771_v56, %v2772_v18  ;;  %v8965_v21 = vcombine.low %v2773_v52, %v2774_v8  ;;  %v2778_v53 = vsel %vm7321_vm3, %v6934_v7, 0  ;;  %v6944_v48 = vld [vmem:[%s7282_s5 + $0xd8] sm:$0xf] }
 0x393   : > { %2509 = vmatprep.mubr.bf16.mxu1 %v2148_v20  ;;  %6048 = vmatprep.mubr.msk.bf16.mxu0 %vm1173_vm8, %v2149_v40  ;;  %v6931_v20 = vld [vmem:[%s7282_s5 + $0x78] sm:$0xf]  ;;  %v2783_v18 = vsel %vm7321_vm3, %v6944_v48, 0  ;;  %v6946_v30 = vld [vmem:[%s7282_s5 + $0xf0] sm:$0xf] }
 0x394   : > { %v6576_v11 = vpop.eup %6575  ;;  %v2775_v40 = vsel %vm7321_vm3, %v6931_v20, 0  ;;  %v2785_v8 = vsel %vm7321_vm3, %v6946_v30, 0 }
 0x395   : > { %v2088_v50 = vmul.f32 %v6576_v11, %v8815_v37  ;;  %v2089_v0 = vmul.f32 %v6576_v11, %v8818_v9  ;;  %v2087_v44 = vmul.f32 %v6576_v11, %v11477_v61  ;;  %v6933_v11 = vld [vmem:[%s7282_s5 + $0x90] sm:$0xf] }
 0x397   : > { %v6578_v62 = vpop.eup %6577 }
 0x398   : > { %2510 = vmatmul.mubr.bf16.gmra.mrb[112].mxu1 %v2147_v49  ;;  %v2091_v23 = vmul.f32 %v6578_v62, %v8832_v34  ;;  %v2092_v36 = vmul.f32 %v6578_v62, %v11475_v15  ;;  %v2090_v16 = vmul.f32 %v6578_v62, %v11476_v59  ;;  %v2777_v49 = vsel %vm7321_vm3, %v6933_v11, 0  ;;  %v6949_v11 = vld [vmem:[%s7282_s5 + $0xb0] ss:$12 sps:$4 sm:$0xff]  }
 0x39a   : > { %v2151_v57 = vpack.c.bf16 %v2091_v23, %v2088_v50  ;;  %v2152_v38 = vpack.c.bf16 %v2092_v36, %v2089_v0  ;;  %v2150_v37 = vpack.c.bf16 %v2090_v16, %v2087_v44  ;;  %v8997_v16 = vcombine.low %v2777_v49, %v2778_v53 }
 0x39b   : > { %v6014_v12 = vpop.f32.mrb[80].mxu0 }
 0x39c   : > { %v2560_v29 = vpop.f32.mrb[81].mxu0  ;;  %2517 = vmatprep.mubr.bf16.mxu1 %v2151_v57  ;;  %6049 = vmatmul.mubr.msk.bf16.gmra.mrb[116].mxu0 %vm1173_vm8, %v2152_v38  ;;  %v2375_v34 = vpop.f32.mrb[44].mxu1  ;;  %v6936_v57 = vld [vmem:[%s7282_s5 + $0x1b4] ss:$12 sps:$4 sm:$0xff]   ;;  %v6937_v38 = vld [vmem:[%s7282_s5 + $0x50] ss:$12 sps:$4 sm:$0xff]  }
 0x39d   : > { %v8930_v14 = vadd.f32 %v2560_v29, %v2367_v13  ;;  %v6015_v9 = vpop.f32.mrb[82].mxu0  ;;  %6060 = vmatprep.mubr.bf16.mxu0 %v5506_v60  ;;  %v8932_v31 = vadd.f32 %v6014_v12, %v2375_v34  ;;  %v2377_v33 = vpop.f32.mrb[45].mxu1  ;;  %v6929_v13 = vld [vmem:[%s7282_s5 + $0x19c] ss:$12 sps:$4 sm:$0xff]  }
 0x39e   : > { %v2563_v41 = vpop.f32.mrb[83].mxu0  ;;  %v2378_v46 = vpop.f32.mrb[46].mxu1  ;;  %v6938_v12 = vld [vmem:[%s7282_s5 + $0xa8] sm:$0xf] }
 0x39f   : > { %11478 = vst [vmem:[#allocation80_spill] sm:$0xff] %v8930_v14  ;;  %11479 = vst [vmem:[#allocation78_spill] sm:$0xff] %v8932_v31  ;;  %v8940_v10 = vadd.f32 %v2563_v41, %v2370_v32  ;;  %v8942_v45 = vadd.f32 %v6015_v9, %v2378_v46  ;;  %v2380_v2 = vpop.f32.mrb[47].mxu1  ;;  %v6932_v32 = vld [vmem:[%s7282_s5 + $0x84] sm:$0xf]  ;;  %v2779_v29 = vsel %vm7321_vm3, %v6938_v12, 0 }
 0x3a0   : > { %2518 = vmatmul.mubr.bf16.gmra.mrb[116].mxu1 %v2150_v37  ;;  %v2776_v1 = vsel %vm7321_vm3, %v6932_v32, 0  ;;  %v6939_v37 = vld [vmem:[%s7282_s5 + $0xb4] sm:$0xf]  ;;  %v6940_v9 = vld [vmem:[%s7282_s5 + $0xc0] sm:$0xf] }
 0x3a1   : > { %11480 = vst [vmem:[#allocation62_spill] sm:$0xff] %v8940_v10  ;;  %11481 = vst [vmem:[#allocation9_spill] sm:$0xff] %v8942_v45  ;;  %5868 = vmatprep.mubr.bf16.mxu1 %v5506_v60  ;;  %v8990_v0 = vcombine.low %v2775_v40, %v2776_v1  ;;  %v2780_v34 = vsel %vm7321_vm3, %v6939_v37, 0  ;;  %v2781_v33 = vsel %vm7321_vm3, %v6940_v9, 0  ;;  %v6941_v41 = vld [vmem:[%s7282_s5 + $0xcc] sm:$0xf] }
 0x3a2   : > { %v2782_v51 = vsel %vm7321_vm3, %v6941_v41, 0  ;;  %v9021_v25 = vcombine.low %v2779_v29, %v2780_v34  ;;  %v6956_v34 = vld [vmem:[%s7282_s5 + $0xe0] ss:$12 sps:$4 sm:$0xff]  }
 0x3a3   : > { %v9024_v46 = vcombine.low %v2781_v33, %v2782_v51 }
 0x3a4   : > { %6061 = vmatmul.mubr.bf16.vlgmr.msra.gmra.mrb[120].mxu0 %v11482_v55 }
 0x3a5   : > { %6064 = vmatprep.mubr.bf16.mxu0 %v8944_v26  ;;  %4392 = vmatpush1.bf16.msra.mxu0 %v6926_v47  ;;  %v6945_v47 = vld [vmem:[%s7282_s5 + $0xe4] sm:$0xf] }
 0x3a6   : > { %4393 = vmatprep.subr.bf16.mxu0 %v11483_v27  ;;  %v2784_v17 = vsel %vm7321_vm3, %v6945_v47, 0  ;;  %v6960_v47 = vld [vmem:[%s7282_s5 + $0x150] sm:$0xf] }
 0x3a7   : > { %v2383_v5 = vpop.f32.mrb[48].mxu1 }
 0x3a8   : > { %v2385_v58 = vpop.f32.mrb[49].mxu1  ;;  %5869 = vmatmul.mubr.bf16.vlgmr.msra.gmra.mrb[120].mxu1 %v5506_v60 }
 0x3a9   : > { %v2386_v19 = vpop.f32.mrb[50].mxu1  ;;  %5870 = vmatprep.mubr.bf16.mxu1 %v11482_v55  ;;  %6152 = vmatpush3.bf16.xpose.msra.mxu1 %v11484_v54 }
 0x3aa   : > { %v2388_v28 = vpop.f32.mrb[51].mxu1  ;;  %6149 = vmatprep.subr.bf16.mxu1 %v6929_v13  ;;  %4394 = vmatpush1.bf16.msra.mxu0 %v6930_v35  ;;  %v9048_v35 = vcombine.low %v2783_v18, %v2784_v17  ;;  %v2793_v17 = vsel %vm7321_vm3, %v6960_v47, 0 }
 0x3ab   : > { %4395 = vmatprep.subr.bf16.mxu0 %v11483_v27 }
 0x3ac   : > { %6065 = vmatmul.mubr.bf16.gmra.mrb[124].mxu0 %v8962_v3 }
 0x3ad   : > { %v6018_v6 = vpop.f32.mrb[84].mxu0  ;;  %6068 = vmatprep.mubr.bf16.mxu0 %v8965_v21 }
 0x3ae   : > { %v2576_v24 = vpop.f32.mrb[85].mxu0  ;;  %4396 = vmatpush1.bf16.msra.mxu0 %v6935_v42  ;;  %v6951_v42 = vld [vmem:[%s7282_s5 + $0x108] sm:$0xf] }
 0x3af   : > { %v8986_v63 = vadd.f32 %v2576_v24, %v2383_v5  ;;  %v6019_v62 = vpop.f32.mrb[86].mxu0  ;;  %4397 = vmatprep.subr.bf16.mxu0 %v11483_v27  ;;  %v2391_v50 = vpop.f32.mrb[52].mxu1  ;;  %v6947_v5 = vld [vmem:[%s7282_s5 + $0xfc] sm:$0xf] }
 0x3b0   : > { %v2579_v23 = vpop.f32.mrb[87].mxu0  ;;  %5871 = vmatmul.mubr.bf16.gmra.mrb[124].mxu1 %v11482_v55  ;;  %v8992_v15 = vadd.f32 %v6018_v6, %v2391_v50  ;;  %v2393_v36 = vpop.f32.mrb[53].mxu1  ;;  %v11489_v55 = vld [vmem:[#allocation76_spill] sm:$0xff]  ;;  %v2786_v58 = vsel %vm7321_vm3, %v6947_v5, 0  ;;  %v6952_v50 = vld [vmem:[%s7282_s5 + $0x114] sm:$0xf] }
 0x3b1   : > { %11485 = vst [vmem:[#allocation81_spill] sm:$0xff] %v8986_v63  ;;  %v8994_v59 = vadd.f32 %v2579_v23, %v2386_v19  ;;  %5872 = vmatprep.mubr.bf16.mxu1 %v8944_v26  ;;  %6153 = vmatpush3.bf16.xpose.msra.mxu1 %v6929_v13  ;;  %v2394_v60 = vpop.f32.mrb[54].mxu1  ;;  %v6948_v19 = vld [vmem:[%s7282_s5 + $0x98] ss:$12 sps:$4 sm:$0xff]   ;;  %v9051_v40 = vcombine.low %v2785_v8, %v2786_v58  ;;  %v2788_v23 = vsel %vm7321_vm3, %v6952_v50, 0 }
 0x3b2   : > { %11486 = vst [vmem:[#allocation89_spill] sm:$0xff] %v8992_v15  ;;  %6150 = vmatprep.subr.bf16.mxu1 %v6936_v57  ;;  %4398 = vmatpush1.bf16.msra.mxu0 %v6937_v38  ;;  %v9001_v61 = vadd.f32 %v6019_v62, %v2394_v60  ;;  %v2396_v44 = vpop.f32.mrb[55].mxu1  ;;  %v2787_v62 = vsel %vm7321_vm3, %v6951_v42, 0  ;;  %v6953_v36 = vld [vmem:[%s7282_s5 + $0xc8] ss:$12 sps:$4 sm:$0xff]  }
 0x3b3   : > { %11487 = vst [vmem:[#allocation63_spill] sm:$0xff] %v8994_v59  ;;  %4399 = vmatprep.subr.bf16.mxu0 %v11483_v27  ;;  %v9077_v60 = vcombine.low %v2787_v62, %v2788_v23  ;;  %v6955_v44 = vld [vmem:[%s7282_s5 + $0x12c] sm:$0xf] }
 0x3b4   : > { %11488 = vst [vmem:[#allocation90_spill] sm:$0xff] %v9001_v61  ;;  %6069 = vmatmul.mubr.bf16.gmra.mrb[128].mxu0 %v8990_v0  ;;  %v2790_v12 = vsel %vm7321_vm3, %v6955_v44, 0 }
 0x3b5   : > { %6072 = vmatprep.mubr.bf16.mxu0 %v8997_v16 }
 0x3b6   : > { %4400 = vmatpush1.bf16.msra.mxu0 %v6942_v43 }
 0x3b7   : > { %4401 = vmatprep.subr.bf16.mxu0 %v11483_v27 }
 0x3b8   : > { %5873 = vmatmul.mubr.bf16.gmra.mrb[128].mxu1 %v8944_v26 }
 0x3b9   : > { %v2399_v22 = vpop.f32.mrb[56].mxu1  ;;  %5874 = vmatprep.mubr.bf16.mxu1 %v8962_v3  ;;  %6154 = vmatpush3.bf16.xpose.msra.mxu1 %v6936_v57  ;;  %v6954_v57 = vld [vmem:[%s7282_s5 + $0x120] sm:$0xf] }
 0x3ba   : > { %v2401_v2 = vpop.f32.mrb[57].mxu1  ;;  %6151 = vmatprep.subr.bf16.mxu1 %v11489_v55  ;;  %4402 = vmatpush1.bf16.msra.mxu0 %v6943_v4  ;;  %v2789_v38 = vsel %vm7321_vm3, %v6954_v57, 0  ;;  %v6958_v4 = vld [vmem:[%s7282_s5 + $0x138] sm:$0xf] }
 0x3bb   : > { %v2402_v56 = vpop.f32.mrb[58].mxu1  ;;  %4403 = vmatprep.subr.bf16.mxu0 %v11483_v27  ;;  %v9087_v9 = vcombine.low %v2789_v38, %v2790_v12  ;;  %v6957_v2 = vld [vmem:[%s7282_s5 + $0xf8] ss:$12 sps:$4 sm:$0xff]   ;;  %v6966_v12 = vld [vmem:[%s7282_s5 + $0x140] ss:$12 sps:$4 sm:$0xff]  }
 0x3bc   : > { %v2404_v26 = vpop.f32.mrb[59].mxu1  ;;  %6073 = vmatmul.mubr.bf16.gmra.mrb[132].mxu0 %v9021_v25 }
 0x3bd   : > { %6076 = vmatprep.mubr.bf16.mxu0 %v9024_v46  ;;  %v6959_v26 = vld [vmem:[%s7282_s5 + $0x144] sm:$0xf] }
 0x3be   : > { %v6022_v52 = vpop.f32.mrb[88].mxu0  ;;  %4404 = vmatpush1.bf16.msra.mxu0 %v6948_v19  ;;  %v2792_v48 = vsel %vm7321_vm3, %v6959_v26, 0 }
 0x3bf   : > { %v2592_v54 = vpop.f32.mrb[89].mxu0  ;;  %4405 = vmatprep.subr.bf16.mxu0 %v11483_v27 }
 0x3c0   : > { %v9045_v28 = vadd.f32 %v2592_v54, %v2399_v22  ;;  %v6023_v13 = vpop.f32.mrb[90].mxu0  ;;  %5875 = vmatmul.mubr.bf16.gmra.mrb[132].mxu1 %v8962_v3  ;;  %v9060_v3 = vld [vmem:[%s7282_s5 + $0x188] ss:$12 sps:$4 sm:$0xff]  }
 0x3c1   : > { %v2407_v6 = vpop.f32.mrb[60].mxu1  ;;  %v2595_v20 = vpop.f32.mrb[91].mxu0  ;;  %5876 = vmatprep.mubr.bf16.mxu1 %v8965_v21  ;;  %6155 = vmatpush3.bf16.xpose.msra.mxu1 %v11489_v55 }
 0x3c2   : > { %11490 = vst [vmem:[#allocation12_spill] sm:$0xff] %v9045_v28  ;;  %v9054_v32 = vadd.f32 %v6022_v52, %v2407_v6  ;;  %v2409_v1 = vpop.f32.mrb[61].mxu1  ;;  %v9056_v24 = vadd.f32 %v2595_v20, %v2402_v56  ;;  %4406 = vmatpush1.bf16.msra.mxu0 %v6949_v11  ;;  %6100 = vmatprep.subr.bf16.mxu1 %v9060_v3  ;;  %v2791_v56 = vsel %vm7321_vm3, %v6958_v4, 0  ;;  %v6961_v52 = vld [vmem:[%s7282_s5 + $0x15c] sm:$0xf] }
 0x3c3   : > { %v2410_v49 = vpop.f32.mrb[62].mxu1  ;;  %4407 = vmatprep.subr.bf16.mxu0 %v11483_v27  ;;  %v2794_v30 = vsel %vm7321_vm3, %v6961_v52, 0  ;;  %v9114_v19 = vcombine.low %v2791_v56, %v2792_v48  ;;  %v6963_v1 = vld [vmem:[%s7282_s5 + $0x128] ss:$12 sps:$4 sm:$0xff]  }
 0x3c4   : > { %11491 = vst [vmem:[#allocation64_spill] sm:$0xff] %v9054_v32  ;;  %11492 = vst [vmem:[#allocation61_spill] sm:$0xff] %v9056_v24  ;;  %v9064_v7 = vadd.f32 %v6023_v13, %v2410_v49  ;;  %v2412_v53 = vpop.f32.mrb[63].mxu1  ;;  %6077 = vmatmul.mubr.bf16.gmra.mrb[136].mxu0 %v9048_v35  ;;  %v9117_v13 = vcombine.low %v2793_v17, %v2794_v30  ;;  %v6964_v11 = vld [vmem:[%s7282_s5 + $0x168] sm:$0xf] }
 0x3c5   : > { %6080 = vmatprep.mubr.bf16.mxu0 %v9051_v40  ;;  %v2795_v49 = vsel %vm7321_vm3, %v6964_v11, 0  ;;  %v6965_v53 = vld [vmem:[%s7282_s5 + $0x174] sm:$0xf] }
 0x3c6   : > { %11493 = vst [vmem:[#allocation86_spill] sm:$0xff] %v9064_v7  ;;  %4408 = vmatpush1.bf16.msra.mxu0 %v6953_v36  ;;  %v2796_v42 = vsel %vm7321_vm3, %v6965_v53, 0 }
 0x3c7   : > { %4409 = vmatprep.subr.bf16.mxu0 %v11483_v27  ;;  %v5521_v44 = vcombine.low %v2795_v49, %v2796_v42  ;;  %v6972_v49 = vld [vmem:[%s7282_s5 + $0x1a4] sm:$0xf] }
 0x3c8   : > { %5877 = vmatmul.mubr.bf16.gmra.mrb[136].mxu1 %v8965_v21  ;;  %v2800_v53 = vsel %vm7321_vm3, %v6972_v49, 0 }
 0x3c9   : > { %v2415_v29 = vpop.f32.mrb[64].mxu1  ;;  %5878 = vmatprep.mubr.bf16.mxu1 %v8990_v0 }
 0x3ca   : > { %v2417_v37 = vpop.f32.mrb[65].mxu1  ;;  %4410 = vmatpush1.bf16.msra.mxu0 %v6956_v34 }
 0x3cb   : > { %v2418_v21 = vpop.f32.mrb[66].mxu1  ;;  %4411 = vmatprep.subr.bf16.mxu0 %v11483_v27 }
 0x3cc   : > { %v2420_v33 = vpop.f32.mrb[67].mxu1  ;;  %v6026_v41 = vpop.f32.mrb[92].mxu0  ;;  %6081 = vmatmul.mubr.bf16.gmra.mrb[140].mxu0 %v9077_v60 }
 0x3cd   : > { %v2608_v51 = vpop.f32.mrb[93].mxu0  ;;  %6084 = vmatprep.mubr.bf16.mxu0 %v9087_v9 }
 0x3ce   : > { %v9092_v43 = vadd.f32 %v2608_v51, %v2415_v29  ;;  %v6027_v22 = vpop.f32.mrb[94].mxu0  ;;  %4412 = vmatpush1.bf16.msra.mxu0 %v6957_v2 }
 0x3cf   : > { %v2611_v55 = vpop.f32.mrb[95].mxu0  ;;  %4413 = vmatprep.subr.bf16.mxu0 %v11483_v27 }
 0x3d0   : > { %11494 = vst [vmem:[#allocation88_spill] sm:$0xff] %v9092_v43  ;;  %v9102_v18 = vadd.f32 %v2611_v55, %v2418_v21  ;;  %5879 = vmatmul.mubr.bf16.gmra.mrb[140].mxu1 %v8990_v0  ;;  %v6962_v0 = vld [vmem:[%s7282_s5 + $0x110] ss:$12 sps:$4 sm:$0xff]   ;;  %v6967_v21 = vld [vmem:[%s7282_s5 + $0x158] ss:$12 sps:$4 sm:$0xff]  }
 0x3d1   : > { %v2423_v8 = vpop.f32.mrb[68].mxu1  ;;  %5880 = vmatprep.mubr.bf16.mxu1 %v8997_v16 }
 0x3d2   : > { %11495 = vst [vmem:[#allocation11_spill] sm:$0xff] %v9102_v18  ;;  %v9112_v5 = vadd.f32 %v6026_v41, %v2423_v8  ;;  %v2425_v58 = vpop.f32.mrb[69].mxu1  ;;  %4414 = vmatpush1.bf16.msra.mxu0 %v6962_v0 }
 0x3d3   : > { %v2426_v54 = vpop.f32.mrb[70].mxu1  ;;  %4415 = vmatprep.subr.bf16.mxu0 %v11483_v27 }
 0x3d4   : > { %11496 = vst [vmem:[#allocation66_spill] sm:$0xff] %v9112_v5  ;;  %v9120_v6 = vadd.f32 %v6027_v22, %v2426_v54  ;;  %v2428_v20 = vpop.f32.mrb[71].mxu1  ;;  %6085 = vmatmul.mubr.bf16.gmra.mrb[144].mxu0 %v9114_v19  ;;  %v6968_v22 = vld [vmem:[%s7282_s5 + $0x170] ss:$12 sps:$4 sm:$0xff]  }
 0x3d5   : > { %6088 = vmatprep.mubr.bf16.mxu0 %v9117_v13 }
 0x3d6   : > { %11497 = vst [vmem:[#allocation16_spill] sm:$0xff] %v9120_v6  ;;  %4416 = vmatpush1.bf16.msra.mxu0 %v6963_v1 }
 0x3d7   : > { %4417 = vmatprep.subr.bf16.mxu0 %v11483_v27  ;;  %v6030_v62 = vpop.f32.mrb[96].mxu0 }
 0x3d8   : > { %5881 = vmatmul.mubr.bf16.gmra.mrb[144].mxu1 %v8997_v16  ;;  %v2624_v23 = vpop.f32.mrb[97].mxu0 }
 0x3d9   : > { %v2431_v50 = vpop.f32.mrb[72].mxu1  ;;  %5882 = vmatprep.mubr.bf16.mxu1 %v9021_v25  ;;  %v6031_v38 = vpop.f32.mrb[98].mxu0 }
 0x3da   : > { %v2433_v36 = vpop.f32.mrb[73].mxu1  ;;  %v9134_v57 = vadd.f32 %v2624_v23, %v2431_v50  ;;  %4418 = vmatpush1.bf16.msra.mxu0 %v6966_v12  ;;  %v2627_v37 = vpop.f32.mrb[99].mxu0  ;;  %v6974_v23 = vld [vmem:[%s7282_s5 + $0x1bc] sm:$0xf] }
 0x3db   : > { %v2434_v29 = vpop.f32.mrb[74].mxu1  ;;  %4419 = vmatprep.subr.bf16.mxu0 %v11483_v27  ;;  %v2802_v36 = vsel %vm7321_vm3, %v6974_v23, 0 }
 0x3dc   : > { %11498 = vst [vmem:[#allocation87_spill] sm:$0xff] %v9134_v57  ;;  %v2436_v34 = vpop.f32.mrb[75].mxu1  ;;  %v9138_v16 = vadd.f32 %v2627_v37, %v2434_v29  ;;  %6089 = vmatmul.mubr.bf16.gmra.mrb[148].mxu0 %v5521_v44  ;;  %v6976_v29 = vld [vmem:[%s7282_s5 + $0x1d4] sm:$0xf] }
 0x3dd   : > { %v2804_v37 = vsel %vm7321_vm3, %v6976_v29, 0 }
 0x3de   : > { %11499 = vst [vmem:[#allocation10_spill] sm:$0xff] %v9138_v16  ;;  %4420 = vmatpush1.bf16.msra.mxu0 %v6967_v21 }
 0x3df   : > { %4421 = vmatprep.subr.bf16.mxu0 %v11483_v27 }
 0x3e0   : > { %5883 = vmatmul.mubr.bf16.gmra.mrb[148].mxu1 %v9021_v25 }
 0x3e1   : > { %v2439_v33 = vpop.f32.mrb[76].mxu1  ;;  %5884 = vmatprep.mubr.bf16.mxu1 %v9024_v46 }
 0x3e2   : > { %v9144_v41 = vadd.f32 %v6030_v62, %v2439_v33  ;;  %v2441_v51 = vpop.f32.mrb[77].mxu1  ;;  %4422 = vmatpush1.bf16.msra.mxu0 %v6968_v22  ;;  %v6973_v62 = vld [vmem:[%s7282_s5 + $0x1b0] sm:$0xf] }
 0x3e3   : > { %v2442_v2 = vpop.f32.mrb[78].mxu1  ;;  %v2801_v50 = vsel %vm7321_vm3, %v6973_v62, 0 }
 0x3e4   : > { %11500 = vst [vmem:[#allocation15_spill] sm:$0xff] %v9144_v41  ;;  %v9147_v55 = vadd.f32 %v6031_v38, %v2442_v2  ;;  %v2444_v4 = vpop.f32.mrb[79].mxu1  ;;  %v6034_v56 = vpop.f32.mrb[100].mxu0  ;;  %v5524_v38 = vcombine.low %v2801_v50, %v2802_v36 }
 0x3e5   : > { %v2640_v26 = vpop.f32.mrb[101].mxu0 }
 0x3e6   : > { %11501 = vst [vmem:[#allocation65_spill] sm:$0xff] %v9147_v55  ;;  %v6035_v48 = vpop.f32.mrb[102].mxu0 }
 0x3e7   : > { %v2643_v27 = vpop.f32.mrb[103].mxu0 }
 0x3e8   : > { %5885 = vmatmul.mubr.bf16.gmra.mrb[152].mxu1 %v9024_v46 }
 0x3e9   : > { %v2447_v47 = vpop.f32.mrb[80].mxu1  ;;  %5886 = vmatprep.mubr.bf16.mxu1 %v9048_v35 }
 0x3ea   : > { %v2449_v25 = vpop.f32.mrb[81].mxu1  ;;  %v9151_v17 = vadd.f32 %v2640_v26, %v2447_v47 }
 0x3eb   : > { %v2450_v52 = vpop.f32.mrb[82].mxu1 }
 0x3ec   : > { %11502 = vst [vmem:[#allocation67_spill] sm:$0xff] %v9151_v17  ;;  %v2452_v30 = vpop.f32.mrb[83].mxu1  ;;  %v9153_v8 = vadd.f32 %v2643_v27, %v2450_v52 }
 0x3ee   : > { %11503 = vst [vmem:[#allocation85_spill] sm:$0xff] %v9153_v8 }
 0x3f0   : > { %5887 = vmatmul.mubr.bf16.gmra.mrb[156].mxu1 %v9048_v35  ;;  %v6969_v35 = vld [vmem:[%s7282_s5 + $0x180] sm:$0xf] }
 0x3f1   : > { %v2455_v58 = vpop.f32.mrb[84].mxu1  ;;  %5888 = vmatprep.mubr.bf16.mxu1 %v9051_v40 }
 0x3f2   : > { %v9157_v0 = vadd.f32 %v6034_v56, %v2455_v58  ;;  %v2457_v46 = vpop.f32.mrb[85].mxu1 }
 0x3f3   : > { %v2458_v54 = vpop.f32.mrb[86].mxu1 }
 0x3f4   : > { %11504 = vst [vmem:[#allocation13_spill] sm:$0xff] %v9157_v0  ;;  %v9159_v20 = vadd.f32 %v6035_v48, %v2458_v54  ;;  %v2460_v1 = vpop.f32.mrb[87].mxu1 }
 0x3f5   : > { %v6977_v1 = vld [vmem:[%s7282_s5 + $0x1a0] ss:$12 sps:$4 sm:$0xff]  }
 0x3f6   : > { %11505 = vst [vmem:[#allocation14_spill] sm:$0xff] %v9159_v20 }
 0x3f8   : > { %5889 = vmatmul.mubr.bf16.gmra.mrb[160].mxu1 %v9051_v40  ;;  %v2797_v40 = vsel %vm7321_vm3, %v6969_v35, 0 }
 0x3f9   : > { %5890 = vmatprep.mubr.bf16.mxu1 %v9077_v60 }
 0x400   : > { %5891 = vmatmul.mubr.bf16.gmra.mrb[164].mxu1 %v9077_v60  ;;  %v6970_v60 = vld [vmem:[%s7282_s5 + $0x18c] sm:$0xf] }
 0x401   : > { %5892 = vmatprep.mubr.bf16.mxu1 %v9087_v9  ;;  %v2798_v11 = vsel %vm7321_vm3, %v6970_v60, 0  ;;  %v6978_v60 = vld [vmem:[%s7282_s5 + $0x1b8] ss:$12 sps:$4 sm:$0xff]  }
 0x408   : > { %5893 = vmatmul.mubr.bf16.gmra.mrb[168].mxu1 %v9087_v9  ;;  %v5522_v9 = vcombine.low %v2797_v40, %v2798_v11 }
 0x409   : > { %5894 = vmatprep.mubr.bf16.mxu1 %v9114_v19 }
 0x410   : > { %5895 = vmatmul.mubr.bf16.gmra.mrb[172].mxu1 %v9114_v19  ;;  %v6971_v19 = vld [vmem:[%s7282_s5 + $0x198] sm:$0xf] }
 0x411   : > { %5896 = vmatprep.mubr.bf16.mxu1 %v9117_v13 }
 0x418   : > { %5897 = vmatmul.mubr.bf16.gmra.mrb[176].mxu1 %v9117_v13  ;;  %v2799_v13 = vsel %vm7321_vm3, %v6971_v19, 0 }
 0x419   : > { %5898 = vmatprep.mubr.bf16.mxu1 %v5521_v44  ;;  %v5523_v42 = vcombine.low %v2799_v13, %v2800_v53  ;;  %v6979_v13 = vld [vmem:[%s7282_s5 + $0x1d0] ss:$12 sps:$4 sm:$0xff]  }
 0x420   : > { %5899 = vmatmul.mubr.bf16.gmra.mrb[180].mxu1 %v5521_v44  ;;  %v6975_v44 = vld [vmem:[%s7282_s5 + $0x1c8] sm:$0xf] }
 0x421   : > { %5900 = vmatprep.mubr.bf16.mxu1 %v5522_v9  ;;  %v2803_v12 = vsel %vm7321_vm3, %v6975_v44, 0 }
 0x422   : > { %v5525_v34 = vcombine.low %v2803_v12, %v2804_v37 }
 0x428   : > { %5901 = vmatmul.mubr.bf16.gmra.mrb[184].mxu1 %v5522_v9 }
 0x429   : > { %5902 = vmatprep.mubr.bf16.mxu1 %v5523_v42 }
 0x430   : > { %5903 = vmatmul.mubr.bf16.gmra.mrb[188].mxu1 %v5523_v42 }
 0x431   : > { %5904 = vmatprep.mubr.bf16.mxu1 %v5524_v38 }
 0x436   : > { %v2463_v21 = vpop.f32.mrb[88].mxu1 }
 0x437   : > { %v2465_v33 = vpop.f32.mrb[89].mxu1 }
 0x438   : > { %5905 = vmatmul.mubr.bf16.gmra.mrb[192].mxu1 %v5524_v38  ;;  %v2466_v51 = vpop.f32.mrb[90].mxu1 }
 0x439   : > { %5906 = vmatprep.mubr.bf16.mxu1 %v5525_v34  ;;  %v2468_v22 = vpop.f32.mrb[91].mxu1 }
 0x43d   : > { %v6038_v2 = vpop.f32.mrb[104].mxu0 }
 0x43e   : > { %v2471_v4 = vpop.f32.mrb[92].mxu1  ;;  %v2656_v56 = vpop.f32.mrb[105].mxu0 }
 0x43f   : > { %v9194_v26 = vadd.f32 %v6038_v2, %v2471_v4  ;;  %v9196_v48 = vadd.f32 %v2656_v56, %v2463_v21  ;;  %v2473_v27 = vpop.f32.mrb[93].mxu1  ;;  %v6039_v47 = vpop.f32.mrb[106].mxu0 }
 0x440   : > { %5907 = vmatmul.mubr.bf16.gmra.mrb[196].mxu1 %v5525_v34  ;;  %v2474_v39 = vpop.f32.mrb[94].mxu1  ;;  %v2659_v25 = vpop.f32.mrb[107].mxu0 }
 0x441   : > { %11506 = vst [vmem:[#allocation70_spill] sm:$0xff] %v9194_v26  ;;  %11507 = vst [vmem:[#allocation21_spill] sm:$0xff] %v9196_v48  ;;  %6092 = vmatprep.mubr.bf16.mxu1 %v5522_v9  ;;  %v9198_v52 = vadd.f32 %v6039_v47, %v2474_v39  ;;  %v9200_v30 = vadd.f32 %v2659_v25, %v2466_v51  ;;  %v2476_v58 = vpop.f32.mrb[95].mxu1 }
 0x443   : > { %11508 = vst [vmem:[#allocation17_spill] sm:$0xff] %v9198_v52  ;;  %11509 = vst [vmem:[#allocation18_spill] sm:$0xff] %v9200_v30 }
 0x448   : > { %6093 = vmatmul.mubr.bf16.vlgmr.msra.gmra.mrb[200].mxu1 %v5523_v42  ;;  %v2479_v46 = vpop.f32.mrb[96].mxu1 }
 0x449   : > { %6096 = vmatprep.mubr.bf16.mxu1 %v5524_v38  ;;  %6101 = vmatpush3.bf16.msra.mxu1 %v9060_v3  ;;  %v2481_v54 = vpop.f32.mrb[97].mxu1 }
 0x44a   : > { %6102 = vmatprep.subr.bf16.mxu1 %v6977_v1  ;;  %v2482_v35 = vpop.f32.mrb[98].mxu1 }
 0x44b   : > { %v2484_v40 = vpop.f32.mrb[99].mxu1 }
 0x44d   : > { %6103 = vmatpush3.bf16.msra.mxu1 %v6977_v1 }
 0x44e   : > { %6104 = vmatprep.subr.bf16.mxu1 %v6978_v60 }
 0x450   : > { %6097 = vmatmul.mubr.bf16.gmra.mrb[204].mxu1 %v5525_v34  ;;  %v6042_v11 = vpop.f32.mrb[108].mxu0 }
 0x451   : > { %6105 = vmatpush3.bf16.msra.mxu1 %v6978_v60  ;;  %v2487_v9 = vpop.f32.mrb[100].mxu1  ;;  %v2672_v19 = vpop.f32.mrb[109].mxu0 }
 0x452   : > { %6106 = vmatprep.subr.bf16.mxu1 %v6979_v13  ;;  %v9206_v49 = vadd.f32 %v6042_v11, %v2487_v9  ;;  %v9208_v53 = vadd.f32 %v2672_v19, %v2479_v46  ;;  %v2489_v3 = vpop.f32.mrb[101].mxu1  ;;  %v6043_v42 = vpop.f32.mrb[110].mxu0 }
 0x453   : > { %v2490_v62 = vpop.f32.mrb[102].mxu1  ;;  %v2675_v50 = vpop.f32.mrb[111].mxu0 }
 0x454   : > { %11510 = vst [vmem:[#allocation23_spill] sm:$0xff] %v9206_v49  ;;  %11511 = vst [vmem:[#allocation40_spill] sm:$0xff] %v9208_v53  ;;  %v9210_v23 = vadd.f32 %v6043_v42, %v2490_v62  ;;  %v9212_v36 = vadd.f32 %v2675_v50, %v2482_v35  ;;  %v2492_v38 = vpop.f32.mrb[103].mxu1 }
 0x455   : > { %6107 = vmatpush3.bf16.msra.mxu1 %v6979_v13 }
 0x456   : > { %11512 = vst [vmem:[#allocation20_spill] sm:$0xff] %v9210_v23  ;;  %11513 = vst [vmem:[#allocation19_spill] sm:$0xff] %v9212_v36 }
 0x45a   : > { %v2495_v44 = vpop.f32.mrb[104].mxu1 }
 0x45b   : > { %v2497_v12 = vpop.f32.mrb[105].mxu1 }
 0x45c   : > { %v2498_v29 = vpop.f32.mrb[106].mxu1 }
 0x45d   : > { %v2500_v37 = vpop.f32.mrb[107].mxu1 }
 0x45e   : > { %v11522_v37 = vld [vmem:[#allocation7_spill] sm:$0xff] }
 0x462   : > { %v6046_v34 = vpop.f32.mrb[112].mxu0 }
 0x463   : > { %v2503_v21 = vpop.f32.mrb[108].mxu1  ;;  %v2688_v33 = vpop.f32.mrb[113].mxu0 }
 0x464   : > { %v9214_v51 = vadd.f32 %v6046_v34, %v2503_v21  ;;  %v9216_v22 = vadd.f32 %v2688_v33, %v2495_v44  ;;  %v2505_v2 = vpop.f32.mrb[109].mxu1  ;;  %v6047_v4 = vpop.f32.mrb[114].mxu0 }
 0x465   : > { %v2506_v56 = vpop.f32.mrb[110].mxu1  ;;  %v2691_v27 = vpop.f32.mrb[115].mxu0 }
 0x466   : > { %11514 = vst [vmem:[#allocation69_spill] sm:$0xff] %v9214_v51  ;;  %11515 = vst [vmem:[#allocation74_spill] sm:$0xff] %v9216_v22  ;;  %v9218_v47 = vadd.f32 %v6047_v4, %v2506_v56  ;;  %v9220_v39 = vadd.f32 %v2691_v27, %v2498_v29  ;;  %v2508_v25 = vpop.f32.mrb[111].mxu1  ;;  %v11523_v4 = vld [vmem:[#allocation8_spill] sm:$0xff] }
 0x468   : > { %11516 = vst [vmem:[#allocation68_spill] sm:$0xff] %v9218_v47  ;;  %11517 = vst [vmem:[#allocation24_spill] sm:$0xff] %v9220_v39 }
 0x46b   : > { %v2511_v58 = vpop.f32.mrb[112].mxu1 }
 0x46c   : > { %v2513_v46 = vpop.f32.mrb[113].mxu1 }
 0x46d   : > { %v2514_v54 = vpop.f32.mrb[114].mxu1 }
 0x46e   : > { %v2516_v1 = vpop.f32.mrb[115].mxu1 }
 0x46f   : > { %v6050_v35 = vpop.f32.mrb[116].mxu0 }
 0x470   : > { %v2704_v40 = vpop.f32.mrb[117].mxu0 }
 0x471   : > { %v9222_v60 = vadd.f32 %v2704_v40, %v2511_v58  ;;  %v6051_v11 = vpop.f32.mrb[118].mxu0 }
 0x472   : > { %v2707_v9 = vpop.f32.mrb[119].mxu0 }
 0x473   : > { %11518 = vst [vmem:[#allocation53_spill] sm:$0xff] %v9222_v60  ;;  %v2519_v19 = vpop.f32.mrb[116].mxu1  ;;  %v9224_v13 = vadd.f32 %v2707_v9, %v2514_v54 }
 0x474   : > { %v9226_v3 = vadd.f32 %v6050_v35, %v2519_v19  ;;  %v2521_v42 = vpop.f32.mrb[117].mxu1 }
 0x475   : > { %11519 = vst [vmem:[#allocation25_spill] sm:$0xff] %v9224_v13  ;;  %v2522_v62 = vpop.f32.mrb[118].mxu1 }
 0x476   : > { %11520 = vst [vmem:[#allocation73_spill] sm:$0xff] %v9226_v3  ;;  %v9228_v50 = vadd.f32 %v6051_v11, %v2522_v62  ;;  %v2524_v38 = vpop.f32.mrb[119].mxu1 }
 0x477   : > { %v6062_v44 = vpop.f32.mrb[120].mxu0 }
 0x478   : > { %11521 = vst [vmem:[#allocation71_spill] sm:$0xff] %v9228_v50  ;;  %v3192_v12 = vpop.f32.mrb[121].mxu0 }
 0x479   : > { %v6063_v29 = vpop.f32.mrb[122].mxu0  ;;  %v9231_v34 = vadd.f32 %v3192_v12, %v11522_v37 }
 0x47a   : > { %v3195_v21 = vpop.f32.mrb[123].mxu0 }
 0x47b   : > { %v9233_v33 = vpop.f32.mrb[120].mxu1  ;;  %v9241_v25 = vadd.f32 %v3195_v21, %v11522_v37  ;;  %v3352_v46 = vsel %vm1173_vm8, %v9231_v34, -inf  ;;  %v9257_v21 = vadd.f32 %v6062_v44, %v11522_v37 }
 0x47c   : > { %v2961_v2 = vpop.f32.mrb[121].mxu1 }
 0x47d   : > { %v9236_v56 = vadd.f32 %v2961_v2, %v11523_v4  ;;  %v9238_v27 = vpop.f32.mrb[122].mxu1  ;;  %v3357_v42 = vsel %vm1173_vm8, %v9241_v25, -inf  ;;  %v3362_v44 = vsel %vm1173_vm8, %v9257_v21, -inf }
 0x47e   : > { %v2965_v58 = vpop.f32.mrb[123].mxu1 }
 0x47f   : > { %v3351_v54 = vmax.f32 %v9233_v33, %v9236_v56  ;;  %v9248_v1 = vadd.f32 %v2965_v58, %v11523_v4  ;;  %v6066_v35 = vpop.f32.mrb[124].mxu0 }
 0x480   : > { %v3208_v40 = vpop.f32.mrb[125].mxu0  ;;  %v9317_v52 = vadd.f32 %v6066_v35, %v11522_v37 }
 0x481   : > { %v3356_v11 = vmax.f32 %v9238_v27, %v9248_v1  ;;  %v3353_v9 = vmax.f32 %v3351_v54, %v3352_v46  ;;  %v6067_v19 = vpop.f32.mrb[126].mxu0  ;;  %v9265_v46 = vadd.f32 %v6063_v29, %v11522_v37  ;;  %v9281_v29 = vadd.f32 %v3208_v40, %v11522_v37 }
 0x482   : > { %v3211_v62 = vpop.f32.mrb[127].mxu0  ;;  %v3382_v35 = vsel %vm1173_vm8, %v9317_v52, -inf }
 0x483   : > { %v9254_v38 = vpop.f32.mrb[124].mxu1  ;;  %3354 = vmax.xlane.f32.xlu0 %v3353_v9  ;;  %v3358_v12 = vmax.f32 %v3356_v11, %v3357_v42  ;;  %v3367_v60 = vsel %vm1173_vm8, %v9265_v46, -inf }
 0x484   : > { %v2971_v2 = vpop.f32.mrb[125].mxu1 }
 0x485   : > { %v9260_v58 = vadd.f32 %v2971_v2, %v11523_v4  ;;  %v9262_v50 = vpop.f32.mrb[126].mxu1  ;;  %3359 = vmax.xlane.f32.xlu1 %v3358_v12 }
 0x486   : > { %v2975_v54 = vpop.f32.mrb[127].mxu1 }
 0x487   : > { %v3361_v3 = vmax.f32 %v9254_v38, %v9260_v58  ;;  %v9270_v9 = vadd.f32 %v2975_v54, %v11523_v4  ;;  %v9272_v11 = vpop.f32.mrb[128].mxu0 }
 0x488   : > { %v3224_v42 = vpop.f32.mrb[129].mxu0  ;;  %v9382_v7 = vadd.f32 %v9272_v11, %v11522_v37 }
 0x489   : > { %v3366_v2 = vmax.f32 %v9262_v50, %v9270_v9  ;;  %v3363_v12 = vmax.f32 %v3361_v3, %v3362_v44  ;;  %v9278_v13 = vpop.f32.mrb[130].mxu0  ;;  %v9293_v3 = vadd.f32 %v3211_v62, %v11522_v37  ;;  %v3372_v44 = vsel %vm1173_vm8, %v9281_v29, -inf }
 0x48a   : > { %v3227_v54 = vpop.f32.mrb[131].mxu0  ;;  %v9343_v8 = vadd.f32 %v3224_v42, %v11522_v37  ;;  %11530 = vst [vmem:[#allocation72_spill] sm:$0xff] %v9382_v7 }
 0x48b   : > { %v9285_v39 = vpop.f32.mrb[128].mxu1  ;;  %3364 = vmax.xlane.f32.xlu0 %v3363_v12  ;;  %v3368_v47 = vmax.f32 %v3366_v2, %v3367_v60  ;;  %v3377_v53 = vsel %vm1173_vm8, %v9293_v3, -inf }
 0x48c   : > { %v2981_v22 = vpop.f32.mrb[129].mxu1  ;;  %11524 = vst [vmem:[#allocation22_spill] sm:$0xff] %v9343_v8 }
 0x48d   : > { %v9288_v51 = vadd.f32 %v2981_v22, %v11523_v4  ;;  %v9290_v36 = vpop.f32.mrb[130].mxu1  ;;  %3369 = vmax.xlane.f32.xlu1 %v3368_v47 }
 0x48e   : > { %v2985_v40 = vpop.f32.mrb[131].mxu1 }
 0x48f   : > { %v3371_v23 = vmax.f32 %v9285_v39, %v9288_v51  ;;  %v9300_v12 = vadd.f32 %v2985_v40, %v11523_v4  ;;  %v9302_v60 = vpop.f32.mrb[132].mxu0 }
 0x490   : > { %v9304_v22 = vpop.f32.mrb[133].mxu0 }
 0x491   : > { %v3376_v47 = vmax.f32 %v9290_v36, %v9300_v12  ;;  %v3373_v2 = vmax.f32 %v3371_v23, %v3372_v44  ;;  %v9308_v62 = vpop.f32.mrb[134].mxu0  ;;  %v9325_v23 = vadd.f32 %v6067_v19, %v11522_v37  ;;  %v9410_v63 = vadd.f32 %v9304_v22, %v11522_v37 }
 0x492   : > { %v9312_v49 = vpop.f32.mrb[135].mxu0 }
 0x493   : > { %v9314_v30 = vpop.f32.mrb[132].mxu1  ;;  %3374 = vmax.xlane.f32.xlu0 %v3373_v2  ;;  %v3378_v40 = vmax.f32 %v3376_v47, %v3377_v53  ;;  %11535 = vst [vmem:[#allocation32_spill] sm:$0xff] %v9410_v63  ;;  %v9425_v22 = vadd.f32 %v9312_v49, %v11522_v37 }
 0x494   : > { %v2991_v48 = vpop.f32.mrb[133].mxu1 }
 0x495   : > { %v9320_v26 = vadd.f32 %v2991_v48, %v11523_v4  ;;  %v9322_v20 = vpop.f32.mrb[134].mxu1  ;;  %3379 = vmax.xlane.f32.xlu1 %v3378_v40  ;;  %11539 = vst [vmem:[#allocation51_spill] sm:$0xff] %v9425_v22 }
 0x496   : > { %v2995_v44 = vpop.f32.mrb[135].mxu1 }
 0x497   : > { %v3381_v0 = vmax.f32 %v9314_v30, %v9320_v26  ;;  %v9330_v2 = vadd.f32 %v2995_v44, %v11523_v4  ;;  %v9332_v53 = vpop.f32.mrb[136].mxu0  ;;  %v3387_v44 = vsel %vm1173_vm8, %v9325_v23, -inf }
 0x498   : > { %v9336_v48 = vpop.f32.mrb[137].mxu0 }
 0x499   : > { %v3386_v47 = vmax.f32 %v9322_v20, %v9330_v2  ;;  %v3383_v40 = vmax.f32 %v3381_v0, %v3382_v35  ;;  %v9340_v19 = vpop.f32.mrb[138].mxu0  ;;  %v9357_v0 = vadd.f32 %v3227_v54, %v11522_v37  ;;  %v3392_v35 = vsel %vm1173_vm8, %v9343_v8, -inf }
 0x49a   : > { %v9347_v17 = vpop.f32.mrb[139].mxu0 }
 0x49b   : > { %v9349_v55 = vpop.f32.mrb[136].mxu1  ;;  %3384 = vmax.xlane.f32.xlu0 %v3383_v40  ;;  %v3388_v41 = vmax.f32 %v3386_v47, %v3387_v44  ;;  %11527 = vst [vmem:[#allocation26_spill] sm:$0xff] %v9357_v0  ;;  %v3397_v18 = vsel %vm1173_vm8, %v9357_v0, -inf }
 0x49c   : > { %v3001_v16 = vpop.f32.mrb[137].mxu1 }
 0x49d   : > { %v9352_v57 = vadd.f32 %v3001_v16, %v11523_v4  ;;  %v9354_v6 = vpop.f32.mrb[138].mxu1  ;;  %3389 = vmax.xlane.f32.xlu1 %v3388_v41 }
 0x49e   : > { %11526 = vst [vmem:[#allocation27_spill] sm:$0xff] %v9354_v6  ;;  %v3005_v42 = vpop.f32.mrb[139].mxu1 }
 0x49f   : > { %11525 = vst [vmem:[#allocation28_spill] sm:$0xff] %v9352_v57  ;;  %v3391_v5 = vmax.f32 %v9349_v55, %v9352_v57  ;;  %v9364_v40 = vadd.f32 %v3005_v42, %v11523_v4  ;;  %v9366_v47 = vpop.f32.mrb[140].mxu0 }
 0x4a0   : > { %v9368_v16 = vpop.f32.mrb[141].mxu0 }
 0x4a1   : > { %11528 = vst [vmem:[#allocation75_spill] sm:$0xff] %v9364_v40  ;;  %v3396_v41 = vmax.f32 %v9354_v6, %v9364_v40  ;;  %v3393_v44 = vmax.f32 %v3391_v5, %v3392_v35  ;;  %v9372_v54 = vpop.f32.mrb[142].mxu0  ;;  %v9391_v35 = vadd.f32 %v9278_v13, %v11522_v37 }
 0x4a2   : > { %v9376_v43 = vpop.f32.mrb[143].mxu0 }
 0x4a3   : > { %v9378_v24 = vpop.f32.mrb[140].mxu1  ;;  %3394 = vmax.xlane.f32.xlu0 %v3393_v44  ;;  %v3398_v42 = vmax.f32 %v3396_v41, %v3397_v18  ;;  %11533 = vst [vmem:[#allocation57_spill] sm:$0xff] %v9391_v35 }
 0x4a4   : > { %11529 = vst [vmem:[#allocation31_spill] sm:$0xff] %v9378_v24  ;;  %v3011_v28 = vpop.f32.mrb[141].mxu1 }
 0x4a5   : > { %v9385_v32 = vadd.f32 %v3011_v28, %v11523_v4  ;;  %v9387_v5 = vpop.f32.mrb[142].mxu1  ;;  %3399 = vmax.xlane.f32.xlu1 %v3398_v42  ;;  %v3402_v28 = vsel %vm1173_vm8, %v9382_v7, -inf }
 0x4a6   : > { %11532 = vst [vmem:[#allocation33_spill] sm:$0xff] %v9387_v5  ;;  %v3015_v59 = vpop.f32.mrb[143].mxu1 }
 0x4a7   : > { %11531 = vst [vmem:[#allocation30_spill] sm:$0xff] %v9385_v32  ;;  %v3401_v44 = vmax.f32 %v9378_v24, %v9385_v32  ;;  %v9396_v18 = vadd.f32 %v3015_v59, %v11523_v4  ;;  %v9398_v11 = vpop.f32.mrb[144].mxu0  ;;  %v3407_v59 = vsel %vm1173_vm8, %v9391_v35, -inf  ;;  %v3412_v35 = vsel %vm1173_vm8, %v9410_v63, -inf }
 0x4a8   : > { %v9402_v41 = vpop.f32.mrb[145].mxu0 }
 0x4a9   : > { %11534 = vst [vmem:[#allocation29_spill] sm:$0xff] %v9396_v18  ;;  %v3406_v42 = vmax.f32 %v9387_v5, %v9396_v18  ;;  %v3403_v61 = vmax.f32 %v3401_v44, %v3402_v28  ;;  %v9406_v13 = vpop.f32.mrb[146].mxu0  ;;  %v3417_v5 = vsel %vm1173_vm8, %v9425_v22, -inf }
 0x4aa   : > { %v9414_v15 = vpop.f32.mrb[147].mxu0 }
 0x4ab   : > { %v9416_v10 = vpop.f32.mrb[144].mxu1  ;;  %3404 = vmax.xlane.f32.xlu0 %v3403_v61  ;;  %v3408_v45 = vmax.f32 %v3406_v42, %v3407_v59 }
 0x4ac   : > { %11536 = vst [vmem:[#allocation37_spill] sm:$0xff] %v9416_v10  ;;  %v3021_v14 = vpop.f32.mrb[145].mxu1 }
 0x4ad   : > { %v9419_v31 = vadd.f32 %v3021_v14, %v11523_v4  ;;  %v9421_v44 = vpop.f32.mrb[146].mxu1  ;;  %3409 = vmax.xlane.f32.xlu1 %v3408_v45 }
 0x4ae   : > { %11538 = vst [vmem:[#allocation35_spill] sm:$0xff] %v9421_v44  ;;  %v3025_v28 = vpop.f32.mrb[147].mxu1 }
 0x4af   : > { %11537 = vst [vmem:[#allocation36_spill] sm:$0xff] %v9419_v31  ;;  %v3411_v18 = vmax.f32 %v9416_v10, %v9419_v31  ;;  %v9432_v61 = vadd.f32 %v3025_v28, %v11523_v4  ;;  %v9434_v42 = vpop.f32.mrb[148].mxu0  ;;  %v9450_v31 = vadd.f32 %v9302_v60, %v11522_v37 }
 0x4b0   : > { %v9436_v14 = vpop.f32.mrb[149].mxu0 }
 0x4b1   : > { %11540 = vst [vmem:[#allocation55_spill] sm:$0xff] %v9432_v61  ;;  %v3416_v45 = vmax.f32 %v9421_v44, %v9432_v61  ;;  %v3413_v59 = vmax.f32 %v3411_v18, %v3412_v35  ;;  %v9440_v49 = vpop.f32.mrb[150].mxu0  ;;  %11542 = vst [vmem:[#allocation44_spill] sm:$0xff] %v9450_v31  ;;  %v9459_v18 = vadd.f32 %v9308_v62, %v11522_v37  ;;  %v3422_v60 = vsel %vm1173_vm8, %v9450_v31, -inf }
 0x4b2   : > { %v9444_v63 = vpop.f32.mrb[151].mxu0 }
 0x4b3   : > { %v9446_v7 = vpop.f32.mrb[148].mxu1  ;;  %3414 = vmax.xlane.f32.xlu0 %v3413_v59  ;;  %v3418_v28 = vmax.f32 %v3416_v45, %v3417_v5  ;;  %11545 = vst [vmem:[#allocation42_spill] sm:$0xff] %v9459_v18  ;;  %v3427_v62 = vsel %vm1173_vm8, %v9459_v18, -inf }
 0x4b4   : > { %11541 = vst [vmem:[#allocation34_spill] sm:$0xff] %v9446_v7  ;;  %v3031_v10 = vpop.f32.mrb[149].mxu1 }
 0x4b5   : > { %v9453_v32 = vadd.f32 %v3031_v10, %v11523_v4  ;;  %v9455_v35 = vpop.f32.mrb[150].mxu1  ;;  %3419 = vmax.xlane.f32.xlu1 %v3418_v28  ;;  %v9472_v28 = vadd.f32 %v9336_v48, %v11522_v37 }
 0x4b6   : > { %11544 = vst [vmem:[#allocation46_spill] sm:$0xff] %v9455_v35  ;;  %v3035_v22 = vpop.f32.mrb[151].mxu1 }
 0x4b7   : > { %11543 = vst [vmem:[#allocation48_spill] sm:$0xff] %v9453_v32  ;;  %v3421_v59 = vmax.f32 %v9446_v7, %v9453_v32  ;;  %v9464_v5 = vadd.f32 %v3035_v22, %v11523_v4  ;;  %11547 = vst [vmem:[#allocation39_spill] sm:$0xff] %v9472_v28  ;;  %v9480_v7 = vadd.f32 %v9347_v17, %v11522_v37 }
 0x4b9   : > { %11546 = vst [vmem:[#allocation43_spill] sm:$0xff] %v9464_v5  ;;  %v3426_v10 = vmax.f32 %v9455_v35, %v9464_v5  ;;  %v3423_v45 = vmax.f32 %v3421_v59, %v3422_v60  ;;  %11549 = vst [vmem:[#allocation38_spill] sm:$0xff] %v9480_v7  ;;  %v3432_v60 = vsel %vm1173_vm8, %v9472_v28, -inf  ;;  %v3437_v17 = vsel %vm1173_vm8, %v9480_v7, -inf }
 0x4bb   : > { %v9476_v61 = vpop.f32.mrb[152].mxu1  ;;  %3424 = vmax.xlane.f32.xlu0 %v3423_v45  ;;  %v3428_v32 = vmax.f32 %v3426_v10, %v3427_v62 }
 0x4bc   : > { %11548 = vst [vmem:[#allocation41_spill] sm:$0xff] %v9476_v61  ;;  %v3041_v22 = vpop.f32.mrb[153].mxu1 }
 0x4bd   : > { %v9483_v31 = vadd.f32 %v3041_v22, %v11523_v4  ;;  %v9485_v59 = vpop.f32.mrb[154].mxu1  ;;  %3429 = vmax.xlane.f32.xlu1 %v3428_v32  ;;  %v9500_v32 = vadd.f32 %v9332_v53, %v11522_v37 }
 0x4be   : > { %11551 = vst [vmem:[#allocation50_spill] sm:$0xff] %v9485_v59  ;;  %v3045_v48 = vpop.f32.mrb[155].mxu1 }
 0x4bf   : > { %11550 = vst [vmem:[#allocation45_spill] sm:$0xff] %v9483_v31  ;;  %v3431_v18 = vmax.f32 %v9476_v61, %v9483_v31  ;;  %v9492_v10 = vadd.f32 %v3045_v48, %v11523_v4  ;;  %11553 = vst [vmem:[#allocation58_spill] sm:$0xff] %v9500_v32  ;;  %v9506_v31 = vadd.f32 %v9340_v19, %v11522_v37 }
 0x4c1   : > { %11552 = vst [vmem:[#allocation54_spill] sm:$0xff] %v9492_v10  ;;  %v3436_v45 = vmax.f32 %v9485_v59, %v9492_v10  ;;  %v3433_v62 = vmax.f32 %v3431_v18, %v3432_v60  ;;  %11555 = vst [vmem:[#allocation47_spill] sm:$0xff] %v9506_v31  ;;  %v3442_v18 = vsel %vm1173_vm8, %v9500_v32, -inf  ;;  %v3447_v19 = vsel %vm1173_vm8, %v9506_v31, -inf }
 0x4c3   : > { %v9502_v22 = vpop.f32.mrb[156].mxu1  ;;  %3434 = vmax.xlane.f32.xlu0 %v3433_v62  ;;  %v3438_v28 = vmax.f32 %v3436_v45, %v3437_v17 }
 0x4c4   : > { %11554 = vst [vmem:[#allocation49_spill] sm:$0xff] %v9502_v22  ;;  %v3051_v48 = vpop.f32.mrb[157].mxu1 }
 0x4c5   : > { %v9509_v61 = vadd.f32 %v3051_v48, %v11523_v4  ;;  %v9511_v7 = vpop.f32.mrb[158].mxu1  ;;  %3439 = vmax.xlane.f32.xlu1 %v3438_v28  ;;  %v9526_v28 = vadd.f32 %v9368_v16, %v11522_v37 }
 0x4c6   : > { %11557 = vst [vmem:[#allocation56_spill] sm:$0xff] %v9511_v7  ;;  %v3055_v53 = vpop.f32.mrb[159].mxu1 }
 0x4c7   : > { %11556 = vst [vmem:[#allocation60_spill] sm:$0xff] %v9509_v61  ;;  %v3441_v60 = vmax.f32 %v9502_v22, %v9509_v61  ;;  %v9518_v17 = vadd.f32 %v3055_v53, %v11523_v4  ;;  %11559 = vst [vmem:[#allocation59_spill] sm:$0xff] %v9526_v28  ;;  %v9532_v53 = vadd.f32 %v9376_v43, %v11522_v37 }
 0x4c9   : > { %11558 = vst [vmem:[#allocation52_spill] sm:$0xff] %v9518_v17  ;;  %v3446_v45 = vmax.f32 %v9511_v7, %v9518_v17  ;;  %v3443_v62 = vmax.f32 %v3441_v60, %v3442_v18  ;;  %11561 = vst [vmem:[#allocation5_spill] sm:$0xff] %v9532_v53  ;;  %v3452_v18 = vsel %vm1173_vm8, %v9526_v28, -inf  ;;  %v3457_v43 = vsel %vm1173_vm8, %v9532_v53, -inf }
 0x4cb   : > { %v9528_v48 = vpop.f32.mrb[160].mxu1  ;;  %3444 = vmax.xlane.f32.xlu0 %v3443_v62  ;;  %v3448_v32 = vmax.f32 %v3446_v45, %v3447_v19 }
 0x4cc   : > { %11560 = vst [vmem:[#allocation83_spill] sm:$0xff] %v9528_v48  ;;  %v3061_v10 = vpop.f32.mrb[161].mxu1 }
 0x4cd   : > { %v9535_v61 = vadd.f32 %v3061_v10, %v11523_v4  ;;  %v9537_v31 = vpop.f32.mrb[162].mxu1  ;;  %3449 = vmax.xlane.f32.xlu1 %v3448_v32  ;;  %v9552_v32 = vadd.f32 %v9366_v47, %v11522_v37 }
 0x4ce   : > { %11563 = vst [vmem:[#allocation77_spill] sm:$0xff] %v9537_v31  ;;  %v3065_v16 = vpop.f32.mrb[163].mxu1 }
 0x4cf   : > { %11562 = vst [vmem:[#allocation79_spill] sm:$0xff] %v9535_v61  ;;  %v3451_v60 = vmax.f32 %v9528_v48, %v9535_v61  ;;  %v9544_v19 = vadd.f32 %v3065_v16, %v11523_v4  ;;  %11565 = vst [vmem:[#allocation6_spill] sm:$0xff] %v9552_v32  ;;  %v9558_v61 = vadd.f32 %v9372_v54, %v11522_v37 }
 0x4d1   : > { %11564 = vst [vmem:[#allocation84_spill] sm:$0xff] %v9544_v19  ;;  %v3453_v45 = vmax.f32 %v3451_v60, %v3452_v18  ;;  %v3456_v10 = vmax.f32 %v9537_v31, %v9544_v19  ;;  %11567 = vst [vmem:[#allocation76_spill] sm:$0xff] %v9558_v61  ;;  %v3462_v60 = vsel %vm1173_vm8, %v9552_v32, -inf  ;;  %v3467_v54 = vsel %vm1173_vm8, %v9558_v61, -inf }
 0x4d3   : > { %v3458_v62 = vmax.f32 %v3456_v10, %v3457_v43  ;;  %v9554_v28 = vpop.f32.mrb[164].mxu1  ;;  %3454 = vmax.xlane.f32.xlu0 %v3453_v45 }
 0x4d4   : > { %11566 = vst [vmem:[#allocation82_spill] sm:$0xff] %v9554_v28  ;;  %v3071_v16 = vpop.f32.mrb[165].mxu1 }
 0x4d5   : > { %v9561_v48 = vadd.f32 %v3071_v16, %v11523_v4  ;;  %v9563_v18 = vpop.f32.mrb[166].mxu1  ;;  %3459 = vmax.xlane.f32.xlu1 %v3458_v62 }
 0x4d6   : > { %11569 = vst [vmem:[#allocation8_spill] sm:$0xff] %v9563_v18  ;;  %v3075_v47 = vpop.f32.mrb[167].mxu1 }
 0x4d7   : > { %11568 = vst [vmem:[#allocation7_spill] sm:$0xff] %v9561_v48  ;;  %v3461_v43 = vmax.f32 %v9554_v28, %v9561_v48  ;;  %v9570_v45 = vadd.f32 %v3075_v47, %v11523_v4 }
 0x4d9   : > { %11570 = vst [vmem:[#allocation91_spill] sm:$0xff] %v9570_v45  ;;  %v3466_v10 = vmax.f32 %v9563_v18, %v9570_v45  ;;  %v3463_v16 = vmax.f32 %v3461_v43, %v3462_v60 }
 0x4db   : > { %3464 = vmax.xlane.f32.xlu0 %v3463_v16  ;;  %v3468_v53 = vmax.f32 %v3466_v10, %v3467_v54  ;;  %v9576_v62 = vpop.f32.mrb[168].mxu1 }
 0x4dc   : > { %v3081_v19 = vpop.f32.mrb[169].mxu1 }
 0x4dd   : > { %3469 = vmax.xlane.f32.xlu1 %v3468_v53  ;;  %v9578_v32 = vpop.f32.mrb[170].mxu1 }
 0x4de   : > { %11571 = vst [vmem:[#allocation92_spill] sm:$0xff] %v9578_v32  ;;  %v9580_v31 = vpop.f32.mrb[171].mxu1 }
 0x4e3   : > { %v9582_v48 = vpop.f32.mrb[172].mxu1 }
 0x4e4   : > { %v9584_v47 = vpop.f32.mrb[173].mxu1 }
 0x4e5   : > { %v9586_v28 = vpop.f32.mrb[174].mxu1 }
 0x4e6   : > { %v9588_v61 = vpop.f32.mrb[175].mxu1 }
 0x4eb   : > { %v9590_v45 = vpop.f32.mrb[176].mxu1 }
 0x4ec   : > { %v9592_v60 = vpop.f32.mrb[177].mxu1 }
 0x4ed   : > { %v9594_v43 = vpop.f32.mrb[178].mxu1 }
 0x4ee   : > { %v9596_v54 = vpop.f32.mrb[179].mxu1 }
 0x4f3   : > { %v9598_v53 = vpop.f32.mrb[180].mxu1 }
 0x4f4   : > { %v9600_v10 = vpop.f32.mrb[181].mxu1 }
 0x4f5   : > { %v9602_v16 = vpop.f32.mrb[182].mxu1 }
 0x4f6   : > { %11572 = vst [vmem:[#allocation93_spill] sm:$0xff] %v9602_v16  ;;  %v9604_v18 = vpop.f32.mrb[183].mxu1 }
 0x4fb   : > { %v9606_v17 = vpop.f32.mrb[184].mxu1 }
 0x4fc   : > { %11573 = vst [vmem:[#allocation94_spill] sm:$0xff] %v9606_v17  ;;  %v9608_v7 = vpop.f32.mrb[185].mxu1 }
 0x4fd   : > { %11574 = vst [vmem:[#allocation95_spill] sm:$0xff] %v9608_v7  ;;  %v9610_v22 = vpop.f32.mrb[186].mxu1 }
 0x4fe   : > { %11575 = vst [vmem:[#allocation96_spill] sm:$0xff] %v9610_v22  ;;  %v9612_v59 = vpop.f32.mrb[187].mxu1 }
 0x4ff   : > { %11576 = vst [vmem:[#allocation97_spill] sm:$0xff] %v9612_v59 }
 0x503   : > { %v9614_v5 = vpop.f32.mrb[188].mxu1 }
 0x504   : > { %11577 = vst [vmem:[#allocation98_spill] sm:$0xff] %v9614_v5  ;;  %v9616_v35 = vpop.f32.mrb[189].mxu1 }
 0x505   : > { %11578 = vst [vmem:[#allocation99_spill] sm:$0xff] %v9616_v35  ;;  %v9618_v44 = vpop.f32.mrb[190].mxu1 }
 0x506   : > { %11579 = vst [vmem:[#allocation100_spill] sm:$0xff] %v9618_v44  ;;  %v9620_v24 = vpop.f32.mrb[191].mxu1 }
 0x507   : > { %11580 = vst [vmem:[#allocation101_spill] sm:$0xff] %v9620_v24 }
 0x50b   : > { %v9622_v0 = vpop.f32.mrb[192].mxu1 }
 0x50c   : > { %11581 = vst [vmem:[#allocation102_spill] sm:$0xff] %v9622_v0  ;;  %v9624_v16 = vpop.f32.mrb[193].mxu1 }
 0x50d   : > { %11582 = vst [vmem:[#allocation103_spill] sm:$0xff] %v9624_v16  ;;  %v9626_v40 = vpop.f32.mrb[194].mxu1 }
 0x50e   : > { %11583 = vst [vmem:[#allocation104_spill] sm:$0xff] %v9626_v40  ;;  %v9628_v17 = vpop.f32.mrb[195].mxu1 }
 0x50f   : > { %11584 = vst [vmem:[#allocation105_spill] sm:$0xff] %v9628_v17 }
 0x510   : > { %v3355_v7 = vpop.xlane.xlu0 %3354 }
 0x511   : > { %v3551_v22 = vsub.f32 %v9233_v33, %v3355_v7  ;;  %v3552_v59 = vsub.f32 %v9236_v56, %v3355_v7  ;;  %v3553_v5 = vsub.f32 %v9231_v34, %v3355_v7  ;;  %v9642_v33 = vadd.f32 %v9402_v41, %v11522_v37 }
 0x512   : > { %v3360_v35 = vpop.xlane.xlu1 %3359 }
 0x513   : > { %v3671_v6 = vmul.f32 1.442695, %v3551_v22  ;;  %v3673_v44 = vmul.f32 1.442695, %v3552_v59  ;;  %v3675_v8 = vmul.f32 1.442695, %v3553_v5  ;;  %v3554_v24 = vsub.f32 %v9238_v27, %v3360_v35 }
 0x514   : > { %v3555_v0 = vsub.f32 %v9248_v1, %v3360_v35  ;;  %v3556_v16 = vsub.f32 %v9241_v25, %v3360_v35  ;;  %v9636_v40 = vpop.f32.mrb[196].mxu1  ;;  %11585 = vst [vmem:[#allocation106_spill] sm:$0xff] %v9642_v33  ;;  %v9649_v25 = vadd.f32 %v3081_v19, %v11523_v4  ;;  %v9675_v22 = vadd.f32 %v9436_v14, %v11522_v37 }
 0x515   : > { %6579 = vpow2.f32 %v3671_v6  ;;  %v3677_v17 = vmul.f32 1.442695, %v3554_v24  ;;  %v9638_v57 = vpop.f32.mrb[197].mxu1  ;;  %v9653_v24 = vadd.f32 %v9398_v11, %v11522_v37  ;;  %v9666_v11 = vadd.f32 %v9414_v15, %v11522_v37 }
 0x516   : > { %6581 = vpow2.f32 %v3673_v44  ;;  %v3679_v7 = vmul.f32 1.442695, %v3555_v0  ;;  %v3681_v34 = vmul.f32 1.442695, %v3556_v16  ;;  %v9644_v56 = vpop.f32.mrb[198].mxu1  ;;  %v9662_v44 = vadd.f32 %v9406_v13, %v11522_v37  ;;  %11590 = vst [vmem:[#allocation111_spill] sm:$0xff] %v9675_v22 }
 0x517   : > { %6583 = vpow2.f32 %v3675_v8  ;;  %v9646_v27 = vpop.f32.mrb[199].mxu1  ;;  %11586 = vst [vmem:[#allocation107_spill] sm:$0xff] %v9653_v24  ;;  %v3472_v8 = vsel %vm1173_vm8, %v9642_v33, -inf  ;;  %11588 = vst [vmem:[#allocation109_spill] sm:$0xff] %v9666_v11  ;;  %v3471_v19 = vmax.f32 %v9576_v62, %v9649_v25  ;;  %v9691_v14 = vadd.f32 %v9580_v31, %v11523_v4 }
 0x518   : > { %6585 = vpow2.f32 %v3677_v17  ;;  %v3365_v6 = vpop.xlane.xlu0 %3364  ;;  %11587 = vst [vmem:[#allocation108_spill] sm:$0xff] %v9662_v44 }
 0x519   : > { %6587 = vpow2.f32 %v3679_v7  ;;  %v3557_v1 = vsub.f32 %v9254_v38, %v3365_v6  ;;  %v3558_v0 = vsub.f32 %v9260_v58, %v3365_v6  ;;  %v3559_v41 = vsub.f32 %v9257_v21, %v3365_v6  ;;  %11592 = vst [vmem:[#allocation113_spill] sm:$0xff] %v9691_v14 }
 0x51a   : > { %6589 = vpow2.f32 %v3681_v34  ;;  %v3370_v35 = vpop.xlane.xlu1 %3369  ;;  %v9671_v21 = vadd.f32 %v9434_v42, %v11522_v37  ;;  %v9699_v6 = vsel %vm1173_vm8, %v9653_v24, -inf }
 0x51b   : > { %v3683_v5 = vmul.f32 1.442695, %v3557_v1  ;;  %v3685_v59 = vmul.f32 1.442695, %v3558_v0  ;;  %v3687_v38 = vmul.f32 1.442695, %v3559_v41  ;;  %v3560_v58 = vsub.f32 %v9262_v50, %v3370_v35 }
 0x51c   : > { %11589 = vst [vmem:[#allocation110_spill] sm:$0xff] %v9671_v21  ;;  %v3561_v13 = vsub.f32 %v9270_v9, %v3370_v35  ;;  %v3562_v15 = vsub.f32 %v9265_v46, %v3370_v35  ;;  %v9679_v17 = vpop.f32.mrb[200].mxu1  ;;  %v9685_v50 = vadd.f32 %v9444_v63, %v11522_v37  ;;  %v9703_v63 = vsel %vm1173_vm8, %v9662_v44, -inf }
 0x51d   : > { %6591 = vpow2.f32 %v3683_v5  ;;  %v3689_v42 = vmul.f32 1.442695, %v3560_v58  ;;  %v9687_v16 = vpop.f32.mrb[201].mxu1  ;;  %v9707_v1 = vsel %vm1173_vm8, %v9666_v11, -inf  ;;  %v9715_v41 = vsel %vm1173_vm8, %v9671_v21, -inf }
 0x51e   : > { %11591 = vst [vmem:[#allocation112_spill] sm:$0xff] %v9685_v50  ;;  %6593 = vpow2.f32 %v3685_v59  ;;  %v3691_v9 = vmul.f32 1.442695, %v3561_v13  ;;  %v3693_v46 = vmul.f32 1.442695, %v3562_v15  ;;  %v9693_v7 = vpop.f32.mrb[202].mxu1  ;;  %v9723_v5 = vadd.f32 %v9440_v49, %v11522_v37 }
 0x51f   : > { %v9695_v34 = vpop.eup %6579  ;;  %6595 = vpow2.f32 %v3687_v38  ;;  %v9709_v31 = vpop.f32.mrb[203].mxu1  ;;  %v9719_v35 = vsel %vm1173_vm8, %v9675_v22, -inf  ;;  %v9727_v38 = vmax.f32 %v3471_v19, %v3472_v8  ;;  %v9731_v13 = vsel %vm1173_vm8, %v9685_v50, -inf }
 0x520   : > { %v9711_v0 = vpop.eup %6581  ;;  %11593 = vst [vmem:[#allocation114_spill] sm:$0xff] %v9723_v5  ;;  %6597 = vpow2.f32 %v3689_v42  ;;  %v3375_v59 = vpop.xlane.xlu0 %3374  ;;  %v3476_v22 = vmax.f32 %v9578_v32, %v9691_v14  ;;  %v9740_v49 = vadd.f32 %v9584_v47, %v11523_v4 }
 0x521   : > { %v9725_v58 = vpop.eup %6583  ;;  %6599 = vpow2.f32 %v3691_v9  ;;  %v3563_v15 = vsub.f32 %v9285_v39, %v3375_v59  ;;  %v3564_v8 = vsub.f32 %v9288_v51, %v3375_v59  ;;  %v9747_v9 = vadd.f32 %v9588_v61, %v11523_v4 }
 0x522   : > { %v9734_v21 = vpop.eup %6585  ;;  %6601 = vpow2.f32 %v3693_v46  ;;  %v3380_v19 = vpop.xlane.xlu1 %3379  ;;  %v3565_v39 = vsub.f32 %v9281_v29, %v3375_v59  ;;  %v3911_v14 = vadd.f32 %v9711_v0, %v9695_v34 }
 0x523   : > { %11594 = vst [vmem:[#allocation115_spill] sm:$0xff] %v9734_v21  ;;  %v9743_v42 = vpop.eup %6587  ;;  %11596 = vst [vmem:[#allocation117_spill] sm:$0xff] %v9747_v9  ;;  %v3695_v50 = vmul.f32 1.442695, %v3563_v15  ;;  %v3566_v44 = vsub.f32 %v9290_v36, %v3380_v19  ;;  %v9751_v24 = vpop.f32.mrb[204].mxu1  ;;  %v3567_v46 = vsub.f32 %v9300_v12, %v3380_v19  ;;  %v3568_v51 = vsub.f32 %v9293_v3, %v3380_v19 }
 0x524   : > { %11595 = vst [vmem:[#allocation116_spill] sm:$0xff] %v9743_v42  ;;  %v9753_v11 = vpop.eup %6589  ;;  %v3697_v47 = vmul.f32 1.442695, %v3564_v8  ;;  %v9759_v32 = vpop.f32.mrb[205].mxu1  ;;  %v3699_v61 = vmul.f32 1.442695, %v3565_v39  ;;  %v3481_v19 = vmax.f32 %v9582_v48, %v9740_v49 }
 0x525   : > { %11597 = vst [vmem:[#allocation118_spill] sm:$0xff] %v9753_v11  ;;  %6603 = vpow2.f32 %v3695_v50  ;;  %v3701_v29 = vmul.f32 1.442695, %v3566_v44  ;;  %v3912_v36 = vsel %vm1173_vm8, %v9725_v58, 0.0  ;;  %v9763_v59 = vpop.f32.mrb[206].mxu1  ;;  %v3916_v44 = vadd.f32 %v9743_v42, %v9734_v21 }
 0x526   : > { %6605 = vpow2.f32 %v3697_v47  ;;  %v3703_v15 = vmul.f32 1.442695, %v3567_v46  ;;  %v3705_v8 = vmul.f32 1.442695, %v3568_v51  ;;  %v3913_v33 = vadd.f32 %v3912_v36, %v3911_v14  ;;  %v9765_v12 = vpop.f32.mrb[207].mxu1 }
 0x527   : > { %v9767_v3 = vpop.eup %6591  ;;  %6607 = vpow2.f32 %v3699_v61  ;;  %v3917_v50 = vsel %vm1173_vm8, %v9753_v11, 0.0  ;;  %v3486_v47 = vmax.f32 %v9586_v28, %v9747_v9  ;;  %v9781_v14 = vadd.f32 %v9592_v60, %v11523_v4 }
 0x528   : > { %11598 = vst [vmem:[#allocation119_spill] sm:$0xff] %v9767_v3  ;;  %v9775_v39 = vpop.eup %6593  ;;  %v9785_v46 = vadd.f32 %v9596_v54, %v11523_v4  ;;  %6609 = vpow2.f32 %v3701_v29  ;;  %3914 = vadd.xlane.f32.xlu0 %v3913_v33  ;;  %v3385_v51 = vpop.xlane.xlu0 %3384  ;;  %v3918_v36 = vadd.f32 %v3917_v50, %v3916_v44 }
 0x529   : > { %v9787_v61 = vpop.eup %6595  ;;  %6611 = vpow2.f32 %v3703_v15  ;;  %v3569_v21 = vsub.f32 %v9314_v30, %v3385_v51  ;;  %v3570_v11 = vsub.f32 %v9320_v26, %v3385_v51  ;;  %v3571_v60 = vsub.f32 %v9317_v52, %v3385_v51 }
 0x52a   : > { %11599 = vst [vmem:[#allocation120_spill] sm:$0xff] %v9787_v61  ;;  %v9791_v42 = vpop.eup %6597  ;;  %6613 = vpow2.f32 %v3705_v8  ;;  %v3390_v9 = vpop.xlane.xlu1 %3389  ;;  %v3921_v54 = vadd.f32 %v9775_v39, %v9767_v3  ;;  %v3922_v33 = vsel %vm1173_vm8, %v9787_v61, 0.0  ;;  %3919 = vadd.xlane.f32.xlu1 %v3918_v36  ;;  %v9806_v52 = vadd.f32 %v9600_v10, %v11523_v4 }
 0x52b   : > { %v9798_v29 = vpop.eup %6599  ;;  %v3707_v15 = vmul.f32 1.442695, %v3569_v21  ;;  %v3709_v44 = vmul.f32 1.442695, %v3570_v11  ;;  %v3572_v30 = vsub.f32 %v9322_v20, %v3390_v9  ;;  %v3573_v26 = vsub.f32 %v9330_v2, %v3390_v9 }
 0x52c   : > { %v9802_v50 = vpop.eup %6601  ;;  %11600 = vst [vmem:[#allocation121_spill] sm:$0xff] %v9806_v52  ;;  %3474 = vmax.xlane.f32.xlu0 %v9727_v38  ;;  %v3711_v8 = vmul.f32 1.442695, %v3571_v60  ;;  %v3574_v51 = vsub.f32 %v9325_v23, %v3390_v9  ;;  %v3923_v3 = vadd.f32 %v3922_v33, %v3921_v54  ;;  %v3478_v36 = vmax.f32 %v3476_v22, %v9707_v1 }
 0x52d   : > { %6615 = vpow2.f32 %v3707_v15  ;;  %v3713_v11 = vmul.f32 1.442695, %v3572_v30  ;;  %v3715_v21 = vmul.f32 1.442695, %v3573_v26  ;;  %v3926_v2 = vadd.f32 %v9798_v29, %v9791_v42  ;;  %v11606_v30 = vld [vmem:[#allocation22_spill] sm:$0xff] }
 0x52e   : > { %6617 = vpow2.f32 %v3709_v44  ;;  %v3717_v20 = vmul.f32 1.442695, %v3574_v51  ;;  %v3483_v61 = vmax.f32 %v3481_v19, %v9699_v6  ;;  %v3491_v38 = vmax.f32 %v9590_v45, %v9781_v14  ;;  %3479 = vmax.xlane.f32.xlu1 %v3478_v36 }
 0x52f   : > { %v9814_v10 = vpop.eup %6603  ;;  %6619 = vpow2.f32 %v3711_v8  ;;  %v3927_v23 = vsel %vm1173_vm8, %v9802_v50, 0.0  ;;  %v3488_v22 = vmax.f32 %v3486_v47, %v9703_v63  ;;  %v3496_v9 = vmax.f32 %v9594_v43, %v9785_v46  ;;  %v11604_v47 = vld [vmem:[#allocation28_spill] sm:$0xff] }
 0x530   : > { %11601 = vst [vmem:[#allocation122_spill] sm:$0xff] %v9814_v10  ;;  %v9821_v1 = vpop.eup %6605  ;;  %v3501_v6 = vmax.f32 %v9598_v53, %v9806_v52  ;;  %6621 = vpow2.f32 %v3713_v11  ;;  %3924 = vadd.xlane.f32.xlu0 %v3923_v3  ;;  %v3928_v19 = vadd.f32 %v3927_v23, %v3926_v2  ;;  %v3395_v60 = vpop.xlane.xlu0 %3394  ;;  %v9831_v33 = vadd.f32 %v9604_v18, %v11523_v4  ;;  %v11609_v2 = vld [vmem:[#allocation75_spill] sm:$0xff] }
 0x531   : > { %11602 = vst [vmem:[#allocation123_spill] sm:$0xff] %v9821_v1  ;;  %v9827_v54 = vpop.eup %6607  ;;  %6623 = vpow2.f32 %v3715_v21  ;;  %v3575_v63 = vsub.f32 %v9349_v55, %v3395_v60  ;;  %v3576_v15 = vsub.f32 %v11604_v47, %v3395_v60  ;;  %v3577_v26 = vsub.f32 %v11606_v30, %v3395_v60  ;;  %v11608_v55 = vld [vmem:[#allocation27_spill] sm:$0xff]  ;;  %v11611_v60 = vld [vmem:[#allocation26_spill] sm:$0xff] }
 0x532   : > { %11603 = vst [vmem:[#allocation124_spill] sm:$0xff] %v9827_v54  ;;  %v9835_v44 = vpop.eup %6609  ;;  %6625 = vpow2.f32 %v3717_v20  ;;  %v3400_v8 = vpop.xlane.xlu1 %3399  ;;  %v3931_v3 = vadd.f32 %v9821_v1, %v9814_v10  ;;  %v3932_v51 = vsel %vm1173_vm8, %v9827_v54, 0.0  ;;  %3929 = vadd.xlane.f32.xlu1 %v3928_v19 }
 0x533   : > { %11605 = vst [vmem:[#allocation28_spill] sm:$0xff] %v9835_v44  ;;  %v9842_v36 = vpop.eup %6611  ;;  %v3719_v18 = vmul.f32 1.442695, %v3575_v63  ;;  %v3721_v11 = vmul.f32 1.442695, %v3576_v15  ;;  %v3578_v21 = vsub.f32 %v11608_v55, %v3400_v8  ;;  %v3579_v23 = vsub.f32 %v11609_v2, %v3400_v8 }
 0x534   : > { %11607 = vst [vmem:[#allocation22_spill] sm:$0xff] %v9842_v36  ;;  %v9846_v47 = vpop.eup %6613  ;;  %3484 = vmax.xlane.f32.xlu0 %v3483_v61  ;;  %v3723_v20 = vmul.f32 1.442695, %v3577_v26  ;;  %v3580_v30 = vsub.f32 %v11611_v60, %v3400_v8  ;;  %v3933_v52 = vadd.f32 %v3932_v51, %v3931_v3  ;;  %v3936_v10 = vadd.f32 %v9842_v36, %v9835_v44  ;;  %v11613_v8 = vld [vmem:[#allocation93_spill] sm:$0xff] }
 0x535   : > { %11610 = vst [vmem:[#allocation27_spill] sm:$0xff] %v9846_v47  ;;  %6627 = vpow2.f32 %v3719_v18  ;;  %v3725_v54 = vmul.f32 1.442695, %v3578_v21  ;;  %v3727_v1 = vmul.f32 1.442695, %v3579_v23  ;;  %v3937_v19 = vsel %vm1173_vm8, %v9846_v47, 0.0 }
 0x536   : > { %v3493_v63 = vmax.f32 %v3491_v38, %v9719_v35  ;;  %v3507_v15 = vsel %vm1173_vm8, %v9723_v5, -inf  ;;  %6629 = vpow2.f32 %v3721_v11  ;;  %v3729_v61 = vmul.f32 1.442695, %v3580_v30  ;;  %3489 = vmax.xlane.f32.xlu1 %v3488_v22  ;;  %v11615_v35 = vld [vmem:[#allocation95_spill] sm:$0xff]  ;;  %v11617_v11 = vld [vmem:[#allocation97_spill] sm:$0xff] }
 0x537   : > { %v9856_v26 = vpop.eup %6615  ;;  %v3506_v3 = vmax.f32 %v11613_v8, %v9831_v33  ;;  %v3498_v51 = vmax.f32 %v3496_v9, %v9731_v13  ;;  %6631 = vpow2.f32 %v3723_v20  ;;  %v3938_v18 = vadd.f32 %v3937_v19, %v3936_v10  ;;  %v11619_v10 = vld [vmem:[#allocation31_spill] sm:$0xff]  ;;  %v11620_v9 = vld [vmem:[#allocation30_spill] sm:$0xff]  ;;  %v11628_v47 = vld [vmem:[#allocation57_spill] sm:$0xff] }
 0x538   : > { %11612 = vst [vmem:[#allocation75_spill] sm:$0xff] %v9856_v26  ;;  %v9861_v55 = vpop.eup %6617  ;;  %v9864_v21 = vmax.f32 %v3501_v6, %v9715_v41  ;;  %v9868_v38 = vadd.f32 %v11615_v35, %v11523_v4  ;;  %v9872_v2 = vadd.f32 %v11617_v11, %v11523_v4  ;;  %6633 = vpow2.f32 %v3725_v54  ;;  %3934 = vadd.xlane.f32.xlu0 %v3933_v52  ;;  %v3405_v23 = vpop.xlane.xlu0 %3404  ;;  %v11621_v41 = vld [vmem:[#allocation72_spill] sm:$0xff]  ;;  %v11623_v30 = vld [vmem:[#allocation99_spill] sm:$0xff] }
 0x539   : > { %11614 = vst [vmem:[#allocation26_spill] sm:$0xff] %v9861_v55  ;;  %v9874_v13 = vpop.eup %6619  ;;  %6635 = vpow2.f32 %v3727_v1  ;;  %v3581_v22 = vsub.f32 %v11619_v10, %v3405_v23  ;;  %v3582_v20 = vsub.f32 %v11620_v9, %v3405_v23  ;;  %v3583_v6 = vsub.f32 %v11621_v41, %v3405_v23  ;;  %v11625_v9 = vld [vmem:[#allocation33_spill] sm:$0xff] }
 0x53a   : > { %11616 = vst [vmem:[#allocation93_spill] sm:$0xff] %v9868_v38  ;;  %11618 = vst [vmem:[#allocation95_spill] sm:$0xff] %v9874_v13  ;;  %v9879_v60 = vpop.eup %6621  ;;  %v9883_v19 = vadd.f32 %v11623_v30, %v11523_v4  ;;  %6637 = vpow2.f32 %v3729_v61  ;;  %v3410_v35 = vpop.xlane.xlu1 %3409  ;;  %v3941_v52 = vadd.f32 %v9861_v55, %v9856_v26  ;;  %v3942_v1 = vsel %vm1173_vm8, %v9874_v13, 0.0  ;;  %3939 = vadd.xlane.f32.xlu1 %v3938_v18  ;;  %v11627_v30 = vld [vmem:[#allocation29_spill] sm:$0xff] }
 0x53b   : > { %11622 = vst [vmem:[#allocation97_spill] sm:$0xff] %v9879_v60  ;;  %v9889_v54 = vpop.eup %6623  ;;  %v3731_v11 = vmul.f32 1.442695, %v3581_v22  ;;  %v3733_v10 = vmul.f32 1.442695, %v3582_v20  ;;  %v3584_v41 = vsub.f32 %v11625_v9, %v3410_v35  ;;  %v3585_v61 = vsub.f32 %v11627_v30, %v3410_v35  ;;  %v11629_v22 = vld [vmem:[#allocation94_spill] sm:$0xff] }
 0x53c   : > { %11624 = vst [vmem:[#allocation31_spill] sm:$0xff] %v9889_v54  ;;  %v3735_v23 = vmul.f32 1.442695, %v3583_v6  ;;  %v9892_v44 = vpop.eup %6625  ;;  %3494 = vmax.xlane.f32.xlu0 %v3493_v63  ;;  %v3586_v36 = vsub.f32 %v11628_v47, %v3410_v35  ;;  %v3943_v5 = vadd.f32 %v3942_v1, %v3941_v52  ;;  %v3946_v26 = vadd.f32 %v9889_v54, %v9879_v60  ;;  %v11631_v47 = vld [vmem:[#allocation96_spill] sm:$0xff]  ;;  %v11632_v52 = vld [vmem:[#allocation98_spill] sm:$0xff]  ;;  %v11647_v54 = vld [vmem:[#allocation51_spill] sm:$0xff] }
 0x53d   : > { %11626 = vst [vmem:[#allocation30_spill] sm:$0xff] %v9892_v44  ;;  %v3508_v13 = vmax.f32 %v3506_v3, %v3507_v15  ;;  %6639 = vpow2.f32 %v3731_v11  ;;  %v3737_v55 = vmul.f32 1.442695, %v3584_v41  ;;  %v3947_v18 = vsel %vm1173_vm8, %v9892_v44, 0.0  ;;  %v11634_v11 = vld [vmem:[#allocation101_spill] sm:$0xff] }
 0x53e   : > { %v3511_v20 = vmax.f32 %v11629_v22, %v9868_v38  ;;  %6641 = vpow2.f32 %v3733_v10  ;;  %v3739_v6 = vmul.f32 1.442695, %v3585_v61  ;;  %v3741_v63 = vmul.f32 1.442695, %v3586_v36  ;;  %3499 = vmax.xlane.f32.xlu1 %v3498_v51  ;;  %v11639_v61 = vld [vmem:[#allocation36_spill] sm:$0xff] }
 0x53f   : > { %v9902_v9 = vpop.eup %6627  ;;  %6643 = vpow2.f32 %v3735_v23  ;;  %v3948_v15 = vadd.f32 %v3947_v18, %v3946_v26  ;;  %v9912_v41 = vadd.f32 %v11634_v11, %v11523_v4  ;;  %v9916_v36 = vadd.f32 %v9679_v17, %v11522_v37  ;;  %v11638_v26 = vld [vmem:[#allocation37_spill] sm:$0xff]  ;;  %v11640_v11 = vld [vmem:[#allocation32_spill] sm:$0xff] }
 0x540   : > { %11630 = vst [vmem:[#allocation72_spill] sm:$0xff] %v9902_v9  ;;  %v9908_v3 = vpop.eup %6629  ;;  %v9920_v10 = vadd.f32 %v9687_v16, %v11522_v37  ;;  %6645 = vpow2.f32 %v3737_v55  ;;  %3944 = vadd.xlane.f32.xlu0 %v3943_v5  ;;  %v3415_v30 = vpop.xlane.xlu0 %3414  ;;  %v9931_v17 = vadd.f32 %v9693_v7, %v11522_v37  ;;  %v11646_v7 = vld [vmem:[#allocation55_spill] sm:$0xff] }
 0x541   : > { %11633 = vst [vmem:[#allocation99_spill] sm:$0xff] %v9908_v3  ;;  %11635 = vst [vmem:[#allocation33_spill] sm:$0xff] %v9912_v41  ;;  %v9922_v23 = vpop.eup %6631  ;;  %6647 = vpow2.f32 %v3739_v6  ;;  %v3587_v51 = vsub.f32 %v11638_v26, %v3415_v30  ;;  %v3588_v18 = vsub.f32 %v11639_v61, %v3415_v30  ;;  %v3589_v1 = vsub.f32 %v11640_v11, %v3415_v30  ;;  %v11644_v11 = vld [vmem:[#allocation35_spill] sm:$0xff] }
 0x542   : > { %11636 = vst [vmem:[#allocation29_spill] sm:$0xff] %v9916_v36  ;;  %11637 = vst [vmem:[#allocation57_spill] sm:$0xff] %v9922_v23  ;;  %v9927_v35 = vpop.eup %6633  ;;  %6649 = vpow2.f32 %v3741_v63  ;;  %v3420_v16 = vpop.xlane.xlu1 %3419  ;;  %v3951_v5 = vadd.f32 %v9908_v3, %v9902_v9  ;;  %v3952_v55 = vsel %vm1173_vm8, %v9922_v23, 0.0  ;;  %3949 = vadd.xlane.f32.xlu1 %v3948_v15  ;;  %v3512_v15 = vsel %vm1173_vm8, %v9920_v10, -inf }
 0x543   : > { %11641 = vst [vmem:[#allocation94_spill] sm:$0xff] %v9927_v35  ;;  %11642 = vst [vmem:[#allocation96_spill] sm:$0xff] %v9931_v17  ;;  %v9937_v6 = vpop.eup %6635  ;;  %v3743_v26 = vmul.f32 1.442695, %v3587_v51  ;;  %v3745_v61 = vmul.f32 1.442695, %v3588_v18  ;;  %v3590_v60 = vsub.f32 %v11644_v11, %v3420_v16  ;;  %v3591_v63 = vsub.f32 %v11646_v7, %v3420_v16 }
 0x544   : > { %11643 = vst [vmem:[#allocation98_spill] sm:$0xff] %v9937_v6  ;;  %v3747_v30 = vmul.f32 1.442695, %v3589_v1  ;;  %v9940_v44 = vpop.eup %6637  ;;  %3504 = vmax.xlane.f32.xlu0 %v9864_v21  ;;  %v3592_v38 = vsub.f32 %v11647_v54, %v3420_v16  ;;  %v3953_v9 = vadd.f32 %v3952_v55, %v3951_v5  ;;  %v3956_v23 = vadd.f32 %v9937_v6, %v9927_v35  ;;  %v11650_v16 = vld [vmem:[#allocation100_spill] sm:$0xff]  ;;  %v11651_v55 = vld [vmem:[#allocation103_spill] sm:$0xff] }
 0x545   : > { %11645 = vst [vmem:[#allocation101_spill] sm:$0xff] %v9940_v44  ;;  %6651 = vpow2.f32 %v3743_v26  ;;  %v3749_v51 = vmul.f32 1.442695, %v3590_v60  ;;  %v3957_v1 = vsel %vm1173_vm8, %v9940_v44, 0.0  ;;  %v9953_v18 = vadd.f32 %v9709_v31, %v11522_v37 }
 0x546   : > { %6653 = vpow2.f32 %v3745_v61  ;;  %v3751_v21 = vmul.f32 1.442695, %v3591_v63  ;;  %v3753_v11 = vmul.f32 1.442695, %v3592_v38  ;;  %v3526_v5 = vmax.f32 %v11650_v16, %v9912_v41  ;;  %3509 = vmax.xlane.f32.xlu1 %v3508_v13  ;;  %v11661_v41 = vld [vmem:[#allocation43_spill] sm:$0xff]  ;;  %v11662_v16 = vld [vmem:[#allocation42_spill] sm:$0xff] }
 0x547   : > { %11648 = vst [vmem:[#allocation37_spill] sm:$0xff] %v9953_v18  ;;  %v9955_v54 = vpop.eup %6639  ;;  %v9961_v7 = vadd.f32 %v11651_v55, %v11523_v4  ;;  %6655 = vpow2.f32 %v3747_v30  ;;  %v3958_v60 = vadd.f32 %v3957_v1, %v3956_v23  ;;  %v3522_v31 = vsel %vm1173_vm8, %v9916_v36, -inf  ;;  %v11654_v55 = vld [vmem:[#allocation34_spill] sm:$0xff]  ;;  %v11655_v30 = vld [vmem:[#allocation48_spill] sm:$0xff] }
 0x548   : > { %11649 = vst [vmem:[#allocation36_spill] sm:$0xff] %v9955_v54  ;;  %v9963_v26 = vpop.eup %6641  ;;  %v3513_v61 = vmax.f32 %v3511_v20, %v3512_v15  ;;  %v3527_v38 = vsel %vm1173_vm8, %v9931_v17, -inf  ;;  %6657 = vpow2.f32 %v3749_v51  ;;  %3954 = vadd.xlane.f32.xlu0 %v3953_v9  ;;  %v3425_v63 = vpop.xlane.xlu0 %3424  ;;  %v11656_v23 = vld [vmem:[#allocation44_spill] sm:$0xff]  ;;  %v3517_v20 = vsel %vm1173_vm8, %v9953_v18, -inf }
 0x549   : > { %11652 = vst [vmem:[#allocation32_spill] sm:$0xff] %v9963_v26  ;;  %v9969_v35 = vpop.eup %6643  ;;  %6659 = vpow2.f32 %v3751_v21  ;;  %v3593_v44 = vsub.f32 %v11654_v55, %v3425_v63  ;;  %v3594_v13 = vsub.f32 %v11655_v30, %v3425_v63  ;;  %v3595_v1 = vsub.f32 %v11656_v23, %v3425_v63  ;;  %v11659_v63 = vld [vmem:[#allocation46_spill] sm:$0xff] }
 0x54a   : > { %11653 = vst [vmem:[#allocation35_spill] sm:$0xff] %v9969_v35  ;;  %v9974_v6 = vpop.eup %6645  ;;  %6661 = vpow2.f32 %v3753_v11  ;;  %v3430_v15 = vpop.xlane.xlu1 %3429  ;;  %v3961_v9 = vadd.f32 %v9963_v26, %v9955_v54  ;;  %v3962_v51 = vsel %vm1173_vm8, %v9969_v35, 0.0  ;;  %3959 = vadd.xlane.f32.xlu1 %v3958_v60  ;;  %v11663_v35 = vmax.f32 %v11631_v47, %v9872_v2 }
 0x54b   : > { %11657 = vst [vmem:[#allocation55_spill] sm:$0xff] %v9974_v6  ;;  %v9982_v21 = vpop.eup %6647  ;;  %v3755_v55 = vmul.f32 1.442695, %v3593_v44  ;;  %v3757_v30 = vmul.f32 1.442695, %v3594_v13  ;;  %v3596_v23 = vsub.f32 %v11659_v63, %v3430_v15  ;;  %v3597_v11 = vsub.f32 %v11661_v41, %v3430_v15 }
 0x54c   : > { %11658 = vst [vmem:[#allocation51_spill] sm:$0xff] %v9982_v21  ;;  %v3759_v3 = vmul.f32 1.442695, %v3595_v1  ;;  %v9985_v17 = vpop.eup %6649  ;;  %3514 = vmax.xlane.f32.xlu0 %v3513_v61  ;;  %v3598_v36 = vsub.f32 %v11662_v16, %v3430_v15  ;;  %v3963_v18 = vadd.f32 %v3962_v51, %v3961_v9  ;;  %v3966_v54 = vadd.f32 %v9982_v21, %v9974_v6  ;;  %v11664_v1 = vld [vmem:[#allocation102_spill] sm:$0xff]  ;;  %v11666_v15 = vld [vmem:[#allocation105_spill] sm:$0xff] }
 0x54d   : > { %11660 = vst [vmem:[#allocation103_spill] sm:$0xff] %v9985_v17  ;;  %v3518_v60 = vmax.f32 %v11663_v35, %v3517_v20  ;;  %6663 = vpow2.f32 %v3755_v55  ;;  %v3761_v44 = vmul.f32 1.442695, %v3596_v23  ;;  %v3967_v13 = vsel %vm1173_vm8, %v9985_v17, 0.0 }
 0x54e   : > { %v3531_v61 = vmax.f32 %v11664_v1, %v9961_v7  ;;  %6665 = vpow2.f32 %v3757_v30  ;;  %v3763_v41 = vmul.f32 1.442695, %v3597_v11  ;;  %v3765_v63 = vmul.f32 1.442695, %v3598_v36 }
 0x54f   : > { %v9998_v16 = vpop.eup %6651  ;;  %v10002_v9 = vadd.f32 %v11666_v15, %v11523_v4  ;;  %v10006_v35 = vadd.f32 %v9638_v57, %v11523_v4  ;;  %6667 = vpow2.f32 %v3759_v3  ;;  %3519 = vmax.xlane.f32.xlu1 %v3518_v60  ;;  %v3968_v20 = vadd.f32 %v3967_v13, %v3966_v54  ;;  %v11671_v57 = vld [vmem:[#allocation41_spill] sm:$0xff]  ;;  %v11673_v13 = vld [vmem:[#allocation39_spill] sm:$0xff] }
 0x550   : > { %11665 = vst [vmem:[#allocation34_spill] sm:$0xff] %v9998_v16  ;;  %v10008_v51 = vpop.eup %6653  ;;  %v11669_v55 = vmax.f32 %v11632_v52, %v9883_v19  ;;  %v3528_v36 = vmax.f32 %v3526_v5, %v3527_v38  ;;  %v10015_v23 = vadd.f32 %v9759_v32, %v11522_v37  ;;  %6669 = vpow2.f32 %v3761_v44  ;;  %3964 = vadd.xlane.f32.xlu0 %v3963_v18  ;;  %v3435_v11 = vpop.xlane.xlu0 %3434  ;;  %v11672_v54 = vld [vmem:[#allocation45_spill] sm:$0xff] }
 0x551   : > { %11667 = vst [vmem:[#allocation48_spill] sm:$0xff] %v10006_v35  ;;  %11668 = vst [vmem:[#allocation44_spill] sm:$0xff] %v10008_v51  ;;  %v10017_v15 = vpop.eup %6655  ;;  %6671 = vpow2.f32 %v3763_v41  ;;  %v3599_v3 = vsub.f32 %v11671_v57, %v3435_v11  ;;  %v3600_v60 = vsub.f32 %v11672_v54, %v3435_v11  ;;  %v3601_v6 = vsub.f32 %v11673_v13, %v3435_v11  ;;  %v11677_v11 = vld [vmem:[#allocation50_spill] sm:$0xff] }
 0x552   : > { %v3523_v30 = vmax.f32 %v11669_v55, %v3522_v31  ;;  %11670 = vst [vmem:[#allocation46_spill] sm:$0xff] %v10017_v15  ;;  %v10022_v17 = vpop.eup %6657  ;;  %v10026_v5 = vadd.f32 %v9751_v24, %v11522_v37  ;;  %6673 = vpow2.f32 %v3765_v63  ;;  %v3440_v32 = vpop.xlane.xlu1 %3439  ;;  %v3971_v18 = vadd.f32 %v10008_v51, %v9998_v16  ;;  %v11679_v24 = vld [vmem:[#allocation54_spill] sm:$0xff]  ;;  %v11690_v51 = vld [vmem:[#allocation47_spill] sm:$0xff] }
 0x553   : > { %11674 = vst [vmem:[#allocation43_spill] sm:$0xff] %v10022_v17  ;;  %v3972_v31 = vsel %vm1173_vm8, %v10017_v15, 0.0  ;;  %v10032_v38 = vpop.eup %6659  ;;  %3969 = vadd.xlane.f32.xlu1 %v3968_v20  ;;  %v3767_v44 = vmul.f32 1.442695, %v3599_v3  ;;  %v3769_v41 = vmul.f32 1.442695, %v3600_v60  ;;  %v3602_v57 = vsub.f32 %v11677_v11, %v3440_v32 }
 0x554   : > { %11675 = vst [vmem:[#allocation42_spill] sm:$0xff] %v10026_v5  ;;  %11676 = vst [vmem:[#allocation102_spill] sm:$0xff] %v10032_v38  ;;  %v3771_v55 = vmul.f32 1.442695, %v3601_v6  ;;  %v10035_v54 = vpop.eup %6661  ;;  %3524 = vmax.xlane.f32.xlu0 %v3523_v30  ;;  %v3603_v63 = vsub.f32 %v11679_v24, %v3440_v32  ;;  %v11680_v13 = vld [vmem:[#allocation38_spill] sm:$0xff]  ;;  %v3973_v26 = vadd.f32 %v3972_v31, %v3971_v18  ;;  %v3532_v15 = vsel %vm1173_vm8, %v10015_v23, -inf }
 0x555   : > { %11678 = vst [vmem:[#allocation105_spill] sm:$0xff] %v10035_v54  ;;  %v3604_v21 = vsub.f32 %v11680_v13, %v3440_v32  ;;  %v3976_v16 = vadd.f32 %v10032_v38, %v10022_v17  ;;  %6675 = vpow2.f32 %v3767_v44  ;;  %v3773_v20 = vmul.f32 1.442695, %v3602_v57  ;;  %v11682_v18 = vld [vmem:[#allocation104_spill] sm:$0xff]  ;;  %v11685_v13 = vld [vmem:[#allocation49_spill] sm:$0xff] }
 0x556   : > { %v3977_v6 = vsel %vm1173_vm8, %v10035_v54, 0.0  ;;  %v10047_v3 = vadd.f32 %v9765_v12, %v11522_v37  ;;  %6677 = vpow2.f32 %v3769_v41  ;;  %v3775_v30 = vmul.f32 1.442695, %v3603_v63  ;;  %v11689_v38 = vld [vmem:[#allocation52_spill] sm:$0xff] }
 0x557   : > { %v3777_v60 = vmul.f32 1.442695, %v3604_v21  ;;  %v10049_v32 = vpop.eup %6663  ;;  %v3536_v31 = vmax.f32 %v11682_v18, %v10002_v9  ;;  %v3541_v11 = vmax.f32 %v9636_v40, %v10006_v35  ;;  %6679 = vpow2.f32 %v3771_v55  ;;  %3529 = vmax.xlane.f32.xlu1 %v3528_v36  ;;  %v11686_v36 = vld [vmem:[#allocation60_spill] sm:$0xff] }
 0x558   : > { %11681 = vst [vmem:[#allocation41_spill] sm:$0xff] %v10049_v32  ;;  %v3978_v44 = vadd.f32 %v3977_v6, %v3976_v16  ;;  %v10055_v57 = vpop.eup %6665  ;;  %v10059_v12 = vadd.f32 %v9646_v27, %v11523_v4  ;;  %v3542_v21 = vsel %vm1173_vm8, %v10026_v5, -inf  ;;  %v3533_v41 = vmax.f32 %v3531_v61, %v3532_v15  ;;  %3974 = vadd.xlane.f32.xlu0 %v3973_v26  ;;  %v3445_v24 = vpop.xlane.xlu0 %3444  ;;  %v11687_v6 = vld [vmem:[#allocation58_spill] sm:$0xff] }
 0x559   : > { %11683 = vst [vmem:[#allocation45_spill] sm:$0xff] %v10055_v57  ;;  %6681 = vpow2.f32 %v3773_v20  ;;  %v10063_v63 = vpop.eup %6667  ;;  %v3605_v55 = vsub.f32 %v11685_v13, %v3445_v24  ;;  %v3606_v16 = vsub.f32 %v11686_v36, %v3445_v24  ;;  %v3607_v17 = vsub.f32 %v11687_v6, %v3445_v24  ;;  %v11688_v24 = vld [vmem:[#allocation56_spill] sm:$0xff] }
 0x55a   : > { %11684 = vst [vmem:[#allocation39_spill] sm:$0xff] %v10063_v63  ;;  %6683 = vpow2.f32 %v3775_v30  ;;  %v10068_v54 = vpop.eup %6669  ;;  %v3537_v4 = vsel %vm1173_vm8, %v10047_v3, -inf  ;;  %v3450_v27 = vpop.xlane.xlu1 %3449  ;;  %v3981_v26 = vadd.f32 %v10055_v57, %v10049_v32  ;;  %v3982_v61 = vsel %vm1173_vm8, %v10063_v63, 0.0 }
 0x55b   : > { %6685 = vpow2.f32 %v3777_v60  ;;  %v10076_v15 = vpop.eup %6671  ;;  %3979 = vadd.xlane.f32.xlu1 %v3978_v44  ;;  %v3779_v20 = vmul.f32 1.442695, %v3605_v55  ;;  %v3781_v30 = vmul.f32 1.442695, %v3606_v16  ;;  %v3783_v13 = vmul.f32 1.442695, %v3607_v17 }
 0x55c   : > { %v3608_v36 = vsub.f32 %v11688_v24, %v3450_v27  ;;  %v10079_v6 = vpop.eup %6673  ;;  %3534 = vmax.xlane.f32.xlu0 %v3533_v41  ;;  %v3609_v60 = vsub.f32 %v11689_v38, %v3450_v27  ;;  %v3610_v5 = vsub.f32 %v11690_v51, %v3450_v27  ;;  %v3983_v35 = vadd.f32 %v3982_v61, %v3981_v26 }
 0x55d   : > { %v3986_v32 = vadd.f32 %v10076_v15, %v10068_v54  ;;  %v3538_v63 = vmax.f32 %v3536_v31, %v3537_v4  ;;  %6687 = vpow2.f32 %v3779_v20  ;;  %v3987_v44 = vsel %vm1173_vm8, %v10079_v6, 0.0  ;;  %v11696_v20 = vld [vmem:[#allocation59_spill] sm:$0xff] }
 0x55e   : > { %v3785_v57 = vmul.f32 1.442695, %v3608_v36  ;;  %v10089_v17 = vadd.f32 %v9763_v59, %v11522_v37  ;;  %6689 = vpow2.f32 %v3781_v30  ;;  %v3787_v41 = vmul.f32 1.442695, %v3609_v60  ;;  %v11694_v37 = vld [vmem:[#allocation83_spill] sm:$0xff]  ;;  %v11697_v60 = vld [vmem:[#allocation77_spill] sm:$0xff] }
 0x55f   : > { %v3789_v55 = vmul.f32 1.442695, %v3610_v5  ;;  %v10091_v38 = vpop.eup %6675  ;;  %6691 = vpow2.f32 %v3783_v13  ;;  %3539 = vmax.xlane.f32.xlu1 %v3538_v63  ;;  %v3988_v51 = vadd.f32 %v3987_v44, %v3986_v32  ;;  %v3546_v31 = vmax.f32 %v9644_v56, %v10059_v12  ;;  %v11695_v5 = vld [vmem:[#allocation79_spill] sm:$0xff] }
 0x560   : > { %11691 = vst [vmem:[#allocation50_spill] sm:$0xff] %v10091_v38  ;;  %v10093_v16 = vpop.eup %6677  ;;  %v3543_v4 = vmax.f32 %v3541_v11, %v3542_v21  ;;  %6693 = vpow2.f32 %v3785_v57  ;;  %3984 = vadd.xlane.f32.xlu0 %v3983_v35  ;;  %v3455_v27 = vpop.xlane.xlu0 %3454  ;;  %v3547_v32 = vsel %vm1173_vm8, %v10089_v17, -inf }
 0x561   : > { %11692 = vst [vmem:[#allocation54_spill] sm:$0xff] %v10093_v16  ;;  %v10097_v26 = vpop.eup %6679  ;;  %6695 = vpow2.f32 %v3787_v41  ;;  %v3611_v59 = vsub.f32 %v11694_v37, %v3455_v27  ;;  %v3612_v61 = vsub.f32 %v11695_v5, %v3455_v27  ;;  %v3613_v30 = vsub.f32 %v11696_v20, %v3455_v27  ;;  %v11698_v27 = vld [vmem:[#allocation84_spill] sm:$0xff]  ;;  %v11699_v37 = vld [vmem:[#allocation5_spill] sm:$0xff] }
 0x562   : > { %11693 = vst [vmem:[#allocation38_spill] sm:$0xff] %v10097_v26  ;;  %6697 = vpow2.f32 %v3789_v55  ;;  %v3460_v13 = vpop.xlane.xlu1 %3459  ;;  %v3991_v35 = vadd.f32 %v10093_v16, %v10091_v38  ;;  %v3992_v11 = vsel %vm1173_vm8, %v10097_v26, 0.0  ;;  %v3548_v26 = vmax.f32 %v3546_v31, %v3547_v32  ;;  %v11702_v31 = vld [vmem:[#allocation82_spill] sm:$0xff] }
 0x563   : > { %v10102_v63 = vpop.eup %6681  ;;  %3989 = vadd.xlane.f32.xlu1 %v3988_v51  ;;  %v3791_v21 = vmul.f32 1.442695, %v3611_v59  ;;  %v3793_v24 = vmul.f32 1.442695, %v3612_v61  ;;  %v3795_v36 = vmul.f32 1.442695, %v3613_v30  ;;  %v3614_v44 = vsub.f32 %v11697_v60, %v3460_v13 }
 0x564   : > { %v10110_v57 = vpop.eup %6683  ;;  %3544 = vmax.xlane.f32.xlu0 %v3543_v4  ;;  %v3615_v55 = vsub.f32 %v11698_v27, %v3460_v13  ;;  %v3616_v5 = vsub.f32 %v11699_v37, %v3460_v13  ;;  %v3993_v20 = vadd.f32 %v3992_v11, %v3991_v35  ;;  %v11703_v11 = vld [vmem:[#allocation7_spill] sm:$0xff] }
 0x565   : > { %v10113_v41 = vpop.eup %6685  ;;  %v3996_v38 = vadd.f32 %v10110_v57, %v10102_v63  ;;  %6699 = vpow2.f32 %v3791_v21  ;;  %v3797_v16 = vmul.f32 1.442695, %v3614_v44 }
 0x566   : > { %v3997_v51 = vsel %vm1173_vm8, %v10113_v41, 0.0  ;;  %6701 = vpow2.f32 %v3793_v24  ;;  %v3799_v59 = vmul.f32 1.442695, %v3615_v55  ;;  %v3801_v61 = vmul.f32 1.442695, %v3616_v5  ;;  %v11704_v24 = vld [vmem:[#allocation6_spill] sm:$0xff] }
 0x567   : > { %v10121_v30 = vpop.eup %6687  ;;  %6703 = vpow2.f32 %v3795_v36  ;;  %3549 = vmax.xlane.f32.xlu1 %v3548_v26  ;;  %v3998_v4 = vadd.f32 %v3997_v51, %v3996_v38 }
 0x568   : > { %11700 = vst [vmem:[#allocation104_spill] sm:$0xff] %v10121_v30  ;;  %v10123_v60 = vpop.eup %6689  ;;  %6705 = vpow2.f32 %v3797_v16  ;;  %3994 = vadd.xlane.f32.xlu0 %v3993_v20  ;;  %v3465_v13 = vpop.xlane.xlu0 %3464  ;;  %v11706_v20 = vld [vmem:[#allocation8_spill] sm:$0xff] }
 0x569   : > { %v10125_v35 = vpop.eup %6691  ;;  %6707 = vpow2.f32 %v3799_v59  ;;  %v3617_v32 = vsub.f32 %v11702_v31, %v3465_v13  ;;  %v3618_v21 = vsub.f32 %v11703_v11, %v3465_v13  ;;  %v3619_v44 = vsub.f32 %v11704_v24, %v3465_v13  ;;  %v11707_v13 = vld [vmem:[#allocation91_spill] sm:$0xff] }
 0x56a   : > { %11701 = vst [vmem:[#allocation49_spill] sm:$0xff] %v10125_v35  ;;  %v10130_v27 = vpop.eup %6693  ;;  %6709 = vpow2.f32 %v3801_v61  ;;  %v3470_v36 = vpop.xlane.xlu1 %3469  ;;  %v4001_v38 = vadd.f32 %v10123_v60, %v10121_v30  ;;  %v4002_v16 = vsel %vm1173_vm8, %v10125_v35, 0.0  ;;  %v11708_v61 = vld [vmem:[#allocation76_spill] sm:$0xff] }
 0x56b   : > { %11705 = vst [vmem:[#allocation60_spill] sm:$0xff] %v10130_v27  ;;  %v10136_v26 = vpop.eup %6695  ;;  %3999 = vadd.xlane.f32.xlu1 %v3998_v4  ;;  %v3803_v55 = vmul.f32 1.442695, %v3617_v32  ;;  %v3805_v37 = vmul.f32 1.442695, %v3618_v21  ;;  %v3620_v51 = vsub.f32 %v11706_v20, %v3470_v36  ;;  %v3621_v31 = vsub.f32 %v11707_v13, %v3470_v36 }
 0x56c   : > { %v3807_v5 = vmul.f32 1.442695, %v3619_v44  ;;  %v10139_v59 = vpop.eup %6697  ;;  %v3622_v11 = vsub.f32 %v11708_v61, %v3470_v36  ;;  %v4003_v24 = vadd.f32 %v4002_v16, %v4001_v38  ;;  %v4006_v30 = vadd.f32 %v10136_v26, %v10130_v27 }
 0x56d   : > { %6711 = vpow2.f32 %v3803_v55  ;;  %v3809_v35 = vmul.f32 1.442695, %v3620_v51  ;;  %v4007_v4 = vsel %vm1173_vm8, %v10139_v59, 0.0  ;;  %v3811_v32 = vmul.f32 1.442695, %v3621_v31 }
 0x56e   : > { %6713 = vpow2.f32 %v3805_v37  ;;  %v3813_v21 = vmul.f32 1.442695, %v3622_v11  ;;  %4004 = vadd.xlane.f32.xlu0 %v4003_v24  ;;  %v4008_v44 = vadd.f32 %v4007_v4, %v4006_v30 }
 0x56f   : > { %v10147_v20 = vpop.eup %6699  ;;  %6715 = vpow2.f32 %v3807_v5 }
 0x570   : > { %11709 = vst [vmem:[#allocation58_spill] sm:$0xff] %v10147_v20  ;;  %v10149_v13 = vpop.eup %6701  ;;  %6717 = vpow2.f32 %v3809_v35  ;;  %4009 = vadd.xlane.f32.xlu1 %v4008_v44 }
 0x571   : > { %11710 = vst [vmem:[#allocation56_spill] sm:$0xff] %v10149_v13  ;;  %v10151_v36 = vpop.eup %6703  ;;  %6719 = vpow2.f32 %v3811_v32  ;;  %v4011_v38 = vadd.f32 %v10149_v13, %v10147_v20 }
 0x572   : > { %v10155_v16 = vpop.eup %6705  ;;  %6721 = vpow2.f32 %v3813_v21  ;;  %v4012_v55 = vsel %vm1173_vm8, %v10151_v36, 0.0 }
 0x573   : > { %11711 = vst [vmem:[#allocation52_spill] sm:$0xff] %v10155_v16  ;;  %v10159_v30 = vpop.eup %6707  ;;  %v4013_v37 = vadd.f32 %v4012_v55, %v4011_v38 }
 0x574   : > { %11712 = vst [vmem:[#allocation47_spill] sm:$0xff] %v10159_v30  ;;  %v10161_v5 = vpop.eup %6709  ;;  %v4016_v35 = vadd.f32 %v10159_v30, %v10155_v16 }
 0x575   : > { %11713 = vst [vmem:[#allocation83_spill] sm:$0xff] %v10161_v5  ;;  %4014 = vadd.xlane.f32.xlu0 %v4013_v37  ;;  %v4017_v51 = vsel %vm1173_vm8, %v10161_v5, 0.0 }
 0x576   : > { %v4018_v31 = vadd.f32 %v4017_v51, %v4016_v35 }
 0x577   : > { %v10167_v61 = vpop.eup %6711 }
 0x578   : > { %11714 = vst [vmem:[#allocation79_spill] sm:$0xff] %v10167_v61  ;;  %v10169_v11 = vpop.eup %6713  ;;  %4019 = vadd.xlane.f32.xlu1 %v4018_v31 }
 0x579   : > { %11715 = vst [vmem:[#allocation59_spill] sm:$0xff] %v10169_v11  ;;  %v10171_v24 = vpop.eup %6715  ;;  %v4021_v4 = vadd.f32 %v10169_v11, %v10167_v61 }
 0x57a   : > { %11716 = vst [vmem:[#allocation77_spill] sm:$0xff] %v10171_v24  ;;  %v10175_v32 = vpop.eup %6717  ;;  %v4022_v21 = vsel %vm1173_vm8, %v10171_v24, 0.0 }
 0x57b   : > { %11717 = vst [vmem:[#allocation84_spill] sm:$0xff] %v10175_v32  ;;  %v10179_v44 = vpop.eup %6719  ;;  %v4023_v38 = vadd.f32 %v4022_v21, %v4021_v4  ;;  %v11720_v21 = vld [vmem:[#allocation106_spill] sm:$0xff] }
 0x57c   : > { %11718 = vst [vmem:[#allocation5_spill] sm:$0xff] %v10179_v44  ;;  %v10181_v55 = vpop.eup %6721  ;;  %v4026_v37 = vadd.f32 %v10179_v44, %v10175_v32  ;;  %v11721_v44 = vld [vmem:[#allocation92_spill] sm:$0xff] }
 0x57d   : > { %11719 = vst [vmem:[#allocation82_spill] sm:$0xff] %v10181_v55  ;;  %4024 = vadd.xlane.f32.xlu0 %v4023_v38  ;;  %v4027_v35 = vsel %vm1173_vm8, %v10181_v55, 0.0  ;;  %v11722_v55 = vld [vmem:[#allocation113_spill] sm:$0xff] }
 0x57e   : > { %v4028_v51 = vadd.f32 %v4027_v35, %v4026_v37  ;;  %v11723_v35 = vld [vmem:[#allocation109_spill] sm:$0xff] }
 0x580   : > { %4029 = vadd.xlane.f32.xlu1 %v4028_v51 }
 0x5b5   : > { %v3915_v31 = vpop.xlane.xlu0 %3914 }
 0x5b6   : > { %6723 = vrcp.f32 %v3915_v31 }
 0x5b7   : > { %v3920_v61 = vpop.xlane.xlu1 %3919 }
 0x5b8   : > { %6725 = vrcp.f32 %v3920_v61 }
 0x5b9   : > { %v3475_v11 = vpop.xlane.xlu0 %3474 }
 0x5ba   : > { %v3623_v20 = vsub.f32 %v9576_v62, %v3475_v11  ;;  %v3624_v4 = vsub.f32 %v9649_v25, %v3475_v11  ;;  %v3625_v16 = vsub.f32 %v11720_v21, %v3475_v11 }
 0x5bb   : > { %v3480_v38 = vpop.xlane.xlu1 %3479 }
 0x5bc   : > { %v3815_v24 = vmul.f32 1.442695, %v3623_v20  ;;  %v3817_v13 = vmul.f32 1.442695, %v3624_v4  ;;  %v3819_v32 = vmul.f32 1.442695, %v3625_v16  ;;  %v3626_v30 = vsub.f32 %v11721_v44, %v3480_v38 }
 0x5bd   : > { %v3627_v37 = vsub.f32 %v11722_v55, %v3480_v38  ;;  %v3628_v51 = vsub.f32 %v11723_v35, %v3480_v38  ;;  %v3925_v31 = vpop.xlane.xlu0 %3924  ;;  %v11724_v44 = vld [vmem:[#allocation107_spill] sm:$0xff]  ;;  %v11726_v35 = vld [vmem:[#allocation108_spill] sm:$0xff] }
 0x5be   : > { %6727 = vpow2.f32 %v3815_v24  ;;  %v3821_v61 = vmul.f32 1.442695, %v3626_v30 }
 0x5bf   : > { %6729 = vpow2.f32 %v3817_v13  ;;  %v3823_v27 = vmul.f32 1.442695, %v3627_v37  ;;  %v3825_v62 = vmul.f32 1.442695, %v3628_v51  ;;  %v3930_v25 = vpop.xlane.xlu1 %3929 }
 0x5c0   : > { %v6724_v5 = vpop.eup %6723  ;;  %6731 = vpow2.f32 %v3819_v32 }
 0x5c1   : > { %6733 = vpow2.f32 %v3821_v61  ;;  %v3485_v20 = vpop.xlane.xlu0 %3484  ;;  %v4152_v24 = vmul.f32 %v6724_v5, %v9711_v0  ;;  %v4153_v13 = vmul.f32 %v6724_v5, %v9725_v58  ;;  %v4151_v30 = vmul.f32 %v6724_v5, %v9695_v34 }
 0x5c2   : > { %6735 = vpow2.f32 %v3823_v27  ;;  %v3629_v16 = vsub.f32 %v9582_v48, %v3485_v20  ;;  %v3630_v11 = vsub.f32 %v9740_v49, %v3485_v20  ;;  %v3631_v55 = vsub.f32 %v11724_v44, %v3485_v20  ;;  %v6726_v4 = vpop.eup %6725  ;;  %v11725_v27 = vld [vmem:[#allocation117_spill] sm:$0xff]  ;;  %v11728_v20 = vld [vmem:[#allocation118_spill] sm:$0xff]  ;;  %v11729_v44 = vld [vmem:[#allocation115_spill] sm:$0xff] }
 0x5c3   : > { %6737 = vpow2.f32 %v3825_v62  ;;  %v3490_v37 = vpop.xlane.xlu1 %3489  ;;  %v11727_v62 = vld [vmem:[#allocation116_spill] sm:$0xff]  ;;  %v4156_v58 = vmul.f32 %v6726_v4, %v11728_v20  ;;  %v4154_v34 = vmul.f32 %v6726_v4, %v11729_v44 }
 0x5c4   : > { %6739 = vrcp.f32 %v3925_v31  ;;  %v3827_v32 = vmul.f32 1.442695, %v3629_v16  ;;  %v3829_v21 = vmul.f32 1.442695, %v3630_v11  ;;  %v3831_v38 = vmul.f32 1.442695, %v3631_v55 }
 0x5c5   : > { %6741 = vrcp.f32 %v3930_v25  ;;  %v3632_v48 = vsub.f32 %v9586_v28, %v3490_v37  ;;  %v3633_v49 = vsub.f32 %v11725_v27, %v3490_v37  ;;  %v3634_v51 = vsub.f32 %v11726_v35, %v3490_v37  ;;  %v3935_v61 = vpop.xlane.xlu0 %3934  ;;  %v11731_v44 = vld [vmem:[#allocation112_spill] sm:$0xff] }
 0x5c6   : > { %6743 = vpow2.f32 %v3827_v32  ;;  %v4155_v0 = vmul.f32 %v6726_v4, %v11727_v62  ;;  %v4273_v55 = vpack.c.bf16 %v4156_v58, %v4153_v13  ;;  %v4271_v27 = vpack.c.bf16 %v4154_v34, %v4151_v30 }
 0x5c7   : > { %6745 = vpow2.f32 %v3829_v21  ;;  %v3833_v5 = vmul.f32 1.442695, %v3632_v48  ;;  %v3835_v31 = vmul.f32 1.442695, %v3633_v49  ;;  %v3837_v16 = vmul.f32 1.442695, %v3634_v51  ;;  %v3940_v28 = vpop.xlane.xlu1 %3939 }
 0x5c8   : > { %v10205_v11 = vpop.eup %6727  ;;  %6747 = vpow2.f32 %v3831_v38  ;;  %v4272_v25 = vpack.c.bf16 %v4155_v0, %v4152_v24  ;;  %6108 = vmatprep.mubr.msk.bf16.mxu1 %vm1173_vm8, %v4273_v55  ;;  %v11730_v48 = vld [vmem:[#allocation111_spill] sm:$0xff] }
 0x5c9   : > { %v10207_v37 = vpop.eup %6729  ;;  %6749 = vpow2.f32 %v3833_v5  ;;  %v3495_v32 = vpop.xlane.xlu0 %3494 }
 0x5ca   : > { %v10209_v35 = vpop.eup %6731  ;;  %6751 = vpow2.f32 %v3835_v31  ;;  %4423 = vmatprep.mubr.bf16.mxu0 %v4272_v25  ;;  %v3635_v4 = vsub.f32 %v9590_v45, %v3495_v32  ;;  %v3636_v21 = vsub.f32 %v9781_v14, %v3495_v32  ;;  %v3637_v38 = vsub.f32 %v11730_v48, %v3495_v32 }
 0x5cb   : > { %v10215_v49 = vpop.eup %6733  ;;  %6753 = vpow2.f32 %v3837_v16  ;;  %4424 = vmatmul.mubr.bf16.vlgmr.msra.gmra.mrb[152].mxu0 %v4271_v27  ;;  %v4031_v24 = vadd.f32 %v10207_v37, %v10205_v11  ;;  %v4032_v13 = vsel %vm1173_vm8, %v10209_v35, 0.0  ;;  %v3500_v0 = vpop.xlane.xlu1 %3499 }
 0x5cc   : > { %v10221_v30 = vpop.eup %6735  ;;  %6755 = vrcp.f32 %v3935_v61  ;;  %v3839_v51 = vmul.f32 1.442695, %v3635_v4  ;;  %v3841_v62 = vmul.f32 1.442695, %v3636_v21  ;;  %v3843_v45 = vmul.f32 1.442695, %v3637_v38 }
 0x5cd   : > { %v10223_v14 = vpop.eup %6737  ;;  %6757 = vrcp.f32 %v3940_v28  ;;  %v3638_v20 = vsub.f32 %v9594_v43, %v3500_v0  ;;  %v3639_v58 = vsub.f32 %v9785_v46, %v3500_v0  ;;  %v3640_v34 = vsub.f32 %v11731_v44, %v3500_v0  ;;  %v3945_v5 = vpop.xlane.xlu0 %3944 }
 0x5ce   : > { %v6740_v31 = vpop.eup %6739  ;;  %6759 = vpow2.f32 %v3839_v51  ;;  %v4033_v16 = vadd.f32 %v4032_v13, %v4031_v24  ;;  %v4036_v61 = vadd.f32 %v10221_v30, %v10215_v49  ;;  %v4037_v25 = vsel %vm1173_vm8, %v10223_v14, 0.0  ;;  %v11733_v24 = vld [vmem:[#allocation120_spill] sm:$0xff] }
 0x5cf   : > { %v6742_v55 = vpop.eup %6741  ;;  %6761 = vpow2.f32 %v3841_v62  ;;  %v3845_v27 = vmul.f32 1.442695, %v3638_v20  ;;  %v3847_v28 = vmul.f32 1.442695, %v3639_v58  ;;  %v3849_v32 = vmul.f32 1.442695, %v3640_v34  ;;  %v3950_v4 = vpop.xlane.xlu1 %3949 }
 0x5d0   : > { %v10232_v43 = vpop.eup %6743  ;;  %6763 = vpow2.f32 %v3843_v45  ;;  %4034 = vadd.xlane.f32.xlu0 %v4033_v16  ;;  %v4038_v46 = vadd.f32 %v4037_v25, %v4036_v61  ;;  %v4158_v21 = vmul.f32 %v6740_v31, %v9775_v39  ;;  %v4161_v48 = vmul.f32 %v6742_v55, %v9798_v29  ;;  %v11734_v62 = vld [vmem:[#allocation119_spill] sm:$0xff]  ;;  %v11736_v16 = vld [vmem:[#allocation121_spill] sm:$0xff]  ;;  %v11737_v25 = vld [vmem:[#allocation110_spill] sm:$0xff] }
 0x5d1   : > { %11732 = vst [vmem:[#allocation7_spill] sm:$0xff] %v10232_v43  ;;  %v10236_v38 = vpop.eup %6745  ;;  %6765 = vpow2.f32 %v3845_v27  ;;  %v4159_v13 = vmul.f32 %v6740_v31, %v11733_v24  ;;  %v4162_v51 = vmul.f32 %v6742_v55, %v9802_v50  ;;  %v4157_v0 = vmul.f32 %v6740_v31, %v11734_v62  ;;  %v3505_v20 = vpop.xlane.xlu0 %3504 }
 0x5d2   : > { %v10241_v58 = vpop.eup %6747  ;;  %6767 = vpow2.f32 %v3847_v28  ;;  %4039 = vadd.xlane.f32.xlu1 %v4038_v46  ;;  %v4275_v45 = vpack.c.bf16 %v4161_v48, %v4158_v21  ;;  %v4160_v44 = vmul.f32 %v6742_v55, %v9791_v42  ;;  %v3641_v39 = vsub.f32 %v9598_v53, %v3505_v20 }
 0x5d3   : > { %v10245_v29 = vpop.eup %6749  ;;  %6769 = vpow2.f32 %v3849_v32  ;;  %v4276_v34 = vpack.c.bf16 %v4162_v51, %v4159_v13  ;;  %v3642_v61 = vsub.f32 %v11736_v16, %v3505_v20  ;;  %v3643_v50 = vsub.f32 %v11737_v25, %v3505_v20  ;;  %v3510_v46 = vpop.xlane.xlu1 %3509  ;;  %v11738_v13 = vld [vmem:[#allocation114_spill] sm:$0xff]  ;;  %v11740_v25 = vld [vmem:[#allocation123_spill] sm:$0xff] }
 0x5d4   : > { %11735 = vst [vmem:[#allocation6_spill] sm:$0xff] %v10245_v29  ;;  %v10249_v27 = vpop.eup %6751  ;;  %6771 = vrcp.f32 %v3945_v5  ;;  %4431 = vmatprep.mubr.bf16.mxu0 %v4275_v45  ;;  %v4274_v31 = vpack.c.bf16 %v4160_v44, %v4157_v0  ;;  %v3851_v28 = vmul.f32 1.442695, %v3641_v39  ;;  %v4041_v42 = vadd.f32 %v10236_v38, %v10232_v43 }
 0x5d5   : > { %v10253_v55 = vpop.eup %6753  ;;  %6773 = vrcp.f32 %v3950_v4  ;;  %6109 = vmatmul.mubr.msk.bf16.vlgmr.msra.gmra.mrb[208].mxu1 %vm1173_vm8, %v4276_v34  ;;  %v3853_v53 = vmul.f32 1.442695, %v3642_v61  ;;  %v3855_v32 = vmul.f32 1.442695, %v3643_v50  ;;  %v3644_v21 = vsub.f32 %v11613_v8, %v3510_v46  ;;  %v3955_v48 = vpop.xlane.xlu0 %3954 }
 0x5d6   : > { %v6756_v24 = vpop.eup %6755  ;;  %4432 = vmatmul.mubr.bf16.gmra.mrb[156].mxu0 %v4274_v31  ;;  %6775 = vpow2.f32 %v3851_v28  ;;  %v3645_v5 = vsub.f32 %v9831_v33, %v3510_v46  ;;  %v3646_v51 = vsub.f32 %v11738_v13, %v3510_v46  ;;  %v4042_v62 = vsel %vm1173_vm8, %v10241_v58, 0.0  ;;  %v11741_v31 = vld [vmem:[#allocation22_spill] sm:$0xff] }
 0x5d7   : > { %v6758_v0 = vpop.eup %6757  ;;  %6777 = vpow2.f32 %v3853_v53  ;;  %v3857_v4 = vmul.f32 1.442695, %v3644_v21  ;;  %v4043_v20 = vadd.f32 %v4042_v62, %v4041_v42  ;;  %v4046_v45 = vadd.f32 %v10249_v27, %v10245_v29  ;;  %v3960_v34 = vpop.xlane.xlu1 %3959  ;;  %v11742_v53 = vld [vmem:[#allocation124_spill] sm:$0xff]  ;;  %v11743_v21 = vld [vmem:[#allocation27_spill] sm:$0xff]  ;;  %v11744_v13 = vld [vmem:[#allocation122_spill] sm:$0xff] }
 0x5d8   : > { %v10263_v44 = vpop.eup %6759  ;;  %6779 = vpow2.f32 %v3855_v32  ;;  %v3859_v8 = vmul.f32 1.442695, %v3645_v5  ;;  %v3861_v39 = vmul.f32 1.442695, %v3646_v51  ;;  %v4047_v33 = vsel %vm1173_vm8, %v10253_v55, 0.0 }
 0x5d9   : > { %11739 = vst [vmem:[#allocation8_spill] sm:$0xff] %v10263_v44  ;;  %v10267_v16 = vpop.eup %6761  ;;  %6781 = vpow2.f32 %v3857_v4  ;;  %4044 = vadd.xlane.f32.xlu0 %v4043_v20  ;;  %v4048_v61 = vadd.f32 %v4047_v33, %v4046_v45  ;;  %v4164_v50 = vmul.f32 %v6756_v24, %v11740_v25  ;;  %v4167_v28 = vmul.f32 %v6758_v0, %v11741_v31  ;;  %v3515_v46 = vpop.xlane.xlu0 %3514  ;;  %v11746_v20 = vld [vmem:[#allocation28_spill] sm:$0xff] }
 0x5da   : > { %v10271_v42 = vpop.eup %6763  ;;  %6783 = vpow2.f32 %v3859_v8  ;;  %v4165_v32 = vmul.f32 %v6756_v24, %v11742_v53  ;;  %v4168_v5 = vmul.f32 %v6758_v0, %v11743_v21  ;;  %v4163_v51 = vmul.f32 %v6756_v24, %v11744_v13  ;;  %v11747_v8 = vld [vmem:[#allocation93_spill] sm:$0xff] }
 0x5db   : > { %v10276_v62 = vpop.eup %6765  ;;  %6785 = vpow2.f32 %v3861_v39  ;;  %4049 = vadd.xlane.f32.xlu1 %v4048_v61  ;;  %v4278_v4 = vpack.c.bf16 %v4167_v28, %v4164_v50  ;;  %v4166_v45 = vmul.f32 %v6758_v0, %v11746_v20  ;;  %v3647_v33 = vsub.f32 %v11629_v22, %v3515_v46 }
 0x5dc   : > { %11745 = vst [vmem:[#allocation91_spill] sm:$0xff] %v10276_v62  ;;  %v10280_v25 = vpop.eup %6767  ;;  %6787 = vrcp.f32 %v3955_v48  ;;  %v4279_v31 = vpack.c.bf16 %v4168_v5, %v4165_v32  ;;  %v3648_v29 = vsub.f32 %v11747_v8, %v3515_v46  ;;  %v3649_v53 = vsub.f32 %v9920_v10, %v3515_v46  ;;  %v3520_v21 = vpop.xlane.xlu1 %3519  ;;  %v11749_v32 = vld [vmem:[#allocation37_spill] sm:$0xff] }
 0x5dd   : > { %v10284_v43 = vpop.eup %6769  ;;  %6789 = vrcp.f32 %v3960_v34  ;;  %4439 = vmatprep.mubr.bf16.mxu0 %v4278_v4  ;;  %v4277_v24 = vpack.c.bf16 %v4166_v45, %v4163_v51  ;;  %v3863_v39 = vmul.f32 1.442695, %v3647_v33  ;;  %v3650_v61 = vsub.f32 %v11631_v47, %v3520_v21  ;;  %v3965_v0 = vpop.xlane.xlu0 %3964 }
 0x5de   : > { %11748 = vst [vmem:[#allocation76_spill] sm:$0xff] %v10284_v43  ;;  %v6772_v50 = vpop.eup %6771  ;;  %6112 = vmatprep.mubr.msk.bf16.mxu1 %vm1173_vm8, %v4279_v31  ;;  %v3865_v22 = vmul.f32 1.442695, %v3648_v29  ;;  %v3867_v48 = vmul.f32 1.442695, %v3649_v53  ;;  %v3651_v28 = vsub.f32 %v9872_v2, %v3520_v21  ;;  %v3652_v5 = vsub.f32 %v11749_v32, %v3520_v21  ;;  %v11751_v31 = vld [vmem:[#allocation26_spill] sm:$0xff] }
 0x5df   : > { %v6774_v10 = vpop.eup %6773  ;;  %4440 = vmatmul.mubr.bf16.gmra.mrb[160].mxu0 %v4277_v24  ;;  %6791 = vpow2.f32 %v3863_v39  ;;  %v3869_v46 = vmul.f32 1.442695, %v3650_v61  ;;  %v4051_v34 = vadd.f32 %v10267_v16, %v10263_v44  ;;  %v4052_v47 = vsel %vm1173_vm8, %v10271_v42, 0.0  ;;  %v11753_v39 = vld [vmem:[#allocation31_spill] sm:$0xff] }
 0x5e0   : > { %v10294_v13 = vpop.eup %6775  ;;  %6793 = vpow2.f32 %v3865_v22  ;;  %v3871_v51 = vmul.f32 1.442695, %v3651_v28  ;;  %v3873_v29 = vmul.f32 1.442695, %v3652_v5  ;;  %v4056_v2 = vadd.f32 %v10280_v25, %v10276_v62  ;;  %v3970_v4 = vpop.xlane.xlu1 %3969  ;;  %v11754_v22 = vld [vmem:[#allocation95_spill] sm:$0xff]  ;;  %v11758_v62 = vld [vmem:[#allocation97_spill] sm:$0xff] }
 0x5e1   : > { %11750 = vst [vmem:[#allocation106_spill] sm:$0xff] %v10294_v13  ;;  %v10298_v20 = vpop.eup %6777  ;;  %6795 = vpow2.f32 %v3867_v48  ;;  %v4053_v45 = vadd.f32 %v4052_v47, %v4051_v34  ;;  %v4057_v33 = vsel %vm1173_vm8, %v10284_v43, 0.0  ;;  %v4170_v8 = vmul.f32 %v6772_v50, %v11751_v31  ;;  %v3525_v53 = vpop.xlane.xlu0 %3524  ;;  %v11756_v48 = vld [vmem:[#allocation30_spill] sm:$0xff]  ;;  %v11757_v34 = vld [vmem:[#allocation75_spill] sm:$0xff] }
 0x5e2   : > { %v10303_v21 = vpop.eup %6779  ;;  %6797 = vpow2.f32 %v3869_v46  ;;  %v4058_v24 = vadd.f32 %v4057_v33, %v4056_v2  ;;  %v4173_v61 = vmul.f32 %v6774_v10, %v11753_v39  ;;  %v4171_v28 = vmul.f32 %v6772_v50, %v11754_v22 }
 0x5e3   : > { %11752 = vst [vmem:[#allocation92_spill] sm:$0xff] %v10303_v21  ;;  %v10307_v32 = vpop.eup %6781  ;;  %6799 = vpow2.f32 %v3871_v51  ;;  %4054 = vadd.xlane.f32.xlu0 %v4053_v45  ;;  %v4174_v5 = vmul.f32 %v6774_v10, %v11756_v48  ;;  %v4169_v47 = vmul.f32 %v6772_v50, %v11757_v34  ;;  %v4172_v44 = vmul.f32 %v6774_v10, %v11758_v62  ;;  %v11761_v48 = vld [vmem:[#allocation29_spill] sm:$0xff] }
 0x5e4   : > { %11755 = vst [vmem:[#allocation113_spill] sm:$0xff] %v10307_v32  ;;  %v10312_v31 = vpop.eup %6783  ;;  %6801 = vpow2.f32 %v3873_v29  ;;  %4059 = vadd.xlane.f32.xlu1 %v4058_v24  ;;  %v4281_v46 = vpack.c.bf16 %v4173_v61, %v4170_v8  ;;  %v3653_v2 = vsub.f32 %v11632_v52, %v3525_v53  ;;  %v3654_v33 = vsub.f32 %v9883_v19, %v3525_v53  ;;  %v3530_v39 = vpop.xlane.xlu1 %3529  ;;  %v11762_v29 = vld [vmem:[#allocation100_spill] sm:$0xff]  ;;  %v11763_v52 = vld [vmem:[#allocation33_spill] sm:$0xff] }
 0x5e5   : > { %11759 = vst [vmem:[#allocation109_spill] sm:$0xff] %v10312_v31  ;;  %v10316_v22 = vpop.eup %6785  ;;  %6803 = vrcp.f32 %v3965_v0  ;;  %v4282_v51 = vpack.c.bf16 %v4174_v5, %v4171_v28  ;;  %v4280_v45 = vpack.c.bf16 %v4172_v44, %v4169_v47  ;;  %v3655_v43 = vsub.f32 %v11761_v48, %v3525_v53  ;;  %v3975_v50 = vpop.xlane.xlu0 %3974  ;;  %v11764_v0 = vld [vmem:[#allocation96_spill] sm:$0xff]  ;;  %v11765_v48 = vld [vmem:[#allocation99_spill] sm:$0xff] }
 0x5e6   : > { %11760 = vst [vmem:[#allocation107_spill] sm:$0xff] %v10316_v22  ;;  %v6788_v34 = vpop.eup %6787  ;;  %6805 = vrcp.f32 %v3970_v4  ;;  %4447 = vmatprep.mubr.bf16.mxu0 %v4281_v46  ;;  %v3875_v62 = vmul.f32 1.442695, %v3653_v2  ;;  %v3877_v10 = vmul.f32 1.442695, %v3654_v33  ;;  %v3656_v8 = vsub.f32 %v11762_v29, %v3530_v39  ;;  %v11766_v29 = vld [vmem:[#allocation98_spill] sm:$0xff] }
 0x5e7   : > { %v6790_v24 = vpop.eup %6789  ;;  %6113 = vmatmul.mubr.msk.bf16.gmra.mrb[212].mxu1 %vm1173_vm8, %v4282_v51  ;;  %4448 = vmatmul.mubr.bf16.gmra.mrb[164].mxu0 %v4280_v45  ;;  %v3879_v19 = vmul.f32 1.442695, %v3655_v43  ;;  %v3657_v61 = vsub.f32 %v11763_v52, %v3530_v39  ;;  %v3658_v28 = vsub.f32 %v11764_v0, %v3530_v39  ;;  %v4061_v44 = vadd.f32 %v10298_v20, %v10294_v13 }
 0x5e8   : > { %6807 = vpow2.f32 %v3875_v62  ;;  %v3881_v53 = vmul.f32 1.442695, %v3656_v8  ;;  %v4062_v4 = vsel %vm1173_vm8, %v10303_v21, 0.0  ;;  %v4066_v5 = vadd.f32 %v10312_v31, %v10307_v32  ;;  %v3980_v47 = vpop.xlane.xlu1 %3979  ;;  %v11769_v32 = vld [vmem:[#allocation72_spill] sm:$0xff] }
 0x5e9   : > { %v10329_v46 = vpop.eup %6791  ;;  %6809 = vpow2.f32 %v3877_v10  ;;  %v3883_v43 = vmul.f32 1.442695, %v3657_v61  ;;  %v3885_v2 = vmul.f32 1.442695, %v3658_v28  ;;  %v4063_v33 = vadd.f32 %v4062_v4, %v4061_v44  ;;  %v3535_v51 = vpop.xlane.xlu0 %3534  ;;  %v11767_v10 = vld [vmem:[#allocation57_spill] sm:$0xff] }
 0x5ea   : > { %v10331_v39 = vpop.eup %6793  ;;  %6811 = vpow2.f32 %v3879_v19  ;;  %v4067_v45 = vsel %vm1173_vm8, %v10316_v22, 0.0  ;;  %v4176_v62 = vmul.f32 %v6788_v34, %v11765_v48  ;;  %v4179_v8 = vmul.f32 %v6790_v24, %v11766_v29  ;;  %v11768_v28 = vld [vmem:[#allocation101_spill] sm:$0xff]  ;;  %v11770_v22 = vld [vmem:[#allocation94_spill] sm:$0xff] }
 0x5eb   : > { %v10337_v52 = vpop.eup %6795  ;;  %6813 = vpow2.f32 %v3881_v53  ;;  %4064 = vadd.xlane.f32.xlu0 %v4063_v33  ;;  %v4068_v0 = vadd.f32 %v4067_v45, %v4066_v5  ;;  %v4177_v61 = vmul.f32 %v6788_v34, %v11767_v10  ;;  %v4180_v44 = vmul.f32 %v6790_v24, %v11768_v28 }
 0x5ec   : > { %v10341_v4 = vpop.eup %6797  ;;  %6815 = vpow2.f32 %v3883_v43  ;;  %v4284_v19 = vpack.c.bf16 %v4179_v8, %v4176_v62  ;;  %v4175_v13 = vmul.f32 %v6788_v34, %v11769_v32  ;;  %v4178_v31 = vmul.f32 %v6790_v24, %v11770_v22  ;;  %v3540_v48 = vpop.xlane.xlu1 %3539 }
 0x5ed   : > { %v10345_v21 = vpop.eup %6799  ;;  %6817 = vpow2.f32 %v3885_v2  ;;  %4069 = vadd.xlane.f32.xlu1 %v4068_v0  ;;  %v4285_v53 = vpack.c.bf16 %v4180_v44, %v4177_v61  ;;  %v3659_v5 = vsub.f32 %v11664_v1, %v3535_v51  ;;  %v3660_v33 = vsub.f32 %v9961_v7, %v3535_v51  ;;  %v3985_v45 = vpop.xlane.xlu0 %3984  ;;  %v11771_v44 = vld [vmem:[#allocation32_spill] sm:$0xff] }
 0x5ee   : > { %v10349_v29 = vpop.eup %6801  ;;  %6819 = vrcp.f32 %v3975_v50  ;;  %4455 = vmatprep.mubr.bf16.mxu0 %v4284_v19  ;;  %v4283_v43 = vpack.c.bf16 %v4178_v31, %v4175_v13  ;;  %v3661_v32 = vsub.f32 %v10015_v23, %v3535_v51  ;;  %v3662_v22 = vsub.f32 %v11682_v18, %v3540_v48 }
 0x5ef   : > { %v6804_v34 = vpop.eup %6803  ;;  %6821 = vrcp.f32 %v3980_v47  ;;  %6116 = vmatprep.mubr.msk.bf16.mxu1 %vm1173_vm8, %v4285_v53  ;;  %v3887_v24 = vmul.f32 1.442695, %v3659_v5  ;;  %v3889_v2 = vmul.f32 1.442695, %v3660_v33  ;;  %v3663_v1 = vsub.f32 %v10002_v9, %v3540_v48  ;;  %v11773_v33 = vld [vmem:[#allocation35_spill] sm:$0xff] }
 0x5f0   : > { %v6806_v62 = vpop.eup %6805  ;;  %4456 = vmatmul.mubr.bf16.gmra.mrb[168].mxu0 %v4283_v43  ;;  %v3891_v7 = vmul.f32 1.442695, %v3661_v32  ;;  %v3664_v8 = vsub.f32 %v10047_v3, %v3540_v48  ;;  %v3893_v50 = vmul.f32 1.442695, %v3662_v22  ;;  %v4071_v13 = vadd.f32 %v10331_v39, %v10329_v46  ;;  %v3990_v23 = vpop.xlane.xlu1 %3989  ;;  %v11772_v48 = vld [vmem:[#allocation51_spill] sm:$0xff] }
 0x5f1   : > { %6823 = vpow2.f32 %v3887_v24  ;;  %v3895_v18 = vmul.f32 1.442695, %v3663_v1  ;;  %v4072_v31 = vsel %vm1173_vm8, %v10337_v52, 0.0  ;;  %v4076_v47 = vadd.f32 %v10345_v21, %v10341_v4  ;;  %v3545_v10 = vpop.xlane.xlu0 %3544  ;;  %v11774_v32 = vld [vmem:[#allocation103_spill] sm:$0xff]  ;;  %v11775_v24 = vld [vmem:[#allocation36_spill] sm:$0xff] }
 0x5f2   : > { %v10362_v51 = vpop.eup %6807  ;;  %6825 = vpow2.f32 %v3889_v2  ;;  %v3897_v9 = vmul.f32 1.442695, %v3664_v8  ;;  %v4073_v0 = vadd.f32 %v4072_v31, %v4071_v13  ;;  %v4077_v3 = vsel %vm1173_vm8, %v10349_v29, 0.0  ;;  %v11776_v13 = vld [vmem:[#allocation55_spill] sm:$0xff] }
 0x5f3   : > { %v10366_v61 = vpop.eup %6809  ;;  %6827 = vpow2.f32 %v3891_v7  ;;  %v4078_v28 = vadd.f32 %v4077_v3, %v4076_v47  ;;  %v4182_v19 = vmul.f32 %v6804_v34, %v11771_v44  ;;  %v4185_v53 = vmul.f32 %v6806_v62, %v11772_v48  ;;  %v11778_v48 = vld [vmem:[#allocation42_spill] sm:$0xff] }
 0x5f4   : > { %v10370_v5 = vpop.eup %6811  ;;  %6829 = vpow2.f32 %v3893_v50  ;;  %4074 = vadd.xlane.f32.xlu0 %v4073_v0  ;;  %v4183_v43 = vmul.f32 %v6804_v34, %v11773_v33  ;;  %v4186_v22 = vmul.f32 %v6806_v62, %v11774_v32  ;;  %v4181_v2 = vmul.f32 %v6804_v34, %v11775_v24  ;;  %v3550_v1 = vpop.xlane.xlu1 %3549  ;;  %v11777_v0 = vld [vmem:[#allocation48_spill] sm:$0xff] }
 0x5f5   : > { %v10375_v8 = vpop.eup %6813  ;;  %6831 = vpow2.f32 %v3895_v18  ;;  %4079 = vadd.xlane.f32.xlu1 %v4078_v28  ;;  %v4287_v7 = vpack.c.bf16 %v4185_v53, %v4182_v19  ;;  %v4184_v31 = vmul.f32 %v6806_v62, %v11776_v13  ;;  %v3665_v47 = vsub.f32 %v9636_v40, %v3545_v10 }
 0x5f6   : > { %v10379_v3 = vpop.eup %6815  ;;  %6833 = vpow2.f32 %v3897_v9  ;;  %v4288_v50 = vpack.c.bf16 %v4186_v22, %v4183_v43  ;;  %v3666_v44 = vsub.f32 %v11777_v0, %v3545_v10  ;;  %v3667_v33 = vsub.f32 %v11778_v48, %v3545_v10  ;;  %v11780_v0 = vld [vmem:[#allocation102_spill] sm:$0xff] }
 0x5f7   : > { %v10383_v32 = vpop.eup %6817  ;;  %6835 = vrcp.f32 %v3985_v45  ;;  %4463 = vmatprep.mubr.bf16.mxu0 %v4287_v7  ;;  %v4286_v34 = vpack.c.bf16 %v4184_v31, %v4181_v2  ;;  %v3899_v18 = vmul.f32 1.442695, %v3665_v47  ;;  %v3668_v28 = vsub.f32 %v9644_v56, %v3550_v1  ;;  %v11779_v47 = vld [vmem:[#allocation44_spill] sm:$0xff] }
 0x5f8   : > { %v6820_v19 = vpop.eup %6819  ;;  %6837 = vrcp.f32 %v3990_v23  ;;  %6117 = vmatmul.mubr.msk.bf16.gmra.mrb[216].mxu1 %vm1173_vm8, %v4288_v50  ;;  %v3901_v40 = vmul.f32 1.442695, %v3666_v44  ;;  %v3903_v62 = vmul.f32 1.442695, %v3667_v33  ;;  %v3669_v9 = vsub.f32 %v10059_v12, %v3550_v1  ;;  %v3995_v23 = vpop.xlane.xlu0 %3994  ;;  %v11781_v33 = vld [vmem:[#allocation46_spill] sm:$0xff] }
 0x5f9   : > { %v6822_v53 = vpop.eup %6821  ;;  %4464 = vmatmul.mubr.bf16.gmra.mrb[172].mxu0 %v4286_v34  ;;  %6839 = vpow2.f32 %v3899_v18  ;;  %v3670_v10 = vsub.f32 %v10089_v17, %v3550_v1  ;;  %v3905_v43 = vmul.f32 1.442695, %v3668_v28  ;;  %v4081_v45 = vadd.f32 %v10366_v61, %v10362_v51  ;;  %v4000_v1 = vpop.xlane.xlu1 %3999  ;;  %v11782_v18 = vld [vmem:[#allocation105_spill] sm:$0xff] }
 0x5fa   : > { %6841 = vpow2.f32 %v3901_v40  ;;  %v3907_v22 = vmul.f32 1.442695, %v3669_v9  ;;  %v4082_v56 = vsel %vm1173_vm8, %v10370_v5, 0.0  ;;  %v4086_v24 = vadd.f32 %v10379_v3, %v10375_v8  ;;  %v11783_v40 = vld [vmem:[#allocation34_spill] sm:$0xff] }
 0x5fb   : > { %v10395_v2 = vpop.eup %6823  ;;  %6843 = vpow2.f32 %v3903_v62  ;;  %v3909_v12 = vmul.f32 1.442695, %v3670_v10  ;;  %v4083_v7 = vadd.f32 %v4082_v56, %v4081_v45  ;;  %v4087_v17 = vsel %vm1173_vm8, %v10383_v32, 0.0 }
 0x5fc   : > { %v10399_v13 = vpop.eup %6825  ;;  %6845 = vpow2.f32 %v3905_v43  ;;  %v4088_v31 = vadd.f32 %v4087_v17, %v4086_v24  ;;  %v4188_v50 = vmul.f32 %v6820_v19, %v11779_v47  ;;  %v4191_v44 = vmul.f32 %v6822_v53, %v11780_v0  ;;  %v11784_v43 = vld [vmem:[#allocation43_spill] sm:$0xff]  ;;  %v4005_v24 = vpop.xlane.xlu0 %4004 }
 0x5fd   : > { %v10403_v48 = vpop.eup %6827  ;;  %6847 = vpow2.f32 %v3907_v22  ;;  %4084 = vadd.xlane.f32.xlu0 %v4083_v7  ;;  %v4189_v34 = vmul.f32 %v6820_v19, %v11781_v33  ;;  %v4192_v28 = vmul.f32 %v6822_v53, %v11782_v18  ;;  %v4187_v62 = vmul.f32 %v6820_v19, %v11783_v40  ;;  %v4010_v47 = vpop.xlane.xlu1 %4009  ;;  %v11785_v33 = vld [vmem:[#allocation45_spill] sm:$0xff]  ;;  %v11787_v40 = vld [vmem:[#allocation39_spill] sm:$0xff] }
 0x5fe   : > { %v10408_v9 = vpop.eup %6829  ;;  %6849 = vpow2.f32 %v3909_v12  ;;  %4089 = vadd.xlane.f32.xlu1 %v4088_v31  ;;  %v4290_v10 = vpack.c.bf16 %v4191_v44, %v4188_v50  ;;  %v4190_v45 = vmul.f32 %v6822_v53, %v11784_v43  ;;  %v4091_v56 = vadd.f32 %v10399_v13, %v10395_v2 }
 0x5ff   : > { %v10413_v17 = vpop.eup %6831  ;;  %6851 = vrcp.f32 %v3995_v23  ;;  %v4291_v22 = vpack.c.bf16 %v4192_v28, %v4189_v34  ;;  %v4092_v7 = vsel %vm1173_vm8, %v10403_v48, 0.0 }
 0x600   : > { %v10417_v19 = vpop.eup %6833  ;;  %6853 = vrcp.f32 %v4000_v1  ;;  %4471 = vmatprep.mubr.bf16.mxu0 %v4290_v10  ;;  %v4289_v12 = vpack.c.bf16 %v4190_v45, %v4187_v62  ;;  %v4093_v31 = vadd.f32 %v4092_v7, %v4091_v56  ;;  %v4096_v53 = vadd.f32 %v10413_v17, %v10408_v9  ;;  %v11788_v56 = vld [vmem:[#allocation41_spill] sm:$0xff] }
 0x601   : > { %v6836_v50 = vpop.eup %6835  ;;  %6120 = vmatprep.mubr.msk.bf16.mxu1 %vm1173_vm8, %v4291_v22  ;;  %6855 = vrcp.f32 %v4005_v24  ;;  %v4097_v23 = vsel %vm1173_vm8, %v10417_v19, 0.0 }
 0x602   : > { %v6838_v0 = vpop.eup %6837  ;;  %4472 = vmatmul.mubr.bf16.gmra.mrb[176].mxu0 %v4289_v12  ;;  %4094 = vadd.xlane.f32.xlu0 %v4093_v31  ;;  %v4098_v44 = vadd.f32 %v4097_v23, %v4096_v53  ;;  %6857 = vrcp.f32 %v4010_v47  ;;  %v4194_v1 = vmul.f32 %v6836_v50, %v11785_v33  ;;  %v4015_v34 = vpop.xlane.xlu0 %4014  ;;  %v4195_v62 = vmul.f32 %v6836_v50, %v11787_v40 }
 0x603   : > { %v10425_v18 = vpop.eup %6839  ;;  %v4197_v28 = vmul.f32 %v6838_v0, %v10076_v15  ;;  %v4198_v10 = vmul.f32 %v6838_v0, %v10079_v6  ;;  %v4196_v43 = vmul.f32 %v6838_v0, %v10068_v54  ;;  %v4193_v24 = vmul.f32 %v6836_v50, %v11788_v56  ;;  %v11791_v56 = vld [vmem:[#allocation38_spill] sm:$0xff] }
 0x604   : > { %11786 = vst [vmem:[#allocation117_spill] sm:$0xff] %v10425_v18  ;;  %v10431_v45 = vpop.eup %6841  ;;  %4099 = vadd.xlane.f32.xlu1 %v4098_v44  ;;  %6859 = vrcp.f32 %v4015_v34 }
 0x605   : > { %v10434_v22 = vpop.eup %6843  ;;  %v4293_v7 = vpack.c.bf16 %v4197_v28, %v4194_v1  ;;  %v4294_v47 = vpack.c.bf16 %v4198_v10, %v4195_v62  ;;  %v4101_v12 = vadd.f32 %v10431_v45, %v10425_v18  ;;  %v4020_v15 = vpop.xlane.xlu1 %4019  ;;  %v4292_v53 = vpack.c.bf16 %v4196_v43, %v4193_v24  ;;  %v11790_v28 = vld [vmem:[#allocation54_spill] sm:$0xff] }
 0x606   : > { %v10438_v31 = vpop.eup %6845  ;;  %v4102_v54 = vsel %vm1173_vm8, %v10434_v22, 0.0  ;;  %6861 = vrcp.f32 %v4020_v15  ;;  %v11792_v15 = vld [vmem:[#allocation50_spill] sm:$0xff] }
 0x607   : > { %11789 = vst [vmem:[#allocation108_spill] sm:$0xff] %v10438_v31  ;;  %v10442_v6 = vpop.eup %6847  ;;  %4479 = vmatprep.mubr.bf16.mxu0 %v4293_v7  ;;  %6121 = vmatmul.mubr.msk.bf16.gmra.mrb[220].mxu1 %vm1173_vm8, %v4294_v47  ;;  %v4103_v50 = vadd.f32 %v4102_v54, %v4101_v12 }
 0x608   : > { %v10445_v23 = vpop.eup %6849  ;;  %v4106_v0 = vadd.f32 %v10442_v6, %v10438_v31 }
 0x609   : > { %v6852_v44 = vpop.eup %6851  ;;  %4104 = vadd.xlane.f32.xlu0 %v4103_v50  ;;  %v4107_v33 = vsel %vm1173_vm8, %v10445_v23, 0.0 }
 0x60a   : > { %v6854_v1 = vpop.eup %6853  ;;  %4480 = vmatmul.mubr.bf16.gmra.mrb[180].mxu0 %v4292_v53  ;;  %v4108_v34 = vadd.f32 %v4107_v33, %v4106_v0  ;;  %v4200_v40 = vmul.f32 %v6852_v44, %v11790_v28  ;;  %v4025_v62 = vpop.xlane.xlu0 %4024  ;;  %v4201_v24 = vmul.f32 %v6852_v44, %v11791_v56  ;;  %v4199_v54 = vmul.f32 %v6852_v44, %v11792_v15  ;;  %v11793_v56 = vld [vmem:[#allocation49_spill] sm:$0xff]  ;;  %v11798_v15 = vld [vmem:[#allocation56_spill] sm:$0xff] }
 0x60b   : > { %v6856_v10 = vpop.eup %6855  ;;  %v4203_v43 = vmul.f32 %v6854_v1, %v10110_v57  ;;  %v4204_v7 = vmul.f32 %v6854_v1, %v10113_v41  ;;  %v4202_v47 = vmul.f32 %v6854_v1, %v10102_v63  ;;  %6863 = vrcp.f32 %v4025_v62 }
 0x60c   : > { %v6858_v12 = vpop.eup %6857  ;;  %4109 = vadd.xlane.f32.xlu1 %v4108_v34  ;;  %v4206_v33 = vmul.f32 %v6856_v10, %v10123_v60  ;;  %v4207_v31 = vmul.f32 %v6856_v10, %v11793_v56  ;;  %v11795_v60 = vld [vmem:[#allocation60_spill] sm:$0xff] }
 0x60d   : > { %v4296_v50 = vpack.c.bf16 %v4203_v43, %v4200_v40  ;;  %v4297_v53 = vpack.c.bf16 %v4204_v7, %v4201_v24  ;;  %v4030_v0 = vpop.xlane.xlu1 %4029  ;;  %v4209_v28 = vmul.f32 %v6858_v12, %v10136_v26  ;;  %v4295_v57 = vpack.c.bf16 %v4202_v47, %v4199_v54  ;;  %v11794_v40 = vld [vmem:[#allocation83_spill] sm:$0xff] }
 0x60e   : > { %v6860_v18 = vpop.eup %6859  ;;  %6865 = vrcp.f32 %v4030_v0  ;;  %v4210_v41 = vmul.f32 %v6858_v12, %v10139_v59  ;;  %v4208_v26 = vmul.f32 %v6858_v12, %v11795_v60  ;;  %v11796_v43 = vld [vmem:[#allocation47_spill] sm:$0xff]  ;;  %v11797_v59 = vld [vmem:[#allocation104_spill] sm:$0xff]  ;;  %v11799_v0 = vld [vmem:[#allocation77_spill] sm:$0xff] }
 0x60f   : > { %4487 = vmatprep.mubr.bf16.mxu0 %v4296_v50  ;;  %6124 = vmatprep.mubr.msk.bf16.mxu1 %vm1173_vm8, %v4297_v53  ;;  %v4299_v63 = vpack.c.bf16 %v4209_v28, %v4206_v33  ;;  %v4213_v34 = vmul.f32 %v6860_v18, %v10151_v36  ;;  %v4205_v47 = vmul.f32 %v6856_v10, %v11797_v59  ;;  %v11800_v28 = vld [vmem:[#allocation82_spill] sm:$0xff]  ;;  %v11801_v12 = vld [vmem:[#allocation52_spill] sm:$0xff] }
 0x610   : > { %v6862_v44 = vpop.eup %6861  ;;  %v4300_v1 = vpack.c.bf16 %v4210_v41, %v4207_v31  ;;  %v4212_v54 = vmul.f32 %v6860_v18, %v11798_v15  ;;  %v11802_v41 = vld [vmem:[#allocation5_spill] sm:$0xff]  ;;  %v11803_v10 = vld [vmem:[#allocation58_spill] sm:$0xff] }
 0x611   : > { %v4216_v62 = vmul.f32 %v6862_v44, %v11794_v40  ;;  %v4215_v24 = vmul.f32 %v6862_v44, %v11796_v43  ;;  %v4298_v50 = vpack.c.bf16 %v4208_v26, %v4205_v47  ;;  %v4214_v56 = vmul.f32 %v6862_v44, %v11801_v12  ;;  %v11804_v40 = vld [vmem:[#allocation59_spill] sm:$0xff]  ;;  %v11805_v43 = vld [vmem:[#allocation84_spill] sm:$0xff] }
 0x612   : > { %4488 = vmatmul.mubr.bf16.gmra.mrb[184].mxu0 %v4295_v57  ;;  %6125 = vmatmul.mubr.msk.bf16.gmra.mrb[224].mxu1 %vm1173_vm8, %v4300_v1 }
 0x613   : > { %4495 = vmatprep.mubr.bf16.mxu0 %v4299_v63  ;;  %v4303_v7 = vpack.c.bf16 %v4216_v62, %v4213_v34  ;;  %v4302_v36 = vpack.c.bf16 %v4215_v24, %v4212_v54  ;;  %v4211_v34 = vmul.f32 %v6860_v18, %v11803_v10  ;;  %v11807_v10 = vld [vmem:[#allocation7_spill] sm:$0xff] }
 0x615   : > { %6128 = vmatprep.mubr.msk.bf16.mxu1 %vm1173_vm8, %v4303_v7  ;;  %v6864_v31 = vpop.eup %6863  ;;  %v4301_v60 = vpack.c.bf16 %v4214_v56, %v4211_v34  ;;  %v11806_v7 = vld [vmem:[#allocation79_spill] sm:$0xff] }
 0x616   : > { %v4219_v33 = vmul.f32 %v6864_v31, %v11799_v0  ;;  %v4218_v62 = vmul.f32 %v6864_v31, %v11804_v40  ;;  %v4217_v59 = vmul.f32 %v6864_v31, %v11806_v7  ;;  %v11808_v40 = vld [vmem:[#allocation6_spill] sm:$0xff] }
 0x618   : > { %v6866_v53 = vpop.eup %6865 }
 0x619   : > { %v4222_v57 = vmul.f32 %v6866_v53, %v11800_v28  ;;  %v4221_v63 = vmul.f32 %v6866_v53, %v11802_v41  ;;  %v4220_v24 = vmul.f32 %v6866_v53, %v11805_v43 }
 0x61a   : > { %4496 = vmatmul.mubr.bf16.gmra.mrb[188].mxu0 %v4298_v50 }
 0x61b   : > { %4503 = vmatprep.mubr.bf16.mxu0 %v4302_v36  ;;  %v4306_v1 = vpack.c.bf16 %v4222_v57, %v4219_v33  ;;  %v4305_v26 = vpack.c.bf16 %v4221_v63, %v4218_v62  ;;  %v4304_v47 = vpack.c.bf16 %v4220_v24, %v4217_v59 }
 0x61d   : > { %6129 = vmatmul.mubr.msk.bf16.gmra.mrb[228].mxu1 %vm1173_vm8, %v4306_v1 }
 0x622   : > { %4504 = vmatmul.mubr.bf16.gmra.mrb[192].mxu0 %v4301_v60 }
 0x623   : > { %4511 = vmatprep.mubr.bf16.mxu0 %v4305_v26 }
 0x62a   : > { %4512 = vmatmul.mubr.bf16.gmra.mrb[196].mxu0 %v4304_v47  ;;  %v11809_v47 = vld [vmem:[#allocation76_spill] sm:$0xff] }
 0x65d   : > { %v4035_v44 = vpop.xlane.xlu0 %4034 }
 0x65e   : > { %6867 = vrcp.f32 %v4035_v44 }
 0x65f   : > { %v4040_v15 = vpop.xlane.xlu1 %4039 }
 0x660   : > { %6869 = vrcp.f32 %v4040_v15  ;;  %v11810_v15 = vld [vmem:[#allocation8_spill] sm:$0xff] }
 0x666   : > { %v4045_v54 = vpop.xlane.xlu0 %4044 }
 0x667   : > { %6871 = vrcp.f32 %v4045_v54 }
 0x668   : > { %v6868_v18 = vpop.eup %6867  ;;  %v4050_v50 = vpop.xlane.xlu1 %4049 }
 0x669   : > { %6873 = vrcp.f32 %v4050_v50  ;;  %v4224_v0 = vmul.f32 %v6868_v18, %v10207_v37  ;;  %v4225_v33 = vmul.f32 %v6868_v18, %v10209_v35  ;;  %v4223_v28 = vmul.f32 %v6868_v18, %v10205_v11  ;;  %v11811_v18 = vld [vmem:[#allocation91_spill] sm:$0xff] }
 0x66a   : > { %v6870_v36 = vpop.eup %6869 }
 0x66b   : > { %v4227_v53 = vmul.f32 %v6870_v36, %v10221_v30  ;;  %v4228_v31 = vmul.f32 %v6870_v36, %v10223_v14  ;;  %v4226_v57 = vmul.f32 %v6870_v36, %v10215_v49 }
 0x66d   : > { %v4308_v12 = vpack.c.bf16 %v4227_v53, %v4224_v0  ;;  %v4309_v56 = vpack.c.bf16 %v4228_v31, %v4225_v33  ;;  %v4307_v41 = vpack.c.bf16 %v4226_v57, %v4223_v28  ;;  %v11812_v28 = vld [vmem:[#allocation92_spill] sm:$0xff] }
 0x66f   : > { %4519 = vmatprep.mubr.bf16.mxu0 %v4308_v12  ;;  %6132 = vmatprep.mubr.msk.bf16.mxu1 %vm1173_vm8, %v4309_v56  ;;  %v11813_v12 = vld [vmem:[#allocation109_spill] sm:$0xff] }
 0x670   : > { %v4055_v63 = vpop.xlane.xlu0 %4054  ;;  %4520 = vmatmul.mubr.bf16.gmra.mrb[200].mxu0 %v4307_v41  ;;  %v11814_v41 = vld [vmem:[#allocation107_spill] sm:$0xff] }
 0x671   : > { %v6872_v1 = vpop.eup %6871  ;;  %6875 = vrcp.f32 %v4055_v63  ;;  %v4060_v37 = vpop.xlane.xlu1 %4059 }
 0x672   : > { %6877 = vrcp.f32 %v4060_v37  ;;  %v4230_v30 = vmul.f32 %v6872_v1, %v10236_v38  ;;  %v4231_v14 = vmul.f32 %v6872_v1, %v10241_v58  ;;  %v4229_v34 = vmul.f32 %v6872_v1, %v11807_v10  ;;  %v11815_v1 = vld [vmem:[#allocation106_spill] sm:$0xff] }
 0x673   : > { %v6874_v35 = vpop.eup %6873 }
 0x674   : > { %v4233_v11 = vmul.f32 %v6874_v35, %v10249_v27  ;;  %v4234_v49 = vmul.f32 %v6874_v35, %v10253_v55  ;;  %v4232_v62 = vmul.f32 %v6874_v35, %v11808_v40  ;;  %v11816_v35 = vld [vmem:[#allocation113_spill] sm:$0xff] }
 0x676   : > { %v4311_v60 = vpack.c.bf16 %v4233_v11, %v4230_v30  ;;  %v4312_v26 = vpack.c.bf16 %v4234_v49, %v4231_v14  ;;  %v4310_v43 = vpack.c.bf16 %v4232_v62, %v4229_v34 }
 0x678   : > { %v4065_v24 = vpop.xlane.xlu0 %4064  ;;  %4527 = vmatprep.mubr.bf16.mxu0 %v4311_v60  ;;  %6133 = vmatmul.mubr.msk.bf16.gmra.mrb[232].mxu1 %vm1173_vm8, %v4312_v26 }
 0x679   : > { %6879 = vrcp.f32 %v4065_v24  ;;  %4528 = vmatmul.mubr.bf16.gmra.mrb[204].mxu0 %v4310_v43 }
 0x67a   : > { %v4070_v38 = vpop.xlane.xlu1 %4069 }
 0x67b   : > { %v6876_v7 = vpop.eup %6875  ;;  %6881 = vrcp.f32 %v4070_v38 }
 0x67c   : > { %v6878_v58 = vpop.eup %6877  ;;  %v4236_v27 = vmul.f32 %v6876_v7, %v10267_v16  ;;  %v4237_v55 = vmul.f32 %v6876_v7, %v10271_v42  ;;  %v4235_v54 = vmul.f32 %v6876_v7, %v11810_v15 }
 0x67d   : > { %v4239_v59 = vmul.f32 %v6878_v58, %v10280_v25  ;;  %v4240_v44 = vmul.f32 %v6878_v58, %v11809_v47  ;;  %v4238_v50 = vmul.f32 %v6878_v58, %v11811_v18 }
 0x67f   : > { %v4314_v36 = vpack.c.bf16 %v4239_v59, %v4236_v27  ;;  %v4315_v0 = vpack.c.bf16 %v4240_v44, %v4237_v55  ;;  %v4313_v33 = vpack.c.bf16 %v4238_v50, %v4235_v54 }
 0x681   : > { %v4075_v53 = vpop.xlane.xlu0 %4074  ;;  %4535 = vmatprep.mubr.bf16.mxu0 %v4314_v36  ;;  %6136 = vmatprep.mubr.msk.bf16.mxu1 %vm1173_vm8, %v4315_v0 }
 0x682   : > { %6883 = vrcp.f32 %v4075_v53  ;;  %v4080_v31 = vpop.xlane.xlu1 %4079  ;;  %4536 = vmatmul.mubr.bf16.gmra.mrb[208].mxu0 %v4313_v33 }
 0x683   : > { %v6880_v16 = vpop.eup %6879  ;;  %6885 = vrcp.f32 %v4080_v31 }
 0x684   : > { %v4242_v25 = vmul.f32 %v6880_v16, %v10298_v20  ;;  %v4243_v57 = vmul.f32 %v6880_v16, %v11812_v28  ;;  %v4241_v37 = vmul.f32 %v6880_v16, %v11815_v1 }
 0x685   : > { %v6882_v42 = vpop.eup %6881 }
 0x686   : > { %v4245_v56 = vmul.f32 %v6882_v42, %v11813_v12  ;;  %v4246_v63 = vmul.f32 %v6882_v42, %v11814_v41  ;;  %v4244_v30 = vmul.f32 %v6882_v42, %v11816_v35  ;;  %v11817_v12 = vld [vmem:[#allocation108_spill] sm:$0xff]  ;;  %v11818_v41 = vld [vmem:[#allocation117_spill] sm:$0xff] }
 0x688   : > { %v4317_v14 = vpack.c.bf16 %v4245_v56, %v4242_v25  ;;  %v4318_v11 = vpack.c.bf16 %v4246_v63, %v4243_v57  ;;  %v4316_v49 = vpack.c.bf16 %v4244_v30, %v4241_v37 }
 0x68a   : > { %v4085_v10 = vpop.xlane.xlu0 %4084  ;;  %4543 = vmatprep.mubr.bf16.mxu0 %v4317_v14  ;;  %6137 = vmatmul.mubr.msk.bf16.gmra.mrb[236].mxu1 %vm1173_vm8, %v4318_v11 }
 0x68b   : > { %6887 = vrcp.f32 %v4085_v10  ;;  %v4090_v34 = vpop.xlane.xlu1 %4089  ;;  %4544 = vmatmul.mubr.bf16.gmra.mrb[212].mxu0 %v4316_v49  ;;  %v11819_v10 = vld [vmem:[#allocation78_spill] sm:$0xff] }
 0x68c   : > { %v6884_v20 = vpop.eup %6883  ;;  %6889 = vrcp.f32 %v4090_v34  ;;  %v2721_v34 = vsel %vm461_vm0, %v11819_v10, 0.0 }
 0x68d   : > { %v6886_v40 = vpop.eup %6885  ;;  %v4248_v62 = vmul.f32 %v6884_v20, %v10331_v39  ;;  %v4249_v60 = vmul.f32 %v6884_v20, %v10337_v52  ;;  %v4247_v24 = vmul.f32 %v6884_v20, %v10329_v46  ;;  %v11821_v20 = vld [vmem:[#allocation80_spill] sm:$0xff] }
 0x68e   : > { %v4251_v26 = vmul.f32 %v6886_v40, %v10345_v21  ;;  %v4252_v43 = vmul.f32 %v6886_v40, %v10349_v29  ;;  %v4250_v38 = vmul.f32 %v6886_v40, %v10341_v4  ;;  %v2719_v40 = vsel %vm461_vm0, %v11821_v20, 0.0 }
 0x68f   : > { %v4095_v7 = vpop.xlane.xlu0 %4094 }
 0x690   : > { %6891 = vrcp.f32 %v4095_v7  ;;  %v4320_v58 = vpack.c.bf16 %v4251_v26, %v4248_v62  ;;  %v4321_v27 = vpack.c.bf16 %v4252_v43, %v4249_v60  ;;  %v4319_v55 = vpack.c.bf16 %v4250_v38, %v4247_v24 }
 0x691   : > { %v4100_v59 = vpop.xlane.xlu1 %4099 }
 0x692   : > { %6893 = vrcp.f32 %v4100_v59  ;;  %4551 = vmatprep.mubr.bf16.mxu0 %v4320_v58  ;;  %6140 = vmatprep.mubr.msk.bf16.mxu1 %vm1173_vm8, %v4321_v27 }
 0x693   : > { %4552 = vmatmul.mubr.bf16.gmra.mrb[216].mxu0 %v4319_v55  ;;  %v11822_v55 = vld [vmem:[#allocation9_spill] sm:$0xff] }
 0x694   : > { %v2722_v59 = vsel %vm461_vm0, %v11822_v55, 0.0 }
 0x695   : > { %v6888_v39 = vpop.eup %6887 }
 0x696   : > { %v6890_v52 = vpop.eup %6889  ;;  %v4105_v21 = vpop.xlane.xlu0 %4104  ;;  %v4254_v29 = vmul.f32 %v6888_v39, %v10366_v61  ;;  %v4255_v46 = vmul.f32 %v6888_v39, %v10370_v5  ;;  %v4253_v4 = vmul.f32 %v6888_v39, %v10362_v51  ;;  %v11823_v39 = vld [vmem:[#allocation62_spill] sm:$0xff] }
 0x697   : > { %6895 = vrcp.f32 %v4105_v21  ;;  %v4257_v47 = vmul.f32 %v6890_v52, %v10379_v3  ;;  %v4258_v44 = vmul.f32 %v6890_v52, %v10383_v32  ;;  %v4256_v15 = vmul.f32 %v6890_v52, %v10375_v8 }
 0x698   : > { %v2720_v52 = vsel %vm461_vm0, %v11823_v39, 0.0 }
 0x699   : > { %v4110_v54 = vpop.xlane.xlu1 %4109  ;;  %v4323_v18 = vpack.c.bf16 %v4257_v47, %v4254_v29  ;;  %v4324_v50 = vpack.c.bf16 %v4258_v44, %v4255_v46  ;;  %v4322_v36 = vpack.c.bf16 %v4256_v15, %v4253_v4 }
 0x69a   : > { %v6892_v0 = vpop.eup %6891  ;;  %6897 = vrcp.f32 %v4110_v54 }
 0x69b   : > { %4559 = vmatprep.mubr.bf16.mxu0 %v4323_v18  ;;  %6141 = vmatmul.mubr.msk.bf16.gmra.mrb[240].mxu1 %vm1173_vm8, %v4324_v50  ;;  %v4260_v51 = vmul.f32 %v6892_v0, %v10399_v13  ;;  %v4261_v3 = vmul.f32 %v6892_v0, %v10403_v48  ;;  %v4259_v53 = vmul.f32 %v6892_v0, %v10395_v2 }
 0x69c   : > { %v6894_v61 = vpop.eup %6893  ;;  %4560 = vmatmul.mubr.bf16.gmra.mrb[220].mxu0 %v4322_v36 }
 0x69d   : > { %v4263_v5 = vmul.f32 %v6894_v61, %v10413_v17  ;;  %v4264_v32 = vmul.f32 %v6894_v61, %v10417_v19  ;;  %v4262_v8 = vmul.f32 %v6894_v61, %v10408_v9 }
 0x69e   : > { %v4425_v33 = vpop.f32.mrb[152].mxu0 }
 0x69f   : > { %v4427_v31 = vpop.f32.mrb[153].mxu0  ;;  %v4326_v16 = vpack.c.bf16 %v4263_v5, %v4260_v51  ;;  %v4327_v42 = vpack.c.bf16 %v4264_v32, %v4261_v3  ;;  %v4325_v28 = vpack.c.bf16 %v4262_v8, %v4259_v53 }
 0x6a0   : > { %v4428_v25 = vpop.f32.mrb[154].mxu0 }
 0x6a1   : > { %v6896_v57 = vpop.eup %6895  ;;  %4567 = vmatprep.mubr.bf16.mxu0 %v4326_v16  ;;  %6144 = vmatprep.mubr.msk.bf16.mxu1 %vm1173_vm8, %v4327_v42  ;;  %v4430_v13 = vpop.f32.mrb[155].mxu0 }
 0x6a2   : > { %v4266_v48 = vmul.f32 %v6896_v57, %v10431_v45  ;;  %v4267_v9 = vmul.f32 %v6896_v57, %v10434_v22  ;;  %v4265_v63 = vmul.f32 %v6896_v57, %v11818_v41 }
 0x6a4   : > { %v6898_v17 = vpop.eup %6897  ;;  %4568 = vmatmul.mubr.bf16.gmra.mrb[224].mxu0 %v4325_v28  ;;  %v11825_v28 = vld [vmem:[#allocation81_spill] sm:$0xff] }
 0x6a5   : > { %v4269_v19 = vmul.f32 %v6898_v17, %v10442_v6  ;;  %v4270_v2 = vmul.f32 %v6898_v17, %v10445_v23  ;;  %v4268_v56 = vmul.f32 %v6898_v17, %v11817_v12  ;;  %v2723_v57 = vsel %vm461_vm0, %v11825_v28, 0.0 }
 0x6a7   : > { %v4329_v1 = vpack.c.bf16 %v4269_v19, %v4266_v48  ;;  %v4330_v37 = vpack.c.bf16 %v4270_v2, %v4267_v9  ;;  %v4328_v30 = vpack.c.bf16 %v4268_v56, %v4265_v63  ;;  %v11826_v19 = vld [vmem:[#allocation90_spill] sm:$0xff]  ;;  %v11827_v56 = vld [vmem:[#allocation63_spill] sm:$0xff] }
 0x6a8   : > { %v6110_v35 = vpop.f32.mrb[208].mxu1  ;;  %v2726_v9 = vsel %vm461_vm0, %v11826_v19, 0.0  ;;  %v2724_v41 = vsel %vm461_vm0, %v11827_v56, 0.0 }
 0x6a9   : > { %v4433_v14 = vpop.f32.mrb[156].mxu0  ;;  %v4618_v11 = vpop.f32.mrb[209].mxu1  ;;  %4575 = vmatprep.mubr.bf16.mxu0 %v4329_v1  ;;  %6145 = vmatmul.mubr.msk.bf16.gmra.mrb[244].mxu1 %vm1173_vm8, %v4330_v37 }
 0x6aa   : > { %v4627_v45 = vadd.f32 %v6110_v35, %v4433_v14  ;;  %v4619_v6 = vadd.f32 %v4618_v11, %v4425_v33  ;;  %v4435_v49 = vpop.f32.mrb[157].mxu0  ;;  %v6111_v22 = vpop.f32.mrb[210].mxu1  ;;  %v11824_v33 = vld [vmem:[#allocation89_spill] sm:$0xff] }
 0x6ab   : > { %v4436_v62 = vpop.f32.mrb[158].mxu0  ;;  %v4621_v60 = vpop.f32.mrb[211].mxu1  ;;  %v2725_v53 = vsel %vm461_vm0, %v11824_v33, 0.0 }
 0x6ac   : > { %v4779_v26 = vsel %vm2759_vm1, %v4627_v45, 0.0  ;;  %v4777_v43 = vsel %vm2759_vm1, %v4619_v6, 0.0  ;;  %v4630_v24 = vadd.f32 %v6111_v22, %v4436_v62  ;;  %4576 = vmatmul.mubr.bf16.gmra.mrb[228].mxu0 %v4328_v30  ;;  %v4622_v38 = vadd.f32 %v4621_v60, %v4428_v25  ;;  %v4438_v7 = vpop.f32.mrb[159].mxu0  ;;  %v11828_v60 = vld [vmem:[#allocation64_spill] sm:$0xff] }
 0x6ad   : > { %v4819_v58 = vadd.f32 %v4779_v26, %v2721_v34  ;;  %v4817_v27 = vadd.f32 %v4777_v43, %v2719_v40  ;;  %v2729_v26 = vsel %vm461_vm0, %v11828_v60, 0.0  ;;  %v11829_v43 = vld [vmem:[#allocation12_spill] sm:$0xff] }
 0x6ae   : > { %v4780_v21 = vsel %vm2759_vm1, %v4630_v24, 0.0  ;;  %v4778_v29 = vsel %vm2759_vm1, %v4622_v38, 0.0  ;;  %v2727_v24 = vsel %vm461_vm0, %v11829_v43, 0.0 }
 0x6af   : > { %v4820_v46 = vadd.f32 %v4780_v21, %v2722_v59  ;;  %v4818_v4 = vadd.f32 %v4778_v29, %v2720_v52  ;;  %v11830_v29 = vld [vmem:[#allocation86_spill] sm:$0xff] }
 0x6b1   : > { %v5637_v47 = vpack.c.bf16 %v4820_v46, %v4819_v58  ;;  %v5632_v44 = vpack.c.bf16 %v4818_v4, %v4817_v27  ;;  %v2730_v46 = vsel %vm461_vm0, %v11830_v29, 0.0  ;;  %v11831_v4 = vld [vmem:[#allocation61_spill] sm:$0xff] }
 0x6b2   : > { %v4441_v15 = vpop.f32.mrb[160].mxu0 }
 0x6b3   : > { %5729 = vst [vmem:[%s10557_s6 + $0x8] sm:$0xff] %v5637_v47   ;;  %5633 = vst [vmem:[%s10557_s6] sm:$0xff] %v5632_v44   ;;  %v4443_v54 = vpop.f32.mrb[161].mxu0  ;;  %v2728_v47 = vsel %vm461_vm0, %v11831_v4, 0.0 }
 0x6b4   : > { %v4444_v18 = vpop.f32.mrb[162].mxu0 }
 0x6b5   : > { %v4446_v50 = vpop.f32.mrb[163].mxu0 }
 0x6ba   : > { %v6114_v36 = vpop.f32.mrb[212].mxu1  ;;  %v4449_v0 = vpop.f32.mrb[164].mxu0  ;;  %v5083_v23 = vld [vmem:[%s10557_s6] sm:$0xf] (%p7096_p6) }
 0x6bb   : > { %v4643_v61 = vadd.f32 %v6114_v36, %v4449_v0  ;;  %v4634_v51 = vpop.f32.mrb[213].mxu1  ;;  %v4451_v5 = vpop.f32.mrb[165].mxu0  ;;  %5084 = vst [vmem:[%s10776_s22] sm:$0xf] (%p7096_p6), %v5083_v23 }
 0x6bc   : > { %v4635_v3 = vadd.f32 %v4634_v51, %v4441_v15  ;;  %v6115_v32 = vpop.f32.mrb[214].mxu1  ;;  %v4452_v8 = vpop.f32.mrb[166].mxu0 }
 0x6bd   : > { %v4783_v31 = vsel %vm2759_vm1, %v4643_v61, 0.0  ;;  %v4646_v16 = vadd.f32 %v6115_v32, %v4452_v8  ;;  %v4637_v42 = vpop.f32.mrb[215].mxu1  ;;  %v4454_v25 = vpop.f32.mrb[167].mxu0 }
 0x6be   : > { %v4823_v13 = vadd.f32 %v4783_v31, %v2725_v53  ;;  %v4781_v17 = vsel %vm2759_vm1, %v4635_v3, 0.0  ;;  %v4638_v48 = vadd.f32 %v4637_v42, %v4444_v18 }
 0x6bf   : > { %v4821_v2 = vadd.f32 %v4781_v17, %v2723_v57  ;;  %v4784_v12 = vsel %vm2759_vm1, %v4646_v16, 0.0  ;;  %v11832_v16 = vld [vmem:[#allocation88_spill] sm:$0xff]  ;;  %v11833_v17 = vld [vmem:[#allocation11_spill] sm:$0xff] }
 0x6c0   : > { %v4824_v63 = vadd.f32 %v4784_v12, %v2726_v9  ;;  %v4782_v1 = vsel %vm2759_vm1, %v4638_v48, 0.0  ;;  %v2731_v42 = vsel %vm461_vm0, %v11832_v16, 0.0  ;;  %v2732_v48 = vsel %vm461_vm0, %v11833_v17, 0.0 }
 0x6c1   : > { %v4822_v37 = vadd.f32 %v4782_v1, %v2724_v41 }
 0x6c2   : > { %v5647_v35 = vpack.c.bf16 %v4824_v63, %v4823_v13 }
 0x6c3   : > { %v5642_v30 = vpack.c.bf16 %v4822_v37, %v4821_v2  ;;  %v4457_v14 = vpop.f32.mrb[168].mxu0  ;;  %v11834_v2 = vld [vmem:[#allocation66_spill] sm:$0xff] }
 0x6c4   : > { %5731 = vst [vmem:[%s10557_s6 + $0x18] sm:$0xff] %v5647_v35   ;;  %v4459_v11 = vpop.f32.mrb[169].mxu0  ;;  %v2733_v12 = vsel %vm461_vm0, %v11834_v2, 0.0 }
 0x6c5   : > { %5730 = vst [vmem:[%s10557_s6 + $0x10] sm:$0xff] %v5642_v30   ;;  %v4460_v45 = vpop.f32.mrb[170].mxu0  ;;  %v11835_v30 = vld [vmem:[#allocation16_spill] sm:$0xff] }
 0x6c6   : > { %v4462_v6 = vpop.f32.mrb[171].mxu0 }
 0x6cb   : > { %v6118_v49 = vpop.f32.mrb[216].mxu1 }
 0x6cc   : > { %v4465_v22 = vpop.f32.mrb[172].mxu0  ;;  %v4650_v10 = vpop.f32.mrb[217].mxu1 }
 0x6cd   : > { %v4659_v34 = vadd.f32 %v6118_v49, %v4465_v22  ;;  %v4651_v20 = vadd.f32 %v4650_v10, %v4457_v14  ;;  %v4467_v40 = vpop.f32.mrb[173].mxu0  ;;  %v6119_v62 = vpop.f32.mrb[218].mxu1  ;;  %v2734_v14 = vsel %vm461_vm0, %v11835_v30, 0.0  ;;  %v11842_v30 = vld [vmem:[#allocation13_spill] sm:$0xff] }
 0x6ce   : > { %v4468_v38 = vpop.f32.mrb[174].mxu0  ;;  %v4653_v7 = vpop.f32.mrb[219].mxu1 }
 0x6cf   : > { %v4787_v58 = vsel %vm2759_vm1, %v4659_v34, 0.0  ;;  %v4785_v27 = vsel %vm2759_vm1, %v4651_v20, 0.0  ;;  %v4662_v55 = vadd.f32 %v6119_v62, %v4468_v38  ;;  %v4654_v59 = vadd.f32 %v4653_v7, %v4460_v45  ;;  %v4470_v39 = vpop.f32.mrb[175].mxu0 }
 0x6d0   : > { %v4827_v52 = vadd.f32 %v4787_v58, %v2729_v26  ;;  %v4825_v21 = vadd.f32 %v4785_v27, %v2727_v24  ;;  %v11836_v24 = vld [vmem:[#allocation87_spill] sm:$0xff] }
 0x6d1   : > { %v4788_v44 = vsel %vm2759_vm1, %v4662_v55, 0.0  ;;  %v4786_v15 = vsel %vm2759_vm1, %v4654_v59, 0.0  ;;  %v2735_v38 = vsel %vm461_vm0, %v11836_v24, 0.0  ;;  %v11837_v55 = vld [vmem:[#allocation10_spill] sm:$0xff] }
 0x6d2   : > { %v4828_v54 = vadd.f32 %v4788_v44, %v2730_v46  ;;  %v4826_v18 = vadd.f32 %v4786_v15, %v2728_v47  ;;  %v2736_v59 = vsel %vm461_vm0, %v11837_v55, 0.0  ;;  %v11838_v44 = vld [vmem:[#allocation15_spill] sm:$0xff] }
 0x6d3   : > { %v2737_v15 = vsel %vm461_vm0, %v11838_v44, 0.0 }
 0x6d4   : > { %v5657_v50 = vpack.c.bf16 %v4828_v54, %v4827_v52  ;;  %v5652_v36 = vpack.c.bf16 %v4826_v18, %v4825_v21 }
 0x6d5   : > { %v4473_v0 = vpop.f32.mrb[176].mxu0 }
 0x6d6   : > { %5733 = vst [vmem:[%s10557_s6 + $0x28] sm:$0xff] %v5657_v50   ;;  %5732 = vst [vmem:[%s10557_s6 + $0x20] sm:$0xff] %v5652_v36   ;;  %v4475_v61 = vpop.f32.mrb[177].mxu0 }
 0x6d7   : > { %v4476_v51 = vpop.f32.mrb[178].mxu0 }
 0x6d8   : > { %v4478_v5 = vpop.f32.mrb[179].mxu0 }
 0x6da   : > { %v6122_v3 = vpop.f32.mrb[220].mxu1 }
 0x6db   : > { %v4666_v32 = vpop.f32.mrb[221].mxu1 }
 0x6dc   : > { %v4667_v8 = vadd.f32 %v4666_v32, %v4473_v0  ;;  %v6123_v33 = vpop.f32.mrb[222].mxu1 }
 0x6dd   : > { %v4481_v53 = vpop.f32.mrb[180].mxu0  ;;  %v4669_v31 = vpop.f32.mrb[223].mxu1 }
 0x6de   : > { %v4675_v25 = vadd.f32 %v6122_v3, %v4481_v53  ;;  %v4789_v28 = vsel %vm2759_vm1, %v4667_v8, 0.0  ;;  %v4483_v57 = vpop.f32.mrb[181].mxu0  ;;  %v4670_v13 = vadd.f32 %v4669_v31, %v4476_v51  ;;  %v11839_v51 = vld [vmem:[#allocation65_spill] sm:$0xff] }
 0x6df   : > { %v4829_v19 = vadd.f32 %v4789_v28, %v2731_v42  ;;  %v4484_v9 = vpop.f32.mrb[182].mxu0  ;;  %v2738_v5 = vsel %vm461_vm0, %v11839_v51, 0.0  ;;  %v11840_v28 = vld [vmem:[#allocation67_spill] sm:$0xff]  ;;  %v11847_v51 = vld [vmem:[#allocation18_spill] sm:$0xff] }
 0x6e0   : > { %v4791_v56 = vsel %vm2759_vm1, %v4675_v25, 0.0  ;;  %v4678_v41 = vadd.f32 %v6123_v33, %v4484_v9  ;;  %v4790_v63 = vsel %vm2759_vm1, %v4670_v13, 0.0  ;;  %v4486_v1 = vpop.f32.mrb[183].mxu0  ;;  %v2739_v57 = vsel %vm461_vm0, %v11840_v28, 0.0  ;;  %v11841_v9 = vld [vmem:[#allocation85_spill] sm:$0xff] }
 0x6e1   : > { %v4831_v37 = vadd.f32 %v4791_v56, %v2733_v12  ;;  %v4830_v35 = vadd.f32 %v4790_v63, %v2732_v48  ;;  %v2740_v2 = vsel %vm461_vm0, %v11841_v9, 0.0 }
 0x6e2   : > { %v4792_v11 = vsel %vm2759_vm1, %v4678_v41, 0.0 }
 0x6e3   : > { %v4832_v45 = vadd.f32 %v4792_v11, %v2734_v14  ;;  %v5662_v6 = vpack.c.bf16 %v4830_v35, %v4829_v19  ;;  %v2741_v14 = vsel %vm461_vm0, %v11842_v30, 0.0 }
 0x6e5   : > { %v5667_v49 = vpack.c.bf16 %v4832_v45, %v4831_v37  ;;  %5734 = vst [vmem:[%s10557_s6 + $0x30] sm:$0xff] %v5662_v6   ;;  %v4489_v22 = vpop.f32.mrb[184].mxu0  ;;  %v6126_v10 = vpop.f32.mrb[224].mxu1 }
 0x6e6   : > { %v4491_v34 = vpop.f32.mrb[185].mxu0  ;;  %v4682_v20 = vpop.f32.mrb[225].mxu1 }
 0x6e7   : > { %5735 = vst [vmem:[%s10557_s6 + $0x38] sm:$0xff] %v5667_v49   ;;  %v4492_v40 = vpop.f32.mrb[186].mxu0  ;;  %v4683_v62 = vadd.f32 %v4682_v20, %v4489_v22  ;;  %v6127_v60 = vpop.f32.mrb[226].mxu1  ;;  %v11843_v22 = vld [vmem:[#allocation14_spill] sm:$0xff] }
 0x6e8   : > { %v4494_v26 = vpop.f32.mrb[187].mxu0  ;;  %v4685_v43 = vpop.f32.mrb[227].mxu1 }
 0x6e9   : > { %v4793_v7 = vsel %vm2759_vm1, %v4683_v62, 0.0  ;;  %v4686_v58 = vadd.f32 %v4685_v43, %v4492_v40 }
 0x6ea   : > { %v4833_v27 = vadd.f32 %v4793_v7, %v2735_v38 }
 0x6eb   : > { %v4794_v39 = vsel %vm2759_vm1, %v4686_v58, 0.0 }
 0x6ec   : > { %v4834_v52 = vadd.f32 %v4794_v39, %v2736_v59  ;;  %v11844_v39 = vld [vmem:[#allocation70_spill] sm:$0xff] }
 0x6ed   : > { %v4497_v21 = vpop.f32.mrb[188].mxu0 }
 0x6ee   : > { %v4691_v29 = vadd.f32 %v6126_v10, %v4497_v21  ;;  %v4499_v46 = vpop.f32.mrb[189].mxu0  ;;  %v5672_v4 = vpack.c.bf16 %v4834_v52, %v4833_v27  ;;  %v2742_v10 = vsel %vm461_vm0, %v11843_v22, 0.0  ;;  %v2745_v52 = vsel %vm461_vm0, %v11844_v39, 0.0  ;;  %v11845_v21 = vld [vmem:[#allocation21_spill] sm:$0xff]  ;;  %v11850_v22 = vld [vmem:[#allocation20_spill] sm:$0xff] }
 0x6ef   : > { %v4500_v47 = vpop.f32.mrb[190].mxu0 }
 0x6f0   : > { %v4795_v54 = vsel %vm2759_vm1, %v4691_v29, 0.0  ;;  %v4694_v18 = vadd.f32 %v6127_v60, %v4500_v47  ;;  %5736 = vst [vmem:[%s10557_s6 + $0x40] sm:$0xff] %v5672_v4   ;;  %v4502_v50 = vpop.f32.mrb[191].mxu0  ;;  %v6130_v36 = vpop.f32.mrb[228].mxu1  ;;  %v2743_v29 = vsel %vm461_vm0, %v11845_v21, 0.0 }
 0x6f1   : > { %v4835_v0 = vadd.f32 %v4795_v54, %v2737_v15  ;;  %v4698_v61 = vpop.f32.mrb[229].mxu1 }
 0x6f2   : > { %v4796_v3 = vsel %vm2759_vm1, %v4694_v18, 0.0  ;;  %v6131_v32 = vpop.f32.mrb[230].mxu1 }
 0x6f3   : > { %v4836_v8 = vadd.f32 %v4796_v3, %v2738_v5  ;;  %v4701_v33 = vpop.f32.mrb[231].mxu1  ;;  %v2744_v5 = vsel %vm461_vm0, %v11847_v51, 0.0 }
 0x6f5   : > { %v5677_v53 = vpack.c.bf16 %v4836_v8, %v4835_v0  ;;  %v4505_v31 = vpop.f32.mrb[192].mxu0  ;;  %v11846_v0 = vld [vmem:[#allocation17_spill] sm:$0xff] }
 0x6f6   : > { %v4507_v16 = vpop.f32.mrb[193].mxu0  ;;  %v4699_v42 = vadd.f32 %v4698_v61, %v4505_v31  ;;  %v2746_v61 = vsel %vm461_vm0, %v11846_v0, 0.0 }
 0x6f7   : > { %5737 = vst [vmem:[%s10557_s6 + $0x48] sm:$0xff] %v5677_v53   ;;  %v4508_v25 = vpop.f32.mrb[194].mxu0 }
 0x6f8   : > { %v4510_v13 = vpop.f32.mrb[195].mxu0  ;;  %v4797_v17 = vsel %vm2759_vm1, %v4699_v42, 0.0  ;;  %v4702_v48 = vadd.f32 %v4701_v33, %v4508_v25 }
 0x6f9   : > { %v4837_v19 = vadd.f32 %v4797_v17, %v2739_v57 }
 0x6fa   : > { %v4798_v12 = vsel %vm2759_vm1, %v4702_v48, 0.0 }
 0x6fb   : > { %v4838_v56 = vadd.f32 %v4798_v12, %v2740_v2  ;;  %v11848_v12 = vld [vmem:[#allocation23_spill] sm:$0xff] }
 0x6fd   : > { %v4513_v41 = vpop.f32.mrb[196].mxu0  ;;  %v5682_v63 = vpack.c.bf16 %v4838_v56, %v4837_v19  ;;  %v2749_v56 = vsel %vm461_vm0, %v11848_v12, 0.0 }
 0x6fe   : > { %v4707_v1 = vadd.f32 %v6130_v36, %v4513_v41  ;;  %v4515_v37 = vpop.f32.mrb[197].mxu0  ;;  %v11849_v41 = vld [vmem:[#allocation40_spill] sm:$0xff] }
 0x6ff   : > { %v4516_v35 = vpop.f32.mrb[198].mxu0  ;;  %5738 = vst [vmem:[%s10557_s6 + $0x50] sm:$0xff] %v5682_v63   ;;  %v2747_v63 = vsel %vm461_vm0, %v11849_v41, 0.0 }
 0x700   : > { %v4799_v11 = vsel %vm2759_vm1, %v4707_v1, 0.0  ;;  %v4710_v45 = vadd.f32 %v6131_v32, %v4516_v35  ;;  %v4518_v6 = vpop.f32.mrb[199].mxu0 }
 0x701   : > { %v4839_v49 = vadd.f32 %v4799_v11, %v2741_v14 }
 0x702   : > { %v4800_v34 = vsel %vm2759_vm1, %v4710_v45, 0.0 }
 0x703   : > { %v4840_v20 = vadd.f32 %v4800_v34, %v2742_v10  ;;  %v2750_v10 = vsel %vm461_vm0, %v11850_v22, 0.0  ;;  %v11851_v34 = vld [vmem:[#allocation19_spill] sm:$0xff] }
 0x705   : > { %v5687_v40 = vpack.c.bf16 %v4840_v20, %v4839_v49  ;;  %v2748_v20 = vsel %vm461_vm0, %v11851_v34, 0.0 }
 0x707   : > { %5739 = vst [vmem:[%s10557_s6 + $0x58] sm:$0xff] %v5687_v40  }
 0x743   : > { %v4521_v62 = vpop.f32.mrb[200].mxu0 }
 0x744   : > { %v4523_v60 = vpop.f32.mrb[201].mxu0 }
 0x745   : > { %v4524_v26 = vpop.f32.mrb[202].mxu0 }
 0x746   : > { %v4526_v43 = vpop.f32.mrb[203].mxu0 }
 0x74b   : > { %v6134_v24 = vpop.f32.mrb[232].mxu1 }
 0x74c   : > { %v4529_v38 = vpop.f32.mrb[204].mxu0  ;;  %v4714_v7 = vpop.f32.mrb[233].mxu1 }
 0x74d   : > { %v4723_v58 = vadd.f32 %v6134_v24, %v4529_v38  ;;  %v4715_v27 = vadd.f32 %v4714_v7, %v4521_v62  ;;  %v4531_v55 = vpop.f32.mrb[205].mxu0  ;;  %v6135_v59 = vpop.f32.mrb[234].mxu1 }
 0x74e   : > { %v4532_v46 = vpop.f32.mrb[206].mxu0  ;;  %v4717_v4 = vpop.f32.mrb[235].mxu1 }
 0x74f   : > { %v4803_v47 = vsel %vm2759_vm1, %v4723_v58, 0.0  ;;  %v4801_v44 = vsel %vm2759_vm1, %v4715_v27, 0.0  ;;  %v4726_v15 = vadd.f32 %v6135_v59, %v4532_v46  ;;  %v4718_v54 = vadd.f32 %v4717_v4, %v4524_v26  ;;  %v4534_v18 = vpop.f32.mrb[207].mxu0  ;;  %v11852_v4 = vld [vmem:[#allocation69_spill] sm:$0xff] }
 0x750   : > { %v4843_v50 = vadd.f32 %v4803_v47, %v2745_v52  ;;  %v4841_v36 = vadd.f32 %v4801_v44, %v2743_v29  ;;  %v2753_v47 = vsel %vm461_vm0, %v11852_v4, 0.0  ;;  %v11853_v44 = vld [vmem:[#allocation74_spill] sm:$0xff]  ;;  %v5097_v4 = vld [vmem:[%s10557_s6 + $0x1c] sm:$0xf] (%p7096_p6) }
 0x751   : > { %v4804_v3 = vsel %vm2759_vm1, %v4726_v15, 0.0  ;;  %v4802_v32 = vsel %vm2759_vm1, %v4718_v54, 0.0  ;;  %v2751_v15 = vsel %vm461_vm0, %v11853_v44, 0.0  ;;  %v5101_v44 = vld [vmem:[%s10557_s6 + $0x24] sm:$0xf] (%p7096_p6) }
 0x752   : > { %v4844_v8 = vadd.f32 %v4804_v3, %v2746_v61  ;;  %v4842_v33 = vadd.f32 %v4802_v32, %v2744_v5  ;;  %v11854_v32 = vld [vmem:[#allocation68_spill] sm:$0xff]  ;;  %5098 = vst [vmem:[%s10776_s22 + $0x38] sm:$0xf] (%p7096_p6), %v5097_v4  ;;  %5102 = vst [vmem:[%s10776_s22 + $0x48] sm:$0xf] (%p7096_p6), %v5101_v44 }
 0x754   : > { %v5697_v53 = vpack.c.bf16 %v4844_v8, %v4843_v50  ;;  %v5692_v31 = vpack.c.bf16 %v4842_v33, %v4841_v36  ;;  %v2754_v8 = vsel %vm461_vm0, %v11854_v32, 0.0  ;;  %v11855_v33 = vld [vmem:[#allocation24_spill] sm:$0xff]  ;;  %v5123_v32 = vld [vmem:[%s10557_s6 + $0x50] sm:$0xf] (%p7096_p6) }
 0x755   : > { %v4537_v16 = vpop.f32.mrb[208].mxu0  ;;  %5124 = vst [vmem:[%s10776_s22 + $0xa0] sm:$0xf] (%p7096_p6), %v5123_v32 }
 0x756   : > { %5741 = vst [vmem:[%s10557_s6 + $0x68] sm:$0xff] %v5697_v53   ;;  %5740 = vst [vmem:[%s10557_s6 + $0x60] sm:$0xff] %v5692_v31   ;;  %v4539_v42 = vpop.f32.mrb[209].mxu0  ;;  %v2752_v53 = vsel %vm461_vm0, %v11855_v33, 0.0  ;;  %v5127_v33 = vld [vmem:[%s10557_s6 + $0x58] sm:$0xf] (%p7096_p6) }
 0x757   : > { %v4540_v25 = vpop.f32.mrb[210].mxu0  ;;  %5128 = vst [vmem:[%s10776_s22 + $0xb0] sm:$0xf] (%p7096_p6), %v5127_v33 }
 0x758   : > { %v4542_v28 = vpop.f32.mrb[211].mxu0 }
 0x75d   : > { %v6138_v57 = vpop.f32.mrb[236].mxu1 }
 0x75e   : > { %v4545_v13 = vpop.f32.mrb[212].mxu0  ;;  %v4730_v17 = vpop.f32.mrb[237].mxu1 }
 0x75f   : > { %v4739_v48 = vadd.f32 %v6138_v57, %v4545_v13  ;;  %v4731_v19 = vadd.f32 %v4730_v17, %v4537_v16  ;;  %v4547_v9 = vpop.f32.mrb[213].mxu0  ;;  %v6139_v2 = vpop.f32.mrb[238].mxu1 }
 0x760   : > { %v4548_v1 = vpop.f32.mrb[214].mxu0  ;;  %v4733_v37 = vpop.f32.mrb[239].mxu1 }
 0x761   : > { %v4807_v35 = vsel %vm2759_vm1, %v4739_v48, 0.0  ;;  %v4805_v30 = vsel %vm2759_vm1, %v4731_v19, 0.0  ;;  %v4742_v14 = vadd.f32 %v6139_v2, %v4548_v1  ;;  %v4734_v11 = vadd.f32 %v4733_v37, %v4540_v25  ;;  %v4550_v45 = vpop.f32.mrb[215].mxu0  ;;  %v11856_v1 = vld [vmem:[#allocation53_spill] sm:$0xff] }
 0x762   : > { %v4847_v6 = vadd.f32 %v4807_v35, %v2749_v56  ;;  %v4845_v49 = vadd.f32 %v4805_v30, %v2747_v63  ;;  %v2755_v37 = vsel %vm461_vm0, %v11856_v1, 0.0  ;;  %v11857_v45 = vld [vmem:[#allocation25_spill] sm:$0xff] }
 0x763   : > { %v4808_v40 = vsel %vm2759_vm1, %v4742_v14, 0.0  ;;  %v4806_v62 = vsel %vm2759_vm1, %v4734_v11, 0.0 }
 0x764   : > { %v4848_v60 = vadd.f32 %v4808_v40, %v2750_v10  ;;  %v4846_v26 = vadd.f32 %v4806_v62, %v2748_v20  ;;  %v11858_v10 = vld [vmem:[#allocation73_spill] sm:$0xff] }
 0x765   : > { %v2757_v34 = vsel %vm461_vm0, %v11858_v10, 0.0 }
 0x766   : > { %v5707_v43 = vpack.c.bf16 %v4848_v60, %v4847_v6  ;;  %v5702_v24 = vpack.c.bf16 %v4846_v26, %v4845_v49  ;;  %v4553_v38 = vpop.f32.mrb[216].mxu0  ;;  %v2756_v6 = vsel %vm461_vm0, %v11857_v45, 0.0 }
 0x767   : > { %v4555_v7 = vpop.f32.mrb[217].mxu0 }
 0x768   : > { %5743 = vst [vmem:[%s10557_s6 + $0x78] sm:$0xff] %v5707_v43   ;;  %5742 = vst [vmem:[%s10557_s6 + $0x70] sm:$0xff] %v5702_v24   ;;  %v4556_v58 = vpop.f32.mrb[218].mxu0  ;;  %v11859_v24 = vld [vmem:[#allocation71_spill] sm:$0xff] }
 0x769   : > { %v4558_v27 = vpop.f32.mrb[219].mxu0 }
 0x76e   : > { %v6142_v55 = vpop.f32.mrb[240].mxu1 }
 0x76f   : > { %v4561_v59 = vpop.f32.mrb[220].mxu0  ;;  %v4746_v39 = vpop.f32.mrb[241].mxu1 }
 0x770   : > { %v4755_v52 = vadd.f32 %v6142_v55, %v4561_v59  ;;  %v4747_v21 = vadd.f32 %v4746_v39, %v4553_v38  ;;  %v4563_v29 = vpop.f32.mrb[221].mxu0  ;;  %v6143_v46 = vpop.f32.mrb[242].mxu1  ;;  %v2758_v38 = vsel %vm461_vm0, %v11859_v24, 0.0  ;;  %v5085_v59 = vld [vmem:[%s10557_s6 + $0x4] sm:$0xf] (%p7096_p6) }
 0x771   : > { %v4564_v54 = vpop.f32.mrb[222].mxu0  ;;  %v4749_v18 = vpop.f32.mrb[243].mxu1  ;;  %v5087_v39 = vld [vmem:[%s10557_s6 + $0x8] sm:$0xf] (%p7096_p6)  ;;  %v5093_v29 = vld [vmem:[%s10557_s6 + $0x14] sm:$0xf] (%p7096_p6) }
 0x772   : > { %v4811_v50 = vsel %vm2759_vm1, %v4755_v52, 0.0  ;;  %v4809_v36 = vsel %vm2759_vm1, %v4747_v21, 0.0  ;;  %v4758_v0 = vadd.f32 %v6143_v46, %v4564_v54  ;;  %v4750_v61 = vadd.f32 %v4749_v18, %v4556_v58  ;;  %v4566_v51 = vpop.f32.mrb[223].mxu0  ;;  %v5089_v52 = vld [vmem:[%s10557_s6 + $0xc] sm:$0xf] (%p7096_p6) }
 0x773   : > { %v4851_v5 = vadd.f32 %v4811_v50, %v2753_v47  ;;  %v4849_v3 = vadd.f32 %v4809_v36, %v2751_v15  ;;  %v5091_v21 = vld [vmem:[%s10557_s6 + $0x10] sm:$0xf] (%p7096_p6)  ;;  %v5095_v46 = vld [vmem:[%s10557_s6 + $0x18] sm:$0xf] (%p7096_p6)  ;;  %v5099_v47 = vld [vmem:[%s10557_s6 + $0x20] sm:$0xf] (%p7096_p6) }
 0x774   : > { %v4812_v31 = vsel %vm2759_vm1, %v4758_v0, 0.0  ;;  %v4810_v16 = vsel %vm2759_vm1, %v4750_v61, 0.0  ;;  %v5103_v15 = vld [vmem:[%s10557_s6 + $0x28] sm:$0xf] (%p7096_p6)  ;;  %v5105_v54 = vld [vmem:[%s10557_s6 + $0x2c] sm:$0xf] (%p7096_p6) }
 0x775   : > { %v4852_v42 = vadd.f32 %v4812_v31, %v2754_v8  ;;  %v4850_v25 = vadd.f32 %v4810_v16, %v2752_v53  ;;  %v5107_v18 = vld [vmem:[%s10557_s6 + $0x30] sm:$0xf] (%p7096_p6)  ;;  %5086 = vst [vmem:[%s10776_s22 + $0x8] sm:$0xf] (%p7096_p6), %v5085_v59  ;;  %5088 = vst [vmem:[%s10776_s22 + $0x10] sm:$0xf] (%p7096_p6), %v5087_v39 }
 0x776   : > { %5090 = vst [vmem:[%s10776_s22 + $0x18] sm:$0xf] (%p7096_p6), %v5089_v52  ;;  %5092 = vst [vmem:[%s10776_s22 + $0x20] sm:$0xf] (%p7096_p6), %v5091_v21  ;;  %v5109_v50 = vld [vmem:[%s10557_s6 + $0x34] sm:$0xf] (%p7096_p6) }
 0x777   : > { %v5717_v28 = vpack.c.bf16 %v4852_v42, %v4851_v5  ;;  %v5712_v57 = vpack.c.bf16 %v4850_v25, %v4849_v3  ;;  %v4569_v13 = vpop.f32.mrb[224].mxu0  ;;  %5094 = vst [vmem:[%s10776_s22 + $0x28] sm:$0xf] (%p7096_p6), %v5093_v29  ;;  %5096 = vst [vmem:[%s10776_s22 + $0x30] sm:$0xf] (%p7096_p6), %v5095_v46 }
 0x778   : > { %v4571_v17 = vpop.f32.mrb[225].mxu0  ;;  %5100 = vst [vmem:[%s10776_s22 + $0x40] sm:$0xf] (%p7096_p6), %v5099_v47  ;;  %5104 = vst [vmem:[%s10776_s22 + $0x50] sm:$0xf] (%p7096_p6), %v5103_v15 }
 0x779   : > { %5745 = vst [vmem:[%s10557_s6 + $0x88] sm:$0xff] %v5717_v28   ;;  %5744 = vst [vmem:[%s10557_s6 + $0x80] sm:$0xff] %v5712_v57   ;;  %v4572_v48 = vpop.f32.mrb[226].mxu0  ;;  %v5111_v36 = vld [vmem:[%s10557_s6 + $0x38] sm:$0xf] (%p7096_p6) }
 0x77a   : > { %v4574_v19 = vpop.f32.mrb[227].mxu0  ;;  %5106 = vst [vmem:[%s10776_s22 + $0x58] sm:$0xf] (%p7096_p6), %v5105_v54  ;;  %5108 = vst [vmem:[%s10776_s22 + $0x60] sm:$0xf] (%p7096_p6), %v5107_v18 }
 0x77b   : > { %v5113_v0 = vld [vmem:[%s10557_s6 + $0x3c] sm:$0xf] (%p7096_p6)  ;;  %5110 = vst [vmem:[%s10776_s22 + $0x68] sm:$0xf] (%p7096_p6), %v5109_v50  ;;  %5112 = vst [vmem:[%s10776_s22 + $0x70] sm:$0xf] (%p7096_p6), %v5111_v36 }
 0x77c   : > { %v6146_v9 = vpop.f32.mrb[244].mxu1  ;;  %5114 = vst [vmem:[%s10776_s22 + $0x78] sm:$0xf] (%p7096_p6), %v5113_v0  ;;  %v5115_v61 = vld [vmem:[%s10557_s6 + $0x40] sm:$0xf] (%p7096_p6) }
 0x77d   : > { %v4762_v2 = vpop.f32.mrb[245].mxu1  ;;  %v5117_v51 = vld [vmem:[%s10557_s6 + $0x44] sm:$0xf] (%p7096_p6)  ;;  %v5119_v5 = vld [vmem:[%s10557_s6 + $0x48] sm:$0xf] (%p7096_p6) }
 0x77e   : > { %v4763_v12 = vadd.f32 %v4762_v2, %v4569_v13  ;;  %v6147_v56 = vpop.f32.mrb[246].mxu1  ;;  %5116 = vst [vmem:[%s10776_s22 + $0x80] sm:$0xf] (%p7096_p6), %v5115_v61  ;;  %5118 = vst [vmem:[%s10776_s22 + $0x88] sm:$0xf] (%p7096_p6), %v5117_v51 }
 0x77f   : > { %v4577_v41 = vpop.f32.mrb[228].mxu0  ;;  %v4765_v63 = vpop.f32.mrb[247].mxu1  ;;  %5120 = vst [vmem:[%s10776_s22 + $0x90] sm:$0xf] (%p7096_p6), %v5119_v5  ;;  %v5121_v3 = vld [vmem:[%s10557_s6 + $0x4c] sm:$0xf] (%p7096_p6) }
 0x780   : > { %v4771_v35 = vadd.f32 %v6146_v9, %v4577_v41  ;;  %v4813_v30 = vsel %vm2759_vm1, %v4763_v12, 0.0  ;;  %v4579_v14 = vpop.f32.mrb[229].mxu0  ;;  %v4766_v11 = vadd.f32 %v4765_v63, %v4572_v48  ;;  %v5125_v8 = vld [vmem:[%s10557_s6 + $0x54] sm:$0xf] (%p7096_p6)  ;;  %5122 = vst [vmem:[%s10776_s22 + $0x98] sm:$0xf] (%p7096_p6), %v5121_v3 }
 0x781   : > { %v4853_v49 = vadd.f32 %v4813_v30, %v2755_v37  ;;  %v4580_v22 = vpop.f32.mrb[230].mxu0  ;;  %5126 = vst [vmem:[%s10776_s22 + $0xa8] sm:$0xf] (%p7096_p6), %v5125_v8  ;;  %v5129_v53 = vld [vmem:[%s10557_s6 + $0x5c] sm:$0xf] (%p7096_p6) }
 0x782   : > { %v4815_v20 = vsel %vm2759_vm1, %v4771_v35, 0.0  ;;  %v4774_v40 = vadd.f32 %v6147_v56, %v4580_v22  ;;  %v4814_v62 = vsel %vm2759_vm1, %v4766_v11, 0.0  ;;  %v4582_v60 = vpop.f32.mrb[231].mxu0  ;;  %v5131_v31 = vld [vmem:[%s10557_s6 + $0x60] sm:$0xf] (%p7096_p6) }
 0x783   : > { %v4855_v26 = vadd.f32 %v4815_v20, %v2757_v34  ;;  %v4854_v43 = vadd.f32 %v4814_v62, %v2756_v6  ;;  %5063 = sbr.rel (!%p7096_p6) target bundleno = 1938 (0x792), region = 54  ;;  %5130 = vst [vmem:[%s10776_s22 + $0xb8] sm:$0xf] (%p7096_p6), %v5129_v53  ;;  %5132 = vst [vmem:[%s10776_s22 + $0xc0] sm:$0xf] (%p7096_p6), %v5131_v31 }
 0x784   : > { %v4816_v7 = vsel %vm2759_vm1, %v4774_v40, 0.0  ;;  %v5133_v16 = vld [vmem:[%s10557_s6 + $0x64] sm:$0xf] (%p7096_p6)  ;;  %v5135_v42 = vld [vmem:[%s10557_s6 + $0x68] sm:$0xf] (%p7096_p6) }
 0x785   : > { %v4856_v58 = vadd.f32 %v4816_v7, %v2758_v38  ;;  %v5722_v27 = vpack.c.bf16 %v4854_v43, %v4853_v49  ;;  %v5137_v25 = vld [vmem:[%s10557_s6 + $0x6c] sm:$0xf] (%p7096_p6)  ;;  %5134 = vst [vmem:[%s10776_s22 + $0xc8] sm:$0xf] (%p7096_p6), %v5133_v16  ;;  %5136 = vst [vmem:[%s10776_s22 + $0xd0] sm:$0xf] (%p7096_p6), %v5135_v42 }
 0x786   : > { %5138 = vst [vmem:[%s10776_s22 + $0xd8] sm:$0xf] (%p7096_p6), %v5137_v25  ;;  %v5139_v28 = vld [vmem:[%s10557_s6 + $0x70] sm:$0xf] (%p7096_p6)  ;;  %v5141_v57 = vld [vmem:[%s10557_s6 + $0x74] sm:$0xf] (%p7096_p6) }
 0x787   : > { %v5727_v55 = vpack.c.bf16 %v4856_v58, %v4855_v26  ;;  %5746 = vst [vmem:[%s10557_s6 + $0x90] sm:$0xff] %v5722_v27   ;;  %v5143_v13 = vld [vmem:[%s10557_s6 + $0x78] sm:$0xf] (%p7096_p6)  ;;  %5140 = vst [vmem:[%s10776_s22 + $0xe0] sm:$0xf] (%p7096_p6), %v5139_v28 }
 0x788   : > { %5142 = vst [vmem:[%s10776_s22 + $0xe8] sm:$0xf] (%p7096_p6), %v5141_v57  ;;  %5144 = vst [vmem:[%s10776_s22 + $0xf0] sm:$0xf] (%p7096_p6), %v5143_v13  ;;  %v5145_v17 = vld [vmem:[%s10557_s6 + $0x7c] sm:$0xf] (%p7096_p6) }
 0x789   : > { %5747 = vst [vmem:[%s10557_s6 + $0x98] sm:$0xff] %v5727_v55   ;;  %v5147_v48 = vld [vmem:[%s10557_s6 + $0x80] sm:$0xf] (%p7096_p6)  ;;  %v5149_v19 = vld [vmem:[%s10557_s6 + $0x84] sm:$0xf] (%p7096_p6) }
 0x78a   : > { %5146 = vst [vmem:[%s10776_s22 + $0xf8] sm:$0xf] %v5145_v17  ;;  %5148 = vst [vmem:[%s10776_s22 + $0x100] sm:$0xf] %v5147_v48  ;;  %v5151_v9 = vld [vmem:[%s10557_s6 + $0x88] sm:$0xf] }
 0x78b   : > { %5150 = vst [vmem:[%s10776_s22 + $0x108] sm:$0xf] %v5149_v19  ;;  %v5153_v2 = vld [vmem:[%s10557_s6 + $0x8c] sm:$0xf]  ;;  %5152 = vst [vmem:[%s10776_s22 + $0x110] sm:$0xf] %v5151_v9 }
 0x78c   : > { %5154 = vst [vmem:[%s10776_s22 + $0x118] sm:$0xf] %v5153_v2 }
 0x78e   : > { %v5155_v12 = vld [vmem:[%s10557_s6 + $0x90] sm:$0xf]  ;;  %v5157_v56 = vld [vmem:[%s10557_s6 + $0x94] sm:$0xf] }
 0x78f   : > { %5156 = vst [vmem:[%s10776_s22 + $0x120] sm:$0xf] %v5155_v12  ;;  %5158 = vst [vmem:[%s10776_s22 + $0x128] sm:$0xf] %v5157_v56 }
 0x790   : > { %v5159_v41 = vld [vmem:[%s10557_s6 + $0x98] sm:$0xf]  ;;  %v5161_v63 = vld [vmem:[%s10557_s6 + $0x9c] sm:$0xf] }
 0x791   : > { %5160 = vst [vmem:[%s10776_s22 + $0x130] sm:$0xf] %v5159_v41  ;;  %5162 = vst [vmem:[%s10776_s22 + $0x138] sm:$0xf] %v5161_v63 }
 0x792 PF: > { %s11_s12 = sadd.s32 1, %s7034_s12   ;;  %s11860_s6 = smov %s7014_s7 }
 0x793   : > { %p8_p12 = scmp.ge.s32.totalorder %s11_s12, 6   ;;  %s11861_s7 = smov %s7104_s21 }
 0x794   : > { %s11862_s8 = smov %s7026_s10  ;;  %s11863_s9 = smov %s7030_s11 }
 0x795   : > { %s11864_s10 = smov %s11867_s13  ;;  %s11865_s11 = smov %s11871_s14 }
 0x796   :  { %10 = sbr.rel (!%p8_p12) target bundleno = 4 (0x4), region = 132 }

</bundles_post_ra>
